<compile_context>
chip_gen: v6e
topology: v6e:2x2x1
jax: 0.10.0
libtpu: 0.0.40
codegen_flags: <defaults>
</compile_context>

<pallas_src>
import numpy as np
from functools import partial

import jax
import jax.numpy as jnp
from jax.experimental import pallas as pl
from jax.experimental.pallas import tpu as pltpu


# ----------------------------------------------------------------------------------
# Host-side constant builders
# ----------------------------------------------------------------------------------
def _bicubic_aa_matrix(in_size, out_size):
    """(out_size, in_size) 1-D resize weights reproducing PyTorch/PIL antialiased
    bicubic (cubic a = -0.5, align_corners=False, clamp + renormalize at borders)."""
    a = -0.5

    def filt(t):
        t = abs(t)
        if t < 1.0:
            return ((a + 2.0) * t - (a + 3.0)) * t * t + 1.0
        if t < 2.0:
            return (((t - 5.0) * t + 8.0) * t - 4.0) * a
        return 0.0

    scale = in_size / out_size
    fscale = max(scale, 1.0)          # antialias widens support only when downsampling
    support = 2.0 * fscale
    m = np.zeros((out_size, in_size), dtype=np.float64)
    for i in range(out_size):
        center = scale * (i + 0.5)
        lo = max(int(center - support + 0.5), 0)
        hi = min(int(center + support + 0.5), in_size)
        w = np.array([filt((j - center + 0.5) / fscale) for j in range(lo, hi)])
        m[i, lo:hi] = w / w.sum()
    return m


def _resize_operators(s):
    """Flattened-spatial bicubic-antialias resize operators, transposed for right-mul."""
    u = _bicubic_aa_matrix(s, 2 * s)                 # (2s, s)
    d = _bicubic_aa_matrix(2 * s, s)                 # (s, 2s)
    up_t = np.kron(u, u).T.astype(np.float32)        # (s*s, 4*s*s)
    down_t = np.kron(d, d).T.astype(np.float32)      # (4*s*s, s*s)
    return up_t, down_t


def _tap_masks(s):
    """(9, 1, s*s) border masks: mask[3*ky+kx] zeroes the wrap-around entries of a
    flattened-spatial roll by (ky-1)*s + (kx-1), reproducing the conv's zero padding."""
    ss = s * s
    hh, ww = np.divmod(np.arange(ss), s)
    m = np.zeros((9, 1, ss), dtype=np.float32)
    for ky in range(3):
        for kx in range(3):
            dy, dx = ky - 1, kx - 1
            ok = (hh + dy >= 0) & (hh + dy < s) & (ww + dx >= 0) & (ww + dx < s)
            m[3 * ky + kx, 0] = ok.astype(np.float32)
    return m


def _fold_bn(w, b, gamma, beta, mean, var, eps):
    """Fold eval-mode BatchNorm2d into the preceding conv ((C,C,3,3) weights, (C,) bias)."""
    scale = gamma / jnp.sqrt(var + eps)
    wf = w * scale[:, None, None, None]
    bf = (b - mean) * scale + beta
    return wf, bf


def _per_row_tap_weights(wf, C, TB):
    """Per-input-row conv-tap weight vectors for the VPU channel mix.

    Rows are laid out r = b*C + c.  For channel offset d and tap k:
      vlo[d*9+k, b*C+ci] = wf[ci-d,   ci, tap k]  if ci >= d else 0
      vhi[d*9+k, b*C+ci] = wf[ci-d+C, ci, tap k]  if ci <  d else 0
    Rotating (vlo*tap) down by d rows / (vhi*tap) down by d-C rows then lands each
    contribution on the right output channel, and the zero weights guarantee that no
    contribution ever crosses a batch-element boundary.
    """
    M = TB * C
    wt = jnp.transpose(wf, (2, 3, 0, 1)).reshape(9, C, C)   # [tap, c_out, c_in]
    ci = np.arange(C)
    vlo, vhi = [], []
    for d in range(C):
        lo_m = (ci >= d).astype(np.float32)
        hi_m = (ci < d).astype(np.float32)
        vlo.append(wt[:, np.clip(ci - d, 0, C - 1), ci] * lo_m)      # (9, C)
        vhi.append(wt[:, np.clip(ci - d + C, 0, C - 1), ci] * hi_m)  # (9, C)
    vlo = jnp.stack(vlo)                                             # (C, 9, C)
    vhi = jnp.stack(vhi)
    vlo = jnp.tile(vlo, (1, 1, TB)).reshape(C * 9, M, 1)
    vhi = jnp.tile(vhi, (1, 1, TB)).reshape(C * 9, M, 1)
    return vlo.astype(jnp.float32), vhi.astype(jnp.float32)


def _split_bf16(a):
    """Split an f32 array into hi + lo bf16 parts (a ~= hi + lo, ~16 mantissa bits)."""
    a = jnp.asarray(a, jnp.float32)
    hi = a.astype(jnp.bfloat16)
    lo = (a - hi.astype(jnp.float32)).astype(jnp.bfloat16)
    return hi, lo


def _pick_batch_tile(B, C):
    """Largest batch tile TB (divisor of B) with TB*C a multiple of 8 and <= 512 rows."""
    tb = 1
    for cand in range(1, B + 1):
        if B % cand:
            continue
        m = cand * C
        if m > 512:
            break
        if (m % 8 == 0) or (cand == B):
            tb = cand
    if (tb * C) % 8 != 0 and tb != B:
        tb = B          # full-array block is always a legal BlockSpec
    return tb


# ----------------------------------------------------------------------------------
# Pallas kernel: one batch tile per grid step, everything fused
# ----------------------------------------------------------------------------------
def _roll_rows(v, shift, size):
    """np.roll along axis 0 (result[i] = v[(i - shift) % size]) via slice + concat;
    only a handful of rows here, and it avoids relying on sublane rotate support."""
    shift = shift % size
    if shift == 0:
        return v
    return jnp.concatenate([v[size - shift:], v[:size - shift]], axis=0)


def residual_block_kernel(x_ref, vlo1_ref, vhi1_ref, b1_ref,
                          vlo2_ref, vhi2_ref, b2_ref,
                          mask_ref, up_hi_ref, up_lo_ref, dn_hi_ref, dn_lo_ref,
                          o_ref, *, C, S, M):
    SS = S * S
    x = x_ref[...]                                   # (M, SS) f32, M = TB*C rows

    def shifted_taps(inp):
        # 9 spatially shifted copies (zero-padded 3x3 taps): XLU lane roll + VPU mask.
        taps = []
        for ky in range(3):
            for kx in range(3):
                off = (ky - 1) * S + (kx - 1)
                if off == 0:
                    taps.append(inp)
                else:
                    rolled = pltpu.roll(inp, (-off) % SS, 1)
                    taps.append(rolled * mask_ref[3 * ky + kx])
        return taps

    def conv3x3(inp, vlo_ref, vhi_ref, b_ref):
        # Channel mix on the VPU: per-row broadcast FMAs + one row rotation per
        # channel offset; zero weights keep different batch elements separate.
        taps = shifted_taps(inp)
        acc = None
        for d in range(C):
            lo = vlo_ref[d * 9] * taps[0]
            for k in range(1, 9):
                lo = lo + vlo_ref[d * 9 + k] * taps[k]
            if d == 0:
                acc = lo
            else:
                acc = acc + _roll_rows(lo, M - d, M)       # out row r <- in row r + d
                hi = vhi_ref[d * 9] * taps[0]
                for k in range(1, 9):
                    hi = hi + vhi_ref[d * 9 + k] * taps[k]
                acc = acc + _roll_rows(hi, C - d, M)       # out row r <- in row r + d - C
        return acc + b_ref[...]

    def mm3(a, w_hi_ref, w_lo_ref):
        # ~Precision.HIGH f32 matmul as 3 single-pass bf16 MXU matmuls (hi/lo split).
        a_hi = a.astype(jnp.bfloat16)
        a_lo = (a - a_hi.astype(jnp.float32)).astype(jnp.bfloat16)
        out = jnp.dot(a_hi, w_hi_ref[...], preferred_element_type=jnp.float32)
        out = out + jnp.dot(a_lo, w_hi_ref[...], preferred_element_type=jnp.float32)
        out = out + jnp.dot(a_hi, w_lo_ref[...], preferred_element_type=jnp.float32)
        return out

    h = conv3x3(x, vlo1_ref, vhi1_ref, b1_ref)             # conv1 (+ folded BN1)
    up = mm3(h, up_hi_ref, up_lo_ref)                      # bicubic-aa upsample x2
    up = jnp.where(up >= 0.0, up, 0.01 * up)               # LeakyReLU(0.01)
    dn = mm3(up, dn_hi_ref, dn_lo_ref)                     # bicubic-aa downsample x2
    h2 = conv3x3(dn, vlo2_ref, vhi2_ref, b2_ref)           # conv2 (+ folded BN2)
    o_ref[...] = (x + h2).astype(o_ref.dtype)              # residual add


# ----------------------------------------------------------------------------------
# Wrapper
# ----------------------------------------------------------------------------------
def residual_block_pallas(x_nchw, w1, b1, w2, b2,
                          gamma1, beta1, mean1, var1,
                          gamma2, beta2, mean2, var2, *, eps=1e-5):
    B, C, H, W = x_nchw.shape
    assert H == W, "ResidualBlock is defined on square spatial inputs"
    S = H
    SS = S * S
    TB = _pick_batch_tile(B, C)
    M = TB * C

    # TODO(synk): training-mode BatchNorm2d (batch statistics over B,H,W) is not computed
    # in-kernel; the running-stats affine (eval semantics) is folded into the convs.
    w1f, b1f = _fold_bn(w1, b1, gamma1, beta1, mean1, var1, eps)
    w2f, b2f = _fold_bn(w2, b2, gamma2, beta2, mean2, var2, eps)

    vlo1, vhi1 = _per_row_tap_weights(w1f, C, TB)            # (C*9, M, 1) each
    vlo2, vhi2 = _per_row_tap_weights(w2f, C, TB)
    b1r = jnp.tile(b1f.astype(jnp.float32), TB).reshape(M, 1)
    b2r = jnp.tile(b2f.astype(jnp.float32), TB).reshape(M, 1)

    masks = jnp.asarray(_tap_masks(S))                       # (9, 1, SS)
    up_np, dn_np = _resize_operators(S)
    up_hi, up_lo = _split_bf16(up_np)                        # (SS, 4*SS) bf16 each
    dn_hi, dn_lo = _split_bf16(dn_np)                        # (4*SS, SS) bf16 each

    x_flat = x_nchw.reshape(B * C, SS).astype(jnp.float32)   # free reshape, no transpose

    const2 = lambda i: (0, 0)
    const3 = lambda i: (0, 0, 0)

    flops = 2 * (2 * B * C * SS * 4 * SS) + 2 * (2 * 9 * B * C * C * SS)
    bytes_accessed = (
        2 * B * C * SS * 4                                          # x in + out
        + (up_hi.size + up_lo.size + dn_hi.size + dn_lo.size) * 2   # bf16 resample ops
        + masks.size * 4
        + (vlo1.size + vhi1.size + vlo2.size + vhi2.size + 2 * M) * 4)

    out_flat = pl.pallas_call(
        partial(residual_block_kernel, C=C, S=S, M=M),
        out_shape=jax.ShapeDtypeStruct((B * C, SS), x_nchw.dtype),
        grid_spec=pltpu.PrefetchScalarGridSpec(
            num_scalar_prefetch=0,
            grid=(B // TB,),
            in_specs=[
                pl.BlockSpec((M, SS), lambda i: (i, 0)),       # x, batch tile fused into M
                pl.BlockSpec((C * 9, M, 1), const3),           # conv1 per-row tap weights (lo)
                pl.BlockSpec((C * 9, M, 1), const3),           # conv1 per-row tap weights (hi)
                pl.BlockSpec((M, 1), const2),                  # conv1 (+bn1) bias rows
                pl.BlockSpec((C * 9, M, 1), const3),           # conv2 per-row tap weights (lo)
                pl.BlockSpec((C * 9, M, 1), const3),           # conv2 per-row tap weights (hi)
                pl.BlockSpec((M, 1), const2),                  # conv2 (+bn2) bias rows
                pl.BlockSpec((9, 1, SS), const3),              # 3x3 border masks
                pl.BlockSpec((SS, 4 * SS), const2),            # bicubic-aa upsample (bf16 hi)
                pl.BlockSpec((SS, 4 * SS), const2),            # bicubic-aa upsample (bf16 lo)
                pl.BlockSpec((4 * SS, SS), const2),            # bicubic-aa downsample (bf16 hi)
                pl.BlockSpec((4 * SS, SS), const2),            # bicubic-aa downsample (bf16 lo)
            ],
            out_specs=pl.BlockSpec((M, SS), lambda i: (i, 0)),
        ),
        compiler_params=pltpu.CompilerParams(
            dimension_semantics=("parallel",),    # batch tiles split across TCs (v7x)
        ),
        cost_estimate=pl.CostEstimate(
            flops=int(flops), transcendentals=0, bytes_accessed=int(bytes_accessed)),
    )(x_flat, vlo1, vhi1, b1r, vlo2, vhi2, b2r, masks, up_hi, up_lo, dn_hi, dn_lo)

    return out_flat.reshape(B, C, H, W)


# ----------------------------------------------------------------------------------
# Pure-JAX reference (independent conv / resize path, full f32 precision)
# ----------------------------------------------------------------------------------
def reference_residual_block(x, w1, b1, w2, b2,
                             gamma1, beta1, mean1, var1,
                             gamma2, beta2, mean2, var2, eps=1e-5):
    S = x.shape[-1]
    U = jnp.asarray(_bicubic_aa_matrix(S, 2 * S), jnp.float32)
    D = jnp.asarray(_bicubic_aa_matrix(2 * S, S), jnp.float32)
    hp = jax.lax.Precision.HIGHEST

    def conv(inp, w, b):
        y = jax.lax.conv_general_dilated(
            inp, w, window_strides=(1, 1), padding="SAME",
            dimension_numbers=("NCHW", "OIHW", "NCHW"), precision=hp)
        return y + b[None, :, None, None]

    def bn(inp, g, be, m, v):
        scale = (g / jnp.sqrt(v + eps))[None, :, None, None]
        return (inp - m[None, :, None, None]) * scale + be[None, :, None, None]

    def act(inp):
        y = jnp.einsum("oh,bchw->bcow", U, inp, precision=hp)
        y = jnp.einsum("bcow,pw->bcop", y, U, precision=hp)
        y = jnp.where(y >= 0, y, 0.01 * y)                       # LeakyReLU(0.01)
        y = jnp.einsum("oh,bchw->bcow", D, y, precision=hp)
        y = jnp.einsum("bcow,pw->bcop", y, D, precision=hp)
        return y

    out = bn(conv(x, w1, b1), gamma1, beta1, mean1, var1)
    out = act(out)
    out = bn(conv(out, w2, b2), gamma2, beta2, mean2, var2)
    return x + out


if __name__ == "__main__":
    B, C, S = 2, 4, 16   # ResidualBlock(channels=4, size=16), batch=2

    key = jax.random.PRNGKey(0)
    ks = jax.random.split(key, 13)

    x = jax.random.normal(ks[0], (B, C, S, S), dtype=jnp.float32)

    w1 = jax.random.normal(ks[1], (C, C, 3, 3), dtype=jnp.float32) * 0.2
    b1 = jax.random.normal(ks[2], (C,), dtype=jnp.float32) * 0.1
    w2 = jax.random.normal(ks[3], (C, C, 3, 3), dtype=jnp.float32) * 0.2
    b2 = jax.random.normal(ks[4], (C,), dtype=jnp.float32) * 0.1

    gamma1 = 1.0 + 0.1 * jax.random.normal(ks[5], (C,), dtype=jnp.float32)
    beta1 = 0.1 * jax.random.normal(ks[6], (C,), dtype=jnp.float32)
    mean1 = 0.1 * jax.random.normal(ks[7], (C,), dtype=jnp.float32)
    var1 = 0.5 + jax.random.uniform(ks[8], (C,), dtype=jnp.float32)

    gamma2 = 1.0 + 0.1 * jax.random.normal(ks[9], (C,), dtype=jnp.float32)
    beta2 = 0.1 * jax.random.normal(ks[10], (C,), dtype=jnp.float32)
    mean2 = 0.1 * jax.random.normal(ks[11], (C,), dtype=jnp.float32)
    var2 = 0.5 + jax.random.uniform(ks[12], (C,), dtype=jnp.float32)

    out = residual_block_pallas(x, w1, b1, w2, b2,
                                gamma1, beta1, mean1, var1,
                                gamma2, beta2, mean2, var2)
    out = jax.block_until_ready(out)

    ref = reference_residual_block(x, w1, b1, w2, b2,
                                   gamma1, beta1, mean1, var1,
                                   gamma2, beta2, mean2, var2)

    assert out.shape == (B, C, S, S)
    max_err = float(jnp.max(jnp.abs(out - ref)))
    # conv / channel mix / rolls are exact f32; only the two resample matmuls run at
    # ~Precision.HIGH (3-pass bf16), so a 3e-3 tolerance against the HIGHEST reference
    # leaves ample margin while still catching any structural bug (those are O(0.1+)).
    assert jnp.allclose(out, ref, atol=3e-3, rtol=3e-3), f"max abs err {max_err}"

    print("KERNEL_OK")
</pallas_src>

<mosaic_0001>
module attributes {stable_mosaic.version = 11 : i64} {
  func.func @residual_block_kernel(%arg0: i32, %arg1: memref<8x256xf32, #tpu.memory_space<vmem>>, %arg2: memref<36x8x1xf32, #tpu.memory_space<vmem>>, %arg3: memref<36x8x1xf32, #tpu.memory_space<vmem>>, %arg4: memref<8x1xf32, #tpu.memory_space<vmem>>, %arg5: memref<36x8x1xf32, #tpu.memory_space<vmem>>, %arg6: memref<36x8x1xf32, #tpu.memory_space<vmem>>, %arg7: memref<8x1xf32, #tpu.memory_space<vmem>>, %arg8: memref<9x1x256xf32, #tpu.memory_space<vmem>>, %arg9: memref<256x1024xbf16, #tpu.memory_space<vmem>>, %arg10: memref<256x1024xbf16, #tpu.memory_space<vmem>>, %arg11: memref<1024x256xbf16, #tpu.memory_space<vmem>>, %arg12: memref<1024x256xbf16, #tpu.memory_space<vmem>>, %arg13: memref<8x256xf32, #tpu.memory_space<vmem>>) attributes {dimension_semantics = [#tpu.dimension_semantics<parallel>], iteration_bounds = array<i64: 1>, scalar_prefetch = 0 : i64, scratch_operands = 0 : i64, tpu.core_type = #tpu.core_type<tc>, window_params = [{transform_indices = @transform_0, window_bounds = array<i64: 8, 256>}, {pipeline_mode = #tpu.pipeline_mode<synchronous>, transform_indices = @transform_1, window_bounds = array<i64: 36, 8, 1>}, {pipeline_mode = #tpu.pipeline_mode<synchronous>, transform_indices = @transform_2, window_bounds = array<i64: 36, 8, 1>}, {pipeline_mode = #tpu.pipeline_mode<synchronous>, transform_indices = @transform_3, window_bounds = array<i64: 8, 1>}, {pipeline_mode = #tpu.pipeline_mode<synchronous>, transform_indices = @transform_4, window_bounds = array<i64: 36, 8, 1>}, {pipeline_mode = #tpu.pipeline_mode<synchronous>, transform_indices = @transform_5, window_bounds = array<i64: 36, 8, 1>}, {pipeline_mode = #tpu.pipeline_mode<synchronous>, transform_indices = @transform_6, window_bounds = array<i64: 8, 1>}, {pipeline_mode = #tpu.pipeline_mode<synchronous>, transform_indices = @transform_7, window_bounds = array<i64: 9, 1, 256>}, {pipeline_mode = #tpu.pipeline_mode<synchronous>, transform_indices = @transform_8, window_bounds = array<i64: 256, 1024>}, {pipeline_mode = #tpu.pipeline_mode<synchronous>, transform_indices = @transform_9, window_bounds = array<i64: 256, 1024>}, {pipeline_mode = #tpu.pipeline_mode<synchronous>, transform_indices = @transform_10, window_bounds = array<i64: 1024, 256>}, {pipeline_mode = #tpu.pipeline_mode<synchronous>, transform_indices = @transform_11, window_bounds = array<i64: 1024, 256>}, {transform_indices = @transform_12, window_bounds = array<i64: 8, 256>}]} {
    %c0 = arith.constant 0 : index
    %c0_0 = arith.constant 0 : index
    %0 = vector.load %arg1[%c0, %c0_0] : memref<8x256xf32, #tpu.memory_space<vmem>>, vector<8x256xf32>
    %c17_i32 = arith.constant 17 : i32
    %1 = tpu.dynamic_rotate %0 by %c17_i32 dim 1 : vector<8x256xf32>, i32 -> vector<8x256xf32>
    %c0_1 = arith.constant 0 : index
    %c0_2 = arith.constant 0 : index
    %c0_3 = arith.constant 0 : index
    %2 = vector.load %arg8[%c0_1, %c0_2, %c0_3] : memref<9x1x256xf32, #tpu.memory_space<vmem>>, vector<1x1x256xf32>
    %3 = vector.shape_cast %2 : vector<1x1x256xf32> to vector<1x256xf32>
    %4 = vector.broadcast %3 : vector<1x256xf32> to vector<8x256xf32>
    %5 = arith.mulf %1, %4 : vector<8x256xf32>
    %c16_i32 = arith.constant 16 : i32
    %6 = tpu.dynamic_rotate %0 by %c16_i32 dim 1 : vector<8x256xf32>, i32 -> vector<8x256xf32>
    %c1 = arith.constant 1 : index
    %c0_4 = arith.constant 0 : index
    %c0_5 = arith.constant 0 : index
    %7 = vector.load %arg8[%c1, %c0_4, %c0_5] : memref<9x1x256xf32, #tpu.memory_space<vmem>>, vector<1x1x256xf32>
    %8 = vector.shape_cast %7 : vector<1x1x256xf32> to vector<1x256xf32>
    %9 = vector.broadcast %8 : vector<1x256xf32> to vector<8x256xf32>
    %10 = arith.mulf %6, %9 : vector<8x256xf32>
    %c15_i32 = arith.constant 15 : i32
    %11 = tpu.dynamic_rotate %0 by %c15_i32 dim 1 : vector<8x256xf32>, i32 -> vector<8x256xf32>
    %c2 = arith.constant 2 : index
    %c0_6 = arith.constant 0 : index
    %c0_7 = arith.constant 0 : index
    %12 = vector.load %arg8[%c2, %c0_6, %c0_7] : memref<9x1x256xf32, #tpu.memory_space<vmem>>, vector<1x1x256xf32>
    %13 = vector.shape_cast %12 : vector<1x1x256xf32> to vector<1x256xf32>
    %14 = vector.broadcast %13 : vector<1x256xf32> to vector<8x256xf32>
    %15 = arith.mulf %11, %14 : vector<8x256xf32>
    %c1_i32 = arith.constant 1 : i32
    %16 = tpu.dynamic_rotate %0 by %c1_i32 dim 1 : vector<8x256xf32>, i32 -> vector<8x256xf32>
    %c3 = arith.constant 3 : index
    %c0_8 = arith.constant 0 : index
    %c0_9 = arith.constant 0 : index
    %17 = vector.load %arg8[%c3, %c0_8, %c0_9] : memref<9x1x256xf32, #tpu.memory_space<vmem>>, vector<1x1x256xf32>
    %18 = vector.shape_cast %17 : vector<1x1x256xf32> to vector<1x256xf32>
    %19 = vector.broadcast %18 : vector<1x256xf32> to vector<8x256xf32>
    %20 = arith.mulf %16, %19 : vector<8x256xf32>
    %c255_i32 = arith.constant 255 : i32
    %21 = tpu.dynamic_rotate %0 by %c255_i32 dim 1 : vector<8x256xf32>, i32 -> vector<8x256xf32>
    %c5 = arith.constant 5 : index
    %c0_10 = arith.constant 0 : index
    %c0_11 = arith.constant 0 : index
    %22 = vector.load %arg8[%c5, %c0_10, %c0_11] : memref<9x1x256xf32, #tpu.memory_space<vmem>>, vector<1x1x256xf32>
    %23 = vector.shape_cast %22 : vector<1x1x256xf32> to vector<1x256xf32>
    %24 = vector.broadcast %23 : vector<1x256xf32> to vector<8x256xf32>
    %25 = arith.mulf %21, %24 : vector<8x256xf32>
    %c241_i32 = arith.constant 241 : i32
    %26 = tpu.dynamic_rotate %0 by %c241_i32 dim 1 : vector<8x256xf32>, i32 -> vector<8x256xf32>
    %c6 = arith.constant 6 : index
    %c0_12 = arith.constant 0 : index
    %c0_13 = arith.constant 0 : index
    %27 = vector.load %arg8[%c6, %c0_12, %c0_13] : memref<9x1x256xf32, #tpu.memory_space<vmem>>, vector<1x1x256xf32>
    %28 = vector.shape_cast %27 : vector<1x1x256xf32> to vector<1x256xf32>
    %29 = vector.broadcast %28 : vector<1x256xf32> to vector<8x256xf32>
    %30 = arith.mulf %26, %29 : vector<8x256xf32>
    %c240_i32 = arith.constant 240 : i32
    %31 = tpu.dynamic_rotate %0 by %c240_i32 dim 1 : vector<8x256xf32>, i32 -> vector<8x256xf32>
    %c7 = arith.constant 7 : index
    %c0_14 = arith.constant 0 : index
    %c0_15 = arith.constant 0 : index
    %32 = vector.load %arg8[%c7, %c0_14, %c0_15] : memref<9x1x256xf32, #tpu.memory_space<vmem>>, vector<1x1x256xf32>
    %33 = vector.shape_cast %32 : vector<1x1x256xf32> to vector<1x256xf32>
    %34 = vector.broadcast %33 : vector<1x256xf32> to vector<8x256xf32>
    %35 = arith.mulf %31, %34 : vector<8x256xf32>
    %c239_i32 = arith.constant 239 : i32
    %36 = tpu.dynamic_rotate %0 by %c239_i32 dim 1 : vector<8x256xf32>, i32 -> vector<8x256xf32>
    %c8 = arith.constant 8 : index
    %c0_16 = arith.constant 0 : index
    %c0_17 = arith.constant 0 : index
    %37 = vector.load %arg8[%c8, %c0_16, %c0_17] : memref<9x1x256xf32, #tpu.memory_space<vmem>>, vector<1x1x256xf32>
    %38 = vector.shape_cast %37 : vector<1x1x256xf32> to vector<1x256xf32>
    %39 = vector.broadcast %38 : vector<1x256xf32> to vector<8x256xf32>
    %40 = arith.mulf %36, %39 : vector<8x256xf32>
    %c0_18 = arith.constant 0 : index
    %c0_19 = arith.constant 0 : index
    %c0_20 = arith.constant 0 : index
    %41 = vector.load %arg2[%c0_18, %c0_19, %c0_20] : memref<36x8x1xf32, #tpu.memory_space<vmem>>, vector<1x8x1xf32>
    %42 = vector.shape_cast %41 : vector<1x8x1xf32> to vector<8x1xf32>
    %43 = vector.broadcast %42 : vector<8x1xf32> to vector<8x256xf32>
    %44 = arith.mulf %43, %5 : vector<8x256xf32>
    %c1_21 = arith.constant 1 : index
    %c0_22 = arith.constant 0 : index
    %c0_23 = arith.constant 0 : index
    %45 = vector.load %arg2[%c1_21, %c0_22, %c0_23] : memref<36x8x1xf32, #tpu.memory_space<vmem>>, vector<1x8x1xf32>
    %46 = vector.shape_cast %45 : vector<1x8x1xf32> to vector<8x1xf32>
    %47 = vector.broadcast %46 : vector<8x1xf32> to vector<8x256xf32>
    %48 = arith.mulf %47, %10 : vector<8x256xf32>
    %49 = arith.addf %44, %48 : vector<8x256xf32>
    %c2_24 = arith.constant 2 : index
    %c0_25 = arith.constant 0 : index
    %c0_26 = arith.constant 0 : index
    %50 = vector.load %arg2[%c2_24, %c0_25, %c0_26] : memref<36x8x1xf32, #tpu.memory_space<vmem>>, vector<1x8x1xf32>
    %51 = vector.shape_cast %50 : vector<1x8x1xf32> to vector<8x1xf32>
    %52 = vector.broadcast %51 : vector<8x1xf32> to vector<8x256xf32>
    %53 = arith.mulf %52, %15 : vector<8x256xf32>
    %54 = arith.addf %49, %53 : vector<8x256xf32>
    %c3_27 = arith.constant 3 : index
    %c0_28 = arith.constant 0 : index
    %c0_29 = arith.constant 0 : index
    %55 = vector.load %arg2[%c3_27, %c0_28, %c0_29] : memref<36x8x1xf32, #tpu.memory_space<vmem>>, vector<1x8x1xf32>
    %56 = vector.shape_cast %55 : vector<1x8x1xf32> to vector<8x1xf32>
    %57 = vector.broadcast %56 : vector<8x1xf32> to vector<8x256xf32>
    %58 = arith.mulf %57, %20 : vector<8x256xf32>
    %59 = arith.addf %54, %58 : vector<8x256xf32>
    %c4 = arith.constant 4 : index
    %c0_30 = arith.constant 0 : index
    %c0_31 = arith.constant 0 : index
    %60 = vector.load %arg2[%c4, %c0_30, %c0_31] : memref<36x8x1xf32, #tpu.memory_space<vmem>>, vector<1x8x1xf32>
    %61 = vector.shape_cast %60 : vector<1x8x1xf32> to vector<8x1xf32>
    %62 = vector.broadcast %61 : vector<8x1xf32> to vector<8x256xf32>
    %63 = arith.mulf %62, %0 : vector<8x256xf32>
    %64 = arith.addf %59, %63 : vector<8x256xf32>
    %c5_32 = arith.constant 5 : index
    %c0_33 = arith.constant 0 : index
    %c0_34 = arith.constant 0 : index
    %65 = vector.load %arg2[%c5_32, %c0_33, %c0_34] : memref<36x8x1xf32, #tpu.memory_space<vmem>>, vector<1x8x1xf32>
    %66 = vector.shape_cast %65 : vector<1x8x1xf32> to vector<8x1xf32>
    %67 = vector.broadcast %66 : vector<8x1xf32> to vector<8x256xf32>
    %68 = arith.mulf %67, %25 : vector<8x256xf32>
    %69 = arith.addf %64, %68 : vector<8x256xf32>
    %c6_35 = arith.constant 6 : index
    %c0_36 = arith.constant 0 : index
    %c0_37 = arith.constant 0 : index
    %70 = vector.load %arg2[%c6_35, %c0_36, %c0_37] : memref<36x8x1xf32, #tpu.memory_space<vmem>>, vector<1x8x1xf32>
    %71 = vector.shape_cast %70 : vector<1x8x1xf32> to vector<8x1xf32>
    %72 = vector.broadcast %71 : vector<8x1xf32> to vector<8x256xf32>
    %73 = arith.mulf %72, %30 : vector<8x256xf32>
    %74 = arith.addf %69, %73 : vector<8x256xf32>
    %c7_38 = arith.constant 7 : index
    %c0_39 = arith.constant 0 : index
    %c0_40 = arith.constant 0 : index
    %75 = vector.load %arg2[%c7_38, %c0_39, %c0_40] : memref<36x8x1xf32, #tpu.memory_space<vmem>>, vector<1x8x1xf32>
    %76 = vector.shape_cast %75 : vector<1x8x1xf32> to vector<8x1xf32>
    %77 = vector.broadcast %76 : vector<8x1xf32> to vector<8x256xf32>
    %78 = arith.mulf %77, %35 : vector<8x256xf32>
    %79 = arith.addf %74, %78 : vector<8x256xf32>
    %c8_41 = arith.constant 8 : index
    %c0_42 = arith.constant 0 : index
    %c0_43 = arith.constant 0 : index
    %80 = vector.load %arg2[%c8_41, %c0_42, %c0_43] : memref<36x8x1xf32, #tpu.memory_space<vmem>>, vector<1x8x1xf32>
    %81 = vector.shape_cast %80 : vector<1x8x1xf32> to vector<8x1xf32>
    %82 = vector.broadcast %81 : vector<8x1xf32> to vector<8x256xf32>
    %83 = arith.mulf %82, %40 : vector<8x256xf32>
    %84 = arith.addf %79, %83 : vector<8x256xf32>
    %c9 = arith.constant 9 : index
    %c0_44 = arith.constant 0 : index
    %c0_45 = arith.constant 0 : index
    %85 = vector.load %arg2[%c9, %c0_44, %c0_45] : memref<36x8x1xf32, #tpu.memory_space<vmem>>, vector<1x8x1xf32>
    %86 = vector.shape_cast %85 : vector<1x8x1xf32> to vector<8x1xf32>
    %87 = vector.broadcast %86 : vector<8x1xf32> to vector<8x256xf32>
    %88 = arith.mulf %87, %5 : vector<8x256xf32>
    %c10 = arith.constant 10 : index
    %c0_46 = arith.constant 0 : index
    %c0_47 = arith.constant 0 : index
    %89 = vector.load %arg2[%c10, %c0_46, %c0_47] : memref<36x8x1xf32, #tpu.memory_space<vmem>>, vector<1x8x1xf32>
    %90 = vector.shape_cast %89 : vector<1x8x1xf32> to vector<8x1xf32>
    %91 = vector.broadcast %90 : vector<8x1xf32> to vector<8x256xf32>
    %92 = arith.mulf %91, %10 : vector<8x256xf32>
    %93 = arith.addf %88, %92 : vector<8x256xf32>
    %c11 = arith.constant 11 : index
    %c0_48 = arith.constant 0 : index
    %c0_49 = arith.constant 0 : index
    %94 = vector.load %arg2[%c11, %c0_48, %c0_49] : memref<36x8x1xf32, #tpu.memory_space<vmem>>, vector<1x8x1xf32>
    %95 = vector.shape_cast %94 : vector<1x8x1xf32> to vector<8x1xf32>
    %96 = vector.broadcast %95 : vector<8x1xf32> to vector<8x256xf32>
    %97 = arith.mulf %96, %15 : vector<8x256xf32>
    %98 = arith.addf %93, %97 : vector<8x256xf32>
    %c12 = arith.constant 12 : index
    %c0_50 = arith.constant 0 : index
    %c0_51 = arith.constant 0 : index
    %99 = vector.load %arg2[%c12, %c0_50, %c0_51] : memref<36x8x1xf32, #tpu.memory_space<vmem>>, vector<1x8x1xf32>
    %100 = vector.shape_cast %99 : vector<1x8x1xf32> to vector<8x1xf32>
    %101 = vector.broadcast %100 : vector<8x1xf32> to vector<8x256xf32>
    %102 = arith.mulf %101, %20 : vector<8x256xf32>
    %103 = arith.addf %98, %102 : vector<8x256xf32>
    %c13 = arith.constant 13 : index
    %c0_52 = arith.constant 0 : index
    %c0_53 = arith.constant 0 : index
    %104 = vector.load %arg2[%c13, %c0_52, %c0_53] : memref<36x8x1xf32, #tpu.memory_space<vmem>>, vector<1x8x1xf32>
    %105 = vector.shape_cast %104 : vector<1x8x1xf32> to vector<8x1xf32>
    %106 = vector.broadcast %105 : vector<8x1xf32> to vector<8x256xf32>
    %107 = arith.mulf %106, %0 : vector<8x256xf32>
    %108 = arith.addf %103, %107 : vector<8x256xf32>
    %c14 = arith.constant 14 : index
    %c0_54 = arith.constant 0 : index
    %c0_55 = arith.constant 0 : index
    %109 = vector.load %arg2[%c14, %c0_54, %c0_55] : memref<36x8x1xf32, #tpu.memory_space<vmem>>, vector<1x8x1xf32>
    %110 = vector.shape_cast %109 : vector<1x8x1xf32> to vector<8x1xf32>
    %111 = vector.broadcast %110 : vector<8x1xf32> to vector<8x256xf32>
    %112 = arith.mulf %111, %25 : vector<8x256xf32>
    %113 = arith.addf %108, %112 : vector<8x256xf32>
    %c15 = arith.constant 15 : index
    %c0_56 = arith.constant 0 : index
    %c0_57 = arith.constant 0 : index
    %114 = vector.load %arg2[%c15, %c0_56, %c0_57] : memref<36x8x1xf32, #tpu.memory_space<vmem>>, vector<1x8x1xf32>
    %115 = vector.shape_cast %114 : vector<1x8x1xf32> to vector<8x1xf32>
    %116 = vector.broadcast %115 : vector<8x1xf32> to vector<8x256xf32>
    %117 = arith.mulf %116, %30 : vector<8x256xf32>
    %118 = arith.addf %113, %117 : vector<8x256xf32>
    %c16 = arith.constant 16 : index
    %c0_58 = arith.constant 0 : index
    %c0_59 = arith.constant 0 : index
    %119 = vector.load %arg2[%c16, %c0_58, %c0_59] : memref<36x8x1xf32, #tpu.memory_space<vmem>>, vector<1x8x1xf32>
    %120 = vector.shape_cast %119 : vector<1x8x1xf32> to vector<8x1xf32>
    %121 = vector.broadcast %120 : vector<8x1xf32> to vector<8x256xf32>
    %122 = arith.mulf %121, %35 : vector<8x256xf32>
    %123 = arith.addf %118, %122 : vector<8x256xf32>
    %c17 = arith.constant 17 : index
    %c0_60 = arith.constant 0 : index
    %c0_61 = arith.constant 0 : index
    %124 = vector.load %arg2[%c17, %c0_60, %c0_61] : memref<36x8x1xf32, #tpu.memory_space<vmem>>, vector<1x8x1xf32>
    %125 = vector.shape_cast %124 : vector<1x8x1xf32> to vector<8x1xf32>
    %126 = vector.broadcast %125 : vector<8x1xf32> to vector<8x256xf32>
    %127 = arith.mulf %126, %40 : vector<8x256xf32>
    %128 = arith.addf %123, %127 : vector<8x256xf32>
    %129 = vector.extract_strided_slice %128 {offsets = [1, 0], sizes = [7, 256], strides = [1, 1]} : vector<8x256xf32> to vector<7x256xf32>
    %130 = vector.extract_strided_slice %128 {offsets = [0, 0], sizes = [1, 256], strides = [1, 1]} : vector<8x256xf32> to vector<1x256xf32>
    %131 = tpu.concatenate %129, %130 in 0 : vector<7x256xf32>, vector<1x256xf32> -> vector<8x256xf32>
    %132 = arith.addf %84, %131 : vector<8x256xf32>
    %c9_62 = arith.constant 9 : index
    %c0_63 = arith.constant 0 : index
    %c0_64 = arith.constant 0 : index
    %133 = vector.load %arg3[%c9_62, %c0_63, %c0_64] : memref<36x8x1xf32, #tpu.memory_space<vmem>>, vector<1x8x1xf32>
    %134 = vector.shape_cast %133 : vector<1x8x1xf32> to vector<8x1xf32>
    %135 = vector.broadcast %134 : vector<8x1xf32> to vector<8x256xf32>
    %136 = arith.mulf %135, %5 : vector<8x256xf32>
    %c10_65 = arith.constant 10 : index
    %c0_66 = arith.constant 0 : index
    %c0_67 = arith.constant 0 : index
    %137 = vector.load %arg3[%c10_65, %c0_66, %c0_67] : memref<36x8x1xf32, #tpu.memory_space<vmem>>, vector<1x8x1xf32>
    %138 = vector.shape_cast %137 : vector<1x8x1xf32> to vector<8x1xf32>
    %139 = vector.broadcast %138 : vector<8x1xf32> to vector<8x256xf32>
    %140 = arith.mulf %139, %10 : vector<8x256xf32>
    %141 = arith.addf %136, %140 : vector<8x256xf32>
    %c11_68 = arith.constant 11 : index
    %c0_69 = arith.constant 0 : index
    %c0_70 = arith.constant 0 : index
    %142 = vector.load %arg3[%c11_68, %c0_69, %c0_70] : memref<36x8x1xf32, #tpu.memory_space<vmem>>, vector<1x8x1xf32>
    %143 = vector.shape_cast %142 : vector<1x8x1xf32> to vector<8x1xf32>
    %144 = vector.broadcast %143 : vector<8x1xf32> to vector<8x256xf32>
    %145 = arith.mulf %144, %15 : vector<8x256xf32>
    %146 = arith.addf %141, %145 : vector<8x256xf32>
    %c12_71 = arith.constant 12 : index
    %c0_72 = arith.constant 0 : index
    %c0_73 = arith.constant 0 : index
    %147 = vector.load %arg3[%c12_71, %c0_72, %c0_73] : memref<36x8x1xf32, #tpu.memory_space<vmem>>, vector<1x8x1xf32>
    %148 = vector.shape_cast %147 : vector<1x8x1xf32> to vector<8x1xf32>
    %149 = vector.broadcast %148 : vector<8x1xf32> to vector<8x256xf32>
    %150 = arith.mulf %149, %20 : vector<8x256xf32>
    %151 = arith.addf %146, %150 : vector<8x256xf32>
    %c13_74 = arith.constant 13 : index
    %c0_75 = arith.constant 0 : index
    %c0_76 = arith.constant 0 : index
    %152 = vector.load %arg3[%c13_74, %c0_75, %c0_76] : memref<36x8x1xf32, #tpu.memory_space<vmem>>, vector<1x8x1xf32>
    %153 = vector.shape_cast %152 : vector<1x8x1xf32> to vector<8x1xf32>
    %154 = vector.broadcast %153 : vector<8x1xf32> to vector<8x256xf32>
    %155 = arith.mulf %154, %0 : vector<8x256xf32>
    %156 = arith.addf %151, %155 : vector<8x256xf32>
    %c14_77 = arith.constant 14 : index
    %c0_78 = arith.constant 0 : index
    %c0_79 = arith.constant 0 : index
    %157 = vector.load %arg3[%c14_77, %c0_78, %c0_79] : memref<36x8x1xf32, #tpu.memory_space<vmem>>, vector<1x8x1xf32>
    %158 = vector.shape_cast %157 : vector<1x8x1xf32> to vector<8x1xf32>
    %159 = vector.broadcast %158 : vector<8x1xf32> to vector<8x256xf32>
    %160 = arith.mulf %159, %25 : vector<8x256xf32>
    %161 = arith.addf %156, %160 : vector<8x256xf32>
    %c15_80 = arith.constant 15 : index
    %c0_81 = arith.constant 0 : index
    %c0_82 = arith.constant 0 : index
    %162 = vector.load %arg3[%c15_80, %c0_81, %c0_82] : memref<36x8x1xf32, #tpu.memory_space<vmem>>, vector<1x8x1xf32>
    %163 = vector.shape_cast %162 : vector<1x8x1xf32> to vector<8x1xf32>
    %164 = vector.broadcast %163 : vector<8x1xf32> to vector<8x256xf32>
    %165 = arith.mulf %164, %30 : vector<8x256xf32>
    %166 = arith.addf %161, %165 : vector<8x256xf32>
    %c16_83 = arith.constant 16 : index
    %c0_84 = arith.constant 0 : index
    %c0_85 = arith.constant 0 : index
    %167 = vector.load %arg3[%c16_83, %c0_84, %c0_85] : memref<36x8x1xf32, #tpu.memory_space<vmem>>, vector<1x8x1xf32>
    %168 = vector.shape_cast %167 : vector<1x8x1xf32> to vector<8x1xf32>
    %169 = vector.broadcast %168 : vector<8x1xf32> to vector<8x256xf32>
    %170 = arith.mulf %169, %35 : vector<8x256xf32>
    %171 = arith.addf %166, %170 : vector<8x256xf32>
    %c17_86 = arith.constant 17 : index
    %c0_87 = arith.constant 0 : index
    %c0_88 = arith.constant 0 : index
    %172 = vector.load %arg3[%c17_86, %c0_87, %c0_88] : memref<36x8x1xf32, #tpu.memory_space<vmem>>, vector<1x8x1xf32>
    %173 = vector.shape_cast %172 : vector<1x8x1xf32> to vector<8x1xf32>
    %174 = vector.broadcast %173 : vector<8x1xf32> to vector<8x256xf32>
    %175 = arith.mulf %174, %40 : vector<8x256xf32>
    %176 = arith.addf %171, %175 : vector<8x256xf32>
    %177 = vector.extract_strided_slice %176 {offsets = [5, 0], sizes = [3, 256], strides = [1, 1]} : vector<8x256xf32> to vector<3x256xf32>
    %178 = vector.extract_strided_slice %176 {offsets = [0, 0], sizes = [5, 256], strides = [1, 1]} : vector<8x256xf32> to vector<5x256xf32>
    %179 = tpu.concatenate %177, %178 in 0 : vector<3x256xf32>, vector<5x256xf32> -> vector<8x256xf32>
    %180 = arith.addf %132, %179 : vector<8x256xf32>
    %c18 = arith.constant 18 : index
    %c0_89 = arith.constant 0 : index
    %c0_90 = arith.constant 0 : index
    %181 = vector.load %arg2[%c18, %c0_89, %c0_90] : memref<36x8x1xf32, #tpu.memory_space<vmem>>, vector<1x8x1xf32>
    %182 = vector.shape_cast %181 : vector<1x8x1xf32> to vector<8x1xf32>
    %183 = vector.broadcast %182 : vector<8x1xf32> to vector<8x256xf32>
    %184 = arith.mulf %183, %5 : vector<8x256xf32>
    %c19 = arith.constant 19 : index
    %c0_91 = arith.constant 0 : index
    %c0_92 = arith.constant 0 : index
    %185 = vector.load %arg2[%c19, %c0_91, %c0_92] : memref<36x8x1xf32, #tpu.memory_space<vmem>>, vector<1x8x1xf32>
    %186 = vector.shape_cast %185 : vector<1x8x1xf32> to vector<8x1xf32>
    %187 = vector.broadcast %186 : vector<8x1xf32> to vector<8x256xf32>
    %188 = arith.mulf %187, %10 : vector<8x256xf32>
    %189 = arith.addf %184, %188 : vector<8x256xf32>
    %c20 = arith.constant 20 : index
    %c0_93 = arith.constant 0 : index
    %c0_94 = arith.constant 0 : index
    %190 = vector.load %arg2[%c20, %c0_93, %c0_94] : memref<36x8x1xf32, #tpu.memory_space<vmem>>, vector<1x8x1xf32>
    %191 = vector.shape_cast %190 : vector<1x8x1xf32> to vector<8x1xf32>
    %192 = vector.broadcast %191 : vector<8x1xf32> to vector<8x256xf32>
    %193 = arith.mulf %192, %15 : vector<8x256xf32>
    %194 = arith.addf %189, %193 : vector<8x256xf32>
    %c21 = arith.constant 21 : index
    %c0_95 = arith.constant 0 : index
    %c0_96 = arith.constant 0 : index
    %195 = vector.load %arg2[%c21, %c0_95, %c0_96] : memref<36x8x1xf32, #tpu.memory_space<vmem>>, vector<1x8x1xf32>
    %196 = vector.shape_cast %195 : vector<1x8x1xf32> to vector<8x1xf32>
    %197 = vector.broadcast %196 : vector<8x1xf32> to vector<8x256xf32>
    %198 = arith.mulf %197, %20 : vector<8x256xf32>
    %199 = arith.addf %194, %198 : vector<8x256xf32>
    %c22 = arith.constant 22 : index
    %c0_97 = arith.constant 0 : index
    %c0_98 = arith.constant 0 : index
    %200 = vector.load %arg2[%c22, %c0_97, %c0_98] : memref<36x8x1xf32, #tpu.memory_space<vmem>>, vector<1x8x1xf32>
    %201 = vector.shape_cast %200 : vector<1x8x1xf32> to vector<8x1xf32>
    %202 = vector.broadcast %201 : vector<8x1xf32> to vector<8x256xf32>
    %203 = arith.mulf %202, %0 : vector<8x256xf32>
    %204 = arith.addf %199, %203 : vector<8x256xf32>
    %c23 = arith.constant 23 : index
    %c0_99 = arith.constant 0 : index
    %c0_100 = arith.constant 0 : index
    %205 = vector.load %arg2[%c23, %c0_99, %c0_100] : memref<36x8x1xf32, #tpu.memory_space<vmem>>, vector<1x8x1xf32>
    %206 = vector.shape_cast %205 : vector<1x8x1xf32> to vector<8x1xf32>
    %207 = vector.broadcast %206 : vector<8x1xf32> to vector<8x256xf32>
    %208 = arith.mulf %207, %25 : vector<8x256xf32>
    %209 = arith.addf %204, %208 : vector<8x256xf32>
    %c24 = arith.constant 24 : index
    %c0_101 = arith.constant 0 : index
    %c0_102 = arith.constant 0 : index
    %210 = vector.load %arg2[%c24, %c0_101, %c0_102] : memref<36x8x1xf32, #tpu.memory_space<vmem>>, vector<1x8x1xf32>
    %211 = vector.shape_cast %210 : vector<1x8x1xf32> to vector<8x1xf32>
    %212 = vector.broadcast %211 : vector<8x1xf32> to vector<8x256xf32>
    %213 = arith.mulf %212, %30 : vector<8x256xf32>
    %214 = arith.addf %209, %213 : vector<8x256xf32>
    %c25 = arith.constant 25 : index
    %c0_103 = arith.constant 0 : index
    %c0_104 = arith.constant 0 : index
    %215 = vector.load %arg2[%c25, %c0_103, %c0_104] : memref<36x8x1xf32, #tpu.memory_space<vmem>>, vector<1x8x1xf32>
    %216 = vector.shape_cast %215 : vector<1x8x1xf32> to vector<8x1xf32>
    %217 = vector.broadcast %216 : vector<8x1xf32> to vector<8x256xf32>
    %218 = arith.mulf %217, %35 : vector<8x256xf32>
    %219 = arith.addf %214, %218 : vector<8x256xf32>
    %c26 = arith.constant 26 : index
    %c0_105 = arith.constant 0 : index
    %c0_106 = arith.constant 0 : index
    %220 = vector.load %arg2[%c26, %c0_105, %c0_106] : memref<36x8x1xf32, #tpu.memory_space<vmem>>, vector<1x8x1xf32>
    %221 = vector.shape_cast %220 : vector<1x8x1xf32> to vector<8x1xf32>
    %222 = vector.broadcast %221 : vector<8x1xf32> to vector<8x256xf32>
    %223 = arith.mulf %222, %40 : vector<8x256xf32>
    %224 = arith.addf %219, %223 : vector<8x256xf32>
    %225 = vector.extract_strided_slice %224 {offsets = [2, 0], sizes = [6, 256], strides = [1, 1]} : vector<8x256xf32> to vector<6x256xf32>
    %226 = vector.extract_strided_slice %224 {offsets = [0, 0], sizes = [2, 256], strides = [1, 1]} : vector<8x256xf32> to vector<2x256xf32>
    %227 = tpu.concatenate %225, %226 in 0 : vector<6x256xf32>, vector<2x256xf32> -> vector<8x256xf32>
    %228 = arith.addf %180, %227 : vector<8x256xf32>
    %c18_107 = arith.constant 18 : index
    %c0_108 = arith.constant 0 : index
    %c0_109 = arith.constant 0 : index
    %229 = vector.load %arg3[%c18_107, %c0_108, %c0_109] : memref<36x8x1xf32, #tpu.memory_space<vmem>>, vector<1x8x1xf32>
    %230 = vector.shape_cast %229 : vector<1x8x1xf32> to vector<8x1xf32>
    %231 = vector.broadcast %230 : vector<8x1xf32> to vector<8x256xf32>
    %232 = arith.mulf %231, %5 : vector<8x256xf32>
    %c19_110 = arith.constant 19 : index
    %c0_111 = arith.constant 0 : index
    %c0_112 = arith.constant 0 : index
    %233 = vector.load %arg3[%c19_110, %c0_111, %c0_112] : memref<36x8x1xf32, #tpu.memory_space<vmem>>, vector<1x8x1xf32>
    %234 = vector.shape_cast %233 : vector<1x8x1xf32> to vector<8x1xf32>
    %235 = vector.broadcast %234 : vector<8x1xf32> to vector<8x256xf32>
    %236 = arith.mulf %235, %10 : vector<8x256xf32>
    %237 = arith.addf %232, %236 : vector<8x256xf32>
    %c20_113 = arith.constant 20 : index
    %c0_114 = arith.constant 0 : index
    %c0_115 = arith.constant 0 : index
    %238 = vector.load %arg3[%c20_113, %c0_114, %c0_115] : memref<36x8x1xf32, #tpu.memory_space<vmem>>, vector<1x8x1xf32>
    %239 = vector.shape_cast %238 : vector<1x8x1xf32> to vector<8x1xf32>
    %240 = vector.broadcast %239 : vector<8x1xf32> to vector<8x256xf32>
    %241 = arith.mulf %240, %15 : vector<8x256xf32>
    %242 = arith.addf %237, %241 : vector<8x256xf32>
    %c21_116 = arith.constant 21 : index
    %c0_117 = arith.constant 0 : index
    %c0_118 = arith.constant 0 : index
    %243 = vector.load %arg3[%c21_116, %c0_117, %c0_118] : memref<36x8x1xf32, #tpu.memory_space<vmem>>, vector<1x8x1xf32>
    %244 = vector.shape_cast %243 : vector<1x8x1xf32> to vector<8x1xf32>
    %245 = vector.broadcast %244 : vector<8x1xf32> to vector<8x256xf32>
    %246 = arith.mulf %245, %20 : vector<8x256xf32>
    %247 = arith.addf %242, %246 : vector<8x256xf32>
    %c22_119 = arith.constant 22 : index
    %c0_120 = arith.constant 0 : index
    %c0_121 = arith.constant 0 : index
    %248 = vector.load %arg3[%c22_119, %c0_120, %c0_121] : memref<36x8x1xf32, #tpu.memory_space<vmem>>, vector<1x8x1xf32>
    %249 = vector.shape_cast %248 : vector<1x8x1xf32> to vector<8x1xf32>
    %250 = vector.broadcast %249 : vector<8x1xf32> to vector<8x256xf32>
    %251 = arith.mulf %250, %0 : vector<8x256xf32>
    %252 = arith.addf %247, %251 : vector<8x256xf32>
    %c23_122 = arith.constant 23 : index
    %c0_123 = arith.constant 0 : index
    %c0_124 = arith.constant 0 : index
    %253 = vector.load %arg3[%c23_122, %c0_123, %c0_124] : memref<36x8x1xf32, #tpu.memory_space<vmem>>, vector<1x8x1xf32>
    %254 = vector.shape_cast %253 : vector<1x8x1xf32> to vector<8x1xf32>
    %255 = vector.broadcast %254 : vector<8x1xf32> to vector<8x256xf32>
    %256 = arith.mulf %255, %25 : vector<8x256xf32>
    %257 = arith.addf %252, %256 : vector<8x256xf32>
    %c24_125 = arith.constant 24 : index
    %c0_126 = arith.constant 0 : index
    %c0_127 = arith.constant 0 : index
    %258 = vector.load %arg3[%c24_125, %c0_126, %c0_127] : memref<36x8x1xf32, #tpu.memory_space<vmem>>, vector<1x8x1xf32>
    %259 = vector.shape_cast %258 : vector<1x8x1xf32> to vector<8x1xf32>
    %260 = vector.broadcast %259 : vector<8x1xf32> to vector<8x256xf32>
    %261 = arith.mulf %260, %30 : vector<8x256xf32>
    %262 = arith.addf %257, %261 : vector<8x256xf32>
    %c25_128 = arith.constant 25 : index
    %c0_129 = arith.constant 0 : index
    %c0_130 = arith.constant 0 : index
    %263 = vector.load %arg3[%c25_128, %c0_129, %c0_130] : memref<36x8x1xf32, #tpu.memory_space<vmem>>, vector<1x8x1xf32>
    %264 = vector.shape_cast %263 : vector<1x8x1xf32> to vector<8x1xf32>
    %265 = vector.broadcast %264 : vector<8x1xf32> to vector<8x256xf32>
    %266 = arith.mulf %265, %35 : vector<8x256xf32>
    %267 = arith.addf %262, %266 : vector<8x256xf32>
    %c26_131 = arith.constant 26 : index
    %c0_132 = arith.constant 0 : index
    %c0_133 = arith.constant 0 : index
    %268 = vector.load %arg3[%c26_131, %c0_132, %c0_133] : memref<36x8x1xf32, #tpu.memory_space<vmem>>, vector<1x8x1xf32>
    %269 = vector.shape_cast %268 : vector<1x8x1xf32> to vector<8x1xf32>
    %270 = vector.broadcast %269 : vector<8x1xf32> to vector<8x256xf32>
    %271 = arith.mulf %270, %40 : vector<8x256xf32>
    %272 = arith.addf %267, %271 : vector<8x256xf32>
    %273 = vector.extract_strided_slice %272 {offsets = [6, 0], sizes = [2, 256], strides = [1, 1]} : vector<8x256xf32> to vector<2x256xf32>
    %274 = vector.extract_strided_slice %272 {offsets = [0, 0], sizes = [6, 256], strides = [1, 1]} : vector<8x256xf32> to vector<6x256xf32>
    %275 = tpu.concatenate %273, %274 in 0 : vector<2x256xf32>, vector<6x256xf32> -> vector<8x256xf32>
    %276 = arith.addf %228, %275 : vector<8x256xf32>
    %c27 = arith.constant 27 : index
    %c0_134 = arith.constant 0 : index
    %c0_135 = arith.constant 0 : index
    %277 = vector.load %arg2[%c27, %c0_134, %c0_135] : memref<36x8x1xf32, #tpu.memory_space<vmem>>, vector<1x8x1xf32>
    %278 = vector.shape_cast %277 : vector<1x8x1xf32> to vector<8x1xf32>
    %279 = vector.broadcast %278 : vector<8x1xf32> to vector<8x256xf32>
    %280 = arith.mulf %279, %5 : vector<8x256xf32>
    %c28 = arith.constant 28 : index
    %c0_136 = arith.constant 0 : index
    %c0_137 = arith.constant 0 : index
    %281 = vector.load %arg2[%c28, %c0_136, %c0_137] : memref<36x8x1xf32, #tpu.memory_space<vmem>>, vector<1x8x1xf32>
    %282 = vector.shape_cast %281 : vector<1x8x1xf32> to vector<8x1xf32>
    %283 = vector.broadcast %282 : vector<8x1xf32> to vector<8x256xf32>
    %284 = arith.mulf %283, %10 : vector<8x256xf32>
    %285 = arith.addf %280, %284 : vector<8x256xf32>
    %c29 = arith.constant 29 : index
    %c0_138 = arith.constant 0 : index
    %c0_139 = arith.constant 0 : index
    %286 = vector.load %arg2[%c29, %c0_138, %c0_139] : memref<36x8x1xf32, #tpu.memory_space<vmem>>, vector<1x8x1xf32>
    %287 = vector.shape_cast %286 : vector<1x8x1xf32> to vector<8x1xf32>
    %288 = vector.broadcast %287 : vector<8x1xf32> to vector<8x256xf32>
    %289 = arith.mulf %288, %15 : vector<8x256xf32>
    %290 = arith.addf %285, %289 : vector<8x256xf32>
    %c30 = arith.constant 30 : index
    %c0_140 = arith.constant 0 : index
    %c0_141 = arith.constant 0 : index
    %291 = vector.load %arg2[%c30, %c0_140, %c0_141] : memref<36x8x1xf32, #tpu.memory_space<vmem>>, vector<1x8x1xf32>
    %292 = vector.shape_cast %291 : vector<1x8x1xf32> to vector<8x1xf32>
    %293 = vector.broadcast %292 : vector<8x1xf32> to vector<8x256xf32>
    %294 = arith.mulf %293, %20 : vector<8x256xf32>
    %295 = arith.addf %290, %294 : vector<8x256xf32>
    %c31 = arith.constant 31 : index
    %c0_142 = arith.constant 0 : index
    %c0_143 = arith.constant 0 : index
    %296 = vector.load %arg2[%c31, %c0_142, %c0_143] : memref<36x8x1xf32, #tpu.memory_space<vmem>>, vector<1x8x1xf32>
    %297 = vector.shape_cast %296 : vector<1x8x1xf32> to vector<8x1xf32>
    %298 = vector.broadcast %297 : vector<8x1xf32> to vector<8x256xf32>
    %299 = arith.mulf %298, %0 : vector<8x256xf32>
    %300 = arith.addf %295, %299 : vector<8x256xf32>
    %c32 = arith.constant 32 : index
    %c0_144 = arith.constant 0 : index
    %c0_145 = arith.constant 0 : index
    %301 = vector.load %arg2[%c32, %c0_144, %c0_145] : memref<36x8x1xf32, #tpu.memory_space<vmem>>, vector<1x8x1xf32>
    %302 = vector.shape_cast %301 : vector<1x8x1xf32> to vector<8x1xf32>
    %303 = vector.broadcast %302 : vector<8x1xf32> to vector<8x256xf32>
    %304 = arith.mulf %303, %25 : vector<8x256xf32>
    %305 = arith.addf %300, %304 : vector<8x256xf32>
    %c33 = arith.constant 33 : index
    %c0_146 = arith.constant 0 : index
    %c0_147 = arith.constant 0 : index
    %306 = vector.load %arg2[%c33, %c0_146, %c0_147] : memref<36x8x1xf32, #tpu.memory_space<vmem>>, vector<1x8x1xf32>
    %307 = vector.shape_cast %306 : vector<1x8x1xf32> to vector<8x1xf32>
    %308 = vector.broadcast %307 : vector<8x1xf32> to vector<8x256xf32>
    %309 = arith.mulf %308, %30 : vector<8x256xf32>
    %310 = arith.addf %305, %309 : vector<8x256xf32>
    %c34 = arith.constant 34 : index
    %c0_148 = arith.constant 0 : index
    %c0_149 = arith.constant 0 : index
    %311 = vector.load %arg2[%c34, %c0_148, %c0_149] : memref<36x8x1xf32, #tpu.memory_space<vmem>>, vector<1x8x1xf32>
    %312 = vector.shape_cast %311 : vector<1x8x1xf32> to vector<8x1xf32>
    %313 = vector.broadcast %312 : vector<8x1xf32> to vector<8x256xf32>
    %314 = arith.mulf %313, %35 : vector<8x256xf32>
    %315 = arith.addf %310, %314 : vector<8x256xf32>
    %c35 = arith.constant 35 : index
    %c0_150 = arith.constant 0 : index
    %c0_151 = arith.constant 0 : index
    %316 = vector.load %arg2[%c35, %c0_150, %c0_151] : memref<36x8x1xf32, #tpu.memory_space<vmem>>, vector<1x8x1xf32>
    %317 = vector.shape_cast %316 : vector<1x8x1xf32> to vector<8x1xf32>
    %318 = vector.broadcast %317 : vector<8x1xf32> to vector<8x256xf32>
    %319 = arith.mulf %318, %40 : vector<8x256xf32>
    %320 = arith.addf %315, %319 : vector<8x256xf32>
    %321 = vector.extract_strided_slice %320 {offsets = [3, 0], sizes = [5, 256], strides = [1, 1]} : vector<8x256xf32> to vector<5x256xf32>
    %322 = vector.extract_strided_slice %320 {offsets = [0, 0], sizes = [3, 256], strides = [1, 1]} : vector<8x256xf32> to vector<3x256xf32>
    %323 = tpu.concatenate %321, %322 in 0 : vector<5x256xf32>, vector<3x256xf32> -> vector<8x256xf32>
    %324 = arith.addf %276, %323 : vector<8x256xf32>
    %c27_152 = arith.constant 27 : index
    %c0_153 = arith.constant 0 : index
    %c0_154 = arith.constant 0 : index
    %325 = vector.load %arg3[%c27_152, %c0_153, %c0_154] : memref<36x8x1xf32, #tpu.memory_space<vmem>>, vector<1x8x1xf32>
    %326 = vector.shape_cast %325 : vector<1x8x1xf32> to vector<8x1xf32>
    %327 = vector.broadcast %326 : vector<8x1xf32> to vector<8x256xf32>
    %328 = arith.mulf %327, %5 : vector<8x256xf32>
    %c28_155 = arith.constant 28 : index
    %c0_156 = arith.constant 0 : index
    %c0_157 = arith.constant 0 : index
    %329 = vector.load %arg3[%c28_155, %c0_156, %c0_157] : memref<36x8x1xf32, #tpu.memory_space<vmem>>, vector<1x8x1xf32>
    %330 = vector.shape_cast %329 : vector<1x8x1xf32> to vector<8x1xf32>
    %331 = vector.broadcast %330 : vector<8x1xf32> to vector<8x256xf32>
    %332 = arith.mulf %331, %10 : vector<8x256xf32>
    %333 = arith.addf %328, %332 : vector<8x256xf32>
    %c29_158 = arith.constant 29 : index
    %c0_159 = arith.constant 0 : index
    %c0_160 = arith.constant 0 : index
    %334 = vector.load %arg3[%c29_158, %c0_159, %c0_160] : memref<36x8x1xf32, #tpu.memory_space<vmem>>, vector<1x8x1xf32>
    %335 = vector.shape_cast %334 : vector<1x8x1xf32> to vector<8x1xf32>
    %336 = vector.broadcast %335 : vector<8x1xf32> to vector<8x256xf32>
    %337 = arith.mulf %336, %15 : vector<8x256xf32>
    %338 = arith.addf %333, %337 : vector<8x256xf32>
    %c30_161 = arith.constant 30 : index
    %c0_162 = arith.constant 0 : index
    %c0_163 = arith.constant 0 : index
    %339 = vector.load %arg3[%c30_161, %c0_162, %c0_163] : memref<36x8x1xf32, #tpu.memory_space<vmem>>, vector<1x8x1xf32>
    %340 = vector.shape_cast %339 : vector<1x8x1xf32> to vector<8x1xf32>
    %341 = vector.broadcast %340 : vector<8x1xf32> to vector<8x256xf32>
    %342 = arith.mulf %341, %20 : vector<8x256xf32>
    %343 = arith.addf %338, %342 : vector<8x256xf32>
    %c31_164 = arith.constant 31 : index
    %c0_165 = arith.constant 0 : index
    %c0_166 = arith.constant 0 : index
    %344 = vector.load %arg3[%c31_164, %c0_165, %c0_166] : memref<36x8x1xf32, #tpu.memory_space<vmem>>, vector<1x8x1xf32>
    %345 = vector.shape_cast %344 : vector<1x8x1xf32> to vector<8x1xf32>
    %346 = vector.broadcast %345 : vector<8x1xf32> to vector<8x256xf32>
    %347 = arith.mulf %346, %0 : vector<8x256xf32>
    %348 = arith.addf %343, %347 : vector<8x256xf32>
    %c32_167 = arith.constant 32 : index
    %c0_168 = arith.constant 0 : index
    %c0_169 = arith.constant 0 : index
    %349 = vector.load %arg3[%c32_167, %c0_168, %c0_169] : memref<36x8x1xf32, #tpu.memory_space<vmem>>, vector<1x8x1xf32>
    %350 = vector.shape_cast %349 : vector<1x8x1xf32> to vector<8x1xf32>
    %351 = vector.broadcast %350 : vector<8x1xf32> to vector<8x256xf32>
    %352 = arith.mulf %351, %25 : vector<8x256xf32>
    %353 = arith.addf %348, %352 : vector<8x256xf32>
    %c33_170 = arith.constant 33 : index
    %c0_171 = arith.constant 0 : index
    %c0_172 = arith.constant 0 : index
    %354 = vector.load %arg3[%c33_170, %c0_171, %c0_172] : memref<36x8x1xf32, #tpu.memory_space<vmem>>, vector<1x8x1xf32>
    %355 = vector.shape_cast %354 : vector<1x8x1xf32> to vector<8x1xf32>
    %356 = vector.broadcast %355 : vector<8x1xf32> to vector<8x256xf32>
    %357 = arith.mulf %356, %30 : vector<8x256xf32>
    %358 = arith.addf %353, %357 : vector<8x256xf32>
    %c34_173 = arith.constant 34 : index
    %c0_174 = arith.constant 0 : index
    %c0_175 = arith.constant 0 : index
    %359 = vector.load %arg3[%c34_173, %c0_174, %c0_175] : memref<36x8x1xf32, #tpu.memory_space<vmem>>, vector<1x8x1xf32>
    %360 = vector.shape_cast %359 : vector<1x8x1xf32> to vector<8x1xf32>
    %361 = vector.broadcast %360 : vector<8x1xf32> to vector<8x256xf32>
    %362 = arith.mulf %361, %35 : vector<8x256xf32>
    %363 = arith.addf %358, %362 : vector<8x256xf32>
    %c35_176 = arith.constant 35 : index
    %c0_177 = arith.constant 0 : index
    %c0_178 = arith.constant 0 : index
    %364 = vector.load %arg3[%c35_176, %c0_177, %c0_178] : memref<36x8x1xf32, #tpu.memory_space<vmem>>, vector<1x8x1xf32>
    %365 = vector.shape_cast %364 : vector<1x8x1xf32> to vector<8x1xf32>
    %366 = vector.broadcast %365 : vector<8x1xf32> to vector<8x256xf32>
    %367 = arith.mulf %366, %40 : vector<8x256xf32>
    %368 = arith.addf %363, %367 : vector<8x256xf32>
    %369 = vector.extract_strided_slice %368 {offsets = [7, 0], sizes = [1, 256], strides = [1, 1]} : vector<8x256xf32> to vector<1x256xf32>
    %370 = vector.extract_strided_slice %368 {offsets = [0, 0], sizes = [7, 256], strides = [1, 1]} : vector<8x256xf32> to vector<7x256xf32>
    %371 = tpu.concatenate %369, %370 in 0 : vector<1x256xf32>, vector<7x256xf32> -> vector<8x256xf32>
    %372 = arith.addf %324, %371 : vector<8x256xf32>
    %c0_179 = arith.constant 0 : index
    %c0_180 = arith.constant 0 : index
    %373 = vector.load %arg4[%c0_179, %c0_180] : memref<8x1xf32, #tpu.memory_space<vmem>>, vector<8x1xf32>
    %374 = vector.broadcast %373 : vector<8x1xf32> to vector<8x256xf32>
    %375 = arith.addf %372, %374 : vector<8x256xf32>
    %376 = arith.truncf %375 : vector<8x256xf32> to vector<8x256xbf16>
    %377 = arith.extf %376 : vector<8x256xbf16> to vector<8x256xf32>
    %378 = arith.subf %375, %377 : vector<8x256xf32>
    %379 = arith.truncf %378 : vector<8x256xf32> to vector<8x256xbf16>
    %c0_181 = arith.constant 0 : index
    %c0_182 = arith.constant 0 : index
    %380 = vector.load %arg9[%c0_181, %c0_182] : memref<256x1024xbf16, #tpu.memory_space<vmem>>, vector<256x1024xbf16>
    %cst = arith.constant dense<0.000000e+00> : vector<8x1024xf32>
    %381 = tpu.matmul %376, %380, %cst {dimension_numbers = #tpu.dot_dimension_numbers<[1], [0], [0], [1], [0, 0, 1, 1], [], []>} : vector<8x256xbf16>, vector<256x1024xbf16>, vector<8x1024xf32> -> vector<8x1024xf32>
    %c0_183 = arith.constant 0 : index
    %c0_184 = arith.constant 0 : index
    %382 = vector.load %arg9[%c0_183, %c0_184] : memref<256x1024xbf16, #tpu.memory_space<vmem>>, vector<256x1024xbf16>
    %cst_185 = arith.constant dense<0.000000e+00> : vector<8x1024xf32>
    %383 = tpu.matmul %379, %382, %cst_185 {dimension_numbers = #tpu.dot_dimension_numbers<[1], [0], [0], [1], [0, 0, 1, 1], [], []>} : vector<8x256xbf16>, vector<256x1024xbf16>, vector<8x1024xf32> -> vector<8x1024xf32>
    %384 = arith.addf %381, %383 : vector<8x1024xf32>
    %c0_186 = arith.constant 0 : index
    %c0_187 = arith.constant 0 : index
    %385 = vector.load %arg10[%c0_186, %c0_187] : memref<256x1024xbf16, #tpu.memory_space<vmem>>, vector<256x1024xbf16>
    %cst_188 = arith.constant dense<0.000000e+00> : vector<8x1024xf32>
    %386 = tpu.matmul %376, %385, %cst_188 {dimension_numbers = #tpu.dot_dimension_numbers<[1], [0], [0], [1], [0, 0, 1, 1], [], []>} : vector<8x256xbf16>, vector<256x1024xbf16>, vector<8x1024xf32> -> vector<8x1024xf32>
    %387 = arith.addf %384, %386 : vector<8x1024xf32>
    %cst_189 = arith.constant 0.000000e+00 : f32
    %388 = vector.broadcast %cst_189 : f32 to vector<8x1024xf32>
    %389 = arith.cmpf oge, %387, %388 : vector<8x1024xf32>
    %cst_190 = arith.constant 0.00999999977 : f32
    %390 = vector.broadcast %cst_190 : f32 to vector<8x1024xf32>
    %391 = arith.mulf %390, %387 : vector<8x1024xf32>
    %392 = arith.select %389, %387, %391 : vector<8x1024xi1>, vector<8x1024xf32>
    %393 = arith.truncf %392 : vector<8x1024xf32> to vector<8x1024xbf16>
    %394 = arith.extf %393 : vector<8x1024xbf16> to vector<8x1024xf32>
    %395 = arith.subf %392, %394 : vector<8x1024xf32>
    %396 = arith.truncf %395 : vector<8x1024xf32> to vector<8x1024xbf16>
    %c0_191 = arith.constant 0 : index
    %c0_192 = arith.constant 0 : index
    %397 = vector.load %arg11[%c0_191, %c0_192] : memref<1024x256xbf16, #tpu.memory_space<vmem>>, vector<1024x256xbf16>
    %cst_193 = arith.constant dense<0.000000e+00> : vector<8x256xf32>
    %398 = tpu.matmul %393, %397, %cst_193 {dimension_numbers = #tpu.dot_dimension_numbers<[1], [0], [0], [1], [0, 0, 1, 1], [], []>} : vector<8x1024xbf16>, vector<1024x256xbf16>, vector<8x256xf32> -> vector<8x256xf32>
    %c0_194 = arith.constant 0 : index
    %c0_195 = arith.constant 0 : index
    %399 = vector.load %arg11[%c0_194, %c0_195] : memref<1024x256xbf16, #tpu.memory_space<vmem>>, vector<1024x256xbf16>
    %cst_196 = arith.constant dense<0.000000e+00> : vector<8x256xf32>
    %400 = tpu.matmul %396, %399, %cst_196 {dimension_numbers = #tpu.dot_dimension_numbers<[1], [0], [0], [1], [0, 0, 1, 1], [], []>} : vector<8x1024xbf16>, vector<1024x256xbf16>, vector<8x256xf32> -> vector<8x256xf32>
    %401 = arith.addf %398, %400 : vector<8x256xf32>
    %c0_197 = arith.constant 0 : index
    %c0_198 = arith.constant 0 : index
    %402 = vector.load %arg12[%c0_197, %c0_198] : memref<1024x256xbf16, #tpu.memory_space<vmem>>, vector<1024x256xbf16>
    %cst_199 = arith.constant dense<0.000000e+00> : vector<8x256xf32>
    %403 = tpu.matmul %393, %402, %cst_199 {dimension_numbers = #tpu.dot_dimension_numbers<[1], [0], [0], [1], [0, 0, 1, 1], [], []>} : vector<8x1024xbf16>, vector<1024x256xbf16>, vector<8x256xf32> -> vector<8x256xf32>
    %404 = arith.addf %401, %403 : vector<8x256xf32>
    %c17_i32_200 = arith.constant 17 : i32
    %405 = tpu.dynamic_rotate %404 by %c17_i32_200 dim 1 : vector<8x256xf32>, i32 -> vector<8x256xf32>
    %c0_201 = arith.constant 0 : index
    %c0_202 = arith.constant 0 : index
    %c0_203 = arith.constant 0 : index
    %406 = vector.load %arg8[%c0_201, %c0_202, %c0_203] : memref<9x1x256xf32, #tpu.memory_space<vmem>>, vector<1x1x256xf32>
    %407 = vector.shape_cast %406 : vector<1x1x256xf32> to vector<1x256xf32>
    %408 = vector.broadcast %407 : vector<1x256xf32> to vector<8x256xf32>
    %409 = arith.mulf %405, %408 : vector<8x256xf32>
    %c16_i32_204 = arith.constant 16 : i32
    %410 = tpu.dynamic_rotate %404 by %c16_i32_204 dim 1 : vector<8x256xf32>, i32 -> vector<8x256xf32>
    %c1_205 = arith.constant 1 : index
    %c0_206 = arith.constant 0 : index
    %c0_207 = arith.constant 0 : index
    %411 = vector.load %arg8[%c1_205, %c0_206, %c0_207] : memref<9x1x256xf32, #tpu.memory_space<vmem>>, vector<1x1x256xf32>
    %412 = vector.shape_cast %411 : vector<1x1x256xf32> to vector<1x256xf32>
    %413 = vector.broadcast %412 : vector<1x256xf32> to vector<8x256xf32>
    %414 = arith.mulf %410, %413 : vector<8x256xf32>
    %c15_i32_208 = arith.constant 15 : i32
    %415 = tpu.dynamic_rotate %404 by %c15_i32_208 dim 1 : vector<8x256xf32>, i32 -> vector<8x256xf32>
    %c2_209 = arith.constant 2 : index
    %c0_210 = arith.constant 0 : index
    %c0_211 = arith.constant 0 : index
    %416 = vector.load %arg8[%c2_209, %c0_210, %c0_211] : memref<9x1x256xf32, #tpu.memory_space<vmem>>, vector<1x1x256xf32>
    %417 = vector.shape_cast %416 : vector<1x1x256xf32> to vector<1x256xf32>
    %418 = vector.broadcast %417 : vector<1x256xf32> to vector<8x256xf32>
    %419 = arith.mulf %415, %418 : vector<8x256xf32>
    %c1_i32_212 = arith.constant 1 : i32
    %420 = tpu.dynamic_rotate %404 by %c1_i32_212 dim 1 : vector<8x256xf32>, i32 -> vector<8x256xf32>
    %c3_213 = arith.constant 3 : index
    %c0_214 = arith.constant 0 : index
    %c0_215 = arith.constant 0 : index
    %421 = vector.load %arg8[%c3_213, %c0_214, %c0_215] : memref<9x1x256xf32, #tpu.memory_space<vmem>>, vector<1x1x256xf32>
    %422 = vector.shape_cast %421 : vector<1x1x256xf32> to vector<1x256xf32>
    %423 = vector.broadcast %422 : vector<1x256xf32> to vector<8x256xf32>
    %424 = arith.mulf %420, %423 : vector<8x256xf32>
    %c255_i32_216 = arith.constant 255 : i32
    %425 = tpu.dynamic_rotate %404 by %c255_i32_216 dim 1 : vector<8x256xf32>, i32 -> vector<8x256xf32>
    %c5_217 = arith.constant 5 : index
    %c0_218 = arith.constant 0 : index
    %c0_219 = arith.constant 0 : index
    %426 = vector.load %arg8[%c5_217, %c0_218, %c0_219] : memref<9x1x256xf32, #tpu.memory_space<vmem>>, vector<1x1x256xf32>
    %427 = vector.shape_cast %426 : vector<1x1x256xf32> to vector<1x256xf32>
    %428 = vector.broadcast %427 : vector<1x256xf32> to vector<8x256xf32>
    %429 = arith.mulf %425, %428 : vector<8x256xf32>
    %c241_i32_220 = arith.constant 241 : i32
    %430 = tpu.dynamic_rotate %404 by %c241_i32_220 dim 1 : vector<8x256xf32>, i32 -> vector<8x256xf32>
    %c6_221 = arith.constant 6 : index
    %c0_222 = arith.constant 0 : index
    %c0_223 = arith.constant 0 : index
    %431 = vector.load %arg8[%c6_221, %c0_222, %c0_223] : memref<9x1x256xf32, #tpu.memory_space<vmem>>, vector<1x1x256xf32>
    %432 = vector.shape_cast %431 : vector<1x1x256xf32> to vector<1x256xf32>
    %433 = vector.broadcast %432 : vector<1x256xf32> to vector<8x256xf32>
    %434 = arith.mulf %430, %433 : vector<8x256xf32>
    %c240_i32_224 = arith.constant 240 : i32
    %435 = tpu.dynamic_rotate %404 by %c240_i32_224 dim 1 : vector<8x256xf32>, i32 -> vector<8x256xf32>
    %c7_225 = arith.constant 7 : index
    %c0_226 = arith.constant 0 : index
    %c0_227 = arith.constant 0 : index
    %436 = vector.load %arg8[%c7_225, %c0_226, %c0_227] : memref<9x1x256xf32, #tpu.memory_space<vmem>>, vector<1x1x256xf32>
    %437 = vector.shape_cast %436 : vector<1x1x256xf32> to vector<1x256xf32>
    %438 = vector.broadcast %437 : vector<1x256xf32> to vector<8x256xf32>
    %439 = arith.mulf %435, %438 : vector<8x256xf32>
    %c239_i32_228 = arith.constant 239 : i32
    %440 = tpu.dynamic_rotate %404 by %c239_i32_228 dim 1 : vector<8x256xf32>, i32 -> vector<8x256xf32>
    %c8_229 = arith.constant 8 : index
    %c0_230 = arith.constant 0 : index
    %c0_231 = arith.constant 0 : index
    %441 = vector.load %arg8[%c8_229, %c0_230, %c0_231] : memref<9x1x256xf32, #tpu.memory_space<vmem>>, vector<1x1x256xf32>
    %442 = vector.shape_cast %441 : vector<1x1x256xf32> to vector<1x256xf32>
    %443 = vector.broadcast %442 : vector<1x256xf32> to vector<8x256xf32>
    %444 = arith.mulf %440, %443 : vector<8x256xf32>
    %c0_232 = arith.constant 0 : index
    %c0_233 = arith.constant 0 : index
    %c0_234 = arith.constant 0 : index
    %445 = vector.load %arg5[%c0_232, %c0_233, %c0_234] : memref<36x8x1xf32, #tpu.memory_space<vmem>>, vector<1x8x1xf32>
    %446 = vector.shape_cast %445 : vector<1x8x1xf32> to vector<8x1xf32>
    %447 = vector.broadcast %446 : vector<8x1xf32> to vector<8x256xf32>
    %448 = arith.mulf %447, %409 : vector<8x256xf32>
    %c1_235 = arith.constant 1 : index
    %c0_236 = arith.constant 0 : index
    %c0_237 = arith.constant 0 : index
    %449 = vector.load %arg5[%c1_235, %c0_236, %c0_237] : memref<36x8x1xf32, #tpu.memory_space<vmem>>, vector<1x8x1xf32>
    %450 = vector.shape_cast %449 : vector<1x8x1xf32> to vector<8x1xf32>
    %451 = vector.broadcast %450 : vector<8x1xf32> to vector<8x256xf32>
    %452 = arith.mulf %451, %414 : vector<8x256xf32>
    %453 = arith.addf %448, %452 : vector<8x256xf32>
    %c2_238 = arith.constant 2 : index
    %c0_239 = arith.constant 0 : index
    %c0_240 = arith.constant 0 : index
    %454 = vector.load %arg5[%c2_238, %c0_239, %c0_240] : memref<36x8x1xf32, #tpu.memory_space<vmem>>, vector<1x8x1xf32>
    %455 = vector.shape_cast %454 : vector<1x8x1xf32> to vector<8x1xf32>
    %456 = vector.broadcast %455 : vector<8x1xf32> to vector<8x256xf32>
    %457 = arith.mulf %456, %419 : vector<8x256xf32>
    %458 = arith.addf %453, %457 : vector<8x256xf32>
    %c3_241 = arith.constant 3 : index
    %c0_242 = arith.constant 0 : index
    %c0_243 = arith.constant 0 : index
    %459 = vector.load %arg5[%c3_241, %c0_242, %c0_243] : memref<36x8x1xf32, #tpu.memory_space<vmem>>, vector<1x8x1xf32>
    %460 = vector.shape_cast %459 : vector<1x8x1xf32> to vector<8x1xf32>
    %461 = vector.broadcast %460 : vector<8x1xf32> to vector<8x256xf32>
    %462 = arith.mulf %461, %424 : vector<8x256xf32>
    %463 = arith.addf %458, %462 : vector<8x256xf32>
    %c4_244 = arith.constant 4 : index
    %c0_245 = arith.constant 0 : index
    %c0_246 = arith.constant 0 : index
    %464 = vector.load %arg5[%c4_244, %c0_245, %c0_246] : memref<36x8x1xf32, #tpu.memory_space<vmem>>, vector<1x8x1xf32>
    %465 = vector.shape_cast %464 : vector<1x8x1xf32> to vector<8x1xf32>
    %466 = vector.broadcast %465 : vector<8x1xf32> to vector<8x256xf32>
    %467 = arith.mulf %466, %404 : vector<8x256xf32>
    %468 = arith.addf %463, %467 : vector<8x256xf32>
    %c5_247 = arith.constant 5 : index
    %c0_248 = arith.constant 0 : index
    %c0_249 = arith.constant 0 : index
    %469 = vector.load %arg5[%c5_247, %c0_248, %c0_249] : memref<36x8x1xf32, #tpu.memory_space<vmem>>, vector<1x8x1xf32>
    %470 = vector.shape_cast %469 : vector<1x8x1xf32> to vector<8x1xf32>
    %471 = vector.broadcast %470 : vector<8x1xf32> to vector<8x256xf32>
    %472 = arith.mulf %471, %429 : vector<8x256xf32>
    %473 = arith.addf %468, %472 : vector<8x256xf32>
    %c6_250 = arith.constant 6 : index
    %c0_251 = arith.constant 0 : index
    %c0_252 = arith.constant 0 : index
    %474 = vector.load %arg5[%c6_250, %c0_251, %c0_252] : memref<36x8x1xf32, #tpu.memory_space<vmem>>, vector<1x8x1xf32>
    %475 = vector.shape_cast %474 : vector<1x8x1xf32> to vector<8x1xf32>
    %476 = vector.broadcast %475 : vector<8x1xf32> to vector<8x256xf32>
    %477 = arith.mulf %476, %434 : vector<8x256xf32>
    %478 = arith.addf %473, %477 : vector<8x256xf32>
    %c7_253 = arith.constant 7 : index
    %c0_254 = arith.constant 0 : index
    %c0_255 = arith.constant 0 : index
    %479 = vector.load %arg5[%c7_253, %c0_254, %c0_255] : memref<36x8x1xf32, #tpu.memory_space<vmem>>, vector<1x8x1xf32>
    %480 = vector.shape_cast %479 : vector<1x8x1xf32> to vector<8x1xf32>
    %481 = vector.broadcast %480 : vector<8x1xf32> to vector<8x256xf32>
    %482 = arith.mulf %481, %439 : vector<8x256xf32>
    %483 = arith.addf %478, %482 : vector<8x256xf32>
    %c8_256 = arith.constant 8 : index
    %c0_257 = arith.constant 0 : index
    %c0_258 = arith.constant 0 : index
    %484 = vector.load %arg5[%c8_256, %c0_257, %c0_258] : memref<36x8x1xf32, #tpu.memory_space<vmem>>, vector<1x8x1xf32>
    %485 = vector.shape_cast %484 : vector<1x8x1xf32> to vector<8x1xf32>
    %486 = vector.broadcast %485 : vector<8x1xf32> to vector<8x256xf32>
    %487 = arith.mulf %486, %444 : vector<8x256xf32>
    %488 = arith.addf %483, %487 : vector<8x256xf32>
    %c9_259 = arith.constant 9 : index
    %c0_260 = arith.constant 0 : index
    %c0_261 = arith.constant 0 : index
    %489 = vector.load %arg5[%c9_259, %c0_260, %c0_261] : memref<36x8x1xf32, #tpu.memory_space<vmem>>, vector<1x8x1xf32>
    %490 = vector.shape_cast %489 : vector<1x8x1xf32> to vector<8x1xf32>
    %491 = vector.broadcast %490 : vector<8x1xf32> to vector<8x256xf32>
    %492 = arith.mulf %491, %409 : vector<8x256xf32>
    %c10_262 = arith.constant 10 : index
    %c0_263 = arith.constant 0 : index
    %c0_264 = arith.constant 0 : index
    %493 = vector.load %arg5[%c10_262, %c0_263, %c0_264] : memref<36x8x1xf32, #tpu.memory_space<vmem>>, vector<1x8x1xf32>
    %494 = vector.shape_cast %493 : vector<1x8x1xf32> to vector<8x1xf32>
    %495 = vector.broadcast %494 : vector<8x1xf32> to vector<8x256xf32>
    %496 = arith.mulf %495, %414 : vector<8x256xf32>
    %497 = arith.addf %492, %496 : vector<8x256xf32>
    %c11_265 = arith.constant 11 : index
    %c0_266 = arith.constant 0 : index
    %c0_267 = arith.constant 0 : index
    %498 = vector.load %arg5[%c11_265, %c0_266, %c0_267] : memref<36x8x1xf32, #tpu.memory_space<vmem>>, vector<1x8x1xf32>
    %499 = vector.shape_cast %498 : vector<1x8x1xf32> to vector<8x1xf32>
    %500 = vector.broadcast %499 : vector<8x1xf32> to vector<8x256xf32>
    %501 = arith.mulf %500, %419 : vector<8x256xf32>
    %502 = arith.addf %497, %501 : vector<8x256xf32>
    %c12_268 = arith.constant 12 : index
    %c0_269 = arith.constant 0 : index
    %c0_270 = arith.constant 0 : index
    %503 = vector.load %arg5[%c12_268, %c0_269, %c0_270] : memref<36x8x1xf32, #tpu.memory_space<vmem>>, vector<1x8x1xf32>
    %504 = vector.shape_cast %503 : vector<1x8x1xf32> to vector<8x1xf32>
    %505 = vector.broadcast %504 : vector<8x1xf32> to vector<8x256xf32>
    %506 = arith.mulf %505, %424 : vector<8x256xf32>
    %507 = arith.addf %502, %506 : vector<8x256xf32>
    %c13_271 = arith.constant 13 : index
    %c0_272 = arith.constant 0 : index
    %c0_273 = arith.constant 0 : index
    %508 = vector.load %arg5[%c13_271, %c0_272, %c0_273] : memref<36x8x1xf32, #tpu.memory_space<vmem>>, vector<1x8x1xf32>
    %509 = vector.shape_cast %508 : vector<1x8x1xf32> to vector<8x1xf32>
    %510 = vector.broadcast %509 : vector<8x1xf32> to vector<8x256xf32>
    %511 = arith.mulf %510, %404 : vector<8x256xf32>
    %512 = arith.addf %507, %511 : vector<8x256xf32>
    %c14_274 = arith.constant 14 : index
    %c0_275 = arith.constant 0 : index
    %c0_276 = arith.constant 0 : index
    %513 = vector.load %arg5[%c14_274, %c0_275, %c0_276] : memref<36x8x1xf32, #tpu.memory_space<vmem>>, vector<1x8x1xf32>
    %514 = vector.shape_cast %513 : vector<1x8x1xf32> to vector<8x1xf32>
    %515 = vector.broadcast %514 : vector<8x1xf32> to vector<8x256xf32>
    %516 = arith.mulf %515, %429 : vector<8x256xf32>
    %517 = arith.addf %512, %516 : vector<8x256xf32>
    %c15_277 = arith.constant 15 : index
    %c0_278 = arith.constant 0 : index
    %c0_279 = arith.constant 0 : index
    %518 = vector.load %arg5[%c15_277, %c0_278, %c0_279] : memref<36x8x1xf32, #tpu.memory_space<vmem>>, vector<1x8x1xf32>
    %519 = vector.shape_cast %518 : vector<1x8x1xf32> to vector<8x1xf32>
    %520 = vector.broadcast %519 : vector<8x1xf32> to vector<8x256xf32>
    %521 = arith.mulf %520, %434 : vector<8x256xf32>
    %522 = arith.addf %517, %521 : vector<8x256xf32>
    %c16_280 = arith.constant 16 : index
    %c0_281 = arith.constant 0 : index
    %c0_282 = arith.constant 0 : index
    %523 = vector.load %arg5[%c16_280, %c0_281, %c0_282] : memref<36x8x1xf32, #tpu.memory_space<vmem>>, vector<1x8x1xf32>
    %524 = vector.shape_cast %523 : vector<1x8x1xf32> to vector<8x1xf32>
    %525 = vector.broadcast %524 : vector<8x1xf32> to vector<8x256xf32>
    %526 = arith.mulf %525, %439 : vector<8x256xf32>
    %527 = arith.addf %522, %526 : vector<8x256xf32>
    %c17_283 = arith.constant 17 : index
    %c0_284 = arith.constant 0 : index
    %c0_285 = arith.constant 0 : index
    %528 = vector.load %arg5[%c17_283, %c0_284, %c0_285] : memref<36x8x1xf32, #tpu.memory_space<vmem>>, vector<1x8x1xf32>
    %529 = vector.shape_cast %528 : vector<1x8x1xf32> to vector<8x1xf32>
    %530 = vector.broadcast %529 : vector<8x1xf32> to vector<8x256xf32>
    %531 = arith.mulf %530, %444 : vector<8x256xf32>
    %532 = arith.addf %527, %531 : vector<8x256xf32>
    %533 = vector.extract_strided_slice %532 {offsets = [1, 0], sizes = [7, 256], strides = [1, 1]} : vector<8x256xf32> to vector<7x256xf32>
    %534 = vector.extract_strided_slice %532 {offsets = [0, 0], sizes = [1, 256], strides = [1, 1]} : vector<8x256xf32> to vector<1x256xf32>
    %535 = tpu.concatenate %533, %534 in 0 : vector<7x256xf32>, vector<1x256xf32> -> vector<8x256xf32>
    %536 = arith.addf %488, %535 : vector<8x256xf32>
    %c9_286 = arith.constant 9 : index
    %c0_287 = arith.constant 0 : index
    %c0_288 = arith.constant 0 : index
    %537 = vector.load %arg6[%c9_286, %c0_287, %c0_288] : memref<36x8x1xf32, #tpu.memory_space<vmem>>, vector<1x8x1xf32>
    %538 = vector.shape_cast %537 : vector<1x8x1xf32> to vector<8x1xf32>
    %539 = vector.broadcast %538 : vector<8x1xf32> to vector<8x256xf32>
    %540 = arith.mulf %539, %409 : vector<8x256xf32>
    %c10_289 = arith.constant 10 : index
    %c0_290 = arith.constant 0 : index
    %c0_291 = arith.constant 0 : index
    %541 = vector.load %arg6[%c10_289, %c0_290, %c0_291] : memref<36x8x1xf32, #tpu.memory_space<vmem>>, vector<1x8x1xf32>
    %542 = vector.shape_cast %541 : vector<1x8x1xf32> to vector<8x1xf32>
    %543 = vector.broadcast %542 : vector<8x1xf32> to vector<8x256xf32>
    %544 = arith.mulf %543, %414 : vector<8x256xf32>
    %545 = arith.addf %540, %544 : vector<8x256xf32>
    %c11_292 = arith.constant 11 : index
    %c0_293 = arith.constant 0 : index
    %c0_294 = arith.constant 0 : index
    %546 = vector.load %arg6[%c11_292, %c0_293, %c0_294] : memref<36x8x1xf32, #tpu.memory_space<vmem>>, vector<1x8x1xf32>
    %547 = vector.shape_cast %546 : vector<1x8x1xf32> to vector<8x1xf32>
    %548 = vector.broadcast %547 : vector<8x1xf32> to vector<8x256xf32>
    %549 = arith.mulf %548, %419 : vector<8x256xf32>
    %550 = arith.addf %545, %549 : vector<8x256xf32>
    %c12_295 = arith.constant 12 : index
    %c0_296 = arith.constant 0 : index
    %c0_297 = arith.constant 0 : index
    %551 = vector.load %arg6[%c12_295, %c0_296, %c0_297] : memref<36x8x1xf32, #tpu.memory_space<vmem>>, vector<1x8x1xf32>
    %552 = vector.shape_cast %551 : vector<1x8x1xf32> to vector<8x1xf32>
    %553 = vector.broadcast %552 : vector<8x1xf32> to vector<8x256xf32>
    %554 = arith.mulf %553, %424 : vector<8x256xf32>
    %555 = arith.addf %550, %554 : vector<8x256xf32>
    %c13_298 = arith.constant 13 : index
    %c0_299 = arith.constant 0 : index
    %c0_300 = arith.constant 0 : index
    %556 = vector.load %arg6[%c13_298, %c0_299, %c0_300] : memref<36x8x1xf32, #tpu.memory_space<vmem>>, vector<1x8x1xf32>
    %557 = vector.shape_cast %556 : vector<1x8x1xf32> to vector<8x1xf32>
    %558 = vector.broadcast %557 : vector<8x1xf32> to vector<8x256xf32>
    %559 = arith.mulf %558, %404 : vector<8x256xf32>
    %560 = arith.addf %555, %559 : vector<8x256xf32>
    %c14_301 = arith.constant 14 : index
    %c0_302 = arith.constant 0 : index
    %c0_303 = arith.constant 0 : index
    %561 = vector.load %arg6[%c14_301, %c0_302, %c0_303] : memref<36x8x1xf32, #tpu.memory_space<vmem>>, vector<1x8x1xf32>
    %562 = vector.shape_cast %561 : vector<1x8x1xf32> to vector<8x1xf32>
    %563 = vector.broadcast %562 : vector<8x1xf32> to vector<8x256xf32>
    %564 = arith.mulf %563, %429 : vector<8x256xf32>
    %565 = arith.addf %560, %564 : vector<8x256xf32>
    %c15_304 = arith.constant 15 : index
    %c0_305 = arith.constant 0 : index
    %c0_306 = arith.constant 0 : index
    %566 = vector.load %arg6[%c15_304, %c0_305, %c0_306] : memref<36x8x1xf32, #tpu.memory_space<vmem>>, vector<1x8x1xf32>
    %567 = vector.shape_cast %566 : vector<1x8x1xf32> to vector<8x1xf32>
    %568 = vector.broadcast %567 : vector<8x1xf32> to vector<8x256xf32>
    %569 = arith.mulf %568, %434 : vector<8x256xf32>
    %570 = arith.addf %565, %569 : vector<8x256xf32>
    %c16_307 = arith.constant 16 : index
    %c0_308 = arith.constant 0 : index
    %c0_309 = arith.constant 0 : index
    %571 = vector.load %arg6[%c16_307, %c0_308, %c0_309] : memref<36x8x1xf32, #tpu.memory_space<vmem>>, vector<1x8x1xf32>
    %572 = vector.shape_cast %571 : vector<1x8x1xf32> to vector<8x1xf32>
    %573 = vector.broadcast %572 : vector<8x1xf32> to vector<8x256xf32>
    %574 = arith.mulf %573, %439 : vector<8x256xf32>
    %575 = arith.addf %570, %574 : vector<8x256xf32>
    %c17_310 = arith.constant 17 : index
    %c0_311 = arith.constant 0 : index
    %c0_312 = arith.constant 0 : index
    %576 = vector.load %arg6[%c17_310, %c0_311, %c0_312] : memref<36x8x1xf32, #tpu.memory_space<vmem>>, vector<1x8x1xf32>
    %577 = vector.shape_cast %576 : vector<1x8x1xf32> to vector<8x1xf32>
    %578 = vector.broadcast %577 : vector<8x1xf32> to vector<8x256xf32>
    %579 = arith.mulf %578, %444 : vector<8x256xf32>
    %580 = arith.addf %575, %579 : vector<8x256xf32>
    %581 = vector.extract_strided_slice %580 {offsets = [5, 0], sizes = [3, 256], strides = [1, 1]} : vector<8x256xf32> to vector<3x256xf32>
    %582 = vector.extract_strided_slice %580 {offsets = [0, 0], sizes = [5, 256], strides = [1, 1]} : vector<8x256xf32> to vector<5x256xf32>
    %583 = tpu.concatenate %581, %582 in 0 : vector<3x256xf32>, vector<5x256xf32> -> vector<8x256xf32>
    %584 = arith.addf %536, %583 : vector<8x256xf32>
    %c18_313 = arith.constant 18 : index
    %c0_314 = arith.constant 0 : index
    %c0_315 = arith.constant 0 : index
    %585 = vector.load %arg5[%c18_313, %c0_314, %c0_315] : memref<36x8x1xf32, #tpu.memory_space<vmem>>, vector<1x8x1xf32>
    %586 = vector.shape_cast %585 : vector<1x8x1xf32> to vector<8x1xf32>
    %587 = vector.broadcast %586 : vector<8x1xf32> to vector<8x256xf32>
    %588 = arith.mulf %587, %409 : vector<8x256xf32>
    %c19_316 = arith.constant 19 : index
    %c0_317 = arith.constant 0 : index
    %c0_318 = arith.constant 0 : index
    %589 = vector.load %arg5[%c19_316, %c0_317, %c0_318] : memref<36x8x1xf32, #tpu.memory_space<vmem>>, vector<1x8x1xf32>
    %590 = vector.shape_cast %589 : vector<1x8x1xf32> to vector<8x1xf32>
    %591 = vector.broadcast %590 : vector<8x1xf32> to vector<8x256xf32>
    %592 = arith.mulf %591, %414 : vector<8x256xf32>
    %593 = arith.addf %588, %592 : vector<8x256xf32>
    %c20_319 = arith.constant 20 : index
    %c0_320 = arith.constant 0 : index
    %c0_321 = arith.constant 0 : index
    %594 = vector.load %arg5[%c20_319, %c0_320, %c0_321] : memref<36x8x1xf32, #tpu.memory_space<vmem>>, vector<1x8x1xf32>
    %595 = vector.shape_cast %594 : vector<1x8x1xf32> to vector<8x1xf32>
    %596 = vector.broadcast %595 : vector<8x1xf32> to vector<8x256xf32>
    %597 = arith.mulf %596, %419 : vector<8x256xf32>
    %598 = arith.addf %593, %597 : vector<8x256xf32>
    %c21_322 = arith.constant 21 : index
    %c0_323 = arith.constant 0 : index
    %c0_324 = arith.constant 0 : index
    %599 = vector.load %arg5[%c21_322, %c0_323, %c0_324] : memref<36x8x1xf32, #tpu.memory_space<vmem>>, vector<1x8x1xf32>
    %600 = vector.shape_cast %599 : vector<1x8x1xf32> to vector<8x1xf32>
    %601 = vector.broadcast %600 : vector<8x1xf32> to vector<8x256xf32>
    %602 = arith.mulf %601, %424 : vector<8x256xf32>
    %603 = arith.addf %598, %602 : vector<8x256xf32>
    %c22_325 = arith.constant 22 : index
    %c0_326 = arith.constant 0 : index
    %c0_327 = arith.constant 0 : index
    %604 = vector.load %arg5[%c22_325, %c0_326, %c0_327] : memref<36x8x1xf32, #tpu.memory_space<vmem>>, vector<1x8x1xf32>
    %605 = vector.shape_cast %604 : vector<1x8x1xf32> to vector<8x1xf32>
    %606 = vector.broadcast %605 : vector<8x1xf32> to vector<8x256xf32>
    %607 = arith.mulf %606, %404 : vector<8x256xf32>
    %608 = arith.addf %603, %607 : vector<8x256xf32>
    %c23_328 = arith.constant 23 : index
    %c0_329 = arith.constant 0 : index
    %c0_330 = arith.constant 0 : index
    %609 = vector.load %arg5[%c23_328, %c0_329, %c0_330] : memref<36x8x1xf32, #tpu.memory_space<vmem>>, vector<1x8x1xf32>
    %610 = vector.shape_cast %609 : vector<1x8x1xf32> to vector<8x1xf32>
    %611 = vector.broadcast %610 : vector<8x1xf32> to vector<8x256xf32>
    %612 = arith.mulf %611, %429 : vector<8x256xf32>
    %613 = arith.addf %608, %612 : vector<8x256xf32>
    %c24_331 = arith.constant 24 : index
    %c0_332 = arith.constant 0 : index
    %c0_333 = arith.constant 0 : index
    %614 = vector.load %arg5[%c24_331, %c0_332, %c0_333] : memref<36x8x1xf32, #tpu.memory_space<vmem>>, vector<1x8x1xf32>
    %615 = vector.shape_cast %614 : vector<1x8x1xf32> to vector<8x1xf32>
    %616 = vector.broadcast %615 : vector<8x1xf32> to vector<8x256xf32>
    %617 = arith.mulf %616, %434 : vector<8x256xf32>
    %618 = arith.addf %613, %617 : vector<8x256xf32>
    %c25_334 = arith.constant 25 : index
    %c0_335 = arith.constant 0 : index
    %c0_336 = arith.constant 0 : index
    %619 = vector.load %arg5[%c25_334, %c0_335, %c0_336] : memref<36x8x1xf32, #tpu.memory_space<vmem>>, vector<1x8x1xf32>
    %620 = vector.shape_cast %619 : vector<1x8x1xf32> to vector<8x1xf32>
    %621 = vector.broadcast %620 : vector<8x1xf32> to vector<8x256xf32>
    %622 = arith.mulf %621, %439 : vector<8x256xf32>
    %623 = arith.addf %618, %622 : vector<8x256xf32>
    %c26_337 = arith.constant 26 : index
    %c0_338 = arith.constant 0 : index
    %c0_339 = arith.constant 0 : index
    %624 = vector.load %arg5[%c26_337, %c0_338, %c0_339] : memref<36x8x1xf32, #tpu.memory_space<vmem>>, vector<1x8x1xf32>
    %625 = vector.shape_cast %624 : vector<1x8x1xf32> to vector<8x1xf32>
    %626 = vector.broadcast %625 : vector<8x1xf32> to vector<8x256xf32>
    %627 = arith.mulf %626, %444 : vector<8x256xf32>
    %628 = arith.addf %623, %627 : vector<8x256xf32>
    %629 = vector.extract_strided_slice %628 {offsets = [2, 0], sizes = [6, 256], strides = [1, 1]} : vector<8x256xf32> to vector<6x256xf32>
    %630 = vector.extract_strided_slice %628 {offsets = [0, 0], sizes = [2, 256], strides = [1, 1]} : vector<8x256xf32> to vector<2x256xf32>
    %631 = tpu.concatenate %629, %630 in 0 : vector<6x256xf32>, vector<2x256xf32> -> vector<8x256xf32>
    %632 = arith.addf %584, %631 : vector<8x256xf32>
    %c18_340 = arith.constant 18 : index
    %c0_341 = arith.constant 0 : index
    %c0_342 = arith.constant 0 : index
    %633 = vector.load %arg6[%c18_340, %c0_341, %c0_342] : memref<36x8x1xf32, #tpu.memory_space<vmem>>, vector<1x8x1xf32>
    %634 = vector.shape_cast %633 : vector<1x8x1xf32> to vector<8x1xf32>
    %635 = vector.broadcast %634 : vector<8x1xf32> to vector<8x256xf32>
    %636 = arith.mulf %635, %409 : vector<8x256xf32>
    %c19_343 = arith.constant 19 : index
    %c0_344 = arith.constant 0 : index
    %c0_345 = arith.constant 0 : index
    %637 = vector.load %arg6[%c19_343, %c0_344, %c0_345] : memref<36x8x1xf32, #tpu.memory_space<vmem>>, vector<1x8x1xf32>
    %638 = vector.shape_cast %637 : vector<1x8x1xf32> to vector<8x1xf32>
    %639 = vector.broadcast %638 : vector<8x1xf32> to vector<8x256xf32>
    %640 = arith.mulf %639, %414 : vector<8x256xf32>
    %641 = arith.addf %636, %640 : vector<8x256xf32>
    %c20_346 = arith.constant 20 : index
    %c0_347 = arith.constant 0 : index
    %c0_348 = arith.constant 0 : index
    %642 = vector.load %arg6[%c20_346, %c0_347, %c0_348] : memref<36x8x1xf32, #tpu.memory_space<vmem>>, vector<1x8x1xf32>
    %643 = vector.shape_cast %642 : vector<1x8x1xf32> to vector<8x1xf32>
    %644 = vector.broadcast %643 : vector<8x1xf32> to vector<8x256xf32>
    %645 = arith.mulf %644, %419 : vector<8x256xf32>
    %646 = arith.addf %641, %645 : vector<8x256xf32>
    %c21_349 = arith.constant 21 : index
    %c0_350 = arith.constant 0 : index
    %c0_351 = arith.constant 0 : index
    %647 = vector.load %arg6[%c21_349, %c0_350, %c0_351] : memref<36x8x1xf32, #tpu.memory_space<vmem>>, vector<1x8x1xf32>
    %648 = vector.shape_cast %647 : vector<1x8x1xf32> to vector<8x1xf32>
    %649 = vector.broadcast %648 : vector<8x1xf32> to vector<8x256xf32>
    %650 = arith.mulf %649, %424 : vector<8x256xf32>
    %651 = arith.addf %646, %650 : vector<8x256xf32>
    %c22_352 = arith.constant 22 : index
    %c0_353 = arith.constant 0 : index
    %c0_354 = arith.constant 0 : index
    %652 = vector.load %arg6[%c22_352, %c0_353, %c0_354] : memref<36x8x1xf32, #tpu.memory_space<vmem>>, vector<1x8x1xf32>
    %653 = vector.shape_cast %652 : vector<1x8x1xf32> to vector<8x1xf32>
    %654 = vector.broadcast %653 : vector<8x1xf32> to vector<8x256xf32>
    %655 = arith.mulf %654, %404 : vector<8x256xf32>
    %656 = arith.addf %651, %655 : vector<8x256xf32>
    %c23_355 = arith.constant 23 : index
    %c0_356 = arith.constant 0 : index
    %c0_357 = arith.constant 0 : index
    %657 = vector.load %arg6[%c23_355, %c0_356, %c0_357] : memref<36x8x1xf32, #tpu.memory_space<vmem>>, vector<1x8x1xf32>
    %658 = vector.shape_cast %657 : vector<1x8x1xf32> to vector<8x1xf32>
    %659 = vector.broadcast %658 : vector<8x1xf32> to vector<8x256xf32>
    %660 = arith.mulf %659, %429 : vector<8x256xf32>
    %661 = arith.addf %656, %660 : vector<8x256xf32>
    %c24_358 = arith.constant 24 : index
    %c0_359 = arith.constant 0 : index
    %c0_360 = arith.constant 0 : index
    %662 = vector.load %arg6[%c24_358, %c0_359, %c0_360] : memref<36x8x1xf32, #tpu.memory_space<vmem>>, vector<1x8x1xf32>
    %663 = vector.shape_cast %662 : vector<1x8x1xf32> to vector<8x1xf32>
    %664 = vector.broadcast %663 : vector<8x1xf32> to vector<8x256xf32>
    %665 = arith.mulf %664, %434 : vector<8x256xf32>
    %666 = arith.addf %661, %665 : vector<8x256xf32>
    %c25_361 = arith.constant 25 : index
    %c0_362 = arith.constant 0 : index
    %c0_363 = arith.constant 0 : index
    %667 = vector.load %arg6[%c25_361, %c0_362, %c0_363] : memref<36x8x1xf32, #tpu.memory_space<vmem>>, vector<1x8x1xf32>
    %668 = vector.shape_cast %667 : vector<1x8x1xf32> to vector<8x1xf32>
    %669 = vector.broadcast %668 : vector<8x1xf32> to vector<8x256xf32>
    %670 = arith.mulf %669, %439 : vector<8x256xf32>
    %671 = arith.addf %666, %670 : vector<8x256xf32>
    %c26_364 = arith.constant 26 : index
    %c0_365 = arith.constant 0 : index
    %c0_366 = arith.constant 0 : index
    %672 = vector.load %arg6[%c26_364, %c0_365, %c0_366] : memref<36x8x1xf32, #tpu.memory_space<vmem>>, vector<1x8x1xf32>
    %673 = vector.shape_cast %672 : vector<1x8x1xf32> to vector<8x1xf32>
    %674 = vector.broadcast %673 : vector<8x1xf32> to vector<8x256xf32>
    %675 = arith.mulf %674, %444 : vector<8x256xf32>
    %676 = arith.addf %671, %675 : vector<8x256xf32>
    %677 = vector.extract_strided_slice %676 {offsets = [6, 0], sizes = [2, 256], strides = [1, 1]} : vector<8x256xf32> to vector<2x256xf32>
    %678 = vector.extract_strided_slice %676 {offsets = [0, 0], sizes = [6, 256], strides = [1, 1]} : vector<8x256xf32> to vector<6x256xf32>
    %679 = tpu.concatenate %677, %678 in 0 : vector<2x256xf32>, vector<6x256xf32> -> vector<8x256xf32>
    %680 = arith.addf %632, %679 : vector<8x256xf32>
    %c27_367 = arith.constant 27 : index
    %c0_368 = arith.constant 0 : index
    %c0_369 = arith.constant 0 : index
    %681 = vector.load %arg5[%c27_367, %c0_368, %c0_369] : memref<36x8x1xf32, #tpu.memory_space<vmem>>, vector<1x8x1xf32>
    %682 = vector.shape_cast %681 : vector<1x8x1xf32> to vector<8x1xf32>
    %683 = vector.broadcast %682 : vector<8x1xf32> to vector<8x256xf32>
    %684 = arith.mulf %683, %409 : vector<8x256xf32>
    %c28_370 = arith.constant 28 : index
    %c0_371 = arith.constant 0 : index
    %c0_372 = arith.constant 0 : index
    %685 = vector.load %arg5[%c28_370, %c0_371, %c0_372] : memref<36x8x1xf32, #tpu.memory_space<vmem>>, vector<1x8x1xf32>
    %686 = vector.shape_cast %685 : vector<1x8x1xf32> to vector<8x1xf32>
    %687 = vector.broadcast %686 : vector<8x1xf32> to vector<8x256xf32>
    %688 = arith.mulf %687, %414 : vector<8x256xf32>
    %689 = arith.addf %684, %688 : vector<8x256xf32>
    %c29_373 = arith.constant 29 : index
    %c0_374 = arith.constant 0 : index
    %c0_375 = arith.constant 0 : index
    %690 = vector.load %arg5[%c29_373, %c0_374, %c0_375] : memref<36x8x1xf32, #tpu.memory_space<vmem>>, vector<1x8x1xf32>
    %691 = vector.shape_cast %690 : vector<1x8x1xf32> to vector<8x1xf32>
    %692 = vector.broadcast %691 : vector<8x1xf32> to vector<8x256xf32>
    %693 = arith.mulf %692, %419 : vector<8x256xf32>
    %694 = arith.addf %689, %693 : vector<8x256xf32>
    %c30_376 = arith.constant 30 : index
    %c0_377 = arith.constant 0 : index
    %c0_378 = arith.constant 0 : index
    %695 = vector.load %arg5[%c30_376, %c0_377, %c0_378] : memref<36x8x1xf32, #tpu.memory_space<vmem>>, vector<1x8x1xf32>
    %696 = vector.shape_cast %695 : vector<1x8x1xf32> to vector<8x1xf32>
    %697 = vector.broadcast %696 : vector<8x1xf32> to vector<8x256xf32>
    %698 = arith.mulf %697, %424 : vector<8x256xf32>
    %699 = arith.addf %694, %698 : vector<8x256xf32>
    %c31_379 = arith.constant 31 : index
    %c0_380 = arith.constant 0 : index
    %c0_381 = arith.constant 0 : index
    %700 = vector.load %arg5[%c31_379, %c0_380, %c0_381] : memref<36x8x1xf32, #tpu.memory_space<vmem>>, vector<1x8x1xf32>
    %701 = vector.shape_cast %700 : vector<1x8x1xf32> to vector<8x1xf32>
    %702 = vector.broadcast %701 : vector<8x1xf32> to vector<8x256xf32>
    %703 = arith.mulf %702, %404 : vector<8x256xf32>
    %704 = arith.addf %699, %703 : vector<8x256xf32>
    %c32_382 = arith.constant 32 : index
    %c0_383 = arith.constant 0 : index
    %c0_384 = arith.constant 0 : index
    %705 = vector.load %arg5[%c32_382, %c0_383, %c0_384] : memref<36x8x1xf32, #tpu.memory_space<vmem>>, vector<1x8x1xf32>
    %706 = vector.shape_cast %705 : vector<1x8x1xf32> to vector<8x1xf32>
    %707 = vector.broadcast %706 : vector<8x1xf32> to vector<8x256xf32>
    %708 = arith.mulf %707, %429 : vector<8x256xf32>
    %709 = arith.addf %704, %708 : vector<8x256xf32>
    %c33_385 = arith.constant 33 : index
    %c0_386 = arith.constant 0 : index
    %c0_387 = arith.constant 0 : index
    %710 = vector.load %arg5[%c33_385, %c0_386, %c0_387] : memref<36x8x1xf32, #tpu.memory_space<vmem>>, vector<1x8x1xf32>
    %711 = vector.shape_cast %710 : vector<1x8x1xf32> to vector<8x1xf32>
    %712 = vector.broadcast %711 : vector<8x1xf32> to vector<8x256xf32>
    %713 = arith.mulf %712, %434 : vector<8x256xf32>
    %714 = arith.addf %709, %713 : vector<8x256xf32>
    %c34_388 = arith.constant 34 : index
    %c0_389 = arith.constant 0 : index
    %c0_390 = arith.constant 0 : index
    %715 = vector.load %arg5[%c34_388, %c0_389, %c0_390] : memref<36x8x1xf32, #tpu.memory_space<vmem>>, vector<1x8x1xf32>
    %716 = vector.shape_cast %715 : vector<1x8x1xf32> to vector<8x1xf32>
    %717 = vector.broadcast %716 : vector<8x1xf32> to vector<8x256xf32>
    %718 = arith.mulf %717, %439 : vector<8x256xf32>
    %719 = arith.addf %714, %718 : vector<8x256xf32>
    %c35_391 = arith.constant 35 : index
    %c0_392 = arith.constant 0 : index
    %c0_393 = arith.constant 0 : index
    %720 = vector.load %arg5[%c35_391, %c0_392, %c0_393] : memref<36x8x1xf32, #tpu.memory_space<vmem>>, vector<1x8x1xf32>
    %721 = vector.shape_cast %720 : vector<1x8x1xf32> to vector<8x1xf32>
    %722 = vector.broadcast %721 : vector<8x1xf32> to vector<8x256xf32>
    %723 = arith.mulf %722, %444 : vector<8x256xf32>
    %724 = arith.addf %719, %723 : vector<8x256xf32>
    %725 = vector.extract_strided_slice %724 {offsets = [3, 0], sizes = [5, 256], strides = [1, 1]} : vector<8x256xf32> to vector<5x256xf32>
    %726 = vector.extract_strided_slice %724 {offsets = [0, 0], sizes = [3, 256], strides = [1, 1]} : vector<8x256xf32> to vector<3x256xf32>
    %727 = tpu.concatenate %725, %726 in 0 : vector<5x256xf32>, vector<3x256xf32> -> vector<8x256xf32>
    %728 = arith.addf %680, %727 : vector<8x256xf32>
    %c27_394 = arith.constant 27 : index
    %c0_395 = arith.constant 0 : index
    %c0_396 = arith.constant 0 : index
    %729 = vector.load %arg6[%c27_394, %c0_395, %c0_396] : memref<36x8x1xf32, #tpu.memory_space<vmem>>, vector<1x8x1xf32>
    %730 = vector.shape_cast %729 : vector<1x8x1xf32> to vector<8x1xf32>
    %731 = vector.broadcast %730 : vector<8x1xf32> to vector<8x256xf32>
    %732 = arith.mulf %731, %409 : vector<8x256xf32>
    %c28_397 = arith.constant 28 : index
    %c0_398 = arith.constant 0 : index
    %c0_399 = arith.constant 0 : index
    %733 = vector.load %arg6[%c28_397, %c0_398, %c0_399] : memref<36x8x1xf32, #tpu.memory_space<vmem>>, vector<1x8x1xf32>
    %734 = vector.shape_cast %733 : vector<1x8x1xf32> to vector<8x1xf32>
    %735 = vector.broadcast %734 : vector<8x1xf32> to vector<8x256xf32>
    %736 = arith.mulf %735, %414 : vector<8x256xf32>
    %737 = arith.addf %732, %736 : vector<8x256xf32>
    %c29_400 = arith.constant 29 : index
    %c0_401 = arith.constant 0 : index
    %c0_402 = arith.constant 0 : index
    %738 = vector.load %arg6[%c29_400, %c0_401, %c0_402] : memref<36x8x1xf32, #tpu.memory_space<vmem>>, vector<1x8x1xf32>
    %739 = vector.shape_cast %738 : vector<1x8x1xf32> to vector<8x1xf32>
    %740 = vector.broadcast %739 : vector<8x1xf32> to vector<8x256xf32>
    %741 = arith.mulf %740, %419 : vector<8x256xf32>
    %742 = arith.addf %737, %741 : vector<8x256xf32>
    %c30_403 = arith.constant 30 : index
    %c0_404 = arith.constant 0 : index
    %c0_405 = arith.constant 0 : index
    %743 = vector.load %arg6[%c30_403, %c0_404, %c0_405] : memref<36x8x1xf32, #tpu.memory_space<vmem>>, vector<1x8x1xf32>
    %744 = vector.shape_cast %743 : vector<1x8x1xf32> to vector<8x1xf32>
    %745 = vector.broadcast %744 : vector<8x1xf32> to vector<8x256xf32>
    %746 = arith.mulf %745, %424 : vector<8x256xf32>
    %747 = arith.addf %742, %746 : vector<8x256xf32>
    %c31_406 = arith.constant 31 : index
    %c0_407 = arith.constant 0 : index
    %c0_408 = arith.constant 0 : index
    %748 = vector.load %arg6[%c31_406, %c0_407, %c0_408] : memref<36x8x1xf32, #tpu.memory_space<vmem>>, vector<1x8x1xf32>
    %749 = vector.shape_cast %748 : vector<1x8x1xf32> to vector<8x1xf32>
    %750 = vector.broadcast %749 : vector<8x1xf32> to vector<8x256xf32>
    %751 = arith.mulf %750, %404 : vector<8x256xf32>
    %752 = arith.addf %747, %751 : vector<8x256xf32>
    %c32_409 = arith.constant 32 : index
    %c0_410 = arith.constant 0 : index
    %c0_411 = arith.constant 0 : index
    %753 = vector.load %arg6[%c32_409, %c0_410, %c0_411] : memref<36x8x1xf32, #tpu.memory_space<vmem>>, vector<1x8x1xf32>
    %754 = vector.shape_cast %753 : vector<1x8x1xf32> to vector<8x1xf32>
    %755 = vector.broadcast %754 : vector<8x1xf32> to vector<8x256xf32>
    %756 = arith.mulf %755, %429 : vector<8x256xf32>
    %757 = arith.addf %752, %756 : vector<8x256xf32>
    %c33_412 = arith.constant 33 : index
    %c0_413 = arith.constant 0 : index
    %c0_414 = arith.constant 0 : index
    %758 = vector.load %arg6[%c33_412, %c0_413, %c0_414] : memref<36x8x1xf32, #tpu.memory_space<vmem>>, vector<1x8x1xf32>
    %759 = vector.shape_cast %758 : vector<1x8x1xf32> to vector<8x1xf32>
    %760 = vector.broadcast %759 : vector<8x1xf32> to vector<8x256xf32>
    %761 = arith.mulf %760, %434 : vector<8x256xf32>
    %762 = arith.addf %757, %761 : vector<8x256xf32>
    %c34_415 = arith.constant 34 : index
    %c0_416 = arith.constant 0 : index
    %c0_417 = arith.constant 0 : index
    %763 = vector.load %arg6[%c34_415, %c0_416, %c0_417] : memref<36x8x1xf32, #tpu.memory_space<vmem>>, vector<1x8x1xf32>
    %764 = vector.shape_cast %763 : vector<1x8x1xf32> to vector<8x1xf32>
    %765 = vector.broadcast %764 : vector<8x1xf32> to vector<8x256xf32>
    %766 = arith.mulf %765, %439 : vector<8x256xf32>
    %767 = arith.addf %762, %766 : vector<8x256xf32>
    %c35_418 = arith.constant 35 : index
    %c0_419 = arith.constant 0 : index
    %c0_420 = arith.constant 0 : index
    %768 = vector.load %arg6[%c35_418, %c0_419, %c0_420] : memref<36x8x1xf32, #tpu.memory_space<vmem>>, vector<1x8x1xf32>
    %769 = vector.shape_cast %768 : vector<1x8x1xf32> to vector<8x1xf32>
    %770 = vector.broadcast %769 : vector<8x1xf32> to vector<8x256xf32>
    %771 = arith.mulf %770, %444 : vector<8x256xf32>
    %772 = arith.addf %767, %771 : vector<8x256xf32>
    %773 = vector.extract_strided_slice %772 {offsets = [7, 0], sizes = [1, 256], strides = [1, 1]} : vector<8x256xf32> to vector<1x256xf32>
    %774 = vector.extract_strided_slice %772 {offsets = [0, 0], sizes = [7, 256], strides = [1, 1]} : vector<8x256xf32> to vector<7x256xf32>
    %775 = tpu.concatenate %773, %774 in 0 : vector<1x256xf32>, vector<7x256xf32> -> vector<8x256xf32>
    %776 = arith.addf %728, %775 : vector<8x256xf32>
    %c0_421 = arith.constant 0 : index
    %c0_422 = arith.constant 0 : index
    %777 = vector.load %arg7[%c0_421, %c0_422] : memref<8x1xf32, #tpu.memory_space<vmem>>, vector<8x1xf32>
    %778 = vector.broadcast %777 : vector<8x1xf32> to vector<8x256xf32>
    %779 = arith.addf %776, %778 : vector<8x256xf32>
    %780 = arith.addf %0, %779 : vector<8x256xf32>
    %c0_423 = arith.constant 0 : index
    %c0_424 = arith.constant 0 : index
    %781 = vector.load %arg13[%c0_423, %c0_424] : memref<8x256xf32, #tpu.memory_space<vmem>>, vector<8x256xf32>
    tpu.vector_store %arg13[%c0_423, %c0_424], %780 {strides = array<i32>} : memref<8x256xf32, #tpu.memory_space<vmem>>, vector<8x256xf32>,
    return
  }
  func.func @transform_0(%arg0: i32) -> (i32, i32) {
    %c0_i32 = arith.constant 0 : i32
    %c0_i32_0 = arith.constant 0 : i32
    return %arg0, %c0_i32 : i32, i32
  }
  func.func @transform_1(%arg0: i32) -> (i32, i32, i32) {
    %c0_i32 = arith.constant 0 : i32
    %c0_i32_0 = arith.constant 0 : i32
    %c0_i32_1 = arith.constant 0 : i32
    %c0_i32_2 = arith.constant 0 : i32
    return %c0_i32, %c0_i32_0, %c0_i32_1 : i32, i32, i32
  }
  func.func @transform_2(%arg0: i32) -> (i32, i32, i32) {
    %c0_i32 = arith.constant 0 : i32
    %c0_i32_0 = arith.constant 0 : i32
    %c0_i32_1 = arith.constant 0 : i32
    %c0_i32_2 = arith.constant 0 : i32
    return %c0_i32, %c0_i32_0, %c0_i32_1 : i32, i32, i32
  }
  func.func @transform_3(%arg0: i32) -> (i32, i32) {
    %c0_i32 = arith.constant 0 : i32
    %c0_i32_0 = arith.constant 0 : i32
    %c0_i32_1 = arith.constant 0 : i32
    return %c0_i32, %c0_i32_0 : i32, i32
  }
  func.func @transform_4(%arg0: i32) -> (i32, i32, i32) {
    %c0_i32 = arith.constant 0 : i32
    %c0_i32_0 = arith.constant 0 : i32
    %c0_i32_1 = arith.constant 0 : i32
    %c0_i32_2 = arith.constant 0 : i32
    return %c0_i32, %c0_i32_0, %c0_i32_1 : i32, i32, i32
  }
  func.func @transform_5(%arg0: i32) -> (i32, i32, i32) {
    %c0_i32 = arith.constant 0 : i32
    %c0_i32_0 = arith.constant 0 : i32
    %c0_i32_1 = arith.constant 0 : i32
    %c0_i32_2 = arith.constant 0 : i32
    return %c0_i32, %c0_i32_0, %c0_i32_1 : i32, i32, i32
  }
  func.func @transform_6(%arg0: i32) -> (i32, i32) {
    %c0_i32 = arith.constant 0 : i32
    %c0_i32_0 = arith.constant 0 : i32
    %c0_i32_1 = arith.constant 0 : i32
    return %c0_i32, %c0_i32_0 : i32, i32
  }
  func.func @transform_7(%arg0: i32) -> (i32, i32, i32) {
    %c0_i32 = arith.constant 0 : i32
    %c0_i32_0 = arith.constant 0 : i32
    %c0_i32_1 = arith.constant 0 : i32
    %c0_i32_2 = arith.constant 0 : i32
    return %c0_i32, %c0_i32_0, %c0_i32_1 : i32, i32, i32
  }
  func.func @transform_8(%arg0: i32) -> (i32, i32) {
    %c0_i32 = arith.constant 0 : i32
    %c0_i32_0 = arith.constant 0 : i32
    %c0_i32_1 = arith.constant 0 : i32
    return %c0_i32, %c0_i32_0 : i32, i32
  }
  func.func @transform_9(%arg0: i32) -> (i32, i32) {
    %c0_i32 = arith.constant 0 : i32
    %c0_i32_0 = arith.constant 0 : i32
    %c0_i32_1 = arith.constant 0 : i32
    return %c0_i32, %c0_i32_0 : i32, i32
  }
  func.func @transform_10(%arg0: i32) -> (i32, i32) {
    %c0_i32 = arith.constant 0 : i32
    %c0_i32_0 = arith.constant 0 : i32
    %c0_i32_1 = arith.constant 0 : i32
    return %c0_i32, %c0_i32_0 : i32, i32
  }
  func.func @transform_11(%arg0: i32) -> (i32, i32) {
    %c0_i32 = arith.constant 0 : i32
    %c0_i32_0 = arith.constant 0 : i32
    %c0_i32_1 = arith.constant 0 : i32
    return %c0_i32, %c0_i32_0 : i32, i32
  }
  func.func @transform_12(%arg0: i32) -> (i32, i32) {
    %c0_i32 = arith.constant 0 : i32
    %c0_i32_0 = arith.constant 0 : i32
    return %arg0, %c0_i32 : i32, i32
  }
}

</mosaic_0001>

<bundles_post_ra>
// kernel: tpu_custom_call.1
= control target key start
LH: loop header
LB: loop body
LE: loop exit
PB: predicated region body
PF: predicated region fallthrough
CT: control target
= control target key end

     0   :  { %17 = vsyncpa [#allocation3], 0  ;;  %s10302_s0 = inlined_call_operand.vmem [shape: f32[8,256], index: 0, kind: input, shape index: {}]   ;;  %s10303_s1 = inlined_call_operand.vmem [shape: f32[36,8,1], index: 1, kind: input, shape index: {}]   ;;  %s10304_s2 = inlined_call_operand.vmem [shape: f32[36,8,1], index: 2, kind: input, shape index: {}]   ;;  %s10305_s3 = inlined_call_operand.vmem [shape: f32[8,1], index: 3, kind: input, shape index: {}]   ;;  %s10306_s4 = inlined_call_operand.vmem [shape: f32[36,8,1], index: 4, kind: input, shape index: {}]   ;;  %s10307_s5 = inlined_call_operand.vmem [shape: f32[36,8,1], index: 5, kind: input, shape index: {}]   ;;  %s10308_s6 = inlined_call_operand.vmem [shape: f32[8,1], index: 6, kind: input, shape index: {}]   ;;  %s10309_s7 = inlined_call_operand.vmem [shape: f32[9,1,256], index: 7, kind: input, shape index: {}]   ;;  %s10310_s8 = inlined_call_operand.vmem [shape: bf16[256,1024], index: 8, kind: input, shape index: {}]   ;;  %s10311_s9 = inlined_call_operand.hbm [shape: bf16[256,1024], index: 9, kind: input, shape index: {}]   ;;  %s10312_s10 = inlined_call_operand.hbm [shape: bf16[1024,256], index: 10, kind: input, shape index: {}]   ;;  %s10313_s11 = inlined_call_operand.hbm [shape: bf16[1024,256], index: 11, kind: input, shape index: {}]   ;;  %s10314_s12 = inlined_call_operand.hbm [shape: f32[8,256], index: 12, kind: output, shape index: {}]  }
   0x1   :  { %18 = vsyncpa [#allocation6], 0 }
   0x2   :  { %19 = vsyncpa [#allocation4], 0  ;;  %s7110_s21 = smov [#allocation5]  }
   0x3   :  { %s55_s22 = sshll.u32 %s7110_s21, 4  ;;  %s56_s22 = int_to_ptr.vmem [resolvable:$true] %s55_s22 }
   0x4   :  { %s7032_s23 = scalar_lea.vmem %s56_s22, 16384  ;;  %p7037_p1 = scmp.lt.s32.totalorder %s56_s22, %s56_s22 }
   0x5   :  { %p7033_p0 = scmp.ne.s32.totalorder %s56_s22, %s7032_s23  ;;  %p7038_p2 = scmp.lt.s32.totalorder %s7032_s23, %s7032_s23 }
   0x7   :  { %p7039_p3 = por %p7038_p2, %p7037_p1 }
   0x9   :  { %p7040_p4 = pnand %p7039_p3, %p7033_p0 }
   0xb   :  { %7043 = shalt.err (!%p7040_p4)
}
   0xc   :  { %s7111_s24 = smov 128   ;;  %s7112_s25 = smov 8  }
   0xd   :  { %61 = dma.hbm_to_vmem [thread:$0]  %s10312_s10, 16384, %s56_s22, [#allocation6], %s7111_s24, %s7111_s24, %s7112_s25  }
   0xe   :  { %s7113_s28 = smov [#allocation2]  }
   0xf   :  { %s43_s29 = sshll.u32 %s7113_s28, 4  ;;  %s44_s29 = int_to_ptr.vmem [resolvable:$true] %s43_s29 }
  0x10   :  { %s7052_s30 = scalar_lea.vmem %s44_s29, 16384  ;;  %p7057_p6 = scmp.lt.s32.totalorder %s44_s29, %s44_s29 }
  0x11   :  { %p7053_p5 = scmp.ne.s32.totalorder %s44_s29, %s7052_s30  ;;  %p7058_p7 = scmp.lt.s32.totalorder %s7052_s30, %s7052_s30 }
  0x13   :  { %p7059_p8 = por %p7058_p7, %p7057_p6 }
  0x15   :  { %p7060_p9 = pnand %p7059_p8, %p7053_p5 }
  0x17   :  { %7063 = shalt.err (!%p7060_p9)
}
  0x18   :  { %s7114_s13 = smov 512   ;;  %s7115_s14 = smov 32  }
  0x19   :  { %49 = dma.hbm_to_vmem [thread:$0]  %s10311_s9, 16384, %s44_s29, [#allocation3], %s7114_s13, %s7114_s13, %s7115_s14  }
  0x1a   :  { %s7116_s17 = smov [#allocation7]  }
  0x1b   :  { %s67_s18 = sshll.u32 %s7116_s17, 4  ;;  %s68_s18 = int_to_ptr.vmem [resolvable:$true] %s67_s18 }
  0x1c   :  { %s7072_s10 = scalar_lea.vmem %s68_s18, 16384  ;;  %p7077_p11 = scmp.lt.s32.totalorder %s68_s18, %s68_s18 }
  0x1d   :  { %p7073_p10 = scmp.ne.s32.totalorder %s68_s18, %s7072_s10  ;;  %p7078_p12 = scmp.lt.s32.totalorder %s7072_s10, %s7072_s10 }
  0x1f   :  { %p7079_p13 = por %p7078_p12, %p7077_p11 }
  0x21   :  { %p7080_p0 = pnand %p7079_p13, %p7073_p10 }
  0x23   :  { %7083 = shalt.err (!%p7080_p0)
}
  0x24   :  { %73 = dma.hbm_to_vmem [thread:$0]  %s10313_s11, 16384, %s68_s18, [#allocation6], %s7111_s24, %s7111_s24, %s7112_s25  }
  0x25   :  { %7104 = dma.done.wait [#allocation3], 16384  }
  0x26   :  { %7105 = vsyncadd [#allocation3], 4294950912 }
  0x27   :  { %7106 = dma.done.wait [#allocation6], 32768  }
  0x28   :  { %7107 = vsyncadd [#allocation6], 4294934528  ;;  %v7117_v0 = vmov 0   ;;  %v5989_v1 = vld [vmem:[%s10303_s1 + $0x48] sm:$0xff]  ;;  %v7207_v2 = vld [vmem:[%s10302_s0] sm:$0xff]  ;;  %s7118_s26 = smov 17  }
  0x29   :  { %6634 = vset.pattern.permute.xlu0 %v7117_v0  ;;  %6635 = vset.pattern.permute.xlu1 %v7117_v0  ;;  %v5990_v3 = vld [vmem:[%s10303_s1 + $0x50] sm:$0xff]  ;;  %v7217_v4 = vld [vmem:[%s10302_s0 + $0x8] sm:$0xff]  ;;  %s7119_s28 = smov 16   ;;  %v262_v5 = vld [vmem:[%s10303_s1] sm:$0xff]  ;;  %s7120_s20 = smov 15  }
  0x2a   :  { %362 = vperm.xlu0 %6634, %v5989_v1   ;;  %85 = vrot.lane.b32.xlu1 %v7207_v2, %s7118_s26  ;;  %v5981_v6 = vld [vmem:[%s10303_s1 + $0x8] sm:$0xff]  ;;  %v5991_v7 = vld [vmem:[%s10303_s1 + $0x58] sm:$0xff]  ;;  %v5999_v9 = vld [vmem:[%s10304_s2 + $0x50] sm:$0xff]  ;;  %s7121_s13 = smov 1   ;;  %s7122_s22 = smov 127  }
  0x2b   :  { %v5998_v8 = vld [vmem:[%s10304_s2 + $0x48] sm:$0xff]  ;;  %v5982_v10 = vld [vmem:[%s10303_s1 + $0x10] sm:$0xff]  ;;  %v5992_v11 = vld [vmem:[%s10303_s1 + $0x60] sm:$0xff]  ;;  %s7123_s23 = smov 113   ;;  %s7124_s21 = smov 112  }
  0x2c   :  { %v6000_v12 = vld [vmem:[%s10304_s2 + $0x58] sm:$0xff]  ;;  %v6007_v13 = vld [vmem:[%s10303_s1 + $0x90] sm:$0xff]  ;;  %v5993_v16 = vld [vmem:[%s10303_s1 + $0x68] sm:$0xff]  ;;  %s7125_s29 = smov 111  }
  0x2d   :  { %v6008_v14 = vld [vmem:[%s10303_s1 + $0x98] sm:$0xff]  ;;  %v6001_v17 = vld [vmem:[%s10304_s2 + $0x60] sm:$0xff]  ;;  %v6016_v19 = vld [vmem:[%s10304_s2 + $0x90] sm:$0xff] }
  0x2e   :  { %371 = vperm.xlu0 %6634, %v5990_v3   ;;  %87 = vrot.lane.b32.xlu1 %v7217_v4, %s7118_s26  ;;  %v5983_v15 = vld [vmem:[%s10303_s1 + $0x18] sm:$0xff]  ;;  %v6009_v18 = vld [vmem:[%s10303_s1 + $0xa0] sm:$0xff]  ;;  %v5994_v22 = vld [vmem:[%s10303_s1 + $0x70] sm:$0xff] }
  0x2f   :  { %v6017_v20 = vld [vmem:[%s10304_s2 + $0x98] sm:$0xff]  ;;  %v5984_v21 = vld [vmem:[%s10303_s1 + $0x20] sm:$0xff]  ;;  %v6002_v23 = vld [vmem:[%s10304_s2 + $0x68] sm:$0xff] }
  0x30   :  { %v6010_v24 = vld [vmem:[%s10303_s1 + $0xa8] sm:$0xff]  ;;  %v6018_v25 = vld [vmem:[%s10304_s2 + $0xa0] sm:$0xff]  ;;  %v6025_v26 = vld [vmem:[%s10303_s1 + $0xd8] sm:$0xff] }
  0x31   :  { %v6026_v27 = vld [vmem:[%s10303_s1 + $0xe0] sm:$0xff]  ;;  %v5985_v28 = vld [vmem:[%s10303_s1 + $0x28] sm:$0xff]  ;;  %v5995_v29 = vld [vmem:[%s10303_s1 + $0x78] sm:$0xff] }
  0x32   :  { %108 = vrot.lane.b32.xlu0 %v7207_v2, %s7119_s28  ;;  %110 = vrot.lane.b32.xlu1 %v7217_v4, %s7119_s28  ;;  %v6003_v30 = vld [vmem:[%s10304_s2 + $0x70] sm:$0xff]  ;;  %v6019_v32 = vld [vmem:[%s10304_s2 + $0xa8] sm:$0xff] }
  0x33   :  { %v6011_v31 = vld [vmem:[%s10303_s1 + $0xb0] sm:$0xff]  ;;  %v6027_v33 = vld [vmem:[%s10303_s1 + $0xe8] sm:$0xff]  ;;  %v6034_v34 = vld [vmem:[%s10304_s2 + $0xd8] sm:$0xff] }
  0x34   :  { %v6035_v35 = vld [vmem:[%s10304_s2 + $0xe0] sm:$0xff]  ;;  %v5986_v36 = vld [vmem:[%s10303_s1 + $0x30] sm:$0xff]  ;;  %v6004_v38 = vld [vmem:[%s10304_s2 + $0x78] sm:$0xff] }
  0x35   :  { %v5996_v37 = vld [vmem:[%s10303_s1 + $0x80] sm:$0xff]  ;;  %v6012_v39 = vld [vmem:[%s10303_s1 + $0xb8] sm:$0xff]  ;;  %v6020_v40 = vld [vmem:[%s10304_s2 + $0xb0] sm:$0xff] }
  0x36   :  { %265 = vperm.xlu0 %6634, %v262_v5   ;;  %274 = vperm.xlu1 %6635, %v5981_v6   ;;  %v6028_v41 = vld [vmem:[%s10303_s1 + $0xf0] sm:$0xff]  ;;  %v6036_v42 = vld [vmem:[%s10304_s2 + $0xe8] sm:$0xff]  ;;  %v5987_v43 = vld [vmem:[%s10303_s1 + $0x38] sm:$0xff] }
  0x37   :  { %v5997_v44 = vld [vmem:[%s10303_s1 + $0x88] sm:$0xff]  ;;  %v1078_v45 = vld [vmem:[%s10310_s8 + $0x1c0] sm:$0xff]  ;;  %v6021_v63 = vld [vmem:[%s10304_s2 + $0xb8] sm:$0xff] }
  0x38   :  { %v1082_v46 = vld [vmem:[%s10310_s8 + $0x1e0] sm:$0xff]  ;;  %v1079_v47 = vld [vmem:[%s10310_s8 + $0x1c8] sm:$0xff]  ;;  %v6029_v0 = vld [vmem:[%s10303_s1 + $0xf8] sm:$0xff] }
  0x39   :  { %v7374_v48 = vcombine.high %v1078_v45, %v1082_v46  ;;  %v1083_v49 = vld [vmem:[%s10310_s8 + $0x1e8] sm:$0xff]  ;;  %v7379_v50 = vcombine.low %v1078_v45, %v1082_v46  ;;  %v6005_v53 = vld [vmem:[%s10304_s2 + $0x80] sm:$0xff] }
  0x3a   :  { %382 = vperm.xlu0 %6634, %v5991_v7   ;;  %470 = vperm.xlu1 %6635, %v5998_v8   ;;  %v7381_v51 = vcombine.high %v1079_v47, %v1083_v49  ;;  %v7383_v52 = vcombine.low %v1079_v47, %v1083_v49  ;;  %v6013_v54 = vld [vmem:[%s10303_s1 + $0xc0] sm:$0xff]  ;;  %v1071_v57 = vld [vmem:[%s10310_s8 + $0x188] sm:$0xff] }
  0x3b   :  { %10540 = vst [vmem:[#allocation12_spill] sm:$0xff] %v7374_v48  ;;  %10541 = vst [vmem:[#allocation13_spill] sm:$0xff] %v7379_v50  ;;  %v1070_v55 = vld [vmem:[%s10310_s8 + $0x180] sm:$0xff]  ;;  %1790 = vmatprep.subr.bf16.mxu0 %v7374_v48  ;;  %v1075_v58 = vld [vmem:[%s10310_s8 + $0x1a8] sm:$0xff] }
  0x3c   :  { %10542 = vst [vmem:[#allocation14_spill] sm:$0xff] %v7381_v51  ;;  %10543 = vst [vmem:[#allocation15_spill] sm:$0xff] %v7383_v52  ;;  %1831 = vmatprep.subr.bf16.mxu1 %v7381_v51  ;;  %v1074_v56 = vld [vmem:[%s10310_s8 + $0x1a0] sm:$0xff]  ;;  %1791 = vmatpush1.bf16.msra.mxu0 %v7379_v50  ;;  %v7409_v60 = vcombine.high %v1071_v57, %v1075_v58  ;;  %v7413_v62 = vcombine.low %v1071_v57, %v1075_v58  ;;  %v1063_v5 = vld [vmem:[%s10310_s8 + $0x148] sm:$0xff] }
  0x3d   :  { %1832 = vmatpush1.bf16.msra.mxu1 %v7383_v52  ;;  %v7407_v59 = vcombine.high %v1070_v55, %v1074_v56  ;;  %v7411_v61 = vcombine.low %v1070_v55, %v1074_v56  ;;  %v1062_v1 = vld [vmem:[%s10310_s8 + $0x140] sm:$0xff]  ;;  %v1067_v6 = vld [vmem:[%s10310_s8 + $0x168] sm:$0xff]  ;;  %v6038_v57 = vld [vmem:[%s10304_s2 + $0xf8] sm:$0xff] }
  0x3e   :  { %479 = vperm.xlu0 %6634, %v5999_v9   ;;  %130 = vrot.lane.b32.xlu1 %v7207_v2, %s7120_s20  ;;  %10545 = vst [vmem:[#allocation17_spill] sm:$0xff] %v7409_v60  ;;  %10547 = vst [vmem:[#allocation19_spill] sm:$0xff] %v7413_v62  ;;  %v1066_v3 = vld [vmem:[%s10310_s8 + $0x160] sm:$0xff]  ;;  %v7439_v8 = vcombine.high %v1063_v5, %v1067_v6  ;;  %v1031_v45 = vld [vmem:[%s10310_s8 + $0x48] sm:$0xff] }
  0x3f   :  { %10544 = vst [vmem:[#allocation16_spill] sm:$0xff] %v7407_v59  ;;  %10546 = vst [vmem:[#allocation18_spill] sm:$0xff] %v7411_v61  ;;  %1792 = vmatprep.subr.bf16.mxu0 %v7407_v59  ;;  %1833 = vmatprep.subr.bf16.mxu1 %v7409_v60  ;;  %v7437_v7 = vcombine.high %v1062_v1, %v1066_v3  ;;  %v7441_v9 = vcombine.low %v1062_v1, %v1066_v3  ;;  %v1035_v46 = vld [vmem:[%s10310_s8 + $0x68] sm:$0xff]  ;;  %v6015_v58 = vld [vmem:[%s10303_s1 + $0xd0] sm:$0xff] }
  0x40   :  { %1793 = vmatpush1.bf16.msra.mxu0 %v7411_v61  ;;  %10549 = vst [vmem:[#allocation21_spill] sm:$0xff] %v7439_v8  ;;  %v7565_v49 = vcombine.high %v1031_v45, %v1035_v46  ;;  %v7573_v56 = vcombine.low %v1031_v45, %v1035_v46  ;;  %v1023_v1 = vld [vmem:[%s10310_s8 + $0x8] sm:$0xff]  ;;  %v6024_v46 = vld [vmem:[%s10304_s2 + $0xd0] sm:$0xff] }
  0x41   :  { %1834 = vmatpush1.bf16.msra.mxu1 %v7413_v62  ;;  %10548 = vst [vmem:[#allocation20_spill] sm:$0xff] %v7437_v7  ;;  %10550 = vst [vmem:[#allocation22_spill] sm:$0xff] %v7441_v9  ;;  %1794 = vmatprep.subr.bf16.mxu0 %v7437_v7  ;;  %v1027_v3 = vld [vmem:[%s10310_s8 + $0x28] sm:$0xff]  ;;  %v6578_v7 = vld [vmem:[%s10307_s5 + $0x78] sm:$0xff] }
  0x42   :  { %132 = vrot.lane.b32.xlu0 %v7217_v4, %s7120_s20  ;;  %285 = vperm.xlu1 %6635, %v5982_v10   ;;  %v7443_v10 = vcombine.low %v1063_v5, %v1067_v6  ;;  %10565 = vst [vmem:[#allocation37_spill] sm:$0xff] %v7565_v49  ;;  %10567 = vst [vmem:[#allocation39_spill] sm:$0xff] %v7573_v56  ;;  %v7599_v6 = vcombine.high %v1023_v1, %v1027_v3  ;;  %v1139_v45 = vld [vmem:[%s10310_s8 + $0x3a8] sm:$0xff] }
  0x43   :  { %1835 = vmatprep.subr.bf16.mxu1 %v7439_v8 }
  0x44   :  { %10551 = vst [vmem:[#allocation23_spill] sm:$0xff] %v7443_v10  ;;  %1795 = vmatpush1.bf16.msra.mxu0 %v7441_v9  ;;  %10569 = vst [vmem:[#allocation41_spill] sm:$0xff] %v7599_v6 }
  0x45   :  { %1836 = vmatpush1.bf16.msra.mxu1 %v7443_v10 }
  0x46   :  { %393 = vperm.xlu0 %6634, %v5992_v11   ;;  %490 = vperm.xlu1 %6635, %v6000_v12   ;;  %v6037_v11 = vld [vmem:[%s10304_s2 + $0xf0] sm:$0xff]  ;;  %v1054_v12 = vld [vmem:[%s10310_s8 + $0x100] sm:$0xff] }
  0x4a   :  { %578 = vperm.xlu0 %6634, %v6007_v13   ;;  %587 = vperm.xlu1 %6635, %v6008_v14   ;;  %v1058_v13 = vld [vmem:[%s10310_s8 + $0x120] sm:$0xff]  ;;  %v1055_v14 = vld [vmem:[%s10310_s8 + $0x108] sm:$0xff] }
  0x4e   :  { %152 = vrot.lane.b32.xlu0 %v7207_v2, %s7121_s13  ;;  %154 = vrot.lane.b32.xlu1 %v7217_v4, %s7121_s13 }
  0x52   :  { %296 = vperm.xlu0 %6634, %v5983_v15   ;;  %404 = vperm.xlu1 %6635, %v5993_v16   ;;  %v1059_v15 = vld [vmem:[%s10310_s8 + $0x128] sm:$0xff]  ;;  %v7464_v16 = vcombine.high %v1054_v12, %v1058_v13 }
  0x54   :  { %10552 = vst [vmem:[#allocation24_spill] sm:$0xff] %v7464_v16  ;;  %1796 = vmatprep.subr.bf16.mxu0 %v7464_v16  ;;  %v94_v16 = vld [vmem:[%s10309_s7] sm:$0x3] }
  0x56   :  { %501 = vperm.xlu0 %6634, %v6001_v17   ;;  %598 = vperm.xlu1 %6635, %v6009_v18   ;;  %v7466_v17 = vcombine.high %v1055_v14, %v1059_v15  ;;  %v7468_v18 = vcombine.low %v1054_v12, %v1058_v13 }
  0x58   :  { %10553 = vst [vmem:[#allocation25_spill] sm:$0xff] %v7466_v17  ;;  %10554 = vst [vmem:[#allocation26_spill] sm:$0xff] %v7468_v18  ;;  %1837 = vmatprep.subr.bf16.mxu1 %v7466_v17  ;;  %1797 = vmatpush1.bf16.msra.mxu0 %v7468_v18  ;;  %v6577_v17 = vld [vmem:[%s10307_s5 + $0x70] sm:$0xff] }
  0x5a   :  { %686 = vperm.xlu0 %6634, %v6016_v19   ;;  %695 = vperm.xlu1 %6635, %v6017_v20   ;;  %v7470_v19 = vcombine.low %v1055_v14, %v1059_v15  ;;  %v5988_v20 = vld [vmem:[%s10303_s1 + $0x40] sm:$0xff]  ;;  %v7607_v14 = vcombine.low %v1023_v1, %v1027_v3  ;;  %v6023_v15 = vld [vmem:[%s10304_s2 + $0xc8] sm:$0xff] }
  0x5c   :  { %10555 = vst [vmem:[#allocation27_spill] sm:$0xff] %v7470_v19  ;;  %1838 = vmatpush1.bf16.msra.mxu1 %v7470_v19  ;;  %10571 = vst [vmem:[#allocation43_spill] sm:$0xff] %v7607_v14 }
  0x5e   :  { %307 = vperm.xlu0 %6634, %v5984_v21   ;;  %415 = vperm.xlu1 %6635, %v5994_v22   ;;  %v1046_v21 = vld [vmem:[%s10310_s8 + $0xc0] sm:$0xff] }
  0x62   :  { %512 = vperm.xlu0 %6634, %v6002_v23   ;;  %609 = vperm.xlu1 %6635, %v6010_v24   ;;  %v1050_v23 = vld [vmem:[%s10310_s8 + $0xe0] sm:$0xff]  ;;  %v1051_v24 = vld [vmem:[%s10310_s8 + $0xe8] sm:$0xff] }
  0x66   :  { %706 = vperm.xlu0 %6634, %v6018_v25   ;;  %794 = vperm.xlu1 %6635, %v6025_v26   ;;  %v7495_v25 = vcombine.high %v1046_v21, %v1050_v23 }
  0x68   :  { %10556 = vst [vmem:[#allocation28_spill] sm:$0xff] %v7495_v25  ;;  %1798 = vmatprep.subr.bf16.mxu0 %v7495_v25 }
  0x6a   :  { %803 = vperm.xlu0 %6634, %v6026_v27   ;;  %174 = vrot.lane.b32.xlu1 %v7207_v2, %s7122_s22  ;;  %v7499_v27 = vcombine.low %v1046_v21, %v1050_v23  ;;  %v1142_v21 = vld [vmem:[%s10310_s8 + $0x3c0] sm:$0xff] }
  0x6b   :  { %v1146_v23 = vld [vmem:[%s10310_s8 + $0x3e0] sm:$0xff] }
  0x6c   :  { %10558 = vst [vmem:[#allocation30_spill] sm:$0xff] %v7499_v27  ;;  %1799 = vmatpush1.bf16.msra.mxu0 %v7499_v27 }
  0x6e   :  { %176 = vrot.lane.b32.xlu0 %v7217_v4, %s7122_s22  ;;  %318 = vperm.xlu1 %6635, %v5985_v28  }
  0x72   :  { %426 = vperm.xlu0 %6634, %v5995_v29   ;;  %523 = vperm.xlu1 %6635, %v6003_v30   ;;  %v6006_v30 = vld [vmem:[%s10304_s2 + $0x88] sm:$0xff] }
  0x76   :  { %620 = vperm.xlu0 %6634, %v6011_v31   ;;  %717 = vperm.xlu1 %6635, %v6019_v32   ;;  %v6014_v31 = vld [vmem:[%s10303_s1 + $0xc8] sm:$0xff]  ;;  %v1038_v32 = vld [vmem:[%s10310_s8 + $0x80] sm:$0xff] }
  0x7a   :  { %814 = vperm.xlu0 %6634, %v6027_v33   ;;  %902 = vperm.xlu1 %6635, %v6034_v34   ;;  %v1039_v33 = vld [vmem:[%s10310_s8 + $0x88] sm:$0xff] }
  0x7b   :  { %v1043_v34 = vld [vmem:[%s10310_s8 + $0xa8] sm:$0xff] }
  0x7e   :  { %911 = vperm.xlu0 %6634, %v6035_v35   ;;  %196 = vrot.lane.b32.xlu1 %v7207_v2, %s7123_s23 }
  0x82   :  { %198 = vrot.lane.b32.xlu0 %v7217_v4, %s7123_s23  ;;  %329 = vperm.xlu1 %6635, %v5986_v36   ;;  %v7531_v36 = vcombine.high %v1039_v33, %v1043_v34 }
  0x84   :  { %10561 = vst [vmem:[#allocation33_spill] sm:$0xff] %v7531_v36 }
  0x86   :  { %437 = vperm.xlu0 %6634, %v5996_v37   ;;  %534 = vperm.xlu1 %6635, %v6004_v38  }
  0x8a   :  { %631 = vperm.xlu0 %6634, %v6012_v39   ;;  %728 = vperm.xlu1 %6635, %v6020_v40   ;;  %v7539_v40 = vcombine.low %v1039_v33, %v1043_v34  ;;  %v7639_v33 = vcombine.low %v1142_v21, %v1146_v23 }
  0x8c   :  { %10563 = vst [vmem:[#allocation35_spill] sm:$0xff] %v7539_v40  ;;  %10574 = vst [vmem:[#allocation46_spill] sm:$0xff] %v7639_v33 }
  0x8e   :  { %825 = vperm.xlu0 %6634, %v6028_v41   ;;  %922 = vperm.xlu1 %6635, %v6036_v42   ;;  %v6022_v41 = vld [vmem:[%s10304_s2 + $0xc0] sm:$0xff] }
  0x8f   :  { %v6030_v42 = vld [vmem:[%s10303_s1 + $0x100] sm:$0xff] }
  0x92   :  { %218 = vrot.lane.b32.xlu0 %v7207_v2, %s7124_s21  ;;  %220 = vrot.lane.b32.xlu1 %v7217_v4, %s7124_s21 }
  0x96   :  { %340 = vperm.xlu0 %6634, %v5987_v43   ;;  %448 = vperm.xlu1 %6635, %v5997_v44   ;;  %v1030_v43 = vld [vmem:[%s10310_s8 + $0x40] sm:$0xff] }
  0x97   :  { %v1034_v44 = vld [vmem:[%s10310_s8 + $0x60] sm:$0xff] }
  0x98   :  { %v7563_v47 = vcombine.high %v1030_v43, %v1034_v44 }
  0x9a   :  { %545 = vperm.xlu0 %6634, %v6005_v53   ;;  %642 = vperm.xlu1 %6635, %v6013_v54   ;;  %10564 = vst [vmem:[#allocation36_spill] sm:$0xff] %v7563_v47  ;;  %v7567_v53 = vcombine.low %v1030_v43, %v1034_v44  ;;  %v1138_v43 = vld [vmem:[%s10310_s8 + $0x3a0] sm:$0xff]  ;;  %v1135_v44 = vld [vmem:[%s10310_s8 + $0x388] sm:$0xff] }
  0x9b   :  { %v7675_v3 = vcombine.low %v1135_v44, %v1139_v45 }
  0x9c   :  { %v7480_v22 = vpop.permute.xlu1 %85  ;;  %10566 = vst [vmem:[#allocation38_spill] sm:$0xff] %v7567_v53 }
  0x9d   :  { %10579 = vst [vmem:[#allocation51_spill] sm:$0xff] %v7675_v3 }
  0x9e   :  { %739 = vperm.xlu0 %6634, %v6021_v63   ;;  %836 = vperm.xlu1 %6635, %v6029_v0   ;;  %v1022_v63 = vld [vmem:[%s10310_s8] sm:$0xff] }
  0x9f   :  { %v1026_v0 = vld [vmem:[%s10310_s8 + $0x20] sm:$0xff] }
  0xa0   :  { %v7535_v38 = vpop.permute.xlu1 %87  ;;  %v7597_v5 = vcombine.high %v1022_v63, %v1026_v0 }
  0xa2   :  { %933 = vperm.xlu0 %6634, %v6037_v11   ;;  %240 = vrot.lane.b32.xlu1 %v7207_v2, %s7125_s29  ;;  %v1047_v2 = vld [vmem:[%s10310_s8 + $0xc8] sm:$0xff]  ;;  %10568 = vst [vmem:[#allocation40_spill] sm:$0xff] %v7597_v5  ;;  %v7601_v11 = vcombine.low %v1022_v63, %v1026_v0 }
  0xa3   :  { %v7497_v26 = vcombine.high %v1047_v2, %v1051_v24  ;;  %v7503_v29 = vcombine.low %v1047_v2, %v1051_v24  ;;  %v1143_v2 = vld [vmem:[%s10310_s8 + $0x3c8] sm:$0xff] }
  0xa4   :  { %v7569_v54 = vpop.permute.xlu1 %110  ;;  %10570 = vst [vmem:[#allocation42_spill] sm:$0xff] %v7601_v11  ;;  %v1147_v24 = vld [vmem:[%s10310_s8 + $0x3e8] sm:$0xff] }
  0xa5   :  { %10557 = vst [vmem:[#allocation29_spill] sm:$0xff] %v7497_v26  ;;  %v7501_v28 = vpop.permute.xlu0 %362  ;;  %10559 = vst [vmem:[#allocation31_spill] sm:$0xff] %v7503_v29  ;;  %1839 = vmatprep.subr.bf16.mxu1 %v7497_v26  ;;  %v7641_v34 = vcombine.low %v1143_v2, %v1147_v24 }
  0xa6   :  { %242 = vrot.lane.b32.xlu0 %v7217_v4, %s7125_s29  ;;  %351 = vperm.xlu1 %6635, %v5988_v20   ;;  %v1042_v4 = vld [vmem:[%s10310_s8 + $0xa0] sm:$0xff]  ;;  %v6031_v20 = vld [vmem:[%s10303_s1 + $0x108] sm:$0xff] }
  0xa7   :  { %1840 = vmatpush1.bf16.msra.mxu1 %v7503_v29  ;;  %v7529_v35 = vcombine.high %v1038_v32, %v1042_v4  ;;  %v7533_v37 = vcombine.low %v1038_v32, %v1042_v4  ;;  %v7637_v4 = vcombine.high %v1143_v2, %v1147_v24  ;;  %10575 = vst [vmem:[#allocation47_spill] sm:$0xff] %v7641_v34  ;;  %v1131_v2 = vld [vmem:[%s10310_s8 + $0x368] sm:$0xff] }
  0xa8   :  { %1841 = vmatprep.subr.bf16.mxu1 %v7531_v36  ;;  %v6040_v24 = vld [vmem:[%s10304_s2 + $0x108] sm:$0xff]  ;;  %v89_v36 = vlaneseq }
  0xa9   :  { %10560 = vst [vmem:[#allocation32_spill] sm:$0xff] %v7529_v35  ;;  %10562 = vst [vmem:[#allocation34_spill] sm:$0xff] %v7533_v37  ;;  %v7537_v39 = vpop.permute.xlu0 %371  ;;  %1800 = vmatprep.subr.bf16.mxu0 %v7529_v35 }
  0xaa   :  { %556 = vperm.xlu0 %6634, %v6006_v30   ;;  %653 = vperm.xlu1 %6635, %v6014_v31   ;;  %v7630_v30 = vcombine.high %v1142_v21, %v1146_v23  ;;  %10573 = vst [vmem:[#allocation45_spill] sm:$0xff] %v7637_v4  ;;  %v1130_v21 = vld [vmem:[%s10310_s8 + $0x360] sm:$0xff]  ;;  %v1127_v23 = vld [vmem:[%s10310_s8 + $0x348] sm:$0xff]  ;;  %v97_v27 = vshrl.u32 %v89_v36, 7  ;;  %v7983_v26 = vand.u32 127, %v89_v36 }
  0xab   :  { %1801 = vmatpush1.bf16.msra.mxu0 %v7533_v37  ;;  %1842 = vmatpush1.bf16.msra.mxu1 %v7539_v40  ;;  %v6570_v40 = vld [vmem:[%s10306_s4 + $0x80] sm:$0xff]  ;;  %v6576_v36 = vld [vmem:[%s10307_s5 + $0x68] sm:$0xff] }
  0xac   :  { %1802 = vmatprep.subr.bf16.mxu0 %v7563_v47  ;;  %1843 = vmatprep.subr.bf16.mxu1 %v7565_v49  ;;  %10572 = vst [vmem:[#allocation44_spill] sm:$0xff] %v7630_v30  ;;  %v6568_v49 = vld [vmem:[%s10306_s4 + $0x70] sm:$0xff]  ;;  %10609 = vst [vmem:[#allocation81_spill] sm:$0xff] %v7983_v26  ;;  %v7994_v18 = vsub.s32 1, %v97_v27  ;;  %vm112_vm0 = vcmp.lt.s32.totalorder %v7983_v26, 16  ;;  %vm91_vm1 = vcmp.lt.s32.totalorder %v7983_v26, 17 }
  0xad   :  { %v7571_v55 = vpop.permute.xlu0 %108  ;;  %vm134_vm2 = vcmp.lt.s32.totalorder %v7983_v26, 15  ;;  %vm156_vm3 = vcmp.lt.s32.totalorder %v7983_v26, 1  ;;  %vm178_vm4 = vcmp.lt.s32.totalorder %v7983_v26, 127  ;;  %vm200_vm5 = vcmp.lt.s32.totalorder %v7983_v26, 113 }
  0xae   :  { %750 = vperm.xlu0 %6634, %v6022_v41   ;;  %847 = vperm.xlu1 %6635, %v6030_v42   ;;  %v6039_v41 = vld [vmem:[%s10304_s2 + $0x100] sm:$0xff]  ;;  %v113_v9 = vsel %vm112_vm0, %v7571_v55, %v7569_v54  ;;  %v114_v8 = vsel %vm112_vm0, %v7569_v54, %v7571_v55  ;;  %v8035_v61 = vrot.slane %v94_v16, %v7994_v18  ;;  %vm222_vm6 = vcmp.lt.s32.totalorder %v7983_v26, 112 }
  0xaf   :  { %1803 = vmatpush1.bf16.msra.mxu0 %v7567_v53  ;;  %1844 = vmatpush1.bf16.msra.mxu1 %v7573_v56  ;;  %v1134_v42 = vld [vmem:[%s10310_s8 + $0x380] sm:$0xff]  ;;  %v1080_v56 = vld [vmem:[%s10310_s8 + $0x1d0] sm:$0xff]  ;;  %vm244_vm7 = vcmp.lt.s32.totalorder %v7983_v26, 111 }
  0xb0   :  { %1804 = vmatprep.subr.bf16.mxu0 %v7597_v5  ;;  %1845 = vmatprep.subr.bf16.mxu1 %v7599_v6  ;;  %v7668_v63 = vcombine.low %v1134_v42, %v1138_v43  ;;  %v1086_v6 = vld [vmem:[%s10310_s8 + $0x200] sm:$0xff]  ;;  %10616 = vst [vmem:[#allocation88_spill] sm:$0xff] %v8035_v61  ;;  %v1096_v26 = vld [vmem:[%s10310_s8 + $0x250] sm:$0xff] }
  0xb1   :  { %v7603_v12 = vpop.permute.xlu0 %265  ;;  %v7605_v13 = vpop.permute.xlu1 %274  ;;  %v5976_v54 = vld [vmem:[%s10309_s7 + $0x6] sm:$0x3] }
  0xb2   :  { %944 = vperm.xlu0 %6634, %v6038_v57   ;;  %664 = vperm.xlu1 %6635, %v6015_v58   ;;  %v7664_v57 = vcombine.high %v1134_v42, %v1138_v43  ;;  %v7666_v58 = vcombine.high %v1135_v44, %v1139_v45  ;;  %10578 = vst [vmem:[#allocation50_spill] sm:$0xff] %v7668_v63  ;;  %v6579_v55 = vld [vmem:[%s10307_s5 + $0x80] sm:$0xff] }
  0xb3   :  { %1805 = vmatpush1.bf16.msra.mxu0 %v7601_v11  ;;  %1846 = vmatpush1.bf16.msra.mxu1 %v7607_v14  ;;  %v7700_v42 = vcombine.high %v1127_v23, %v1131_v2 }
  0xb4   :  { %1806 = vmatprep.subr.bf16.mxu0 %v7630_v30  ;;  %1847 = vmatprep.subr.bf16.mxu1 %v7637_v4  ;;  %10576 = vst [vmem:[#allocation48_spill] sm:$0xff] %v7664_v57  ;;  %10577 = vst [vmem:[#allocation49_spill] sm:$0xff] %v7666_v58  ;;  %v1103_v30 = vld [vmem:[%s10310_s8 + $0x288] sm:$0xff] }
  0xb5   :  { %v7632_v31 = vpop.permute.xlu0 %382  ;;  %v7634_v32 = vpop.permute.xlu1 %470  ;;  %10581 = vst [vmem:[#allocation53_spill] sm:$0xff] %v7700_v42 }
  0xb6   :  { %761 = vperm.xlu0 %6634, %v6023_v15   ;;  %858 = vperm.xlu1 %6635, %v6031_v20   ;;  %v6032_v15 = vld [vmem:[%s10303_s1 + $0x110] sm:$0xff]  ;;  %v1126_v20 = vld [vmem:[%s10310_s8 + $0x340] sm:$0xff] }
  0xb7   :  { %1807 = vmatpush2.bf16.msra.mxu0 %v7639_v33  ;;  %1848 = vmatpush2.bf16.msra.mxu1 %v7641_v34  ;;  %v7707_v45 = vcombine.low %v1126_v20, %v1130_v21  ;;  %v1110_v34 = vld [vmem:[%s10310_s8 + $0x2c0] sm:$0xff] }
  0xb8   :  { %1808 = vmatprep.subr.bf16.mxu0 %v7664_v57  ;;  %1849 = vmatprep.subr.bf16.mxu1 %v7666_v58  ;;  %v1122_v58 = vld [vmem:[%s10310_s8 + $0x320] sm:$0xff] }
  0xb9   :  { %v7670_v0 = vpop.permute.xlu0 %479  ;;  %v7672_v1 = vpop.permute.xlu1 %130  ;;  %10582 = vst [vmem:[#allocation54_spill] sm:$0xff] %v7707_v45 }
  0xba   :  { %955 = vperm.xlu0 %6634, %v6039_v41   ;;  %772 = vperm.xlu1 %6635, %v6024_v46   ;;  %v7698_v41 = vcombine.high %v1126_v20, %v1130_v21  ;;  %v7709_v46 = vcombine.low %v1127_v23, %v1131_v2  ;;  %v1123_v21 = vld [vmem:[%s10310_s8 + $0x328] sm:$0xff]  ;;  %v6041_v23 = vld [vmem:[%s10304_s2 + $0x110] sm:$0xff] }
  0xbb   :  { %1809 = vmatpush2.bf16.msra.mxu0 %v7668_v63  ;;  %1850 = vmatpush2.bf16.msra.mxu1 %v7675_v3  ;;  %v1118_v63 = vld [vmem:[%s10310_s8 + $0x300] sm:$0xff]  ;;  %v6033_v3 = vld [vmem:[%s10303_s1 + $0x118] sm:$0xff] }
  0xbc   :  { %10580 = vst [vmem:[#allocation52_spill] sm:$0xff] %v7698_v41  ;;  %10583 = vst [vmem:[#allocation55_spill] sm:$0xff] %v7709_v46  ;;  %1810 = vmatprep.subr.bf16.mxu0 %v7698_v41  ;;  %1851 = vmatprep.subr.bf16.mxu1 %v7700_v42  ;;  %v7722_v20 = vcombine.high %v1118_v63, %v1122_v58 }
  0xbd   :  { %v7702_v43 = vpop.permute.xlu0 %132  ;;  %v7704_v44 = vpop.permute.xlu1 %285 }
  0xbe   :  { %869 = vperm.xlu0 %6634, %v6032_v15   ;;  %966 = vperm.xlu1 %6635, %v6040_v24   ;;  %10584 = vst [vmem:[#allocation56_spill] sm:$0xff] %v7722_v20  ;;  %v1119_v15 = vld [vmem:[%s10310_s8 + $0x308] sm:$0xff]  ;;  %v7736_v24 = vcombine.low %v1118_v63, %v1122_v58  ;;  %v1114_v58 = vld [vmem:[%s10310_s8 + $0x2e0] sm:$0xff] }
  0xbf   :  { %1811 = vmatpush2.bf16.msra.mxu0 %v7707_v45  ;;  %v7734_v2 = vcombine.high %v1119_v15, %v1123_v21  ;;  %1852 = vmatpush2.bf16.msra.mxu1 %v7709_v46  ;;  %v7743_v57 = vcombine.low %v1119_v15, %v1123_v21  ;;  %v1111_v63 = vld [vmem:[%s10310_s8 + $0x2c8] sm:$0xff]  ;;  %v6042_v15 = vld [vmem:[%s10304_s2 + $0x118] sm:$0xff]  ;;  %v1006_v21 = vld [vmem:[%s10305_s3] sm:$0xff]  ;;  %v7775_v33 = vcombine.low %v1110_v34, %v1114_v58 }
  0xc0   :  { %10586 = vst [vmem:[#allocation58_spill] sm:$0xff] %v7736_v24  ;;  %1812 = vmatprep.subr.bf16.mxu0 %v7722_v20  ;;  %v7766_v20 = vcombine.high %v1110_v34, %v1114_v58  ;;  %v5208_v34 = vld [vmem:[%s10306_s4] sm:$0xff] }
  0xc1   :  { %10585 = vst [vmem:[#allocation57_spill] sm:$0xff] %v7734_v2  ;;  %v7738_v42 = vpop.permute.xlu0 %393  ;;  %v7740_v41 = vpop.permute.xlu1 %490  ;;  %10587 = vst [vmem:[#allocation59_spill] sm:$0xff] %v7743_v57  ;;  %1853 = vmatprep.subr.bf16.mxu1 %v7734_v2  ;;  %v1102_v2 = vld [vmem:[%s10310_s8 + $0x280] sm:$0xff] }
  0xc2   :  { %880 = vperm.xlu0 %6634, %v6033_v3   ;;  %977 = vperm.xlu1 %6635, %v6041_v23   ;;  %v1115_v3 = vld [vmem:[%s10310_s8 + $0x2e8] sm:$0xff]  ;;  %10588 = vst [vmem:[#allocation60_spill] sm:$0xff] %v7766_v20  ;;  %10590 = vst [vmem:[#allocation62_spill] sm:$0xff] %v7775_v33 }
  0xc3   :  { %1813 = vmatpush2.bf16.msra.mxu0 %v7736_v24  ;;  %1854 = vmatpush2.bf16.msra.mxu1 %v7743_v57  ;;  %v7773_v45 = vcombine.high %v1111_v63, %v1115_v3  ;;  %v7777_v4 = vcombine.low %v1111_v63, %v1115_v3  ;;  %v1106_v24 = vld [vmem:[%s10310_s8 + $0x2a0] sm:$0xff]  ;;  %v1107_v63 = vld [vmem:[%s10310_s8 + $0x2a8] sm:$0xff] }
  0xc4   :  { %1814 = vmatprep.subr.bf16.mxu0 %v7766_v20  ;;  %v7792_v58 = vcombine.high %v1102_v2, %v1106_v24  ;;  %v7802_v3 = vcombine.high %v1103_v30, %v1107_v63  ;;  %v7810_v20 = vcombine.low %v1102_v2, %v1106_v24  ;;  %v7812_v14 = vcombine.low %v1103_v30, %v1107_v63  ;;  %v6556_v30 = vld [vmem:[%s10306_s4 + $0x10] sm:$0xff]  ;;  %v1099_v24 = vld [vmem:[%s10310_s8 + $0x268] sm:$0xff] }
  0xc5   :  { %v7768_v46 = vpop.permute.xlu0 %578  ;;  %v7770_v23 = vpop.permute.xlu1 %587  ;;  %10589 = vst [vmem:[#allocation61_spill] sm:$0xff] %v7773_v45  ;;  %10591 = vst [vmem:[#allocation63_spill] sm:$0xff] %v7777_v4  ;;  %1855 = vmatprep.subr.bf16.mxu1 %v7773_v45  ;;  %v1098_v45 = vld [vmem:[%s10310_s8 + $0x260] sm:$0xff] }
  0xc6   :  { %988 = vperm.xlu0 %6634, %v6042_v15   ;;  %1009 = vperm.xlu1 %6635, %v1006_v21   ;;  %10592 = vst [vmem:[#allocation64_spill] sm:$0xff] %v7792_v58  ;;  %v6555_v15 = vld [vmem:[%s10306_s4 + $0x8] sm:$0xff]  ;;  %10593 = vst [vmem:[#allocation65_spill] sm:$0xff] %v7802_v3 }
  0xc7   :  { %1815 = vmatpush2.bf16.msra.mxu0 %v7775_v33  ;;  %1856 = vmatpush2.bf16.msra.mxu1 %v7777_v4  ;;  %10594 = vst [vmem:[#allocation66_spill] sm:$0xff] %v7810_v20  ;;  %10595 = vst [vmem:[#allocation67_spill] sm:$0xff] %v7812_v14  ;;  %v1094_v33 = vld [vmem:[%s10310_s8 + $0x240] sm:$0xff]  ;;  %v1095_v4 = vld [vmem:[%s10310_s8 + $0x248] sm:$0xff] }
  0xc8   :  { %1816 = vmatprep.subr.bf16.mxu0 %v7792_v58  ;;  %1857 = vmatprep.subr.bf16.mxu1 %v7802_v3  ;;  %v7827_v2 = vcombine.high %v1094_v33, %v1098_v45  ;;  %v7836_v63 = vcombine.high %v1095_v4, %v1099_v24  ;;  %v7838_v3 = vcombine.low %v1094_v33, %v1098_v45  ;;  %v1090_v33 = vld [vmem:[%s10310_s8 + $0x220] sm:$0xff]  ;;  %v1087_v45 = vld [vmem:[%s10310_s8 + $0x208] sm:$0xff] }
  0xc9   :  { %v7804_v21 = vpop.permute.xlu0 %152  ;;  %v7806_v57 = vpop.permute.xlu1 %154  ;;  %v7846_v11 = vcombine.low %v1095_v4, %v1099_v24  ;;  %v7861_v4 = vcombine.high %v1086_v6, %v1090_v33  ;;  %v6559_v24 = vld [vmem:[%s10306_s4 + $0x28] sm:$0xff] }
  0xca   :  { %5211 = vperm.xlu0 %6634, %v5208_v34   ;;  %5220 = vperm.xlu1 %6635, %v6555_v15   ;;  %10596 = vst [vmem:[#allocation68_spill] sm:$0xff] %v7827_v2  ;;  %v6557_v34 = vld [vmem:[%s10306_s4 + $0x18] sm:$0xff]  ;;  %10597 = vst [vmem:[#allocation69_spill] sm:$0xff] %v7836_v63 }
  0xcb   :  { %1817 = vmatpush2.bf16.msra.mxu0 %v7810_v20  ;;  %10598 = vst [vmem:[#allocation70_spill] sm:$0xff] %v7838_v3  ;;  %1858 = vmatpush2.bf16.msra.mxu1 %v7812_v14  ;;  %10599 = vst [vmem:[#allocation71_spill] sm:$0xff] %v7846_v11 }
  0xcc   :  { %1818 = vmatprep.subr.bf16.mxu0 %v7827_v2  ;;  %v6558_v2 = vld [vmem:[%s10306_s4 + $0x20] sm:$0xff]  ;;  %1859 = vmatprep.subr.bf16.mxu1 %v7836_v63  ;;  %10600 = vst [vmem:[#allocation72_spill] sm:$0xff] %v7861_v4 }
  0xcd   :  { %v7840_v15 = vpop.permute.xlu0 %296  ;;  %v7842_v58 = vpop.permute.xlu1 %404 }
  0xce   :  { %5231 = vperm.xlu0 %6634, %v6556_v30   ;;  %5242 = vperm.xlu1 %6635, %v6557_v34   ;;  %v1091_v30 = vld [vmem:[%s10310_s8 + $0x228] sm:$0xff]  ;;  %v7872_v34 = vcombine.low %v1086_v6, %v1090_v33  ;;  %v1084_v6 = vld [vmem:[%s10310_s8 + $0x1f0] sm:$0xff]  ;;  %v1081_v33 = vld [vmem:[%s10310_s8 + $0x1d8] sm:$0xff] }
  0xcf   :  { %1819 = vmatpush2.bf16.msra.mxu0 %v7838_v3  ;;  %v7870_v14 = vcombine.high %v1087_v45, %v1091_v30  ;;  %1860 = vmatpush2.bf16.msra.mxu1 %v7846_v11  ;;  %v7880_v63 = vcombine.low %v1087_v45, %v1091_v30  ;;  %v1085_v45 = vld [vmem:[%s10310_s8 + $0x1f8] sm:$0xff]  ;;  %v7909_v3 = vcombine.low %v1080_v56, %v1084_v6 }
  0xd0   :  { %10602 = vst [vmem:[#allocation74_spill] sm:$0xff] %v7872_v34  ;;  %1820 = vmatprep.subr.bf16.mxu0 %v7861_v4  ;;  %v6560_v4 = vld [vmem:[%s10306_s4 + $0x30] sm:$0xff]  ;;  %v6561_v30 = vld [vmem:[%s10306_s4 + $0x38] sm:$0xff]  ;;  %v7914_v53 = vcombine.high %v1081_v33, %v1085_v45 }
  0xd1   :  { %10601 = vst [vmem:[#allocation73_spill] sm:$0xff] %v7870_v14  ;;  %v7874_v20 = vpop.permute.xlu0 %501  ;;  %v7876_v5 = vpop.permute.xlu1 %598  ;;  %10603 = vst [vmem:[#allocation75_spill] sm:$0xff] %v7880_v63  ;;  %1861 = vmatprep.subr.bf16.mxu1 %v7870_v14  ;;  %v7912_v14 = vcombine.low %v1081_v33, %v1085_v45  ;;  %v6565_v33 = vld [vmem:[%s10306_s4 + $0x58] sm:$0xff] }
  0xd2   :  { %5253 = vperm.xlu0 %6634, %v6558_v2   ;;  %5264 = vperm.xlu1 %6635, %v6559_v24   ;;  %v7895_v2 = vcombine.high %v1080_v56, %v1084_v6  ;;  %10605 = vst [vmem:[#allocation77_spill] sm:$0xff] %v7909_v3  ;;  %10607 = vst [vmem:[#allocation79_spill] sm:$0xff] %v7914_v53 }
  0xd3   :  { %1821 = vmatpush2.bf16.msra.mxu0 %v7872_v34  ;;  %1862 = vmatpush2.bf16.msra.mxu1 %v7880_v63  ;;  %10606 = vst [vmem:[#allocation78_spill] sm:$0xff] %v7912_v14  ;;  %v6562_v34 = vld [vmem:[%s10306_s4 + $0x40] sm:$0xff]  ;;  %v6563_v63 = vld [vmem:[%s10306_s4 + $0x48] sm:$0xff]  ;;  %v6581_v14 = vld [vmem:[%s10306_s4 + $0x90] sm:$0xff] }
  0xd4   :  { %10604 = vst [vmem:[#allocation76_spill] sm:$0xff] %v7895_v2  ;;  %1872 = vmatprep.subr.bf16.mxu0 %v7895_v2  ;;  %1913 = vmatprep.subr.bf16.mxu1 %v7914_v53  ;;  %v6566_v53 = vld [vmem:[%s10306_s4 + $0x60] sm:$0xff] }
  0xd5   :  { %v7904_v11 = vpop.permute.xlu0 %686  ;;  %v7906_v24 = vpop.permute.xlu1 %695 }
  0xd6   :  { %5275 = vperm.xlu0 %6634, %v6560_v4   ;;  %5286 = vperm.xlu1 %6635, %v6561_v30   ;;  %v6564_v4 = vld [vmem:[%s10306_s4 + $0x50] sm:$0xff] }
  0xd9   :  { %v7923_v56 = vpop.permute.xlu0 %307  ;;  %v7925_v6 = vpop.permute.xlu1 %415 }
  0xda   :  { %5297 = vperm.xlu0 %6634, %v6562_v34   ;;  %5308 = vperm.xlu1 %6635, %v6563_v63   ;;  %v6567_v63 = vld [vmem:[%s10306_s4 + $0x68] sm:$0xff] }
  0xdd   :  { %v7933_v45 = vpop.permute.xlu0 %512  ;;  %v7935_v30 = vpop.permute.xlu1 %609 }
  0xde   :  { %5317 = vperm.xlu0 %6634, %v6564_v4   ;;  %5328 = vperm.xlu1 %6635, %v6565_v33   ;;  %v6569_v4 = vld [vmem:[%s10306_s4 + $0x78] sm:$0xff] }
  0xe1   :  { %v7943_v34 = vpop.permute.xlu0 %706  ;;  %v7945_v2 = vpop.permute.xlu1 %794 }
  0xe2   :  { %5339 = vperm.xlu0 %6634, %v6566_v53   ;;  %5350 = vperm.xlu1 %6635, %v6567_v63   ;;  %v6571_v53 = vld [vmem:[%s10306_s4 + $0x88] sm:$0xff] }
  0xe5   :  { %v7953_v33 = vpop.permute.xlu0 %803  ;;  %v7955_v47 = vpop.permute.xlu1 %174 }
  0xe6   :  { %5361 = vperm.xlu0 %6634, %v6568_v49   ;;  %5372 = vperm.xlu1 %6635, %v6569_v4   ;;  %v6572_v49 = vld [vmem:[%s10307_s5 + $0x48] sm:$0xff]  ;;  %v6573_v4 = vld [vmem:[%s10307_s5 + $0x50] sm:$0xff] }
  0xe9   :  { %v7963_v63 = vpop.permute.xlu0 %176  ;;  %v7965_v37 = vpop.permute.xlu1 %318 }
  0xea   :  { %5383 = vperm.xlu0 %6634, %v6570_v40   ;;  %5394 = vperm.xlu1 %6635, %v6571_v53   ;;  %v6574_v40 = vld [vmem:[%s10307_s5 + $0x58] sm:$0xff]  ;;  %v6575_v53 = vld [vmem:[%s10307_s5 + $0x60] sm:$0xff] }
  0xed   :  { %v7973_v35 = vpop.permute.xlu0 %426  ;;  %v7975_v29 = vpop.permute.xlu1 %523 }
  0xee   :  { %10608 = vst [vmem:[#allocation80_spill] sm:$0xff] %v7973_v35  ;;  %5415 = vperm.xlu0 %6634, %v6572_v49   ;;  %5424 = vperm.xlu1 %6635, %v6573_v4   ;;  %v5974_v49 = vld [vmem:[%s10309_s7 + $0x2] sm:$0x3]  ;;  %v7992_v4 = vsub.s32 0, %v97_v27 }
  0xef   :  { %v8010_v27 = vrot.slane %v5974_v49, %v7994_v18 }
  0xf0   :  { %v8032_v62 = vrot.slane %v94_v16, %v7992_v4  ;;  %v92_v16 = vsel %vm91_vm1, %v7480_v22, %v7535_v38 }
  0xf1   :  { %v7985_v25 = vpop.permute.xlu0 %620  ;;  %v7987_v19 = vpop.permute.xlu1 %717  ;;  %10612 = vst [vmem:[#allocation84_spill] sm:$0xff] %v8010_v27  ;;  %v8059_v59 = vmul.f32 %v8010_v27, %v113_v9  ;;  %v8076_v9 = vrot.slane %v5976_v54, %v7992_v4 }
  0xf2   :  { %10610 = vst [vmem:[#allocation82_spill] sm:$0xff] %v7987_v19  ;;  %5435 = vperm.xlu0 %6634, %v6574_v40   ;;  %5446 = vperm.xlu1 %6635, %v6575_v53   ;;  %v8007_v40 = vrot.slane %v5974_v49, %v7992_v4  ;;  %v5975_v49 = vld [vmem:[%s10309_s7 + $0x4] sm:$0x3]  ;;  %10615 = vst [vmem:[#allocation87_spill] sm:$0xff] %v8032_v62 }
  0xf3   :  { %v8066_v51 = vrot.slane %v5975_v49, %v7992_v4  ;;  %v8069_v48 = vrot.slane %v5975_v49, %v7994_v18  ;;  %10620 = vst [vmem:[#allocation92_spill] sm:$0xff] %v8076_v9  ;;  %v5979_v49 = vld [vmem:[%s10309_s7 + $0xe] sm:$0x3] }
  0xf4   :  { %10611 = vst [vmem:[#allocation83_spill] sm:$0xff] %v8007_v40  ;;  %v8056_v60 = vmul.f32 %v8007_v40, %v114_v8  ;;  %v5978_v8 = vld [vmem:[%s10309_s7 + $0xc] sm:$0x3] }
  0xf5   :  { %v8012_v10 = vpop.permute.xlu0 %814  ;;  %v8014_v53 = vpop.permute.xlu1 %902  ;;  %10618 = vst [vmem:[#allocation90_spill] sm:$0xff] %v8066_v51  ;;  %10619 = vst [vmem:[#allocation91_spill] sm:$0xff] %v8069_v48 }
  0xf6   :  { %10613 = vst [vmem:[#allocation85_spill] sm:$0xff] %v8012_v10  ;;  %10614 = vst [vmem:[#allocation86_spill] sm:$0xff] %v8014_v53  ;;  %5457 = vperm.xlu0 %6634, %v6576_v36   ;;  %5468 = vperm.xlu1 %6635, %v6577_v17   ;;  %v5977_v17 = vld [vmem:[%s10309_s7 + $0xa] sm:$0x3]  ;;  %v93_v36 = vsel %vm91_vm1, %v7535_v38, %v7480_v22  ;;  %v8079_v22 = vrot.slane %v5976_v54, %v7994_v18 }
  0xf7   :  { %v8082_v38 = vrot.slane %v5977_v17, %v7992_v4  ;;  %v8085_v27 = vrot.slane %v5977_v17, %v7994_v18  ;;  %v8094_v40 = vmul.f32 %v8032_v62, %v93_v36  ;;  %v8097_v54 = vmul.f32 %v8035_v61, %v92_v16 }
  0xf8   :  { %10621 = vst [vmem:[#allocation93_spill] sm:$0xff] %v8079_v22  ;;  %v135_v17 = vsel %vm134_vm2, %v7672_v1, %v7702_v43  ;;  %v374_v36 = vmul.f32 %v7537_v39, %v8056_v60  ;;  %v375_v16 = vmul.f32 %v7537_v39, %v8059_v59  ;;  %v8115_v61 = vrot.slane %v5978_v8, %v7992_v4 }
  0xf9   :  { %v8061_v52 = vpop.permute.xlu0 %911  ;;  %v8063_v50 = vpop.permute.xlu1 %196  ;;  %10622 = vst [vmem:[#allocation94_spill] sm:$0xff] %v8082_v38  ;;  %10623 = vst [vmem:[#allocation95_spill] sm:$0xff] %v8085_v27  ;;  %v8118_v62 = vrot.slane %v5978_v8, %v7994_v18  ;;  %v366_v39 = vmul.f32 %v7501_v28, %v8097_v54  ;;  %v8132_v53 = vrot.slane %v5979_v49, %v7992_v4 }
  0xfa   :  { %10617 = vst [vmem:[#allocation89_spill] sm:$0xff] %v8061_v52  ;;  %5479 = vperm.xlu0 %6634, %v6578_v7   ;;  %5490 = vperm.xlu1 %6635, %v6579_v55   ;;  %v6580_v7 = vld [vmem:[%s10307_s5 + $0x88] sm:$0xff]  ;;  %v136_v55 = vsel %vm134_vm2, %v7702_v43, %v7672_v1  ;;  %10624 = vst [vmem:[#allocation96_spill] sm:$0xff] %v8115_v61  ;;  %v5980_v1 = vld [vmem:[%s10309_s7 + $0x10] sm:$0x3]  ;;  %v365_v43 = vmul.f32 %v7501_v28, %v8094_v40 }
  0xfb   :  { %10625 = vst [vmem:[#allocation97_spill] sm:$0xff] %v8118_v62  ;;  %10627 = vst [vmem:[#allocation99_spill] sm:$0xff] %v8132_v53  ;;  %v8135_v8 = vrot.slane %v5979_v49, %v7994_v18  ;;  %v8138_v52 = vmul.f32 %v8066_v51, %v136_v55  ;;  %v157_v10 = vsel %vm156_vm3, %v7804_v21, %v7806_v57  ;;  %v6583_v55 = vld [vmem:[%s10306_s4 + $0xa0] sm:$0xff] }
  0xfc   :  { %v158_v28 = vsel %vm156_vm3, %v7806_v57, %v7804_v21  ;;  %v268_v49 = vmul.f32 %v7603_v12, %v8094_v40  ;;  %v8165_v57 = vrot.slane %v5980_v1, %v7994_v18  ;;  %v278_v21 = vmul.f32 %v7605_v13, %v8059_v59 }
  0xfd   :  { %v8120_v3 = vpop.permute.xlu0 %198  ;;  %v8122_v35 = vpop.permute.xlu1 %329  ;;  %10628 = vst [vmem:[#allocation100_spill] sm:$0xff] %v8135_v8  ;;  %v376_v51 = vadd.f32 %v374_v36, %v365_v43  ;;  %v377_v8 = vadd.f32 %v375_v16, %v366_v39  ;;  %v473_v19 = vmul.f32 %v7634_v32, %v8094_v40  ;;  %v8180_v18 = vmul.f32 %v8076_v9, %v158_v28 }
  0xfe   :  { %10626 = vst [vmem:[#allocation98_spill] sm:$0xff] %v8122_v35  ;;  %5501 = vperm.xlu0 %6634, %v6580_v7   ;;  %v8141_v35 = vmul.f32 %v8069_v48, %v135_v17  ;;  %5522 = vperm.xlu1 %6635, %v6581_v14   ;;  %v6582_v7 = vld [vmem:[%s10306_s4 + $0x98] sm:$0xff]  ;;  %v269_v17 = vmul.f32 %v7603_v12, %v8097_v54  ;;  %10630 = vst [vmem:[#allocation102_spill] sm:$0xff] %v8165_v57 }
  0xff   :  { %v8162_v48 = vrot.slane %v5980_v1, %v7992_v4  ;;  %v277_v14 = vmul.f32 %v7605_v13, %v8056_v60  ;;  %v474_v4 = vmul.f32 %v7634_v32, %v8097_v54  ;;  %v8183_v1 = vmul.f32 %v8079_v22, %v157_v10  ;;  %v6584_v10 = vld [vmem:[%s10306_s4 + $0xa8] sm:$0xff] }
 0x100   :  { %v482_v13 = vmul.f32 %v7670_v0, %v8056_v60  ;;  %v483_v36 = vmul.f32 %v7670_v0, %v8059_v59  ;;  %v288_v16 = vmul.f32 %v7704_v44, %v8138_v52  ;;  %v289_v32 = vmul.f32 %v7704_v44, %v8141_v35  ;;  %v6585_v44 = vld [vmem:[%s10306_s4 + $0xb0] sm:$0xff] }
 0x101   :  { %10629 = vst [vmem:[#allocation101_spill] sm:$0xff] %v8162_v48  ;;  %v8171_v53 = vpop.permute.xlu0 %437  ;;  %v8173_v12 = vpop.permute.xlu1 %534  ;;  %v493_v43 = vmul.f32 %v7740_v41, %v8138_v52  ;;  %v494_v39 = vmul.f32 %v7740_v41, %v8141_v35  ;;  %v385_v0 = vmul.f32 %v7632_v31, %v8138_v52  ;;  %v386_v28 = vmul.f32 %v7632_v31, %v8141_v35 }
 0x102   :  { %10631 = vst [vmem:[#allocation103_spill] sm:$0xff] %v8171_v53  ;;  %10632 = vst [vmem:[#allocation104_spill] sm:$0xff] %v8173_v12  ;;  %5531 = vperm.xlu0 %6634, %v6582_v7   ;;  %5542 = vperm.xlu1 %6635, %v6583_v55   ;;  %v581_v7 = vmul.f32 %v7768_v46, %v8094_v40  ;;  %v582_v55 = vmul.f32 %v7768_v46, %v8097_v54 }
 0x103   :  { %v590_v22 = vmul.f32 %v7770_v23, %v8056_v60  ;;  %v591_v41 = vmul.f32 %v7770_v23, %v8059_v59  ;;  %v279_v31 = vadd.f32 %v277_v14, %v268_v49  ;;  %v280_v57 = vadd.f32 %v278_v21, %v269_v17  ;;  %v6586_v49 = vld [vmem:[%s10306_s4 + $0xb8] sm:$0xff] }
 0x104   :  { %v396_v48 = vmul.f32 %v7738_v42, %v8180_v18  ;;  %v397_v12 = vmul.f32 %v7738_v42, %v8183_v1  ;;  %v484_v46 = vadd.f32 %v482_v13, %v473_v19  ;;  %v485_v62 = vadd.f32 %v483_v36, %v474_v4  ;;  %v6587_v19 = vld [vmem:[%s10306_s4 + $0xc0] sm:$0xff] }
 0x105   :  { %v8216_v9 = vpop.permute.xlu0 %631  ;;  %v8218_v53 = vpop.permute.xlu1 %728  ;;  %v299_v61 = vmul.f32 %v7840_v15, %v8180_v18  ;;  %v300_v23 = vmul.f32 %v7840_v15, %v8183_v1  ;;  %v290_v17 = vadd.f32 %v288_v16, %v279_v31  ;;  %v291_v14 = vadd.f32 %v289_v32, %v280_v57  ;;  %v8241_v57 = vld [vmem:[%s10302_s0] sm:$0xff]  ;;  %v6588_v16 = vld [vmem:[%s10306_s4 + $0xc8] sm:$0xff] }
 0x106   :  { %10633 = vst [vmem:[#allocation105_spill] sm:$0xff] %v8216_v9  ;;  %10634 = vst [vmem:[#allocation106_spill] sm:$0xff] %v8218_v53  ;;  %5553 = vperm.xlu0 %6634, %v6584_v10   ;;  %5564 = vperm.xlu1 %6635, %v6585_v44   ;;  %v387_v21 = vadd.f32 %v385_v0, %v376_v51  ;;  %v388_v53 = vadd.f32 %v386_v28, %v377_v8 }
 0x107   :  { %v495_v42 = vadd.f32 %v493_v43, %v484_v46  ;;  %v496_v4 = vadd.f32 %v494_v39, %v485_v62  ;;  %v592_v13 = vadd.f32 %v590_v22, %v581_v7  ;;  %v593_v36 = vadd.f32 %v591_v41, %v582_v55  ;;  %v8248_v62 = vld [vmem:[%s10302_s0 + $0x8] sm:$0xff] }
 0x108   :  { %v398_v44 = vadd.f32 %v396_v48, %v387_v21  ;;  %v399_v9 = vadd.f32 %v397_v12, %v388_v53  ;;  %v407_v51 = vmul.f32 %v8241_v57, %v7842_v58  ;;  %v408_v22 = vmul.f32 %v8248_v62, %v7842_v58 }
 0x109   :  { %v8234_v10 = vpop.permute.xlu0 %825  ;;  %v8236_v15 = vpop.permute.xlu1 %922  ;;  %v301_v8 = vadd.f32 %v299_v61, %v290_v17  ;;  %v302_v48 = vadd.f32 %v300_v23, %v291_v14  ;;  %v504_v53 = vmul.f32 %v7874_v20, %v8180_v18  ;;  %v505_v12 = vmul.f32 %v7874_v20, %v8183_v1  ;;  %v6589_v20 = vld [vmem:[%s10306_s4 + $0xd0] sm:$0xff] }
 0x10a   :  { %5575 = vperm.xlu0 %6634, %v6586_v49   ;;  %5586 = vperm.xlu1 %6635, %v6587_v19   ;;  %v601_v32 = vmul.f32 %v7876_v5, %v8138_v52  ;;  %v602_v61 = vmul.f32 %v7876_v5, %v8141_v35  ;;  %v689_v58 = vmul.f32 %v7904_v11, %v8094_v40 }
 0x10b   :  { %v690_v43 = vmul.f32 %v7904_v11, %v8097_v54  ;;  %v698_v39 = vmul.f32 %v7906_v24, %v8056_v60  ;;  %v699_v0 = vmul.f32 %v7906_v24, %v8059_v59  ;;  %v179_v5 = vsel %vm178_vm4, %v7955_v47, %v7963_v63 }
 0x10c   :  { %v180_v11 = vsel %vm178_vm4, %v7963_v63, %v7955_v47  ;;  %v8287_v55 = vadd.f32 %v407_v51, %v398_v44  ;;  %v8289_v41 = vadd.f32 %v408_v22, %v399_v9  ;;  %v310_v24 = vmul.f32 %v8241_v57, %v7923_v56  ;;  %v6590_v9 = vld [vmem:[%s10307_s5 + $0x90] sm:$0xff] }
 0x10d   :  { %v8283_v28 = vpop.permute.xlu0 %218  ;;  %v8285_v7 = vpop.permute.xlu1 %220  ;;  %v311_v31 = vmul.f32 %v8248_v62, %v7923_v56  ;;  %v506_v46 = vadd.f32 %v504_v53, %v495_v42  ;;  %v507_v23 = vadd.f32 %v505_v12, %v496_v4  ;;  %v515_v47 = vmul.f32 %v8241_v57, %v7933_v45 }
 0x10e   :  { %5597 = vperm.xlu0 %6634, %v6588_v16   ;;  %v516_v63 = vmul.f32 %v8248_v62, %v7933_v45  ;;  %5608 = vperm.xlu1 %6635, %v6589_v20   ;;  %v612_v49 = vmul.f32 %v7935_v30, %v8180_v18  ;;  %v613_v56 = vmul.f32 %v7935_v30, %v8183_v1  ;;  %v6591_v45 = vld [vmem:[%s10307_s5 + $0x98] sm:$0xff] }
 0x10f   :  { %v8307_v17 = vmul.f32 %v8082_v38, %v179_v5  ;;  %v8310_v14 = vmul.f32 %v8085_v27, %v180_v11  ;;  %v603_v21 = vadd.f32 %v601_v32, %v592_v13  ;;  %v604_v19 = vadd.f32 %v602_v61, %v593_v36 }
 0x110   :  { %v700_v42 = vadd.f32 %v698_v39, %v689_v58  ;;  %v701_v4 = vadd.f32 %v699_v0, %v690_v43  ;;  %v312_v22 = vadd.f32 %v310_v24, %v301_v8  ;;  %v313_v30 = vadd.f32 %v311_v31, %v302_v48  ;;  %v6592_v8 = vld [vmem:[%s10307_s5 + $0xa0] sm:$0xff]  ;;  %v6593_v43 = vld [vmem:[%s10307_s5 + $0xa8] sm:$0xff] }
 0x111   :  { %v8315_v44 = vpop.permute.xlu0 %340  ;;  %v8317_v51 = vpop.permute.xlu1 %448  ;;  %v709_v53 = vmul.f32 %v7943_v34, %v8138_v52  ;;  %v710_v12 = vmul.f32 %v7943_v34, %v8141_v35  ;;  %v517_v16 = vadd.f32 %v515_v47, %v506_v46  ;;  %v518_v13 = vadd.f32 %v516_v63, %v507_v23  ;;  %v6594_v63 = vld [vmem:[%s10307_s5 + $0xb0] sm:$0xff] }
 0x112   :  { %5629 = vperm.xlu0 %6634, %v6590_v9   ;;  %v806_v36 = vmul.f32 %v7953_v33, %v8056_v60  ;;  %v807_v32 = vmul.f32 %v7953_v33, %v8059_v59  ;;  %5638 = vperm.xlu1 %6635, %v6591_v45   ;;  %v614_v48 = vadd.f32 %v612_v49, %v603_v21  ;;  %v10636_v21 = vld [vmem:[#allocation97_spill] sm:$0xff] }
 0x113   :  { %v615_v61 = vadd.f32 %v613_v56, %v604_v19  ;;  %v321_v34 = vmul.f32 %v7965_v37, %v8307_v17  ;;  %v322_v58 = vmul.f32 %v7965_v37, %v8310_v14  ;;  %v797_v33 = vmul.f32 %v7945_v2, %v8094_v40  ;;  %v6595_v56 = vld [vmem:[%s10307_s5 + $0xb8] sm:$0xff] }
 0x114   :  { %v798_v20 = vmul.f32 %v7945_v2, %v8097_v54  ;;  %v418_v5 = vmul.f32 %v7925_v6, %v8307_v17  ;;  %v419_v37 = vmul.f32 %v7925_v6, %v8310_v14  ;;  %v711_v11 = vadd.f32 %v709_v53, %v700_v42 }
 0x115   :  { %v8342_v39 = vpop.permute.xlu0 %545  ;;  %v8344_v0 = vpop.permute.xlu1 %642  ;;  %v712_v24 = vadd.f32 %v710_v12, %v701_v4  ;;  %v201_v31 = vsel %vm200_vm5, %v8063_v50, %v8120_v3  ;;  %v202_v2 = vsel %vm200_vm5, %v8120_v3, %v8063_v50  ;;  %v808_v46 = vadd.f32 %v806_v36, %v797_v33  ;;  %v10638_v36 = vld [vmem:[#allocation85_spill] sm:$0xff] }
 0x116   :  { %5649 = vperm.xlu0 %6634, %v6592_v8   ;;  %v809_v23 = vadd.f32 %v807_v32, %v798_v20  ;;  %v526_v47 = vmul.f32 %v7975_v29, %v8307_v17  ;;  %v527_v6 = vmul.f32 %v7975_v29, %v8310_v14  ;;  %5660 = vperm.xlu1 %6635, %v6593_v43   ;;  %v10635_v29 = vld [vmem:[#allocation96_spill] sm:$0xff]  ;;  %v10639_v43 = vld [vmem:[#allocation89_spill] sm:$0xff] }
 0x117   :  { %v323_v9 = vadd.f32 %v321_v34, %v312_v22  ;;  %v324_v49 = vadd.f32 %v322_v58, %v313_v30  ;;  %v623_v50 = vmul.f32 %v8241_v57, %v7985_v25  ;;  %v624_v3 = vmul.f32 %v8248_v62, %v7985_v25  ;;  %v10637_v25 = vld [vmem:[#allocation82_spill] sm:$0xff]  ;;  %v6599_v33 = vld [vmem:[%s10306_s4 + $0xd8] sm:$0xff] }
 0x118   :  { %v8374_v45 = vmul.f32 %v10635_v29, %v201_v31  ;;  %v8377_v19 = vmul.f32 %v10636_v21, %v202_v2  ;;  %v420_v22 = vadd.f32 %v418_v5, %v8287_v55  ;;  %v421_v30 = vadd.f32 %v419_v37, %v8289_v41  ;;  %v10640_v37 = vld [vmem:[#allocation86_spill] sm:$0xff]  ;;  %v10650_v21 = vld [vmem:[#allocation103_spill] sm:$0xff] }
 0x119   :  { %v8379_v42 = vpop.permute.xlu0 %739  ;;  %v8381_v4 = vpop.permute.xlu1 %836  ;;  %v720_v53 = vmul.f32 %v10637_v25, %v8180_v18  ;;  %v721_v12 = vmul.f32 %v10637_v25, %v8183_v1  ;;  %v817_v32 = vmul.f32 %v10638_v36, %v8138_v52  ;;  %v818_v8 = vmul.f32 %v10638_v36, %v8141_v35  ;;  %v10642_v25 = vld [vmem:[#allocation80_spill] sm:$0xff] }
 0x11a   :  { %5671 = vperm.xlu0 %6634, %v6594_v63   ;;  %v528_v34 = vadd.f32 %v526_v47, %v517_v16  ;;  %v529_v58 = vadd.f32 %v527_v6, %v518_v13  ;;  %v914_v55 = vmul.f32 %v10639_v43, %v8056_v60  ;;  %v915_v41 = vmul.f32 %v10639_v43, %v8059_v59  ;;  %v6600_v60 = vld [vmem:[%s10306_s4 + $0xe0] sm:$0xff] }
 0x11b   :  { %5682 = vperm.xlu1 %6635, %v6595_v56   ;;  %v625_v20 = vadd.f32 %v623_v50, %v614_v48  ;;  %v626_v5 = vadd.f32 %v624_v3, %v615_v61  ;;  %v905_v31 = vmul.f32 %v10640_v37, %v8094_v40  ;;  %v906_v16 = vmul.f32 %v10640_v37, %v8097_v54  ;;  %v10641_v13 = vld [vmem:[#allocation98_spill] sm:$0xff] }
 0x11c   :  { %v332_v59 = vmul.f32 %v10641_v13, %v8374_v45  ;;  %v333_v2 = vmul.f32 %v10641_v13, %v8377_v19  ;;  %v223_v48 = vsel %vm222_vm6, %v8283_v28, %v8285_v7  ;;  %v224_v40 = vsel %vm222_vm6, %v8285_v7, %v8283_v28  ;;  %v6601_v28 = vld [vmem:[%s10306_s4 + $0xe8] sm:$0xff]  ;;  %v10643_v7 = vld [vmem:[#allocation104_spill] sm:$0xff] }
 0x11d   :  { %v8419_v54 = vpop.permute.xlu0 %933  ;;  %v241_v61 = vpop.permute.xlu1 %240  ;;  %v722_v47 = vadd.f32 %v720_v53, %v711_v11  ;;  %v723_v6 = vadd.f32 %v721_v12, %v712_v24  ;;  %v819_v63 = vadd.f32 %v817_v32, %v808_v46  ;;  %v820_v50 = vadd.f32 %v818_v8, %v809_v23  ;;  %v10644_v46 = vld [vmem:[#allocation99_spill] sm:$0xff]  ;;  %v10645_v53 = vld [vmem:[#allocation100_spill] sm:$0xff]  ;;  %v6608_v32 = vld [vmem:[%s10307_s5 + $0xd8] sm:$0xff] }
 0x11e   :  { %5736 = vperm.xlu0 %6634, %v6599_v33   ;;  %v8421_v3 = vadd.f32 %v914_v55, %v905_v31  ;;  %v8423_v56 = vadd.f32 %v915_v41, %v906_v16  ;;  %v429_v36 = vmul.f32 %v10642_v25, %v8374_v45  ;;  %v430_v43 = vmul.f32 %v10642_v25, %v8377_v19  ;;  %v10646_v41 = vld [vmem:[#allocation105_spill] sm:$0xff] }
 0x11f   :  { %5745 = vperm.xlu1 %6635, %v6600_v60   ;;  %v537_v11 = vmul.f32 %v10643_v7, %v8374_v45  ;;  %v538_v24 = vmul.f32 %v10643_v7, %v8377_v19  ;;  %v8437_v23 = vmul.f32 %v10644_v46, %v223_v48  ;;  %v8440_v12 = vmul.f32 %v10645_v53, %v224_v40  ;;  %v10647_v60 = vld [vmem:[#allocation106_spill] sm:$0xff] }
 0x120   :  { %v334_v8 = vadd.f32 %v332_v59, %v323_v9  ;;  %v335_v55 = vadd.f32 %v333_v2, %v324_v49  ;;  %v634_v33 = vmul.f32 %v10646_v41, %v8307_v17  ;;  %v635_v37 = vmul.f32 %v10646_v41, %v8310_v14  ;;  %v10648_v49 = vld [vmem:[#allocation101_spill] sm:$0xff]  ;;  %v10649_v2 = vld [vmem:[#allocation102_spill] sm:$0xff] }
 0x121   :  { %v243_v31 = vpop.permute.xlu0 %242  ;;  %v352_v16 = vpop.permute.xlu1 %351  ;;  %v731_v13 = vmul.f32 %v8241_v57, %v10647_v60  ;;  %v732_v48 = vmul.f32 %v8248_v62, %v10647_v60  ;;  %v431_v7 = vadd.f32 %v429_v36, %v420_v22  ;;  %v432_v41 = vadd.f32 %v430_v43, %v421_v30  ;;  %v6609_v60 = vld [vmem:[%s10307_s5 + $0xe0] sm:$0xff] }
 0x122   :  { %v245_v40 = vsel %vm244_vm7, %v241_v61, %v243_v31  ;;  %v246_v9 = vsel %vm244_vm7, %v243_v31, %v241_v61  ;;  %5756 = vperm.xlu0 %6634, %v6601_v28   ;;  %v539_v53 = vadd.f32 %v537_v11, %v528_v34  ;;  %v540_v46 = vadd.f32 %v538_v24, %v529_v58  ;;  %v6602_v28 = vld [vmem:[%s10306_s4 + $0xf0] sm:$0xff] }
 0x123   :  { %v8458_v59 = vmul.f32 %v10648_v49, %v245_v40  ;;  %v8461_v25 = vmul.f32 %v10649_v2, %v246_v9  ;;  %5843 = vperm.xlu1 %6635, %v6608_v32   ;;  %v440_v29 = vmul.f32 %v10650_v21, %v8437_v23  ;;  %v441_v61 = vmul.f32 %v10650_v21, %v8440_v12  ;;  %v1104_v2 = vld [vmem:[%s10310_s8 + $0x290] sm:$0xff] }
 0x124   :  { %v636_v31 = vadd.f32 %v634_v33, %v625_v20  ;;  %v637_v22 = vadd.f32 %v635_v37, %v626_v5  ;;  %v828_v30 = vmul.f32 %v8234_v10, %v8180_v18  ;;  %v829_v36 = vmul.f32 %v8234_v10, %v8183_v1  ;;  %v1108_v49 = vld [vmem:[%s10310_s8 + $0x2b0] sm:$0xff] }
 0x125   :  { %v557_v34 = vpop.permute.xlu0 %556  ;;  %v654_v58 = vpop.permute.xlu1 %653  ;;  %v733_v43 = vadd.f32 %v731_v13, %v722_v47  ;;  %v734_v11 = vadd.f32 %v732_v48, %v723_v6  ;;  %v451_v24 = vmul.f32 %v8317_v51, %v8458_v59  ;;  %v452_v21 = vmul.f32 %v8317_v51, %v8461_v25  ;;  %v6610_v6 = vld [vmem:[%s10307_s5 + $0xe8] sm:$0xff] }
 0x126   :  { %5852 = vperm.xlu0 %6634, %v6609_v60   ;;  %v925_v20 = vmul.f32 %v8236_v15, %v8138_v52  ;;  %v926_v5 = vmul.f32 %v8236_v15, %v8141_v35  ;;  %v343_v10 = vmul.f32 %v8315_v44, %v8437_v23  ;;  %v344_v47 = vmul.f32 %v8315_v44, %v8440_v12  ;;  %v6603_v35 = vld [vmem:[%s10306_s4 + $0xf8] sm:$0xff] }
 0x127   :  { %5767 = vperm.xlu1 %6635, %v6602_v28   ;;  %v548_v51 = vmul.f32 %v8342_v39, %v8437_v23  ;;  %v549_v52 = vmul.f32 %v8342_v39, %v8440_v12  ;;  %v442_v32 = vadd.f32 %v440_v29, %v431_v7  ;;  %v443_v33 = vadd.f32 %v441_v61, %v432_v41 }
 0x128   :  { %v830_v15 = vadd.f32 %v828_v30, %v819_v63  ;;  %v831_v37 = vadd.f32 %v829_v36, %v820_v50  ;;  %v645_v44 = vmul.f32 %v8344_v0, %v8374_v45  ;;  %v646_v13 = vmul.f32 %v8344_v0, %v8377_v19  ;;  %v6611_v0 = vld [vmem:[%s10307_s5 + $0xf0] sm:$0xff] }
 0x129   :  { %v751_v48 = vpop.permute.xlu0 %750  ;;  %v848_v40 = vpop.permute.xlu1 %847  ;;  %v453_v9 = vadd.f32 %v451_v24, %v442_v32  ;;  %v454_v60 = vadd.f32 %v452_v21, %v443_v33  ;;  %v559_v39 = vmul.f32 %v557_v34, %v8458_v59  ;;  %v560_v29 = vmul.f32 %v557_v34, %v8461_v25  ;;  %v6596_v34 = vld [vmem:[%s10307_s5 + $0xc0] sm:$0xff] }
 0x12a   :  { %5863 = vperm.xlu0 %6634, %v6610_v6   ;;  %v927_v7 = vadd.f32 %v925_v20, %v8421_v3  ;;  %v928_v63 = vadd.f32 %v926_v5, %v8423_v56  ;;  %v345_v50 = vadd.f32 %v343_v10, %v334_v8  ;;  %v346_v41 = vadd.f32 %v344_v47, %v335_v55 }
 0x12b   :  { %5778 = vperm.xlu1 %6635, %v6603_v35   ;;  %v550_v61 = vadd.f32 %v548_v51, %v539_v53  ;;  %v551_v28 = vadd.f32 %v549_v52, %v540_v46  ;;  %v354_v30 = vmul.f32 %v352_v16, %v8458_v59  ;;  %v355_v36 = vmul.f32 %v352_v16, %v8461_v25 }
 0x12c   :  { %v647_v3 = vadd.f32 %v645_v44, %v636_v31  ;;  %v648_v24 = vadd.f32 %v646_v13, %v637_v22  ;;  %v742_v56 = vmul.f32 %v8379_v42, %v8307_v17  ;;  %v743_v8 = vmul.f32 %v8379_v42, %v8310_v14  ;;  %v6604_v42 = vld [vmem:[%s10306_s4 + $0x100] sm:$0xff] }
 0x12d   :  { %v945_v55 = vpop.permute.xlu0 %944  ;;  %v457_v21 = vrot.slane %v453_v9, 1  ;;  %v458_v53 = vrot.slane %v454_v60, 1  ;;  %v561_v46 = vadd.f32 %v559_v39, %v550_v61  ;;  %v562_v20 = vadd.f32 %v560_v29, %v551_v28  ;;  %v665_v5 = vpop.permute.xlu1 %664  ;;  %v6605_v61 = vld [vmem:[%s10306_s4 + $0x108] sm:$0xff] }
 0x12e   :  { %5874 = vperm.xlu0 %6634, %v6611_v0   ;;  %v839_v16 = vmul.f32 %v8241_v57, %v8381_v4  ;;  %v840_v31 = vmul.f32 %v8248_v62, %v8381_v4  ;;  %v936_v22 = vmul.f32 %v8419_v54, %v8180_v18  ;;  %v937_v10 = vmul.f32 %v8419_v54, %v8183_v1  ;;  %v6612_v4 = vld [vmem:[%s10307_s5 + $0xf8] sm:$0xff] }
 0x12f   :  { %5693 = vperm.xlu1 %6635, %v6596_v34   ;;  %v356_v47 = vadd.f32 %v354_v30, %v345_v50  ;;  %v357_v6 = vadd.f32 %v355_v36, %v346_v41  ;;  %v656_v51 = vmul.f32 %v654_v58, %v8437_v23  ;;  %v657_v52 = vmul.f32 %v654_v58, %v8440_v12 }
 0x130   :  { %v744_v32 = vadd.f32 %v742_v56, %v733_v43  ;;  %v745_v18 = vadd.f32 %v743_v8, %v734_v11  ;;  %v753_v33 = vmul.f32 %v751_v48, %v8374_v45  ;;  %v754_v1 = vmul.f32 %v751_v48, %v8377_v19  ;;  %v6597_v43 = vld [vmem:[%s10307_s5 + $0xc8] sm:$0xff] }
 0x131   :  { %v762_v54 = vpop.permute.xlu0 %761  ;;  %v464_v35 = vadd.f32 %v457_v21, %v356_v47  ;;  %v465_v44 = vadd.f32 %v458_v53, %v357_v6  ;;  %v565_v13 = vrot.slane %v561_v46, 5  ;;  %v566_v9 = vrot.slane %v562_v20, 5  ;;  %v859_v60 = vpop.permute.xlu1 %858  ;;  %v6613_v53 = vld [vmem:[%s10307_s5 + $0x100] sm:$0xff] }
 0x132   :  { %5789 = vperm.xlu0 %6634, %v6604_v42   ;;  %v841_v39 = vadd.f32 %v839_v16, %v830_v15  ;;  %v842_v29 = vadd.f32 %v840_v31, %v831_v37  ;;  %v850_v58 = vmul.f32 %v848_v40, %v8307_v17  ;;  %v851_v50 = vmul.f32 %v848_v40, %v8310_v14  ;;  %v6598_v31 = vld [vmem:[%s10307_s5 + $0xd0] sm:$0xff] }
 0x133   :  { %5885 = vperm.xlu1 %6635, %v6612_v4   ;;  %v938_v11 = vadd.f32 %v936_v22, %v927_v7  ;;  %v939_v48 = vadd.f32 %v937_v10, %v928_v63  ;;  %v658_v41 = vadd.f32 %v656_v51, %v647_v3  ;;  %v659_v0 = vadd.f32 %v657_v52, %v648_v24 }
 0x134   :  { %v755_v28 = vadd.f32 %v753_v33, %v744_v32  ;;  %v756_v15 = vadd.f32 %v754_v1, %v745_v18  ;;  %v667_v37 = vmul.f32 %v665_v5, %v8458_v59  ;;  %v668_v30 = vmul.f32 %v665_v5, %v8461_v25 }
 0x135   :  { %v956_v40 = vpop.permute.xlu0 %955  ;;  %v572_v36 = vadd.f32 %v565_v13, %v464_v35  ;;  %v573_v34 = vadd.f32 %v566_v9, %v465_v44  ;;  %v764_v56 = vmul.f32 %v762_v54, %v8437_v23  ;;  %v765_v7 = vmul.f32 %v762_v54, %v8440_v12  ;;  %v773_v63 = vpop.permute.xlu1 %772 }
 0x136   :  { %5704 = vperm.xlu0 %6634, %v6597_v43   ;;  %v852_v3 = vadd.f32 %v850_v58, %v841_v39  ;;  %v853_v24 = vadd.f32 %v851_v50, %v842_v29  ;;  %v947_v8 = vmul.f32 %v8241_v57, %v945_v55  ;;  %v948_v21 = vmul.f32 %v8248_v62, %v945_v55 }
 0x137   :  { %5800 = vperm.xlu1 %6635, %v6605_v61   ;;  %v861_v46 = vmul.f32 %v859_v60, %v8374_v45  ;;  %v862_v20 = vmul.f32 %v859_v60, %v8377_v19  ;;  %v775_v5 = vmul.f32 %v773_v63, %v8458_v59  ;;  %v776_v16 = vmul.f32 %v773_v63, %v8461_v25 }
 0x138   :  { %v669_v57 = vadd.f32 %v667_v37, %v658_v41  ;;  %v670_v22 = vadd.f32 %v668_v30, %v659_v0  ;;  %v958_v62 = vmul.f32 %v956_v40, %v8307_v17  ;;  %v959_v55 = vmul.f32 %v956_v40, %v8310_v14  ;;  %v6606_v17 = vld [vmem:[%s10306_s4 + $0x110] sm:$0xff] }
 0x139   :  { %v870_v10 = vpop.permute.xlu0 %869  ;;  %v766_v42 = vadd.f32 %v764_v56, %v755_v28  ;;  %v767_v47 = vadd.f32 %v765_v7, %v756_v15  ;;  %v967_v52 = vpop.permute.xlu1 %966  ;;  %v949_v4 = vadd.f32 %v947_v8, %v938_v11  ;;  %v950_v32 = vadd.f32 %v948_v21, %v939_v48 }
 0x13a   :  { %v872_v6 = vmul.f32 %v870_v10, %v8437_v23  ;;  %v873_v51 = vmul.f32 %v870_v10, %v8440_v12  ;;  %5896 = vperm.xlu0 %6634, %v6613_v53   ;;  %v969_v18 = vmul.f32 %v967_v52, %v8374_v45  ;;  %v970_v33 = vmul.f32 %v967_v52, %v8377_v19  ;;  %v1077_v52 = vld [vmem:[%s10310_s8 + $0x1b8] sm:$0xff] }
 0x13b   :  { %5715 = vperm.xlu1 %6635, %v6598_v31   ;;  %v863_v14 = vadd.f32 %v861_v46, %v852_v3  ;;  %v864_v1 = vadd.f32 %v862_v20, %v853_v24  ;;  %v777_v54 = vadd.f32 %v775_v5, %v766_v42  ;;  %v778_v35 = vadd.f32 %v776_v16, %v767_v47  ;;  %v1072_v47 = vld [vmem:[%s10310_s8 + $0x190] sm:$0xff] }
 0x13c   :  { %v673_v44 = vrot.slane %v669_v57, 2  ;;  %v674_v13 = vrot.slane %v670_v22, 2  ;;  %v960_v9 = vadd.f32 %v958_v62, %v949_v4  ;;  %v961_v60 = vadd.f32 %v959_v55, %v950_v32 }
 0x13d   :  { %v881_v39 = vpop.permute.xlu0 %880  ;;  %v874_v29 = vadd.f32 %v872_v6, %v863_v14  ;;  %v875_v58 = vadd.f32 %v873_v51, %v864_v1  ;;  %v978_v50 = vpop.permute.xlu1 %977  ;;  %v781_v0 = vrot.slane %v777_v54, 6  ;;  %v782_v61 = vrot.slane %v778_v35, 6  ;;  %v1076_v6 = vld [vmem:[%s10310_s8 + $0x1b0] sm:$0xff]  ;;  %v1073_v51 = vld [vmem:[%s10310_s8 + $0x198] sm:$0xff] }
 0x13e   :  { %v883_v45 = vmul.f32 %v881_v39, %v8458_v59  ;;  %v884_v19 = vmul.f32 %v881_v39, %v8461_v25  ;;  %5811 = vperm.xlu0 %6634, %v6606_v17   ;;  %v971_v43 = vadd.f32 %v969_v18, %v960_v9  ;;  %v972_v11 = vadd.f32 %v970_v33, %v961_v60  ;;  %v1064_v18 = vld [vmem:[%s10310_s8 + $0x150] sm:$0xff]  ;;  %v1065_v1 = vld [vmem:[%s10310_s8 + $0x158] sm:$0xff] }
 0x13f   :  { %v980_v48 = vmul.f32 %v978_v50, %v8437_v23  ;;  %v981_v41 = vmul.f32 %v978_v50, %v8440_v12  ;;  %v680_v37 = vadd.f32 %v673_v44, %v572_v36  ;;  %v681_v30 = vadd.f32 %v674_v13, %v573_v34  ;;  %v1068_v14 = vld [vmem:[%s10310_s8 + $0x170] sm:$0xff]  ;;  %v1069_v54 = vld [vmem:[%s10310_s8 + $0x178] sm:$0xff]  ;;  %v10652_v44 = vld [vmem:[#allocation78_spill] sm:$0xff] }
 0x140   :  { %v885_v28 = vadd.f32 %v883_v45, %v874_v29  ;;  %v886_v15 = vadd.f32 %v884_v19, %v875_v58  ;;  %v8599_v33 = vcombine.high %v1072_v47, %v1076_v6  ;;  %v8601_v17 = vcombine.high %v1073_v51, %v1077_v52  ;;  %v10651_v35 = vld [vmem:[#allocation77_spill] sm:$0xff]  ;;  %v1056_v29 = vld [vmem:[%s10310_s8 + $0x110] sm:$0xff] }
 0x141   :  { %v982_v40 = vadd.f32 %v980_v48, %v971_v43  ;;  %v983_v56 = vadd.f32 %v981_v41, %v972_v11  ;;  %v989_v7 = vpop.permute.xlu0 %988  ;;  %v788_v21 = vadd.f32 %v781_v0, %v680_v37  ;;  %v789_v53 = vadd.f32 %v782_v61, %v681_v30  ;;  %v1010_v34 = vpop.permute.xlu1 %1009  ;;  %v1060_v58 = vld [vmem:[%s10310_s8 + $0x130] sm:$0xff]  ;;  %v1057_v45 = vld [vmem:[%s10310_s8 + $0x118] sm:$0xff] }
 0x142   :  { %v889_v63 = vrot.slane %v885_v28, 3  ;;  %v890_v3 = vrot.slane %v886_v15, 3  ;;  %v991_v24 = vmul.f32 %v989_v7, %v8458_v59  ;;  %v992_v8 = vmul.f32 %v989_v7, %v8461_v25  ;;  %v1061_v19 = vld [vmem:[%s10310_s8 + $0x138] sm:$0xff]  ;;  %v1048_v41 = vld [vmem:[%s10310_s8 + $0xd0] sm:$0xff] }
 0x143   :  { %v8616_v13 = vcombine.low %v1072_v47, %v1076_v6  ;;  %v8618_v9 = vcombine.low %v1073_v51, %v1077_v52  ;;  %v8620_v60 = vcombine.high %v1064_v18, %v1068_v14  ;;  %v8622_v39 = vcombine.high %v1065_v1, %v1069_v54  ;;  %v1052_v0 = vld [vmem:[%s10310_s8 + $0xf0] sm:$0xff]  ;;  %v1049_v61 = vld [vmem:[%s10310_s8 + $0xd8] sm:$0xff] }
 0x144   :  { %v993_v23 = vadd.f32 %v991_v24, %v982_v40  ;;  %v994_v46 = vadd.f32 %v992_v8, %v983_v56  ;;  %v896_v5 = vadd.f32 %v889_v63, %v788_v21  ;;  %v897_v16 = vadd.f32 %v890_v3, %v789_v53  ;;  %v1053_v28 = vld [vmem:[%s10310_s8 + $0xf8] sm:$0xff]  ;;  %v1040_v56 = vld [vmem:[%s10310_s8 + $0x90] sm:$0xff] }
 0x145   :  { %v8640_v50 = vcombine.low %v1064_v18, %v1068_v14  ;;  %v8642_v43 = vcombine.low %v1065_v1, %v1069_v54  ;;  %v8646_v11 = vcombine.high %v1056_v29, %v1060_v58  ;;  %v8648_v48 = vcombine.high %v1057_v45, %v1061_v19  ;;  %v1044_v7 = vld [vmem:[%s10310_s8 + $0xb0] sm:$0xff]  ;;  %v1041_v63 = vld [vmem:[%s10310_s8 + $0x98] sm:$0xff] }
 0x146   :  { %v997_v12 = vrot.slane %v993_v23, 7  ;;  %v998_v20 = vrot.slane %v994_v46, 7  ;;  %v8664_v15 = vcombine.low %v1056_v29, %v1060_v58  ;;  %v8666_v37 = vcombine.low %v1057_v45, %v1061_v19  ;;  %v1045_v3 = vld [vmem:[%s10310_s8 + $0xb8] sm:$0xff]  ;;  %v1032_v23 = vld [vmem:[%s10310_s8 + $0x50] sm:$0xff] }
 0x147   :  { %v8670_v30 = vcombine.high %v1048_v41, %v1052_v0  ;;  %v8672_v40 = vcombine.high %v1049_v61, %v1053_v28  ;;  %v8688_v24 = vcombine.low %v1048_v41, %v1052_v0  ;;  %v8690_v8 = vcombine.low %v1049_v61, %v1053_v28  ;;  %v1036_v46 = vld [vmem:[%s10310_s8 + $0x70] sm:$0xff]  ;;  %v1145_v52 = vld [vmem:[%s10310_s8 + $0x3d8] sm:$0xff] }
 0x148   :  { %v1004_v31 = vadd.f32 %v997_v12, %v896_v5  ;;  %v1005_v36 = vadd.f32 %v998_v20, %v897_v16  ;;  %v8694_v21 = vcombine.high %v1040_v56, %v1044_v7  ;;  %v8696_v53 = vcombine.high %v1041_v63, %v1045_v3  ;;  %v1033_v12 = vld [vmem:[%s10310_s8 + $0x58] sm:$0xff]  ;;  %v1144_v6 = vld [vmem:[%s10310_s8 + $0x3d0] sm:$0xff] }
 0x149   :  { %v1037_v20 = vld [vmem:[%s10310_s8 + $0x78] sm:$0xff]  ;;  %v8712_v5 = vcombine.low %v1040_v56, %v1044_v7  ;;  %v8714_v16 = vcombine.low %v1041_v63, %v1045_v3  ;;  %v1148_v51 = vld [vmem:[%s10310_s8 + $0x3f0] sm:$0xff]  ;;  %v8886_v27 = vcombine.high %v1104_v2, %v1108_v49 }
 0x14a   :  { %v1012_v57 = vadd.f32 %v1010_v34, %v1004_v31  ;;  %v1013_v22 = vadd.f32 %v1010_v34, %v1005_v36  ;;  %v8718_v31 = vcombine.high %v1032_v23, %v1036_v46  ;;  %v8720_v36 = vcombine.high %v1033_v12, %v1037_v20  ;;  %v1024_v34 = vld [vmem:[%s10310_s8 + $0x10] sm:$0xff]  ;;  %v1137_v45 = vld [vmem:[%s10310_s8 + $0x398] sm:$0xff] }
 0x14b   :  { %v8766_v1 = vcombine.high %v1144_v6, %v1148_v51  ;;  %v1136_v29 = vld [vmem:[%s10310_s8 + $0x390] sm:$0xff]  ;;  %v1141_v19 = vld [vmem:[%s10310_s8 + $0x3b8] sm:$0xff]  ;;  %v8784_v41 = vcombine.low %v1144_v6, %v1148_v51  ;;  %10659 = vst [vmem:[#allocation104_spill] sm:$0xff] %v8886_v27 }
 0x14c   :  { %v8576_v62 = vpack.c.bf16 %v1012_v57, %v1012_v57  ;;  %v8578_v55 = vpack.c.bf16 %v1013_v22, %v1013_v22  ;;  %v1140_v58 = vld [vmem:[%s10310_s8 + $0x3b0] sm:$0xff]  ;;  %v8792_v28 = vcombine.high %v1137_v45, %v1141_v19  ;;  %v1129_v63 = vld [vmem:[%s10310_s8 + $0x358] sm:$0xff] }
 0x14d   :  { %v8790_v61 = vcombine.high %v1136_v29, %v1140_v58  ;;  %v1128_v56 = vld [vmem:[%s10310_s8 + $0x350] sm:$0xff]  ;;  %v1133_v3 = vld [vmem:[%s10310_s8 + $0x378] sm:$0xff] }
 0x14e   :  { %v1016_v59 = vunpack.c.l.bf16 %v8576_v62  ;;  %v1017_v25 = vunpack.c.l.bf16 %v8578_v55  ;;  %v1132_v7 = vld [vmem:[%s10310_s8 + $0x370] sm:$0xff]  ;;  %v8834_v51 = vcombine.low %v1129_v63, %v1133_v3 }
 0x14f   :  { %v8832_v6 = vcombine.low %v1128_v56, %v1132_v7 }
 0x150   :  { %v1018_v10 = vsub.f32 %v1012_v57, %v1016_v59  ;;  %v1019_v42 = vsub.f32 %v1013_v22, %v1017_v25  ;;  %v1028_v57 = vld [vmem:[%s10310_s8 + $0x30] sm:$0xff]  ;;  %v1025_v22 = vld [vmem:[%s10310_s8 + $0x18] sm:$0xff]  ;;  %v8736_v25 = vcombine.low %v1032_v23, %v1036_v46  ;;  %v8808_v23 = vcombine.low %v1136_v29, %v1140_v58 }
 0x151   :  { %v1029_v59 = vld [vmem:[%s10310_s8 + $0x38] sm:$0xff]  ;;  %v8760_v18 = vcombine.low %v1024_v34, %v1028_v57  ;;  %v8810_v46 = vcombine.low %v1137_v45, %v1141_v19  ;;  %v1112_v29 = vld [vmem:[%s10310_s8 + $0x2d0] sm:$0xff] }
 0x152   :  { %v8594_v4 = vpack.c.bf16 %v1018_v10, %v1018_v10  ;;  %v1021_v32 = vpack.c.bf16 %v1019_v42, %v1019_v42  ;;  %v8738_v10 = vcombine.low %v1033_v12, %v1037_v20  ;;  %v8742_v42 = vcombine.high %v1024_v34, %v1028_v57  ;;  %v1120_v34 = vld [vmem:[%s10310_s8 + $0x310] sm:$0xff]  ;;  %v1113_v45 = vld [vmem:[%s10310_s8 + $0x2d8] sm:$0xff] }
 0x153   :  { %v8744_v47 = vcombine.high %v1025_v22, %v1029_v59  ;;  %v8762_v14 = vcombine.low %v1025_v22, %v1029_v59  ;;  %v8814_v12 = vcombine.high %v1128_v56, %v1132_v7  ;;  %v8816_v20 = vcombine.high %v1129_v63, %v1133_v3  ;;  %v1124_v57 = vld [vmem:[%s10310_s8 + $0x330] sm:$0xff]  ;;  %v1121_v22 = vld [vmem:[%s10310_s8 + $0x318] sm:$0xff] }
 0x154   :  { %1822 = vmatprep.mubr.bf16.mxu0 %v1021_v32  ;;  %1863 = vmatprep.mubr.bf16.mxu1 %v1021_v32  ;;  %v1125_v59 = vld [vmem:[%s10310_s8 + $0x338] sm:$0xff]  ;;  %v1116_v58 = vld [vmem:[%s10310_s8 + $0x2f0] sm:$0xff]  ;;  %v8856_v56 = vcombine.low %v1120_v34, %v1124_v57 }
 0x155   :  { %1823 = vmatmul.mubr.bf16.vlgmr.msra.gmra.mxu0 %v8594_v4  ;;  %1864 = vmatmul.mubr.bf16.vlgmr.msra.gmra.mxu1 %v8594_v4  ;;  %v1117_v19 = vld [vmem:[%s10310_s8 + $0x2f8] sm:$0xff]  ;;  %v8858_v7 = vcombine.low %v1121_v22, %v1125_v59  ;;  %v8862_v63 = vcombine.high %v1112_v29, %v1116_v58 }
 0x156   :  { %1873 = vmatpush1.bf16.msra.mxu0 %v10651_v35  ;;  %1914 = vmatpush1.bf16.msra.mxu1 %v10652_v44  ;;  %10653 = vst [vmem:[#allocation82_spill] sm:$0xff] %v8856_v56  ;;  %v8864_v3 = vcombine.high %v1113_v45, %v1117_v19 }
 0x157   :  { %1904 = vmatprep.mubr.bf16.mxu0 %v1021_v32  ;;  %1945 = vmatprep.mubr.bf16.mxu1 %v1021_v32  ;;  %v1149_v32 = vld [vmem:[%s10310_s8 + $0x3f8] sm:$0xff]  ;;  %10654 = vst [vmem:[#allocation85_spill] sm:$0xff] %v8858_v7  ;;  %10655 = vst [vmem:[#allocation89_spill] sm:$0xff] %v8862_v63 }
 0x158   :  { %1874 = vmatprep.subr.bf16.mxu0 %v8599_v33  ;;  %1915 = vmatprep.subr.bf16.mxu1 %v8601_v17  ;;  %v8768_v54 = vcombine.high %v1145_v52, %v1149_v32  ;;  %v8786_v0 = vcombine.low %v1145_v52, %v1149_v32  ;;  %v8838_v52 = vcombine.high %v1120_v34, %v1124_v57  ;;  %v1105_v34 = vld [vmem:[%s10310_s8 + $0x298] sm:$0xff] }
 0x159   :  { %v8840_v32 = vcombine.high %v1121_v22, %v1125_v59  ;;  %10656 = vst [vmem:[#allocation86_spill] sm:$0xff] %v8864_v3  ;;  %v1109_v57 = vld [vmem:[%s10310_s8 + $0x2b8] sm:$0xff]  ;;  %v8880_v22 = vcombine.low %v1112_v29, %v1116_v58  ;;  %v8882_v59 = vcombine.low %v1113_v45, %v1117_v19  ;;  %v8904_v45 = vcombine.low %v1104_v2, %v1108_v49 }
 0x15a   :  { %1875 = vmatpush1.bf16.msra.mxu0 %v8616_v13  ;;  %1916 = vmatpush1.bf16.msra.mxu1 %v8618_v9  ;;  %v8888_v38 = vcombine.high %v1105_v34, %v1109_v57  ;;  %v1097_v29 = vld [vmem:[%s10310_s8 + $0x258] sm:$0xff]  ;;  %v8906_v19 = vcombine.low %v1105_v34, %v1109_v57 }
 0x15b   :  { %1876 = vmatprep.subr.bf16.mxu0 %v8620_v60  ;;  %1917 = vmatprep.subr.bf16.mxu1 %v8622_v39  ;;  %10657 = vst [vmem:[#allocation98_spill] sm:$0xff] %v8880_v22  ;;  %10658 = vst [vmem:[#allocation80_spill] sm:$0xff] %v8882_v59  ;;  %v1101_v58 = vld [vmem:[%s10310_s8 + $0x278] sm:$0xff] }
 0x15c   :  { %10660 = vst [vmem:[#allocation105_spill] sm:$0xff] %v8888_v38  ;;  %10661 = vst [vmem:[#allocation106_spill] sm:$0xff] %v8904_v45  ;;  %v1089_v49 = vld [vmem:[%s10310_s8 + $0x218] sm:$0xff]  ;;  %v8930_v57 = vcombine.low %v1097_v29, %v1101_v58 }
 0x15d   :  { %v1093_v2 = vld [vmem:[%s10310_s8 + $0x238] sm:$0xff] }
 0x15e   :  { %1877 = vmatpush1.bf16.msra.mxu0 %v8640_v50  ;;  %1918 = vmatpush1.bf16.msra.mxu1 %v8642_v43 }
 0x15f   :  { %1878 = vmatprep.subr.bf16.mxu0 %v8646_v11  ;;  %1919 = vmatprep.subr.bf16.mxu1 %v8648_v48 }
 0x162   :  { %1879 = vmatpush1.bf16.msra.mxu0 %v8664_v15  ;;  %1920 = vmatpush1.bf16.msra.mxu1 %v8666_v37 }
 0x163   :  { %1880 = vmatprep.subr.bf16.mxu0 %v8670_v30  ;;  %1921 = vmatprep.subr.bf16.mxu1 %v8672_v40 }
 0x166   :  { %1881 = vmatpush1.bf16.msra.mxu0 %v8688_v24  ;;  %1922 = vmatpush1.bf16.msra.mxu1 %v8690_v8 }
 0x167   :  { %1882 = vmatprep.subr.bf16.mxu0 %v8694_v21  ;;  %1923 = vmatprep.subr.bf16.mxu1 %v8696_v53 }
 0x16a   :  { %1883 = vmatpush1.bf16.msra.mxu0 %v8712_v5  ;;  %1924 = vmatpush1.bf16.msra.mxu1 %v8714_v16 }
 0x16b   :  { %1884 = vmatprep.subr.bf16.mxu0 %v8718_v31  ;;  %1925 = vmatprep.subr.bf16.mxu1 %v8720_v36 }
 0x16e   :  { %1885 = vmatpush1.bf16.msra.mxu0 %v8736_v25  ;;  %1926 = vmatpush1.bf16.msra.mxu1 %v8738_v10 }
 0x16f   :  { %1886 = vmatprep.subr.bf16.mxu0 %v8742_v42  ;;  %1927 = vmatprep.subr.bf16.mxu1 %v8744_v47 }
 0x172   :  { %1887 = vmatpush1.bf16.msra.mxu0 %v8760_v18  ;;  %1928 = vmatpush1.bf16.msra.mxu1 %v8762_v14 }
 0x173   :  { %1888 = vmatprep.subr.bf16.mxu0 %v8766_v1  ;;  %1929 = vmatprep.subr.bf16.mxu1 %v8768_v54 }
 0x176   :  { %1889 = vmatpush2.bf16.msra.mxu0 %v8784_v41  ;;  %1930 = vmatpush2.bf16.msra.mxu1 %v8786_v0 }
 0x177   :  { %1890 = vmatprep.subr.bf16.mxu0 %v8790_v61  ;;  %1931 = vmatprep.subr.bf16.mxu1 %v8792_v28 }
 0x17a   :  { %1891 = vmatpush2.bf16.msra.mxu0 %v8808_v23  ;;  %1932 = vmatpush2.bf16.msra.mxu1 %v8810_v46 }
 0x17b   :  { %1892 = vmatprep.subr.bf16.mxu0 %v8814_v12  ;;  %1933 = vmatprep.subr.bf16.mxu1 %v8816_v20 }
 0x17e   :  { %1893 = vmatpush2.bf16.msra.mxu0 %v8832_v6  ;;  %1934 = vmatpush2.bf16.msra.mxu1 %v8834_v51 }
 0x17f   :  { %1894 = vmatprep.subr.bf16.mxu0 %v8838_v52  ;;  %1935 = vmatprep.subr.bf16.mxu1 %v8840_v32 }
 0x182   :  { %1895 = vmatpush2.bf16.msra.mxu0 %v8856_v56  ;;  %1936 = vmatpush2.bf16.msra.mxu1 %v8858_v7  ;;  %v1100_v7 = vld [vmem:[%s10310_s8 + $0x270] sm:$0xff] }
 0x183   :  { %1896 = vmatprep.subr.bf16.mxu0 %v8862_v63  ;;  %1937 = vmatprep.subr.bf16.mxu1 %v8864_v3  ;;  %v8910_v3 = vcombine.high %v1096_v26, %v1100_v7  ;;  %v8912_v63 = vcombine.high %v1097_v29, %v1101_v58  ;;  %v1088_v56 = vld [vmem:[%s10310_s8 + $0x210] sm:$0xff]  ;;  %v8928_v34 = vcombine.low %v1096_v26, %v1100_v7  ;;  %v10665_v7 = vld [vmem:[#allocation14_spill] sm:$0xff]  ;;  %v10669_v58 = vld [vmem:[#allocation17_spill] sm:$0xff] }
 0x184   :  { %v10664_v26 = vld [vmem:[#allocation12_spill] sm:$0xff] }
 0x185   :  { %v10668_v29 = vld [vmem:[#allocation16_spill] sm:$0xff] }
 0x186   :  { %1897 = vmatpush2.bf16.msra.mxu0 %v8880_v22  ;;  %1938 = vmatpush2.bf16.msra.mxu1 %v8882_v59  ;;  %v1092_v59 = vld [vmem:[%s10310_s8 + $0x230] sm:$0xff] }
 0x187   :  { %1898 = vmatprep.subr.bf16.mxu0 %v8886_v27  ;;  %1939 = vmatprep.subr.bf16.mxu1 %v8888_v38  ;;  %v8934_v38 = vcombine.high %v1088_v56, %v1092_v59  ;;  %v8936_v27 = vcombine.high %v1089_v49, %v1093_v2  ;;  %v8940_v22 = vcombine.low %v1088_v56, %v1092_v59  ;;  %v10666_v56 = vld [vmem:[#allocation13_spill] sm:$0xff]  ;;  %v10667_v59 = vld [vmem:[#allocation15_spill] sm:$0xff] }
 0x189   :  { %10662 = vst [vmem:[#allocation103_spill] sm:$0xff] %v8940_v22 }
 0x18a   :  { %1899 = vmatpush2.bf16.msra.mxu0 %v8904_v45  ;;  %1940 = vmatpush2.bf16.msra.mxu1 %v8906_v19  ;;  %v8942_v45 = vcombine.low %v1089_v49, %v1093_v2  ;;  %v10670_v49 = vld [vmem:[#allocation18_spill] sm:$0xff]  ;;  %v10671_v2 = vld [vmem:[#allocation19_spill] sm:$0xff] }
 0x18b   :  { %1900 = vmatprep.subr.bf16.mxu0 %v8910_v3  ;;  %1941 = vmatprep.subr.bf16.mxu1 %v8912_v63 }
 0x18c   :  { %10663 = vst [vmem:[#allocation77_spill] sm:$0xff] %v8942_v45 }
 0x18e   :  { %1901 = vmatpush2.bf16.msra.mxu0 %v8928_v34  ;;  %1942 = vmatpush2.bf16.msra.mxu1 %v8930_v57 }
 0x18f   :  { %1902 = vmatprep.subr.bf16.mxu0 %v8934_v38  ;;  %1943 = vmatprep.subr.bf16.mxu1 %v8936_v27 }
 0x192   :  { %1903 = vmatpush2.bf16.msra.mxu0 %v8940_v22  ;;  %1944 = vmatpush2.bf16.msra.mxu1 %v8942_v45  ;;  %v10676_v45 = vld [vmem:[#allocation24_spill] sm:$0xff]  ;;  %v10678_v22 = vld [vmem:[#allocation26_spill] sm:$0xff] }
 0x193   :  { %1954 = vmatprep.subr.bf16.mxu0 %v10664_v26  ;;  %1995 = vmatprep.subr.bf16.mxu1 %v10665_v7  ;;  %v10672_v26 = vld [vmem:[#allocation20_spill] sm:$0xff]  ;;  %v10673_v7 = vld [vmem:[#allocation21_spill] sm:$0xff] }
 0x195   :  { %1905 = vmatmul.mubr.bf16.vlgmr.msra.gmra.mxu0 %v8594_v4  ;;  %1946 = vmatmul.mubr.bf16.vlgmr.msra.gmra.mxu1 %v8594_v4  ;;  %v10674_v4 = vld [vmem:[#allocation22_spill] sm:$0xff] }
 0x196   :  { %1955 = vmatpush1.bf16.msra.mxu0 %v10666_v56  ;;  %1986 = vmatprep.mubr.bf16.mxu0 %v8578_v55  ;;  %v10675_v56 = vld [vmem:[#allocation23_spill] sm:$0xff] }
 0x197   :  { %1996 = vmatpush1.bf16.msra.mxu1 %v10667_v59  ;;  %2027 = vmatprep.mubr.bf16.mxu1 %v8578_v55  ;;  %v10677_v59 = vld [vmem:[#allocation25_spill] sm:$0xff] }
 0x198   :  { %1956 = vmatprep.subr.bf16.mxu0 %v10668_v29  ;;  %1997 = vmatprep.subr.bf16.mxu1 %v10669_v58  ;;  %v10679_v29 = vld [vmem:[#allocation27_spill] sm:$0xff]  ;;  %v10680_v58 = vld [vmem:[#allocation28_spill] sm:$0xff] }
 0x19a   :  { %1957 = vmatpush1.bf16.msra.mxu0 %v10670_v49  ;;  %v10681_v49 = vld [vmem:[#allocation29_spill] sm:$0xff] }
 0x19b   :  { %1998 = vmatpush1.bf16.msra.mxu1 %v10671_v2  ;;  %1958 = vmatprep.subr.bf16.mxu0 %v10672_v26  ;;  %v10682_v2 = vld [vmem:[#allocation30_spill] sm:$0xff]  ;;  %v10683_v26 = vld [vmem:[#allocation31_spill] sm:$0xff] }
 0x19c   :  { %1999 = vmatprep.subr.bf16.mxu1 %v10673_v7  ;;  %v10684_v7 = vld [vmem:[#allocation32_spill] sm:$0xff] }
 0x19e   :  { %1959 = vmatpush1.bf16.msra.mxu0 %v10674_v4  ;;  %v10685_v4 = vld [vmem:[#allocation33_spill] sm:$0xff] }
 0x19f   :  { %2000 = vmatpush1.bf16.msra.mxu1 %v10675_v56  ;;  %1960 = vmatprep.subr.bf16.mxu0 %v10676_v45  ;;  %v10686_v56 = vld [vmem:[#allocation34_spill] sm:$0xff]  ;;  %v10687_v45 = vld [vmem:[#allocation35_spill] sm:$0xff] }
 0x1a0   :  { %2001 = vmatprep.subr.bf16.mxu1 %v10677_v59  ;;  %v10688_v59 = vld [vmem:[#allocation36_spill] sm:$0xff] }
 0x1a2   :  { %1961 = vmatpush1.bf16.msra.mxu0 %v10678_v22  ;;  %v10689_v22 = vld [vmem:[#allocation37_spill] sm:$0xff] }
 0x1a3   :  { %2002 = vmatpush1.bf16.msra.mxu1 %v10679_v29  ;;  %1962 = vmatprep.subr.bf16.mxu0 %v10680_v58  ;;  %v10690_v29 = vld [vmem:[#allocation38_spill] sm:$0xff]  ;;  %v10691_v58 = vld [vmem:[#allocation39_spill] sm:$0xff] }
 0x1a4   :  { %2003 = vmatprep.subr.bf16.mxu1 %v10681_v49  ;;  %v10692_v49 = vld [vmem:[#allocation40_spill] sm:$0xff] }
 0x1a6   :  { %1963 = vmatpush1.bf16.msra.mxu0 %v10682_v2  ;;  %v10693_v2 = vld [vmem:[#allocation41_spill] sm:$0xff] }
 0x1a7   :  { %2004 = vmatpush1.bf16.msra.mxu1 %v10683_v26  ;;  %1964 = vmatprep.subr.bf16.mxu0 %v10684_v7  ;;  %v10694_v26 = vld [vmem:[#allocation42_spill] sm:$0xff]  ;;  %v10695_v7 = vld [vmem:[#allocation43_spill] sm:$0xff] }
 0x1a8   :  { %2005 = vmatprep.subr.bf16.mxu1 %v10685_v4  ;;  %v10696_v4 = vld [vmem:[#allocation44_spill] sm:$0xff] }
 0x1aa   :  { %1965 = vmatpush1.bf16.msra.mxu0 %v10686_v56  ;;  %v10697_v56 = vld [vmem:[#allocation45_spill] sm:$0xff] }
 0x1ab   :  { %2006 = vmatpush1.bf16.msra.mxu1 %v10687_v45  ;;  %1966 = vmatprep.subr.bf16.mxu0 %v10688_v59  ;;  %v10698_v45 = vld [vmem:[#allocation46_spill] sm:$0xff]  ;;  %v10699_v59 = vld [vmem:[#allocation47_spill] sm:$0xff] }
 0x1ac   :  { %2007 = vmatprep.subr.bf16.mxu1 %v10689_v22  ;;  %v10700_v22 = vld [vmem:[#allocation48_spill] sm:$0xff] }
 0x1ae   :  { %1967 = vmatpush1.bf16.msra.mxu0 %v10690_v29  ;;  %v10701_v29 = vld [vmem:[#allocation49_spill] sm:$0xff] }
 0x1af   :  { %2008 = vmatpush1.bf16.msra.mxu1 %v10691_v58  ;;  %1968 = vmatprep.subr.bf16.mxu0 %v10692_v49  ;;  %v10702_v58 = vld [vmem:[#allocation50_spill] sm:$0xff]  ;;  %v10703_v49 = vld [vmem:[#allocation51_spill] sm:$0xff] }
 0x1b0   :  { %2009 = vmatprep.subr.bf16.mxu1 %v10693_v2  ;;  %v10704_v2 = vld [vmem:[#allocation52_spill] sm:$0xff] }
 0x1b2   :  { %1969 = vmatpush1.bf16.msra.mxu0 %v10694_v26  ;;  %v10705_v26 = vld [vmem:[#allocation53_spill] sm:$0xff] }
 0x1b3   :  { %2010 = vmatpush1.bf16.msra.mxu1 %v10695_v7  ;;  %1970 = vmatprep.subr.bf16.mxu0 %v10696_v4  ;;  %v10706_v7 = vld [vmem:[#allocation54_spill] sm:$0xff]  ;;  %v10707_v4 = vld [vmem:[#allocation55_spill] sm:$0xff] }
 0x1b4   :  { %2011 = vmatprep.subr.bf16.mxu1 %v10697_v56  ;;  %v10708_v56 = vld [vmem:[#allocation56_spill] sm:$0xff] }
 0x1b6   :  { %1971 = vmatpush2.bf16.msra.mxu0 %v10698_v45  ;;  %v10709_v45 = vld [vmem:[#allocation57_spill] sm:$0xff] }
 0x1b7   :  { %2012 = vmatpush2.bf16.msra.mxu1 %v10699_v59  ;;  %1972 = vmatprep.subr.bf16.mxu0 %v10700_v22  ;;  %v10710_v59 = vld [vmem:[#allocation58_spill] sm:$0xff]  ;;  %v10711_v22 = vld [vmem:[#allocation59_spill] sm:$0xff] }
 0x1b8   :  { %2013 = vmatprep.subr.bf16.mxu1 %v10701_v29  ;;  %v10712_v29 = vld [vmem:[#allocation60_spill] sm:$0xff] }
 0x1ba   :  { %1973 = vmatpush2.bf16.msra.mxu0 %v10702_v58  ;;  %v10713_v58 = vld [vmem:[#allocation61_spill] sm:$0xff] }
 0x1bb   :  { %2014 = vmatpush2.bf16.msra.mxu1 %v10703_v49  ;;  %1974 = vmatprep.subr.bf16.mxu0 %v10704_v2  ;;  %v10714_v49 = vld [vmem:[#allocation62_spill] sm:$0xff]  ;;  %v10715_v2 = vld [vmem:[#allocation63_spill] sm:$0xff] }
 0x1bc   :  { %2015 = vmatprep.subr.bf16.mxu1 %v10705_v26  ;;  %v10716_v26 = vld [vmem:[#allocation64_spill] sm:$0xff] }
 0x1be   :  { %1975 = vmatpush2.bf16.msra.mxu0 %v10706_v7  ;;  %v10717_v7 = vld [vmem:[#allocation65_spill] sm:$0xff] }
 0x1bf   :  { %2016 = vmatpush2.bf16.msra.mxu1 %v10707_v4  ;;  %1976 = vmatprep.subr.bf16.mxu0 %v10708_v56  ;;  %v10718_v4 = vld [vmem:[#allocation66_spill] sm:$0xff]  ;;  %v10719_v56 = vld [vmem:[#allocation67_spill] sm:$0xff] }
 0x1c0   :  { %2017 = vmatprep.subr.bf16.mxu1 %v10709_v45  ;;  %v10720_v45 = vld [vmem:[#allocation68_spill] sm:$0xff] }
 0x1c2   :  { %1977 = vmatpush2.bf16.msra.mxu0 %v10710_v59  ;;  %v10721_v59 = vld [vmem:[#allocation69_spill] sm:$0xff] }
 0x1c3   :  { %2018 = vmatpush2.bf16.msra.mxu1 %v10711_v22  ;;  %1978 = vmatprep.subr.bf16.mxu0 %v10712_v29  ;;  %v10722_v22 = vld [vmem:[#allocation70_spill] sm:$0xff]  ;;  %v10723_v29 = vld [vmem:[#allocation71_spill] sm:$0xff] }
 0x1c4   :  { %2019 = vmatprep.subr.bf16.mxu1 %v10713_v58  ;;  %v10724_v58 = vld [vmem:[#allocation72_spill] sm:$0xff] }
 0x1c6   :  { %1979 = vmatpush2.bf16.msra.mxu0 %v10714_v49  ;;  %v10725_v49 = vld [vmem:[#allocation73_spill] sm:$0xff] }
 0x1c7   :  { %2020 = vmatpush2.bf16.msra.mxu1 %v10715_v2  ;;  %1980 = vmatprep.subr.bf16.mxu0 %v10716_v26  ;;  %v10726_v2 = vld [vmem:[#allocation74_spill] sm:$0xff]  ;;  %v10727_v26 = vld [vmem:[#allocation75_spill] sm:$0xff] }
 0x1c8   :  { %2021 = vmatprep.subr.bf16.mxu1 %v10717_v7  ;;  %v10728_v7 = vld [vmem:[#allocation76_spill] sm:$0xff] }
 0x1ca   :  { %1981 = vmatpush2.bf16.msra.mxu0 %v10718_v4  ;;  %v10729_v4 = vld [vmem:[#allocation79_spill] sm:$0xff] }
 0x1cb   :  { %2022 = vmatpush2.bf16.msra.mxu1 %v10719_v56  ;;  %1982 = vmatprep.subr.bf16.mxu0 %v10720_v45  ;;  %v2143_v56 = vld [vmem:[#allocation2 + $0xc8] sm:$0xff] }
 0x1cc   :  { %2023 = vmatprep.subr.bf16.mxu1 %v10721_v59  ;;  %v2147_v45 = vld [vmem:[#allocation2 + $0xe8] sm:$0xff] }
 0x1ce   :  { %1983 = vmatpush2.bf16.msra.mxu0 %v10722_v22 }
 0x1cf   :  { %2024 = vmatpush2.bf16.msra.mxu1 %v10723_v29  ;;  %1984 = vmatprep.subr.bf16.mxu0 %v10724_v58  ;;  %v6198_v58 = vcombine.high %v2143_v56, %v2147_v45 }
 0x1d0   :  { %2025 = vmatprep.subr.bf16.mxu1 %v10725_v49  ;;  %v2134_v49 = vld [vmem:[#allocation2 + $0x80] sm:$0xff] }
 0x1d2   :  { %1985 = vmatpush2.bf16.msra.mxu0 %v10726_v2  ;;  %v2138_v2 = vld [vmem:[#allocation2 + $0xa0] sm:$0xff] }
 0x1d3   :  { %2026 = vmatpush2.bf16.msra.mxu1 %v10727_v26  ;;  %2036 = vmatprep.subr.bf16.mxu0 %v10728_v7  ;;  %v2135_v26 = vld [vmem:[#allocation2 + $0x88] sm:$0xff] }
 0x1d4   :  { %2077 = vmatprep.subr.bf16.mxu1 %v10729_v4  ;;  %v2139_v7 = vld [vmem:[#allocation2 + $0xa8] sm:$0xff] }
 0x1d5   :  { %1987 = vmatmul.mubr.bf16.vlgmr.msra.gmra.mxu0 %v8576_v62 }
 0x1d6   :  { %2028 = vmatmul.mubr.bf16.vlgmr.msra.gmra.mxu1 %v8576_v62  ;;  %2037 = vmatpush1.bf16.msra.mxu0 %v10651_v35  ;;  %v10732_v35 = vld [vmem:[#allocation89_spill] sm:$0xff] }
 0x1d7   :  { %2068 = vmatprep.mubr.bf16.mxu0 %v8578_v55  ;;  %2078 = vmatpush1.bf16.msra.mxu1 %v10652_v44  ;;  %v10733_v44 = vld [vmem:[#allocation86_spill] sm:$0xff] }
 0x1d8   :  { %2109 = vmatprep.mubr.bf16.mxu1 %v8578_v55  ;;  %2038 = vmatprep.subr.bf16.mxu0 %v8599_v33  ;;  %v10730_v33 = vld [vmem:[#allocation82_spill] sm:$0xff] }
 0x1d9   :  { %2079 = vmatprep.subr.bf16.mxu1 %v8601_v17  ;;  %v10731_v17 = vld [vmem:[#allocation85_spill] sm:$0xff] }
 0x1da   :  { %2039 = vmatpush1.bf16.msra.mxu0 %v8616_v13  ;;  %v10734_v13 = vld [vmem:[#allocation98_spill] sm:$0xff] }
 0x1db   :  { %2080 = vmatpush1.bf16.msra.mxu1 %v8618_v9  ;;  %2040 = vmatprep.subr.bf16.mxu0 %v8620_v60  ;;  %v10735_v9 = vld [vmem:[#allocation80_spill] sm:$0xff] }
 0x1dc   :  { %2081 = vmatprep.subr.bf16.mxu1 %v8622_v39  ;;  %v10736_v60 = vld [vmem:[#allocation104_spill] sm:$0xff]  ;;  %v10737_v39 = vld [vmem:[#allocation105_spill] sm:$0xff] }
 0x1de   :  { %2041 = vmatpush1.bf16.msra.mxu0 %v8640_v50  ;;  %v10738_v50 = vld [vmem:[#allocation106_spill] sm:$0xff] }
 0x1df   :  { %2082 = vmatpush1.bf16.msra.mxu1 %v8642_v43  ;;  %2042 = vmatprep.subr.bf16.mxu0 %v8646_v11  ;;  %v2174_v43 = vld [vmem:[#allocation2 + $0x1c0] sm:$0xff] }
 0x1e0   :  { %2083 = vmatprep.subr.bf16.mxu1 %v8648_v48  ;;  %v2178_v11 = vld [vmem:[#allocation2 + $0x1e0] sm:$0xff]  ;;  %v2175_v48 = vld [vmem:[#allocation2 + $0x1c8] sm:$0xff] }
 0x1e2   :  { %2043 = vmatpush1.bf16.msra.mxu0 %v8664_v15  ;;  %v2179_v15 = vld [vmem:[#allocation2 + $0x1e8] sm:$0xff] }
 0x1e3   :  { %2084 = vmatpush1.bf16.msra.mxu1 %v8666_v37  ;;  %2044 = vmatprep.subr.bf16.mxu0 %v8670_v30  ;;  %v6228_v37 = vcombine.high %v2174_v43, %v2178_v11  ;;  %v6230_v30 = vcombine.high %v2175_v48, %v2179_v15 }
 0x1e4   :  { %2085 = vmatprep.subr.bf16.mxu1 %v8672_v40  ;;  %v2166_v40 = vld [vmem:[#allocation2 + $0x180] sm:$0xff] }
 0x1e6   :  { %2045 = vmatpush1.bf16.msra.mxu0 %v8688_v24  ;;  %v2170_v24 = vld [vmem:[#allocation2 + $0x1a0] sm:$0xff] }
 0x1e7   :  { %2086 = vmatpush1.bf16.msra.mxu1 %v8690_v8  ;;  %2046 = vmatprep.subr.bf16.mxu0 %v8694_v21  ;;  %v10739_v8 = vld [vmem:[#allocation103_spill] sm:$0xff]  ;;  %v6227_v21 = vcombine.low %v2174_v43, %v2178_v11 }
 0x1e8   :  { %2087 = vmatprep.subr.bf16.mxu1 %v8696_v53  ;;  %v2167_v53 = vld [vmem:[#allocation2 + $0x188] sm:$0xff] }
 0x1ea   :  { %2047 = vmatpush1.bf16.msra.mxu0 %v8712_v5  ;;  %v2171_v5 = vld [vmem:[#allocation2 + $0x1a8] sm:$0xff] }
 0x1eb   :  { %2088 = vmatpush1.bf16.msra.mxu1 %v8714_v16  ;;  %2048 = vmatprep.subr.bf16.mxu0 %v8718_v31  ;;  %v10740_v16 = vld [vmem:[#allocation77_spill] sm:$0xff]  ;;  %v6229_v31 = vcombine.low %v2175_v48, %v2179_v15  ;;  %v2118_v48 = vld [vmem:[#allocation2] sm:$0xff] }
 0x1ec   :  { %2089 = vmatprep.subr.bf16.mxu1 %v8720_v36  ;;  %v6220_v36 = vcombine.high %v2166_v40, %v2170_v24  ;;  %v2122_v15 = vld [vmem:[#allocation2 + $0x20] sm:$0xff] }
 0x1ee   :  { %2049 = vmatpush1.bf16.msra.mxu0 %v8736_v25  ;;  %v2158_v25 = vld [vmem:[#allocation2 + $0x140] sm:$0xff] }
 0x1ef   :  { %2090 = vmatpush1.bf16.msra.mxu1 %v8738_v10  ;;  %2050 = vmatprep.subr.bf16.mxu0 %v8742_v42  ;;  %v2162_v10 = vld [vmem:[#allocation2 + $0x160] sm:$0xff]  ;;  %v6222_v42 = vcombine.high %v2167_v53, %v2171_v5 }
 0x1f0   :  { %2091 = vmatprep.subr.bf16.mxu1 %v8744_v47  ;;  %v2159_v47 = vld [vmem:[#allocation2 + $0x148] sm:$0xff] }
 0x1f2   :  { %2051 = vmatpush1.bf16.msra.mxu0 %v8760_v18  ;;  %v2163_v18 = vld [vmem:[#allocation2 + $0x168] sm:$0xff] }
 0x1f3   :  { %2092 = vmatpush1.bf16.msra.mxu1 %v8762_v14  ;;  %2052 = vmatprep.subr.bf16.mxu0 %v8766_v1  ;;  %v6219_v14 = vcombine.low %v2166_v40, %v2170_v24 }
 0x1f4   :  { %2093 = vmatprep.subr.bf16.mxu1 %v8768_v54 }
 0x1f6   :  { %2053 = vmatpush2.bf16.msra.mxu0 %v8784_v41  ;;  %v6221_v41 = vcombine.low %v2167_v53, %v2171_v5  ;;  %v2238_v53 = vld [vmem:[#allocation2 + $0x3c0] sm:$0xff] }
 0x1f7   :  { %2094 = vmatpush2.bf16.msra.mxu1 %v8786_v0  ;;  %2054 = vmatprep.subr.bf16.mxu0 %v8790_v61  ;;  %v6212_v0 = vcombine.high %v2158_v25, %v2162_v10  ;;  %v6214_v61 = vcombine.high %v2159_v47, %v2163_v18  ;;  %v2242_v5 = vld [vmem:[#allocation2 + $0x3e0] sm:$0xff] }
 0x1f8   :  { %2095 = vmatprep.subr.bf16.mxu1 %v8792_v28  ;;  %v2150_v28 = vld [vmem:[#allocation2 + $0x100] sm:$0xff] }
 0x1fa   :  { %2055 = vmatpush2.bf16.msra.mxu0 %v8808_v23  ;;  %v2154_v23 = vld [vmem:[#allocation2 + $0x120] sm:$0xff] }
 0x1fb   :  { %2096 = vmatpush2.bf16.msra.mxu1 %v8810_v46  ;;  %2056 = vmatprep.subr.bf16.mxu0 %v8814_v12  ;;  %v6203_v59 = vcombine.low %v2150_v28, %v2154_v23 }
 0x1fc   :  { %2097 = vmatprep.subr.bf16.mxu1 %v8816_v20  ;;  %v2151_v20 = vld [vmem:[#allocation2 + $0x108] sm:$0xff] }
 0x1fe   :  { %2057 = vmatpush2.bf16.msra.mxu0 %v8832_v6  ;;  %v2155_v6 = vld [vmem:[#allocation2 + $0x128] sm:$0xff] }
 0x1ff   :  { %2098 = vmatpush2.bf16.msra.mxu1 %v8834_v51  ;;  %2058 = vmatprep.subr.bf16.mxu0 %v8838_v52  ;;  %v6211_v51 = vcombine.low %v2158_v25, %v2162_v10  ;;  %v6205_v22 = vcombine.low %v2151_v20, %v2155_v6  ;;  %v6292_v10 = vcombine.high %v2238_v53, %v2242_v5 }
 0x200   :  { %2099 = vmatprep.subr.bf16.mxu1 %v8840_v32 }
 0x202   :  { %2059 = vmatpush2.bf16.msra.mxu0 %v10730_v33  ;;  %v6197_v33 = vcombine.low %v2143_v56, %v2147_v45 }
 0x203   :  { %2100 = vmatpush2.bf16.msra.mxu1 %v10731_v17  ;;  %2060 = vmatprep.subr.bf16.mxu0 %v10732_v35  ;;  %v6188_v17 = vcombine.high %v2134_v49, %v2138_v2  ;;  %v6190_v35 = vcombine.high %v2135_v26, %v2139_v7 }
 0x204   :  { %2101 = vmatprep.subr.bf16.mxu1 %v10733_v44  ;;  %v2126_v44 = vld [vmem:[#allocation2 + $0x40] sm:$0xff] }
 0x206   :  { %2061 = vmatpush2.bf16.msra.mxu0 %v10734_v13  ;;  %v2130_v13 = vld [vmem:[#allocation2 + $0x60] sm:$0xff] }
 0x207   :  { %2102 = vmatpush2.bf16.msra.mxu1 %v10735_v9  ;;  %2062 = vmatprep.subr.bf16.mxu0 %v10736_v60  ;;  %v2127_v9 = vld [vmem:[#allocation2 + $0x48] sm:$0xff]  ;;  %v6180_v43 = vcombine.high %v2126_v44, %v2130_v13  ;;  %v6179_v40 = vcombine.low %v2126_v44, %v2130_v13 }
 0x208   :  { %2103 = vmatprep.subr.bf16.mxu1 %v10737_v39  ;;  %v2131_v60 = vld [vmem:[#allocation2 + $0x68] sm:$0xff]  ;;  %v6187_v39 = vcombine.low %v2134_v49, %v2138_v2 }
 0x209   :  { %v6182_v11 = vcombine.high %v2127_v9, %v2131_v60  ;;  %v6181_v24 = vcombine.low %v2127_v9, %v2131_v60  ;;  %v2207_v49 = vld [vmem:[#allocation2 + $0x2c8] sm:$0xff] }
 0x20a   :  { %2063 = vmatpush2.bf16.msra.mxu0 %v10738_v50  ;;  %v6189_v50 = vcombine.low %v2135_v26, %v2139_v7  ;;  %v2211_v2 = vld [vmem:[#allocation2 + $0x2e8] sm:$0xff] }
 0x20b   :  { %2104 = vmatpush2.bf16.msra.mxu1 %v8906_v19  ;;  %2064 = vmatprep.subr.bf16.mxu0 %v8910_v3  ;;  %v6204_v3 = vcombine.high %v2150_v28, %v2154_v23  ;;  %v6206_v19 = vcombine.high %v2151_v20, %v2155_v6  ;;  %v2223_v20 = vld [vmem:[#allocation2 + $0x348] sm:$0xff]  ;;  %v6261_v60 = vcombine.low %v2207_v49, %v2211_v2 }
 0x20c   :  { %2105 = vmatprep.subr.bf16.mxu1 %v8912_v63  ;;  %v6213_v63 = vcombine.low %v2159_v47, %v2163_v18  ;;  %v2230_v47 = vld [vmem:[#allocation2 + $0x380] sm:$0xff]  ;;  %v2227_v6 = vld [vmem:[#allocation2 + $0x368] sm:$0xff] }
 0x20d   :  { %v2234_v18 = vld [vmem:[#allocation2 + $0x3a0] sm:$0xff]  ;;  %v6277_v45 = vcombine.low %v2223_v20, %v2227_v6  ;;  %v2199_v44 = vld [vmem:[#allocation2 + $0x288] sm:$0xff] }
 0x20e   :  { %2065 = vmatpush2.bf16.msra.mxu0 %v8928_v34  ;;  %v2142_v34 = vld [vmem:[#allocation2 + $0xc0] sm:$0xff]  ;;  %v6284_v28 = vcombine.high %v2230_v47, %v2234_v18  ;;  %v2203_v13 = vld [vmem:[#allocation2 + $0x2a8] sm:$0xff] }
 0x20f   :  { %2106 = vmatpush2.bf16.msra.mxu1 %v8930_v57  ;;  %2066 = vmatprep.subr.bf16.mxu0 %v8934_v38  ;;  %v2146_v57 = vld [vmem:[#allocation2 + $0xe0] sm:$0xff] }
 0x210   :  { %2107 = vmatprep.subr.bf16.mxu1 %v8936_v27  ;;  %v6196_v29 = vcombine.high %v2142_v34, %v2146_v57  ;;  %v6195_v4 = vcombine.low %v2142_v34, %v2146_v57  ;;  %v2215_v34 = vld [vmem:[#allocation2 + $0x308] sm:$0xff] }
 0x211   :  { %v2219_v57 = vld [vmem:[#allocation2 + $0x328] sm:$0xff] }
 0x212   :  { %2067 = vmatpush2.bf16.msra.mxu0 %v10739_v8  ;;  %v6172_v8 = vcombine.high %v2118_v48, %v2122_v15  ;;  %v6269_v7 = vcombine.low %v2215_v34, %v2219_v57 }
 0x213   :  { %2108 = vmatpush2.bf16.msra.mxu1 %v10740_v16  ;;  %2886 = vmatprep.subr.bf16.mxu0 %v6228_v37  ;;  %v2119_v37 = vld [vmem:[#allocation2 + $0x8] sm:$0xff] }
 0x214   :  { %2927 = vmatprep.subr.bf16.mxu1 %v6230_v30  ;;  %v2123_v30 = vld [vmem:[#allocation2 + $0x28] sm:$0xff] }
 0x215   :  { %2069 = vmatmul.mubr.bf16.vlgmr.msra.gmra.mxu0 %v8576_v62  ;;  %v9085_v38 = vpop.f32.mrf.mxu0  ;;  %v9087_v27 = vpop.f32.mrf.mxu1  ;;  %v2239_v16 = vld [vmem:[#allocation2 + $0x3c8] sm:$0xff]  ;;  %v6173_v25 = vcombine.low %v2119_v37, %v2123_v30 }
 0x216   :  { %2110 = vmatmul.mubr.bf16.vlgmr.msra.gmra.mxu1 %v8576_v62  ;;  %2887 = vmatpush1.bf16.msra.mxu0 %v6227_v21  ;;  %v6174_v21 = vcombine.high %v2119_v37, %v2123_v30  ;;  %v6253_v30 = vcombine.low %v2199_v44, %v2203_v13 }
 0x217   :  { %2918 = vmatprep.mubr.bf16.mxu0 %v8578_v55  ;;  %2928 = vmatpush1.bf16.msra.mxu1 %v6229_v31  ;;  %v9091_v1 = vpop.f32.mrf.mxu0  ;;  %v9093_v54 = vpop.f32.mrf.mxu1  ;;  %v2243_v31 = vld [vmem:[#allocation2 + $0x3e8] sm:$0xff] }
 0x218   :  { %2959 = vmatprep.mubr.bf16.mxu1 %v8578_v55  ;;  %2888 = vmatprep.subr.bf16.mxu0 %v6220_v36  ;;  %v6171_v36 = vcombine.low %v2118_v48, %v2122_v15  ;;  %v2191_v48 = vld [vmem:[#allocation2 + $0x248] sm:$0xff] }
 0x219   :  { %2929 = vmatprep.subr.bf16.mxu1 %v6222_v42  ;;  %v1828_v46 = vpop.f32.mrf.mxu0  ;;  %v1869_v12 = vpop.f32.mrf.mxu1  ;;  %v6294_v42 = vcombine.high %v2239_v16, %v2243_v31  ;;  %v2195_v15 = vld [vmem:[#allocation2 + $0x268] sm:$0xff] }
 0x21a   :  { %2889 = vmatpush1.bf16.msra.mxu0 %v6219_v14  ;;  %v2231_v14 = vld [vmem:[#allocation2 + $0x388] sm:$0xff]  ;;  %v2222_v46 = vld [vmem:[#allocation2 + $0x340] sm:$0xff] }
 0x21b   :  { %2930 = vmatpush1.bf16.msra.mxu1 %v6221_v41  ;;  %v1829_v52 = vpop.f32.mrf.mxu0  ;;  %v1870_v32 = vpop.f32.mrf.mxu1  ;;  %2890 = vmatprep.subr.bf16.mxu0 %v6212_v0  ;;  %v2235_v41 = vld [vmem:[#allocation2 + $0x3a8] sm:$0xff]  ;;  %v6291_v0 = vcombine.low %v2238_v53, %v2242_v5  ;;  %v2226_v12 = vld [vmem:[#allocation2 + $0x360] sm:$0xff] }
 0x21c   :  { %2931 = vmatprep.subr.bf16.mxu1 %v6214_v61  ;;  %v6293_v61 = vcombine.low %v2239_v16, %v2243_v31  ;;  %v6286_v23 = vcombine.high %v2231_v14, %v2235_v41  ;;  %v6285_v52 = vcombine.low %v2231_v14, %v2235_v41  ;;  %v6276_v32 = vcombine.high %v2222_v46, %v2226_v12  ;;  %v2183_v53 = vld [vmem:[#allocation2 + $0x208] sm:$0xff] }
 0x21d   :  { %v6275_v56 = vcombine.low %v2222_v46, %v2226_v12  ;;  %v2187_v5 = vld [vmem:[#allocation2 + $0x228] sm:$0xff]  ;;  %v6245_v31 = vcombine.low %v2191_v48, %v2195_v15  ;;  %v2169_v12 = vld [vmem:[#allocation2 + $0x198] sm:$0xff] }
 0x21e   :  { %2891 = vmatpush1.bf16.msra.mxu0 %v6211_v51  ;;  %v6283_v51 = vcombine.low %v2230_v47, %v2234_v18  ;;  %v2177_v47 = vld [vmem:[#allocation2 + $0x1d8] sm:$0xff]  ;;  %v6237_v41 = vcombine.low %v2183_v53, %v2187_v5 }
 0x21f   :  { %2932 = vmatpush1.bf16.msra.mxu1 %v6213_v63  ;;  %2892 = vmatprep.subr.bf16.mxu0 %v6204_v3  ;;  %v6278_v63 = vcombine.high %v2223_v20, %v2227_v6  ;;  %v2214_v3 = vld [vmem:[#allocation2 + $0x300] sm:$0xff]  ;;  %v2181_v18 = vld [vmem:[#allocation2 + $0x1f8] sm:$0xff] }
 0x220   :  { %2933 = vmatprep.subr.bf16.mxu1 %v6206_v19  ;;  %v2218_v19 = vld [vmem:[#allocation2 + $0x320] sm:$0xff]  ;;  %v2173_v20 = vld [vmem:[#allocation2 + $0x1b8] sm:$0xff]  ;;  %v6233_v6 = vcombine.low %v2177_v47, %v2181_v18 }
 0x221   :  { %v6267_v26 = vcombine.low %v2214_v3, %v2218_v19 }
 0x222   :  { %2893 = vmatpush1.bf16.msra.mxu0 %v6203_v59  ;;  %v6268_v59 = vcombine.high %v2214_v3, %v2218_v19  ;;  %v6226_v19 = vcombine.high %v2169_v12, %v2173_v20 }
 0x223   :  { %2934 = vmatpush1.bf16.msra.mxu1 %v6205_v22  ;;  %2894 = vmatprep.subr.bf16.mxu0 %v6196_v29  ;;  %v6270_v22 = vcombine.high %v2215_v34, %v2219_v57  ;;  %v2206_v29 = vld [vmem:[#allocation2 + $0x2c0] sm:$0xff]  ;;  %v2161_v34 = vld [vmem:[#allocation2 + $0x158] sm:$0xff] }
 0x224   :  { %2935 = vmatprep.subr.bf16.mxu1 %v6198_v58  ;;  %v2210_v58 = vld [vmem:[#allocation2 + $0x2e0] sm:$0xff]  ;;  %v2165_v57 = vld [vmem:[#allocation2 + $0x178] sm:$0xff] }
 0x225   :  { %v6259_v9 = vcombine.low %v2206_v29, %v2210_v58 }
 0x226   :  { %2895 = vmatpush1.bf16.msra.mxu0 %v6195_v4  ;;  %v6260_v4 = vcombine.high %v2206_v29, %v2210_v58  ;;  %v6218_v58 = vcombine.high %v2161_v34, %v2165_v57 }
 0x227   :  { %2936 = vmatpush1.bf16.msra.mxu1 %v6197_v33  ;;  %2896 = vmatprep.subr.bf16.mxu0 %v6188_v17  ;;  %v6262_v33 = vcombine.high %v2207_v49, %v2211_v2  ;;  %v2198_v17 = vld [vmem:[#allocation2 + $0x280] sm:$0xff]  ;;  %v2152_v49 = vld [vmem:[#allocation2 + $0x110] sm:$0xff] }
 0x228   :  { %2937 = vmatprep.subr.bf16.mxu1 %v6190_v35  ;;  %v2202_v35 = vld [vmem:[#allocation2 + $0x2a0] sm:$0xff]  ;;  %v2156_v2 = vld [vmem:[#allocation2 + $0x130] sm:$0xff] }
 0x229   :  { %v6251_v37 = vcombine.low %v2198_v17, %v2202_v35 }
 0x22a   :  { %2897 = vmatpush1.bf16.msra.mxu0 %v6187_v39  ;;  %v6252_v39 = vcombine.high %v2198_v17, %v2202_v35 }
 0x22b   :  { %2938 = vmatpush1.bf16.msra.mxu1 %v6189_v50  ;;  %2898 = vmatprep.subr.bf16.mxu0 %v6180_v43  ;;  %v6254_v50 = vcombine.high %v2199_v44, %v2203_v13  ;;  %v2190_v43 = vld [vmem:[#allocation2 + $0x240] sm:$0xff]  ;;  %v6217_v13 = vcombine.low %v2161_v34, %v2165_v57 }
 0x22c   :  { %2939 = vmatprep.subr.bf16.mxu1 %v6182_v11  ;;  %v2194_v11 = vld [vmem:[#allocation2 + $0x260] sm:$0xff] }
 0x22d   :  { %v6243_v16 = vcombine.low %v2190_v43, %v2194_v11 }
 0x22e   :  { %2899 = vmatpush1.bf16.msra.mxu0 %v6179_v40  ;;  %v6244_v40 = vcombine.high %v2190_v43, %v2194_v11  ;;  %v2149_v43 = vld [vmem:[#allocation2 + $0xf8] sm:$0xff]  ;;  %v6207_v11 = vcombine.low %v2152_v49, %v2156_v2 }
 0x22f   :  { %2940 = vmatpush1.bf16.msra.mxu1 %v6181_v24  ;;  %2900 = vmatprep.subr.bf16.mxu0 %v6172_v8  ;;  %v6246_v24 = vcombine.high %v2191_v48, %v2195_v15  ;;  %v2182_v8 = vld [vmem:[#allocation2 + $0x200] sm:$0xff] }
 0x230   :  { %2941 = vmatprep.subr.bf16.mxu1 %v6174_v21  ;;  %v2186_v21 = vld [vmem:[#allocation2 + $0x220] sm:$0xff] }
 0x231   :  { %v6235_v14 = vcombine.low %v2182_v8, %v2186_v21 }
 0x232   :  { %2901 = vmatpush1.bf16.msra.mxu0 %v6171_v36  ;;  %v6236_v36 = vcombine.high %v2182_v8, %v2186_v21  ;;  %v2141_v8 = vld [vmem:[#allocation2 + $0xb8] sm:$0xff] }
 0x233   :  { %2942 = vmatpush1.bf16.msra.mxu1 %v6173_v25  ;;  %2902 = vmatprep.subr.bf16.mxu0 %v6292_v10  ;;  %v6238_v25 = vcombine.high %v2183_v53, %v2187_v5  ;;  %v2176_v10 = vld [vmem:[#allocation2 + $0x1d0] sm:$0xff] }
 0x234   :  { %2943 = vmatprep.subr.bf16.mxu1 %v6294_v42  ;;  %v2180_v42 = vld [vmem:[#allocation2 + $0x1f0] sm:$0xff] }
 0x235   :  { %v6231_v46 = vcombine.low %v2176_v10, %v2180_v42 }
 0x236   :  { %2903 = vmatpush2.bf16.msra.mxu0 %v6291_v0  ;;  %v6232_v0 = vcombine.high %v2176_v10, %v2180_v42  ;;  %v2133_v10 = vld [vmem:[#allocation2 + $0x78] sm:$0xff] }
 0x237   :  { %2944 = vmatpush2.bf16.msra.mxu1 %v6293_v61  ;;  %2904 = vmatprep.subr.bf16.mxu0 %v6284_v28  ;;  %v6234_v61 = vcombine.high %v2177_v47, %v2181_v18  ;;  %v2168_v28 = vld [vmem:[#allocation2 + $0x190] sm:$0xff] }
 0x238   :  { %2945 = vmatprep.subr.bf16.mxu1 %v6286_v23  ;;  %v2172_v23 = vld [vmem:[#allocation2 + $0x1b0] sm:$0xff] }
 0x23a   :  { %2905 = vmatpush2.bf16.msra.mxu0 %v6283_v51  ;;  %v6224_v51 = vcombine.high %v2168_v28, %v2172_v23 }
 0x23b   :  { %2946 = vmatpush2.bf16.msra.mxu1 %v6285_v52  ;;  %2906 = vmatprep.subr.bf16.mxu0 %v6276_v32  ;;  %v2160_v52 = vld [vmem:[#allocation2 + $0x150] sm:$0xff] }
 0x23c   :  { %2947 = vmatprep.subr.bf16.mxu1 %v6278_v63  ;;  %v2164_v32 = vld [vmem:[#allocation2 + $0x170] sm:$0xff] }
 0x23d   :  { %v6216_v29 = vcombine.high %v2160_v52, %v2164_v32  ;;  %v6215_v17 = vcombine.low %v2160_v52, %v2164_v32  ;;  %v2241_v52 = vld [vmem:[#allocation2 + $0x3d8] sm:$0xff] }
 0x23e   :  { %2907 = vmatpush2.bf16.msra.mxu0 %v6275_v56  ;;  %v6223_v56 = vcombine.low %v2168_v28, %v2172_v23  ;;  %v2125_v28 = vld [vmem:[#allocation2 + $0x38] sm:$0xff] }
 0x23f   :  { %2948 = vmatpush2.bf16.msra.mxu1 %v6277_v45  ;;  %2908 = vmatprep.subr.bf16.mxu0 %v6268_v59  ;;  %v2245_v32 = vld [vmem:[#allocation2 + $0x3f8] sm:$0xff] }
 0x240   :  { %2949 = vmatprep.subr.bf16.mxu1 %v6270_v22  ;;  %v6225_v22 = vcombine.low %v2169_v12, %v2173_v20 }
 0x242   :  { %2909 = vmatpush2.bf16.msra.mxu0 %v6267_v26 }
 0x243   :  { %2950 = vmatpush2.bf16.msra.mxu1 %v6269_v7  ;;  %2910 = vmatprep.subr.bf16.mxu0 %v6260_v4  ;;  %v2153_v4 = vld [vmem:[#allocation2 + $0x118] sm:$0xff] }
 0x244   :  { %2951 = vmatprep.subr.bf16.mxu1 %v6262_v33  ;;  %v2157_v33 = vld [vmem:[#allocation2 + $0x138] sm:$0xff] }
 0x245   :  { %v6209_v48 = vcombine.low %v2153_v4, %v2157_v33 }
 0x246   :  { %2911 = vmatpush2.bf16.msra.mxu0 %v6259_v9  ;;  %v6208_v9 = vcombine.high %v2152_v49, %v2156_v2  ;;  %v2237_v49 = vld [vmem:[#allocation2 + $0x3b8] sm:$0xff] }
 0x247   :  { %2952 = vmatpush2.bf16.msra.mxu1 %v6261_v60  ;;  %2912 = vmatprep.subr.bf16.mxu0 %v6252_v39  ;;  %v6210_v60 = vcombine.high %v2153_v4, %v2157_v33  ;;  %v2148_v39 = vld [vmem:[#allocation2 + $0xf0] sm:$0xff] }
 0x248   :  { %2953 = vmatprep.subr.bf16.mxu1 %v6254_v50  ;;  %v2145_v50 = vld [vmem:[#allocation2 + $0xd8] sm:$0xff]  ;;  %v2224_v33 = vld [vmem:[#allocation2 + $0x350] sm:$0xff] }
 0x249   :  { %v6201_v53 = vcombine.low %v2145_v50, %v2149_v43 }
 0x24a   :  { %2913 = vmatpush2.bf16.msra.mxu0 %v6251_v37  ;;  %v6202_v37 = vcombine.high %v2145_v50, %v2149_v43  ;;  %v2220_v50 = vld [vmem:[#allocation2 + $0x330] sm:$0xff]  ;;  %v2217_v43 = vld [vmem:[#allocation2 + $0x318] sm:$0xff] }
 0x24b   :  { %2954 = vmatpush2.bf16.msra.mxu1 %v6253_v30  ;;  %2914 = vmatprep.subr.bf16.mxu0 %v6244_v40  ;;  %v2136_v30 = vld [vmem:[#allocation2 + $0x90] sm:$0xff] }
 0x24c   :  { %2955 = vmatprep.subr.bf16.mxu1 %v6246_v24  ;;  %v2140_v40 = vld [vmem:[#allocation2 + $0xb0] sm:$0xff]  ;;  %v2137_v24 = vld [vmem:[#allocation2 + $0x98] sm:$0xff] }
 0x24d   :  { %v6192_v5 = vcombine.high %v2136_v30, %v2140_v40  ;;  %v6191_v42 = vcombine.low %v2136_v30, %v2140_v40  ;;  %v6193_v47 = vcombine.low %v2137_v24, %v2141_v8  ;;  %v2208_v40 = vld [vmem:[#allocation2 + $0x2d0] sm:$0xff] }
 0x24e   :  { %2915 = vmatpush2.bf16.msra.mxu0 %v6243_v16  ;;  %v6194_v16 = vcombine.high %v2137_v24, %v2141_v8  ;;  %v2212_v24 = vld [vmem:[#allocation2 + $0x2f0] sm:$0xff]  ;;  %v2209_v8 = vld [vmem:[#allocation2 + $0x2d8] sm:$0xff] }
 0x24f   :  { %2956 = vmatpush2.bf16.msra.mxu1 %v6245_v31  ;;  %2916 = vmatprep.subr.bf16.mxu0 %v6236_v36  ;;  %v2128_v31 = vld [vmem:[#allocation2 + $0x50] sm:$0xff] }
 0x250   :  { %2957 = vmatprep.subr.bf16.mxu1 %v6238_v25  ;;  %v2132_v36 = vld [vmem:[#allocation2 + $0x70] sm:$0xff]  ;;  %v2129_v25 = vld [vmem:[#allocation2 + $0x58] sm:$0xff] }
 0x251   :  { %v6184_v18 = vcombine.high %v2128_v31, %v2132_v36  ;;  %v6183_v23 = vcombine.low %v2128_v31, %v2132_v36  ;;  %v2200_v36 = vld [vmem:[#allocation2 + $0x290] sm:$0xff] }
 0x252   :  { %2917 = vmatpush2.bf16.msra.mxu0 %v6235_v14  ;;  %v6186_v14 = vcombine.high %v2129_v25, %v2133_v10 }
 0x253   :  { %2958 = vmatpush2.bf16.msra.mxu1 %v6237_v41  ;;  %2968 = vmatprep.subr.bf16.mxu0 %v6232_v0  ;;  %v2120_v41 = vld [vmem:[#allocation2 + $0x10] sm:$0xff] }
 0x254   :  { %3009 = vmatprep.subr.bf16.mxu1 %v6234_v61  ;;  %v2124_v0 = vld [vmem:[#allocation2 + $0x30] sm:$0xff]  ;;  %v2121_v61 = vld [vmem:[#allocation2 + $0x18] sm:$0xff] }
 0x255   :  { %v9096_v63 = vpop.f32.mrf.mxu0  ;;  %v9098_v3 = vpop.f32.mrf.mxu1  ;;  %2919 = vmatmul.mubr.bf16.vlgmr.msra.gmra.mxu0 %v8576_v62  ;;  %v6176_v12 = vcombine.high %v2120_v41, %v2124_v0  ;;  %v6178_v20 = vcombine.high %v2121_v61, %v2125_v28  ;;  %v6177_v34 = vcombine.low %v2121_v61, %v2125_v28  ;;  %v2196_v61 = vld [vmem:[#allocation2 + $0x270] sm:$0xff]  ;;  %v2193_v28 = vld [vmem:[#allocation2 + $0x258] sm:$0xff] }
 0x256   :  { %2960 = vmatmul.mubr.bf16.vlgmr.msra.gmra.mxu1 %v8576_v62  ;;  %2969 = vmatpush1.bf16.msra.mxu0 %v6231_v46  ;;  %v6185_v46 = vcombine.low %v2129_v25, %v2133_v10  ;;  %v2204_v25 = vld [vmem:[#allocation2 + $0x2b0] sm:$0xff]  ;;  %v2201_v10 = vld [vmem:[#allocation2 + $0x298] sm:$0xff] }
 0x257   :  { %3000 = vmatprep.mubr.bf16.mxu0 %v8578_v55  ;;  %3010 = vmatpush1.bf16.msra.mxu1 %v6233_v6  ;;  %v9103_v45 = vpop.f32.mrf.mxu0  ;;  %v9105_v59 = vpop.f32.mrf.mxu1  ;;  %v2240_v6 = vld [vmem:[#allocation2 + $0x3d0] sm:$0xff] }
 0x258   :  { %3041 = vmatprep.mubr.bf16.mxu1 %v8578_v55  ;;  %2970 = vmatprep.subr.bf16.mxu0 %v6224_v51  ;;  %v2144_v55 = vld [vmem:[#allocation2 + $0xd0] sm:$0xff] }
 0x259   :  { %v1910_v26 = vpop.f32.mrf.mxu0  ;;  %v1951_v7 = vpop.f32.mrf.mxu1  ;;  %3011 = vmatprep.subr.bf16.mxu1 %v6226_v19  ;;  %v6200_v15 = vcombine.high %v2144_v55, %v2148_v39  ;;  %v6199_v21 = vcombine.low %v2144_v55, %v2148_v39  ;;  %v2244_v51 = vld [vmem:[#allocation2 + $0x3f0] sm:$0xff]  ;;  %v6175_v19 = vcombine.low %v2120_v41, %v2124_v0 }
 0x25a   :  { %2971 = vmatpush1.bf16.msra.mxu0 %v6223_v56  ;;  %v6296_v57 = vcombine.high %v2240_v6, %v2244_v51  ;;  %v6298_v56 = vcombine.high %v2241_v52, %v2245_v32  ;;  %v6295_v2 = vcombine.low %v2240_v6, %v2244_v51  ;;  %v6297_v26 = vcombine.low %v2241_v52, %v2245_v32  ;;  %v2216_v39 = vld [vmem:[#allocation2 + $0x310] sm:$0xff]  ;;  %v2185_v32 = vld [vmem:[#allocation2 + $0x218] sm:$0xff] }
 0x25b   :  { %3012 = vmatpush1.bf16.msra.mxu1 %v6225_v22  ;;  %v1911_v35 = vpop.f32.mrf.mxu0  ;;  %v1952_v44 = vpop.f32.mrf.mxu1  ;;  %2972 = vmatprep.subr.bf16.mxu0 %v6216_v29  ;;  %v2232_v22 = vld [vmem:[#allocation2 + $0x390] sm:$0xff] }
 0x25c   :  { %3013 = vmatprep.subr.bf16.mxu1 %v6218_v58  ;;  %v2236_v29 = vld [vmem:[#allocation2 + $0x3b0] sm:$0xff]  ;;  %v2233_v58 = vld [vmem:[#allocation2 + $0x398] sm:$0xff] }
 0x25d   :  { %v6288_v7 = vcombine.high %v2232_v22, %v2236_v29  ;;  %v6290_v4 = vcombine.high %v2233_v58, %v2237_v49  ;;  %v2225_v35 = vld [vmem:[#allocation2 + $0x358] sm:$0xff]  ;;  %v2192_v0 = vld [vmem:[#allocation2 + $0x250] sm:$0xff] }
 0x25e   :  { %2973 = vmatpush1.bf16.msra.mxu0 %v6215_v17  ;;  %v2228_v17 = vld [vmem:[#allocation2 + $0x370] sm:$0xff]  ;;  %v2229_v44 = vld [vmem:[#allocation2 + $0x378] sm:$0xff] }
 0x25f   :  { %3014 = vmatpush1.bf16.msra.mxu1 %v6217_v13  ;;  %2974 = vmatprep.subr.bf16.mxu0 %v6208_v9  ;;  %v6287_v13 = vcombine.low %v2232_v22, %v2236_v29  ;;  %v6289_v9 = vcombine.low %v2233_v58, %v2237_v49  ;;  %v6282_v55 = vcombine.high %v2225_v35, %v2229_v44  ;;  %v2184_v51 = vld [vmem:[#allocation2 + $0x210] sm:$0xff] }
 0x260   :  { %3015 = vmatprep.subr.bf16.mxu1 %v6210_v60  ;;  %v6280_v60 = vcombine.high %v2224_v33, %v2228_v17  ;;  %v2188_v52 = vld [vmem:[#allocation2 + $0x230] sm:$0xff] }
 0x261   :  { %v6239_v29 = vcombine.low %v2184_v51, %v2188_v52  ;;  %v9108_v49 = vld [vmem:[#allocation5 + $0x74] ss:$8 sps:$4 sm:$0xff]  }
 0x262   :  { %2975 = vmatpush1.bf16.msra.mxu0 %v6207_v11  ;;  %v2221_v11 = vld [vmem:[#allocation2 + $0x338] sm:$0xff] }
 0x263   :  { %3016 = vmatpush1.bf16.msra.mxu1 %v6209_v48  ;;  %2976 = vmatprep.subr.bf16.mxu0 %v6200_v15  ;;  %v6279_v48 = vcombine.low %v2224_v33, %v2228_v17  ;;  %v6281_v15 = vcombine.low %v2225_v35, %v2229_v44  ;;  %v6274_v30 = vcombine.high %v2217_v43, %v2221_v11  ;;  %v9120_v33 = vld [vmem:[#allocation5 + $0x164] ss:$8 sps:$4 sm:$0xff]   ;;  %v9129_v44 = vld [vmem:[#allocation5 + $0x60] ss:$8 sps:$4 sm:$0xff]  }
 0x264   :  { %3017 = vmatprep.subr.bf16.mxu1 %v6202_v37  ;;  %v6272_v37 = vcombine.high %v2216_v39, %v2220_v50 }
 0x266   :  { %2977 = vmatpush1.bf16.msra.mxu0 %v6199_v21  ;;  %v2213_v21 = vld [vmem:[#allocation2 + $0x2f8] sm:$0xff] }
 0x267   :  { %3018 = vmatpush1.bf16.msra.mxu1 %v6201_v53  ;;  %2978 = vmatprep.subr.bf16.mxu0 %v6192_v5  ;;  %v6271_v53 = vcombine.low %v2216_v39, %v2220_v50  ;;  %v6273_v5 = vcombine.low %v2217_v43, %v2221_v11  ;;  %v6266_v31 = vcombine.high %v2209_v8, %v2213_v21  ;;  %v9142_v39 = vld [vmem:[#allocation5 + $0x154] ss:$8 sps:$4 sm:$0xff]   ;;  %v9145_v43 = vld [vmem:[#allocation5 + $0x50] ss:$8 sps:$4 sm:$0xff]  }
 0x268   :  { %3019 = vmatprep.subr.bf16.mxu1 %v6194_v16  ;;  %v6264_v16 = vcombine.high %v2208_v40, %v2212_v24 }
 0x26a   :  { %2979 = vmatpush1.bf16.msra.mxu0 %v6191_v42  ;;  %v2205_v42 = vld [vmem:[#allocation2 + $0x2b8] sm:$0xff] }
 0x26b   :  { %3020 = vmatpush1.bf16.msra.mxu1 %v6193_v47  ;;  %2980 = vmatprep.subr.bf16.mxu0 %v6184_v18  ;;  %v6263_v47 = vcombine.low %v2208_v40, %v2212_v24  ;;  %v6265_v18 = vcombine.low %v2209_v8, %v2213_v21  ;;  %v6258_v41 = vcombine.high %v2201_v10, %v2205_v42  ;;  %v9157_v40 = vld [vmem:[#allocation5 + $0x40] ss:$8 sps:$4 sm:$0xff]   ;;  %v9163_v8 = vld [vmem:[#allocation5 + $0x34] ss:$8 sps:$4 sm:$0xff]  }
 0x26c   :  { %3021 = vmatprep.subr.bf16.mxu1 %v6186_v14  ;;  %v6256_v14 = vcombine.high %v2200_v36, %v2204_v25  ;;  %v9161_v24 = vld [vmem:[#allocation5 + $0x140] ss:$8 sps:$4 sm:$0xff]   ;;  %v9166_v21 = vld [vmem:[#allocation5 + $0x134] ss:$8 sps:$4 sm:$0xff]  }
 0x26e   :  { %2981 = vmatpush1.bf16.msra.mxu0 %v6183_v23  ;;  %v2197_v23 = vld [vmem:[#allocation2 + $0x278] sm:$0xff] }
 0x26f   :  { %3022 = vmatpush1.bf16.msra.mxu1 %v6185_v46  ;;  %2982 = vmatprep.subr.bf16.mxu0 %v6176_v12  ;;  %v6255_v46 = vcombine.low %v2200_v36, %v2204_v25  ;;  %v6257_v12 = vcombine.low %v2201_v10, %v2205_v42  ;;  %v6250_v6 = vcombine.high %v2193_v28, %v2197_v23  ;;  %v9181_v36 = vld [vmem:[#allocation5 + $0x20] ss:$8 sps:$4 sm:$0xff]   ;;  %v9187_v10 = vld [vmem:[#allocation5 + $0x14] ss:$8 sps:$4 sm:$0xff]  }
 0x270   :  { %3023 = vmatprep.subr.bf16.mxu1 %v6178_v20  ;;  %v6248_v20 = vcombine.high %v2192_v0, %v2196_v61  ;;  %v9185_v25 = vld [vmem:[#allocation5 + $0x120] ss:$8 sps:$4 sm:$0xff]   ;;  %v9190_v42 = vld [vmem:[#allocation5 + $0x114] ss:$8 sps:$4 sm:$0xff]  }
 0x272   :  { %2983 = vmatpush1.bf16.msra.mxu0 %v6175_v19  ;;  %v2189_v19 = vld [vmem:[#allocation2 + $0x238] sm:$0xff] }
 0x273   :  { %3024 = vmatpush1.bf16.msra.mxu1 %v6177_v34  ;;  %2984 = vmatprep.subr.bf16.mxu0 %v6296_v57  ;;  %v6247_v34 = vcombine.low %v2192_v0, %v2196_v61  ;;  %v6249_v57 = vcombine.low %v2193_v28, %v2197_v23  ;;  %v6242_v22 = vcombine.high %v2185_v32, %v2189_v19  ;;  %v9205_v0 = vld [vmem:[#allocation5] ss:$8 sps:$4 sm:$0xff]   ;;  %v9211_v28 = vld [vmem:[#allocation5 + $0xf4] ss:$8 sps:$4 sm:$0xff]  }
 0x274   :  { %3025 = vmatprep.subr.bf16.mxu1 %v6298_v56  ;;  %v6240_v56 = vcombine.high %v2184_v51, %v2188_v52  ;;  %v6241_v58 = vcombine.low %v2185_v32, %v2189_v19  ;;  %v9209_v61 = vld [vmem:[#allocation5 + $0x100] ss:$8 sps:$4 sm:$0xff]   ;;  %v9214_v23 = vld [vmem:[#allocation5 + $0x1f4] ss:$8 sps:$4 sm:$0xff]  }
 0x275   :  { %v9229_v51 = vld [vmem:[#allocation5 + $0xe0] ss:$8 sps:$4 sm:$0xff]   ;;  %v9235_v32 = vld [vmem:[#allocation5 + $0xd4] ss:$8 sps:$4 sm:$0xff]  }
 0x276   :  { %2985 = vmatpush2.bf16.msra.mxu0 %v6295_v2  ;;  %v9110_v2 = vld [vmem:[#allocation5 + $0x174] ss:$8 sps:$4 sm:$0xff]   ;;  %10745 = vst [vmem:[#allocation15_spill] sm:$0xff] %v9229_v51  ;;  %v9233_v52 = vld [vmem:[#allocation5 + $0x1e0] ss:$8 sps:$4 sm:$0xff]   ;;  %10747 = vst [vmem:[#allocation17_spill] sm:$0xff] %v9235_v32 }
 0x277   :  { %3026 = vmatpush2.bf16.msra.mxu1 %v6297_v26  ;;  %2986 = vmatprep.subr.bf16.mxu0 %v6288_v7  ;;  %v9112_v26 = vld [vmem:[#allocation5 + $0x70] ss:$8 sps:$4 sm:$0xff]   ;;  %10746 = vst [vmem:[#allocation16_spill] sm:$0xff] %v9233_v52  ;;  %v9238_v19 = vld [vmem:[#allocation5 + $0x1d4] ss:$8 sps:$4 sm:$0xff]  }
 0x278   :  { %3027 = vmatprep.subr.bf16.mxu1 %v6290_v4  ;;  %v9115_v7 = vld [vmem:[#allocation5 + $0x170] ss:$8 sps:$4 sm:$0xff]   ;;  %v9117_v4 = vld [vmem:[#allocation5 + $0x64] ss:$8 sps:$4 sm:$0xff]   ;;  %10748 = vst [vmem:[#allocation18_spill] sm:$0xff] %v9238_v19 }
 0x27a   :  { %2987 = vmatpush2.bf16.msra.mxu0 %v6287_v13 }
 0x27b   :  { %3028 = vmatpush2.bf16.msra.mxu1 %v6289_v9  ;;  %2988 = vmatprep.subr.bf16.mxu0 %v6280_v60  ;;  %v9135_v9 = vld [vmem:[#allocation5 + $0x160] ss:$8 sps:$4 sm:$0xff]   ;;  %v9137_v60 = vld [vmem:[#allocation5 + $0x54] ss:$8 sps:$4 sm:$0xff]  }
 0x27c   :  { %3029 = vmatprep.subr.bf16.mxu1 %v6282_v55 }
 0x27e   :  { %2989 = vmatpush2.bf16.msra.mxu0 %v6279_v48  ;;  %v9149_v48 = vld [vmem:[#allocation5 + $0x150] ss:$8 sps:$4 sm:$0xff]  }
 0x27f   :  { %3030 = vmatpush2.bf16.msra.mxu1 %v6281_v15  ;;  %2990 = vmatprep.subr.bf16.mxu0 %v6272_v37  ;;  %v9151_v15 = vld [vmem:[#allocation5 + $0x44] ss:$8 sps:$4 sm:$0xff]  }
 0x280   :  { %3031 = vmatprep.subr.bf16.mxu1 %v6274_v30  ;;  %v9154_v30 = vld [vmem:[#allocation5 + $0x144] ss:$8 sps:$4 sm:$0xff]  }
 0x282   :  { %2991 = vmatpush2.bf16.msra.mxu0 %v6271_v53  ;;  %v9169_v53 = vld [vmem:[#allocation5 + $0x30] ss:$8 sps:$4 sm:$0xff]  }
 0x283   :  { %3032 = vmatpush2.bf16.msra.mxu1 %v6273_v5  ;;  %2992 = vmatprep.subr.bf16.mxu0 %v6264_v16  ;;  %v9173_v5 = vld [vmem:[#allocation5 + $0x130] ss:$8 sps:$4 sm:$0xff]   ;;  %v9175_v16 = vld [vmem:[#allocation5 + $0x24] ss:$8 sps:$4 sm:$0xff]  }
 0x284   :  { %3033 = vmatprep.subr.bf16.mxu1 %v6266_v31  ;;  %v9178_v31 = vld [vmem:[#allocation5 + $0x124] ss:$8 sps:$4 sm:$0xff]  }
 0x286   :  { %2993 = vmatpush2.bf16.msra.mxu0 %v6263_v47  ;;  %v9193_v47 = vld [vmem:[#allocation5 + $0x10] ss:$8 sps:$4 sm:$0xff]  }
 0x287   :  { %3034 = vmatpush2.bf16.msra.mxu1 %v6265_v18  ;;  %2994 = vmatprep.subr.bf16.mxu0 %v6256_v14  ;;  %v9197_v18 = vld [vmem:[#allocation5 + $0x110] ss:$8 sps:$4 sm:$0xff]   ;;  %v9199_v14 = vld [vmem:[#allocation5 + $0x4] ss:$8 sps:$4 sm:$0xff]  }
 0x288   :  { %3035 = vmatprep.subr.bf16.mxu1 %v6258_v41  ;;  %v9202_v41 = vld [vmem:[#allocation5 + $0x104] ss:$8 sps:$4 sm:$0xff]  }
 0x28a   :  { %2995 = vmatpush2.bf16.msra.mxu0 %v6255_v46  ;;  %v9217_v46 = vld [vmem:[#allocation5 + $0xf0] ss:$8 sps:$4 sm:$0xff]  }
 0x28b   :  { %3036 = vmatpush2.bf16.msra.mxu1 %v6257_v12  ;;  %2996 = vmatprep.subr.bf16.mxu0 %v6248_v20  ;;  %10741 = vst [vmem:[#allocation78_spill] sm:$0xff] %v9217_v46  ;;  %v9221_v12 = vld [vmem:[#allocation5 + $0x1f0] ss:$8 sps:$4 sm:$0xff]   ;;  %v9223_v20 = vld [vmem:[#allocation5 + $0xe4] ss:$8 sps:$4 sm:$0xff]  }
 0x28c   :  { %3037 = vmatprep.subr.bf16.mxu1 %v6250_v6  ;;  %10742 = vst [vmem:[#allocation12_spill] sm:$0xff] %v9221_v12  ;;  %10743 = vst [vmem:[#allocation14_spill] sm:$0xff] %v9223_v20  ;;  %v9226_v6 = vld [vmem:[#allocation5 + $0x1e4] ss:$8 sps:$4 sm:$0xff]  }
 0x28d   :  { %10744 = vst [vmem:[#allocation13_spill] sm:$0xff] %v9226_v6 }
 0x28e   :  { %2997 = vmatpush2.bf16.msra.mxu0 %v6247_v34  ;;  %v9241_v34 = vld [vmem:[#allocation5 + $0xd0] ss:$8 sps:$4 sm:$0xff]  }
 0x28f   :  { %3038 = vmatpush2.bf16.msra.mxu1 %v6249_v57  ;;  %2998 = vmatprep.subr.bf16.mxu0 %v6240_v56  ;;  %10749 = vst [vmem:[#allocation19_spill] sm:$0xff] %v9241_v34  ;;  %v9245_v57 = vld [vmem:[#allocation5 + $0x1d0] ss:$8 sps:$4 sm:$0xff]   ;;  %v9247_v56 = vld [vmem:[#allocation5 + $0xc4] ss:$8 sps:$4 sm:$0xff]  }
 0x290   :  { %3039 = vmatprep.subr.bf16.mxu1 %v6242_v22  ;;  %10750 = vst [vmem:[#allocation20_spill] sm:$0xff] %v9245_v57  ;;  %10751 = vst [vmem:[#allocation21_spill] sm:$0xff] %v9247_v56  ;;  %v9250_v22 = vld [vmem:[#allocation5 + $0x1c4] ss:$8 sps:$4 sm:$0xff]  }
 0x291   :  { %10752 = vst [vmem:[#allocation22_spill] sm:$0xff] %v9250_v22 }
 0x292   :  { %2999 = vmatpush2.bf16.msra.mxu0 %v6239_v29  ;;  %v9253_v29 = vld [vmem:[#allocation5 + $0xc0] ss:$8 sps:$4 sm:$0xff]  }
 0x293   :  { %3040 = vmatpush2.bf16.msra.mxu1 %v6241_v58  ;;  %3882 = vmatprep.subr.bf16.mxu0 %v9108_v49  ;;  %10753 = vst [vmem:[#allocation23_spill] sm:$0xff] %v9253_v29  ;;  %v9257_v58 = vld [vmem:[#allocation5 + $0x1c0] ss:$8 sps:$4 sm:$0xff]  }
 0x294   :  { %3923 = vmatprep.subr.bf16.mxu1 %v9110_v2  ;;  %10754 = vst [vmem:[#allocation24_spill] sm:$0xff] %v9257_v58 }
 0x295   :  { %v9122_v17 = vpop.f32.mrf.mxu0  ;;  %3001 = vmatmul.mubr.bf16.vlgmr.msra.gmra.mxu0 %v8576_v62 }
 0x296   :  { %v9125_v35 = vpop.f32.mrf.mxu1  ;;  %3042 = vmatmul.mubr.bf16.vlgmr.msra.gmra.mxu1 %v8576_v62  ;;  %3883 = vmatpush1.bf16.msra.mxu0 %v9112_v26 }
 0x297   :  { %v9131_v13 = vpop.f32.mrf.mxu0  ;;  %3924 = vmatpush1.bf16.msra.mxu1 %v9115_v7  ;;  %3884 = vmatprep.subr.bf16.mxu0 %v9117_v4 }
 0x298   :  { %v9139_v55 = vpop.f32.mrf.mxu1  ;;  %3925 = vmatprep.subr.bf16.mxu1 %v9120_v33 }
 0x299   :  { %v1992_v62 = vpop.f32.mrf.mxu0 }
 0x29a   :  { %v2033_v50 = vpop.f32.mrf.mxu1  ;;  %3885 = vmatpush1.bf16.msra.mxu0 %v9129_v44  ;;  %v9259_v62 = vld [vmem:[#allocation5 + $0xb4] ss:$8 sps:$4 sm:$0xff]  }
 0x29b   :  { %v1993_v11 = vpop.f32.mrf.mxu0  ;;  %3926 = vmatpush1.bf16.msra.mxu1 %v9135_v9  ;;  %3886 = vmatprep.subr.bf16.mxu0 %v9137_v60  ;;  %10755 = vst [vmem:[#allocation25_spill] sm:$0xff] %v9259_v62  ;;  %v9262_v50 = vld [vmem:[#allocation5 + $0x1b4] ss:$8 sps:$4 sm:$0xff]  }
 0x29c   :  { %v2034_v37 = vpop.f32.mrf.mxu1  ;;  %3927 = vmatprep.subr.bf16.mxu1 %v9142_v39  ;;  %10756 = vst [vmem:[#allocation26_spill] sm:$0xff] %v9262_v50  ;;  %v9265_v11 = vld [vmem:[#allocation5 + $0xb0] ss:$8 sps:$4 sm:$0xff]  }
 0x29d   :  { %10757 = vst [vmem:[#allocation27_spill] sm:$0xff] %v9265_v11  ;;  %v9269_v37 = vld [vmem:[#allocation5 + $0x1b0] ss:$8 sps:$4 sm:$0xff]  }
 0x29e   :  { %3887 = vmatpush1.bf16.msra.mxu0 %v9145_v43  ;;  %10758 = vst [vmem:[#allocation28_spill] sm:$0xff] %v9269_v37 }
 0x29f   :  { %3928 = vmatpush1.bf16.msra.mxu1 %v9149_v48  ;;  %3888 = vmatprep.subr.bf16.mxu0 %v9151_v15 }
 0x2a0   :  { %3929 = vmatprep.subr.bf16.mxu1 %v9154_v30 }
 0x2a2   :  { %3889 = vmatpush1.bf16.msra.mxu0 %v9157_v40 }
 0x2a3   :  { %3930 = vmatpush1.bf16.msra.mxu1 %v9161_v24  ;;  %3890 = vmatprep.subr.bf16.mxu0 %v9163_v8 }
 0x2a4   :  { %3931 = vmatprep.subr.bf16.mxu1 %v9166_v21 }
 0x2a6   :  { %3891 = vmatpush1.bf16.msra.mxu0 %v9169_v53 }
 0x2a7   :  { %3932 = vmatpush1.bf16.msra.mxu1 %v9173_v5  ;;  %3892 = vmatprep.subr.bf16.mxu0 %v9175_v16 }
 0x2a8   :  { %3933 = vmatprep.subr.bf16.mxu1 %v9178_v31 }
 0x2aa   :  { %3893 = vmatpush1.bf16.msra.mxu0 %v9181_v36 }
 0x2ab   :  { %3934 = vmatpush1.bf16.msra.mxu1 %v9185_v25  ;;  %3894 = vmatprep.subr.bf16.mxu0 %v9187_v10 }
 0x2ac   :  { %3935 = vmatprep.subr.bf16.mxu1 %v9190_v42 }
 0x2ae   :  { %3895 = vmatpush1.bf16.msra.mxu0 %v9193_v47 }
 0x2af   :  { %3936 = vmatpush1.bf16.msra.mxu1 %v9197_v18  ;;  %3896 = vmatprep.subr.bf16.mxu0 %v9199_v14 }
 0x2b0   :  { %3937 = vmatprep.subr.bf16.mxu1 %v9202_v41 }
 0x2b2   :  { %3897 = vmatpush1.bf16.msra.mxu0 %v9205_v0 }
 0x2b3   :  { %3938 = vmatpush1.bf16.msra.mxu1 %v9209_v61  ;;  %3898 = vmatprep.subr.bf16.mxu0 %v9211_v28 }
 0x2b4   :  { %3939 = vmatprep.subr.bf16.mxu1 %v9214_v23 }
 0x2b6   :  { %3899 = vmatpush2.bf16.msra.mxu0 %v9217_v46 }
 0x2b7   :  { %3940 = vmatpush2.bf16.msra.mxu1 %v9221_v12  ;;  %3900 = vmatprep.subr.bf16.mxu0 %v9223_v20 }
 0x2b8   :  { %3941 = vmatprep.subr.bf16.mxu1 %v9226_v6  ;;  %v2032_v6 = vadd.f32 %v9139_v55, %v9093_v54 }
 0x2ba   :  { %3901 = vmatpush2.bf16.msra.mxu0 %v9229_v51 }
 0x2bb   :  { %3942 = vmatpush2.bf16.msra.mxu1 %v9233_v52  ;;  %3902 = vmatprep.subr.bf16.mxu0 %v9235_v32 }
 0x2bc   :  { %3943 = vmatprep.subr.bf16.mxu1 %v9238_v19 }
 0x2be   :  { %3903 = vmatpush2.bf16.msra.mxu0 %v9241_v34 }
 0x2bf   :  { %3944 = vmatpush2.bf16.msra.mxu1 %v9245_v57  ;;  %3904 = vmatprep.subr.bf16.mxu0 %v9247_v56  ;;  %v9271_v57 = vld [vmem:[#allocation5 + $0xa4] ss:$8 sps:$4 sm:$0xff]  }
 0x2c0   :  { %3945 = vmatprep.subr.bf16.mxu1 %v9250_v22  ;;  %10759 = vst [vmem:[#allocation29_spill] sm:$0xff] %v9271_v57  ;;  %v9274_v56 = vld [vmem:[#allocation5 + $0x1a4] ss:$8 sps:$4 sm:$0xff]   ;;  %v9277_v22 = vld [vmem:[#allocation5 + $0xa0] ss:$8 sps:$4 sm:$0xff]  }
 0x2c1   :  { %10760 = vst [vmem:[#allocation30_spill] sm:$0xff] %v9274_v56  ;;  %10761 = vst [vmem:[#allocation31_spill] sm:$0xff] %v9277_v22 }
 0x2c2   :  { %3905 = vmatpush2.bf16.msra.mxu0 %v9253_v29  ;;  %v9281_v29 = vld [vmem:[#allocation5 + $0x1a0] ss:$8 sps:$4 sm:$0xff]  }
 0x2c3   :  { %3946 = vmatpush2.bf16.msra.mxu1 %v9257_v58  ;;  %3906 = vmatprep.subr.bf16.mxu0 %v9259_v62  ;;  %10762 = vst [vmem:[#allocation32_spill] sm:$0xff] %v9281_v29  ;;  %v9283_v58 = vld [vmem:[#allocation5 + $0x94] ss:$8 sps:$4 sm:$0xff]  }
 0x2c4   :  { %3947 = vmatprep.subr.bf16.mxu1 %v9262_v50  ;;  %10763 = vst [vmem:[#allocation33_spill] sm:$0xff] %v9283_v58  ;;  %v9286_v62 = vld [vmem:[#allocation5 + $0x194] ss:$8 sps:$4 sm:$0xff]   ;;  %v9289_v50 = vld [vmem:[#allocation5 + $0x90] ss:$8 sps:$4 sm:$0xff]  }
 0x2c5   :  { %10764 = vst [vmem:[#allocation34_spill] sm:$0xff] %v9286_v62  ;;  %10765 = vst [vmem:[#allocation35_spill] sm:$0xff] %v9289_v50 }
 0x2c6   :  { %3907 = vmatpush2.bf16.msra.mxu0 %v9265_v11  ;;  %v9293_v11 = vld [vmem:[#allocation5 + $0x190] ss:$8 sps:$4 sm:$0xff]  }
 0x2c7   :  { %3948 = vmatpush2.bf16.msra.mxu1 %v9269_v37  ;;  %3908 = vmatprep.subr.bf16.mxu0 %v9271_v57  ;;  %10766 = vst [vmem:[#allocation36_spill] sm:$0xff] %v9293_v11  ;;  %v9295_v37 = vld [vmem:[#allocation5 + $0x84] ss:$8 sps:$4 sm:$0xff]  }
 0x2c8   :  { %3949 = vmatprep.subr.bf16.mxu1 %v9274_v56  ;;  %10767 = vst [vmem:[#allocation37_spill] sm:$0xff] %v9295_v37  ;;  %v9298_v57 = vld [vmem:[#allocation5 + $0x184] ss:$8 sps:$4 sm:$0xff]   ;;  %v9301_v56 = vld [vmem:[#allocation5 + $0x80] ss:$8 sps:$4 sm:$0xff]  }
 0x2c9   :  { %10768 = vst [vmem:[#allocation38_spill] sm:$0xff] %v9298_v57  ;;  %10769 = vst [vmem:[#allocation39_spill] sm:$0xff] %v9301_v56 }
 0x2ca   :  { %3909 = vmatpush2.bf16.msra.mxu0 %v9277_v22  ;;  %v9305_v22 = vld [vmem:[#allocation5 + $0x180] ss:$8 sps:$4 sm:$0xff]  }
 0x2cb   :  { %3950 = vmatpush2.bf16.msra.mxu1 %v9281_v29  ;;  %3910 = vmatprep.subr.bf16.mxu0 %v9283_v58  ;;  %10770 = vst [vmem:[#allocation40_spill] sm:$0xff] %v9305_v22  ;;  %v9307_v29 = vld [vmem:[#allocation5 + $0x274] ss:$8 sps:$4 sm:$0xff]  }
 0x2cc   :  { %3951 = vmatprep.subr.bf16.mxu1 %v9286_v62  ;;  %10771 = vst [vmem:[#allocation41_spill] sm:$0xff] %v9307_v29  ;;  %v9310_v58 = vld [vmem:[#allocation5 + $0x374] ss:$8 sps:$4 sm:$0xff]  }
 0x2cd   :  { %10772 = vst [vmem:[#allocation42_spill] sm:$0xff] %v9310_v58 }
 0x2ce   :  { %3911 = vmatpush2.bf16.msra.mxu0 %v9289_v50 }
 0x2cf   :  { %3952 = vmatpush2.bf16.msra.mxu1 %v9293_v11  ;;  %3912 = vmatprep.subr.bf16.mxu0 %v9295_v37 }
 0x2d0   :  { %3953 = vmatprep.subr.bf16.mxu1 %v9298_v57 }
 0x2d2   :  { %3913 = vmatpush2.bf16.msra.mxu0 %v9301_v56  ;;  %v1989_v56 = vadd.f32 %v9122_v17, %v9085_v38 }
 0x2d3   :  { %3954 = vmatpush2.bf16.msra.mxu1 %v9305_v22  ;;  %3964 = vmatprep.subr.bf16.mxu0 %v9307_v29  ;;  %v2030_v29 = vadd.f32 %v9125_v35, %v9087_v27 }
 0x2d4   :  { %4005 = vmatprep.subr.bf16.mxu1 %v9310_v58  ;;  %v1991_v58 = vadd.f32 %v9131_v13, %v9091_v1 }
 0x2d5   :  { %v9316_v50 = vpop.f32.mrf.mxu0 }
 0x2d6   :  { %v9318_v11 = vpop.f32.mrf.mxu1 }
 0x2d7   :  { %v9320_v37 = vpop.f32.mrf.mxu0 }
 0x2d8   :  { %v9322_v62 = vpop.f32.mrf.mxu1 }
 0x2d9   :  { %v2074_v34 = vpop.f32.mrf.mxu0 }
 0x2da   :  { %v2115_v57 = vpop.f32.mrf.mxu1 }
 0x2db   :  { %v2075_v19 = vpop.f32.mrf.mxu0 }
 0x2dc   :  { %v2116_v32 = vpop.f32.mrf.mxu1 }
 0x315   :  { %v2920_v22 = vpop.f32.mrf.mxu0 }
 0x316   :  { %v3050_v52 = vadd.f32 %v2920_v22, %v1989_v56  ;;  %v2961_v51 = vpop.f32.mrf.mxu1 }
 0x317   :  { %v3052_v20 = vadd.f32 %v2961_v51, %v2030_v29  ;;  %v2922_v34 = vpop.f32.mrf.mxu0 }
 0x318   :  { %vm3058_vm8 = vcmp.ge.f32.partialorder %v3050_v52, 0.0  ;;  %v3066_v19 = vmul.f32 0.01, %v3050_v52  ;;  %v3051_v32 = vadd.f32 %v2922_v34, %v1991_v58  ;;  %v2963_v57 = vpop.f32.mrf.mxu1 }
 0x319   :  { %vm3060_vm9 = vcmp.ge.f32.partialorder %v3052_v20, 0.0  ;;  %v3068_v38 = vmul.f32 0.01, %v3052_v20  ;;  %v3053_v17 = vadd.f32 %v2963_v57, %v2032_v6  ;;  %v2924_v12 = vpop.f32.mrf.mxu0 }
 0x31a   :  { %v3074_v27 = vsel %vm3058_vm8, %v3050_v52, %v3066_v19  ;;  %vm3059_vm10 = vcmp.ge.f32.partialorder %v3051_v32, 0.0  ;;  %v3067_v35 = vmul.f32 0.01, %v3051_v32  ;;  %v2965_v46 = vpop.f32.mrf.mxu1 }
 0x31b   :  { %v9332_v1 = vpack.c.bf16 %v3074_v27, %v3074_v27  ;;  %v3076_v13 = vsel %vm3060_vm9, %v3052_v20, %v3068_v38  ;;  %vm3061_vm11 = vcmp.ge.f32.partialorder %v3053_v17, 0.0  ;;  %v3069_v56 = vmul.f32 0.01, %v3053_v17  ;;  %v2925_v54 = vpop.f32.mrf.mxu0 }
 0x31c   :  { %v9334_v55 = vpack.c.bf16 %v3076_v13, %v3076_v13  ;;  %v3075_v51 = vsel %vm3059_vm10, %v3051_v32, %v3067_v35  ;;  %v2966_v22 = vpop.f32.mrf.mxu1  ;;  %v9344_v32 = vld [vmem:[#allocation5 + $0x270] ss:$8 sps:$4 sm:$0xff]  }
 0x31d   :  { %10773 = vst [vmem:[#allocation43_spill] sm:$0xff] %v9332_v1  ;;  %v3090_v29 = vunpack.c.l.bf16 %v9332_v1  ;;  %v9337_v58 = vpack.c.bf16 %v3075_v51, %v3075_v51  ;;  %v3077_v6 = vsel %vm3061_vm11, %v3053_v17, %v3069_v56  ;;  %v9346_v1 = vld [vmem:[#allocation5 + $0x370] ss:$8 sps:$4 sm:$0xff]   ;;  %v9348_v17 = vld [vmem:[#allocation5 + $0x264] ss:$8 sps:$4 sm:$0xff]  }
 0x31e   :  { %10774 = vst [vmem:[#allocation44_spill] sm:$0xff] %v9334_v55  ;;  %v3092_v12 = vunpack.c.l.bf16 %v9334_v55  ;;  %v9340_v52 = vpack.c.bf16 %v3077_v6, %v3077_v6  ;;  %v9350_v55 = vld [vmem:[#allocation5 + $0x364] ss:$8 sps:$4 sm:$0xff]  }
 0x31f   :  { %v3091_v46 = vunpack.c.l.bf16 %v9337_v58  ;;  %v3098_v34 = vsub.f32 %v3074_v27, %v3090_v29  ;;  %v9353_v27 = vld [vmem:[#allocation5 + $0x260] ss:$8 sps:$4 sm:$0xff]   ;;  %v9362_v29 = vld [vmem:[#allocation5 + $0x354] ss:$8 sps:$4 sm:$0xff]  }
 0x320   :  { %v3093_v20 = vunpack.c.l.bf16 %v9340_v52  ;;  %v3100_v19 = vsub.f32 %v3076_v13, %v3092_v12  ;;  %v9357_v13 = vld [vmem:[#allocation5 + $0x360] ss:$8 sps:$4 sm:$0xff]   ;;  %10776 = vst [vmem:[#allocation46_spill] sm:$0xff] %v9362_v29  ;;  %v9369_v12 = vld [vmem:[#allocation5 + $0x350] ss:$8 sps:$4 sm:$0xff]  }
 0x321   :  { %v3099_v57 = vsub.f32 %v3075_v51, %v3091_v46  ;;  %v3106_v35 = vpack.c.bf16 %v3098_v34, %v3098_v34  ;;  %v9359_v51 = vld [vmem:[#allocation5 + $0x254] ss:$8 sps:$4 sm:$0xff]   ;;  %10778 = vst [vmem:[#allocation48_spill] sm:$0xff] %v9369_v12  ;;  %v9371_v46 = vld [vmem:[#allocation5 + $0x244] ss:$8 sps:$4 sm:$0xff]  }
 0x322   :  { %v3101_v38 = vsub.f32 %v3077_v6, %v3093_v20  ;;  %v3108_v56 = vpack.c.bf16 %v3100_v19, %v3100_v19  ;;  %10775 = vst [vmem:[#allocation45_spill] sm:$0xff] %v9359_v51  ;;  %v9365_v6 = vld [vmem:[#allocation5 + $0x250] ss:$8 sps:$4 sm:$0xff]   ;;  %10779 = vst [vmem:[#allocation49_spill] sm:$0xff] %v9371_v46  ;;  %v9374_v34 = vld [vmem:[#allocation5 + $0x344] ss:$8 sps:$4 sm:$0xff]  }
 0x323   :  { %v3107_v54 = vpack.c.bf16 %v3099_v57, %v3099_v57  ;;  %10777 = vst [vmem:[#allocation47_spill] sm:$0xff] %v9365_v6  ;;  %10780 = vst [vmem:[#allocation50_spill] sm:$0xff] %v9374_v34  ;;  %v9377_v20 = vld [vmem:[#allocation5 + $0x240] ss:$8 sps:$4 sm:$0xff]   ;;  %v9383_v57 = vld [vmem:[#allocation5 + $0x234] ss:$8 sps:$4 sm:$0xff]  }
 0x324   :  { %v3109_v22 = vpack.c.bf16 %v3101_v38, %v3101_v38  ;;  %10781 = vst [vmem:[#allocation51_spill] sm:$0xff] %v9377_v20  ;;  %v9381_v19 = vld [vmem:[#allocation5 + $0x340] ss:$8 sps:$4 sm:$0xff]   ;;  %10783 = vst [vmem:[#allocation53_spill] sm:$0xff] %v9383_v57  ;;  %v9386_v38 = vld [vmem:[#allocation5 + $0x334] ss:$8 sps:$4 sm:$0xff]  }
 0x325   :  { %3914 = vmatprep.mubr.bf16.mxu0 %v3107_v54  ;;  %10782 = vst [vmem:[#allocation52_spill] sm:$0xff] %v9381_v19  ;;  %10784 = vst [vmem:[#allocation54_spill] sm:$0xff] %v9386_v38  ;;  %v9389_v54 = vld [vmem:[#allocation5 + $0x230] ss:$8 sps:$4 sm:$0xff]  }
 0x326   :  { %3955 = vmatprep.mubr.bf16.mxu1 %v3109_v22  ;;  %3915 = vmatmul.mubr.bf16.vlgmr.msra.gmra.mxu0 %v3106_v35  ;;  %10785 = vst [vmem:[#allocation55_spill] sm:$0xff] %v9389_v54  ;;  %v9393_v35 = vld [vmem:[#allocation5 + $0x330] ss:$8 sps:$4 sm:$0xff]   ;;  %v9395_v22 = vld [vmem:[#allocation5 + $0x224] ss:$8 sps:$4 sm:$0xff]  }
 0x327   :  { %3956 = vmatmul.mubr.bf16.vlgmr.msra.gmra.mxu1 %v3108_v56  ;;  %3965 = vmatpush1.bf16.msra.mxu0 %v9344_v32  ;;  %10786 = vst [vmem:[#allocation56_spill] sm:$0xff] %v9393_v35  ;;  %10787 = vst [vmem:[#allocation57_spill] sm:$0xff] %v9395_v22  ;;  %v9398_v56 = vld [vmem:[#allocation5 + $0x324] ss:$8 sps:$4 sm:$0xff]  }
 0x328   :  { %4006 = vmatpush1.bf16.msra.mxu1 %v9346_v1  ;;  %3966 = vmatprep.subr.bf16.mxu0 %v9348_v17  ;;  %10788 = vst [vmem:[#allocation58_spill] sm:$0xff] %v9398_v56 }
 0x329   :  { %4007 = vmatprep.subr.bf16.mxu1 %v9350_v55 }
 0x32b   :  { %3967 = vmatpush1.bf16.msra.mxu0 %v9353_v27 }
 0x32c   :  { %4008 = vmatpush1.bf16.msra.mxu1 %v9357_v13  ;;  %3968 = vmatprep.subr.bf16.mxu0 %v9359_v51 }
 0x32d   :  { %4009 = vmatprep.subr.bf16.mxu1 %v9362_v29  ;;  %v9505_v29 = vld [vmem:[#allocation5 + $0x2a0] ss:$8 sps:$4 sm:$0xff]  }
 0x32e   :  { %10820 = vst [vmem:[#allocation108_spill] sm:$0xff] %v9505_v29 }
 0x32f   :  { %3969 = vmatpush1.bf16.msra.mxu0 %v9365_v6 }
 0x330   :  { %4010 = vmatpush1.bf16.msra.mxu1 %v9369_v12  ;;  %3970 = vmatprep.subr.bf16.mxu0 %v9371_v46  ;;  %v2073_v12 = vadd.f32 %v9320_v37, %v9103_v45  ;;  %v9511_v45 = vld [vmem:[#allocation5 + $0x294] ss:$8 sps:$4 sm:$0xff]  }
 0x331   :  { %4011 = vmatprep.subr.bf16.mxu1 %v9374_v34  ;;  %v9401_v34 = vld [vmem:[#allocation5 + $0x220] ss:$8 sps:$4 sm:$0xff]   ;;  %10822 = vst [vmem:[#allocation110_spill] sm:$0xff] %v9511_v45 }
 0x332   :  { %10789 = vst [vmem:[#allocation59_spill] sm:$0xff] %v9401_v34 }
 0x333   :  { %3971 = vmatpush1.bf16.msra.mxu0 %v9377_v20  ;;  %v9405_v20 = vld [vmem:[#allocation5 + $0x320] ss:$8 sps:$4 sm:$0xff]  }
 0x334   :  { %4012 = vmatpush1.bf16.msra.mxu1 %v9381_v19  ;;  %3972 = vmatprep.subr.bf16.mxu0 %v9383_v57  ;;  %10790 = vst [vmem:[#allocation60_spill] sm:$0xff] %v9405_v20  ;;  %v9407_v19 = vld [vmem:[#allocation5 + $0x214] ss:$8 sps:$4 sm:$0xff]  }
 0x335   :  { %4013 = vmatprep.subr.bf16.mxu1 %v9386_v38  ;;  %10791 = vst [vmem:[#allocation61_spill] sm:$0xff] %v9407_v19  ;;  %v9410_v57 = vld [vmem:[#allocation5 + $0x314] ss:$8 sps:$4 sm:$0xff]   ;;  %v9413_v38 = vld [vmem:[#allocation5 + $0x210] ss:$8 sps:$4 sm:$0xff]  }
 0x336   :  { %10792 = vst [vmem:[#allocation62_spill] sm:$0xff] %v9410_v57  ;;  %10793 = vst [vmem:[#allocation63_spill] sm:$0xff] %v9413_v38 }
 0x337   :  { %3973 = vmatpush1.bf16.msra.mxu0 %v9389_v54  ;;  %v9417_v54 = vld [vmem:[#allocation5 + $0x310] ss:$8 sps:$4 sm:$0xff]  }
 0x338   :  { %4014 = vmatpush1.bf16.msra.mxu1 %v9393_v35  ;;  %3974 = vmatprep.subr.bf16.mxu0 %v9395_v22  ;;  %10794 = vst [vmem:[#allocation64_spill] sm:$0xff] %v9417_v54  ;;  %v9419_v35 = vld [vmem:[#allocation5 + $0x204] ss:$8 sps:$4 sm:$0xff]  }
 0x339   :  { %4015 = vmatprep.subr.bf16.mxu1 %v9398_v56  ;;  %10795 = vst [vmem:[#allocation65_spill] sm:$0xff] %v9419_v35  ;;  %v9422_v22 = vld [vmem:[#allocation5 + $0x304] ss:$8 sps:$4 sm:$0xff]   ;;  %v9425_v56 = vld [vmem:[#allocation5 + $0x200] ss:$8 sps:$4 sm:$0xff]  }
 0x33a   :  { %10796 = vst [vmem:[#allocation66_spill] sm:$0xff] %v9422_v22  ;;  %10797 = vst [vmem:[#allocation67_spill] sm:$0xff] %v9425_v56 }
 0x33b   :  { %3975 = vmatpush1.bf16.msra.mxu0 %v9401_v34  ;;  %v9429_v34 = vld [vmem:[#allocation5 + $0x300] ss:$8 sps:$4 sm:$0xff]  }
 0x33c   :  { %4016 = vmatpush1.bf16.msra.mxu1 %v9405_v20  ;;  %3976 = vmatprep.subr.bf16.mxu0 %v9407_v19  ;;  %10798 = vst [vmem:[#allocation68_spill] sm:$0xff] %v9429_v34  ;;  %v9431_v20 = vld [vmem:[#allocation5 + $0x2f4] ss:$8 sps:$4 sm:$0xff]  }
 0x33d   :  { %4017 = vmatprep.subr.bf16.mxu1 %v9410_v57  ;;  %10799 = vst [vmem:[#allocation69_spill] sm:$0xff] %v9431_v20  ;;  %v9434_v19 = vld [vmem:[#allocation5 + $0x3f4] ss:$8 sps:$4 sm:$0xff]   ;;  %v9437_v57 = vld [vmem:[#allocation5 + $0x2f0] ss:$8 sps:$4 sm:$0xff]  }
 0x33e   :  { %10800 = vst [vmem:[#allocation70_spill] sm:$0xff] %v9434_v19  ;;  %10801 = vst [vmem:[#allocation71_spill] sm:$0xff] %v9437_v57 }
 0x33f   :  { %3977 = vmatpush1.bf16.msra.mxu0 %v9413_v38  ;;  %v9441_v38 = vld [vmem:[#allocation5 + $0x3f0] ss:$8 sps:$4 sm:$0xff]  }
 0x340   :  { %4018 = vmatpush1.bf16.msra.mxu1 %v9417_v54  ;;  %3978 = vmatprep.subr.bf16.mxu0 %v9419_v35  ;;  %10802 = vst [vmem:[#allocation72_spill] sm:$0xff] %v9441_v38  ;;  %v9443_v54 = vld [vmem:[#allocation5 + $0x2e4] ss:$8 sps:$4 sm:$0xff]  }
 0x341   :  { %4019 = vmatprep.subr.bf16.mxu1 %v9422_v22  ;;  %10803 = vst [vmem:[#allocation73_spill] sm:$0xff] %v9443_v54  ;;  %v9446_v35 = vld [vmem:[#allocation5 + $0x3e4] ss:$8 sps:$4 sm:$0xff]   ;;  %v9449_v22 = vld [vmem:[#allocation5 + $0x2e0] ss:$8 sps:$4 sm:$0xff]  }
 0x342   :  { %10804 = vst [vmem:[#allocation74_spill] sm:$0xff] %v9446_v35  ;;  %10805 = vst [vmem:[#allocation75_spill] sm:$0xff] %v9449_v22 }
 0x343   :  { %3979 = vmatpush1.bf16.msra.mxu0 %v9425_v56  ;;  %v9453_v56 = vld [vmem:[#allocation5 + $0x3e0] ss:$8 sps:$4 sm:$0xff]  }
 0x344   :  { %4020 = vmatpush1.bf16.msra.mxu1 %v9429_v34  ;;  %3980 = vmatprep.subr.bf16.mxu0 %v9431_v20  ;;  %10806 = vst [vmem:[#allocation76_spill] sm:$0xff] %v9453_v56  ;;  %v9455_v34 = vld [vmem:[#allocation5 + $0x2d4] ss:$8 sps:$4 sm:$0xff]  }
 0x345   :  { %4021 = vmatprep.subr.bf16.mxu1 %v9434_v19  ;;  %10807 = vst [vmem:[#allocation79_spill] sm:$0xff] %v9455_v34  ;;  %v9458_v20 = vld [vmem:[#allocation5 + $0x3d4] ss:$8 sps:$4 sm:$0xff]   ;;  %v9461_v19 = vld [vmem:[#allocation5 + $0x2d0] ss:$8 sps:$4 sm:$0xff]  }
 0x346   :  { %10808 = vst [vmem:[#allocation82_spill] sm:$0xff] %v9458_v20  ;;  %10809 = vst [vmem:[#allocation85_spill] sm:$0xff] %v9461_v19 }
 0x347   :  { %3981 = vmatpush2.bf16.msra.mxu0 %v9437_v57  ;;  %v9465_v57 = vld [vmem:[#allocation5 + $0x3d0] ss:$8 sps:$4 sm:$0xff]  }
 0x348   :  { %4022 = vmatpush2.bf16.msra.mxu1 %v9441_v38  ;;  %3982 = vmatprep.subr.bf16.mxu0 %v9443_v54  ;;  %10810 = vst [vmem:[#allocation89_spill] sm:$0xff] %v9465_v57  ;;  %v9467_v38 = vld [vmem:[#allocation5 + $0x2c4] ss:$8 sps:$4 sm:$0xff]  }
 0x349   :  { %4023 = vmatprep.subr.bf16.mxu1 %v9446_v35  ;;  %10811 = vst [vmem:[#allocation86_spill] sm:$0xff] %v9467_v38  ;;  %v9470_v54 = vld [vmem:[#allocation5 + $0x3c4] ss:$8 sps:$4 sm:$0xff]   ;;  %v9473_v35 = vld [vmem:[#allocation5 + $0x2c0] ss:$8 sps:$4 sm:$0xff]  }
 0x34a   :  { %10812 = vst [vmem:[#allocation98_spill] sm:$0xff] %v9470_v54  ;;  %10813 = vst [vmem:[#allocation80_spill] sm:$0xff] %v9473_v35 }
 0x34b   :  { %3983 = vmatpush2.bf16.msra.mxu0 %v9449_v22  ;;  %v9477_v22 = vld [vmem:[#allocation5 + $0x3c0] ss:$8 sps:$4 sm:$0xff]  }
 0x34c   :  { %4024 = vmatpush2.bf16.msra.mxu1 %v9453_v56  ;;  %3984 = vmatprep.subr.bf16.mxu0 %v9455_v34  ;;  %10814 = vst [vmem:[#allocation104_spill] sm:$0xff] %v9477_v22  ;;  %v9479_v56 = vld [vmem:[#allocation5 + $0x2b4] ss:$8 sps:$4 sm:$0xff]  }
 0x34d   :  { %4025 = vmatprep.subr.bf16.mxu1 %v9458_v20  ;;  %10815 = vst [vmem:[#allocation105_spill] sm:$0xff] %v9479_v56  ;;  %v9482_v34 = vld [vmem:[#allocation5 + $0x3b4] ss:$8 sps:$4 sm:$0xff]   ;;  %v9485_v20 = vld [vmem:[#allocation5 + $0x2b0] ss:$8 sps:$4 sm:$0xff]  }
 0x34e   :  { %10816 = vst [vmem:[#allocation106_spill] sm:$0xff] %v9482_v34  ;;  %10817 = vst [vmem:[#allocation103_spill] sm:$0xff] %v9485_v20 }
 0x34f   :  { %3985 = vmatpush2.bf16.msra.mxu0 %v9461_v19  ;;  %v2071_v19 = vadd.f32 %v9316_v50, %v9096_v63 }
 0x350   :  { %4026 = vmatpush2.bf16.msra.mxu1 %v9465_v57  ;;  %3986 = vmatprep.subr.bf16.mxu0 %v9467_v38  ;;  %v9491_v38 = vld [vmem:[#allocation5 + $0x3b0] ss:$8 sps:$4 sm:$0xff]   ;;  %v9493_v57 = vld [vmem:[#allocation5 + $0x2a4] ss:$8 sps:$4 sm:$0xff]  }
 0x351   :  { %4027 = vmatprep.subr.bf16.mxu1 %v9470_v54  ;;  %10818 = vst [vmem:[#allocation77_spill] sm:$0xff] %v9491_v38  ;;  %10819 = vst [vmem:[#allocation107_spill] sm:$0xff] %v9493_v57  ;;  %v2112_v54 = vadd.f32 %v9318_v11, %v9098_v3  ;;  %v9507_v3 = vld [vmem:[#allocation5 + $0x3a0] ss:$8 sps:$4 sm:$0xff]  }
 0x352   :  { %10821 = vst [vmem:[#allocation109_spill] sm:$0xff] %v9507_v3 }
 0x353   :  { %3987 = vmatpush2.bf16.msra.mxu0 %v9473_v35  ;;  %v9498_v35 = vld [vmem:[#allocation5 + $0x3a4] ss:$8 sps:$4 sm:$0xff]  }
 0x354   :  { %4028 = vmatpush2.bf16.msra.mxu1 %v9477_v22  ;;  %3988 = vmatprep.subr.bf16.mxu0 %v9479_v56  ;;  %v2114_v56 = vadd.f32 %v9322_v62, %v9105_v59 }
 0x355   :  { %v3002_v46 = vpop.f32.mrf.mxu0  ;;  %4029 = vmatprep.subr.bf16.mxu1 %v9482_v34 }
 0x356   :  { %v3054_v63 = vadd.f32 %v3002_v46, %v2071_v19  ;;  %v3043_v50 = vpop.f32.mrf.mxu1  ;;  %v9514_v46 = vld [vmem:[#allocation5 + $0x394] ss:$8 sps:$4 sm:$0xff]  }
 0x357   :  { %v3056_v22 = vadd.f32 %v3043_v50, %v2112_v54  ;;  %3989 = vmatpush2.bf16.msra.mxu0 %v9485_v20  ;;  %v3004_v6 = vpop.f32.mrf.mxu0  ;;  %10823 = vst [vmem:[#allocation111_spill] sm:$0xff] %v9514_v46 }
 0x358   :  { %vm3062_vm12 = vcmp.ge.f32.partialorder %v3054_v63, 0.0  ;;  %v3070_v11 = vmul.f32 0.01, %v3054_v63  ;;  %4030 = vmatpush2.bf16.msra.mxu1 %v9491_v38  ;;  %v3055_v34 = vadd.f32 %v3004_v6, %v2073_v12  ;;  %v3045_v51 = vpop.f32.mrf.mxu1  ;;  %3990 = vmatprep.subr.bf16.mxu0 %v9493_v57  ;;  %v9519_v38 = vld [vmem:[#allocation5 + $0x290] ss:$8 sps:$4 sm:$0xff]  }
 0x359   :  { %vm3064_vm13 = vcmp.ge.f32.partialorder %v3056_v22, 0.0  ;;  %v3072_v59 = vmul.f32 0.01, %v3056_v22  ;;  %v3057_v62 = vadd.f32 %v3045_v51, %v2114_v56  ;;  %v3006_v37 = vpop.f32.mrf.mxu0  ;;  %4031 = vmatprep.subr.bf16.mxu1 %v9498_v35  ;;  %10825 = vst [vmem:[#allocation113_spill] sm:$0xff] %v9519_v38 }
 0x35a   :  { %v3078_v19 = vsel %vm3062_vm12, %v3054_v63, %v3070_v11  ;;  %vm3063_vm14 = vcmp.ge.f32.partialorder %v3055_v34, 0.0  ;;  %v3071_v54 = vmul.f32 0.01, %v3055_v34  ;;  %v3047_v50 = vpop.f32.mrf.mxu1  ;;  %v9525_v63 = vld [vmem:[#allocation5 + $0x390] ss:$8 sps:$4 sm:$0xff]  }
 0x35b   :  { %v9516_v20 = vpack.c.bf16 %v3078_v19, %v3078_v19  ;;  %v3080_v6 = vsel %vm3064_vm13, %v3056_v22, %v3072_v59  ;;  %vm3065_vm15 = vcmp.ge.f32.partialorder %v3057_v62, 0.0  ;;  %v3073_v12 = vmul.f32 0.01, %v3057_v62  ;;  %3991 = vmatpush2.bf16.msra.mxu0 %v9505_v29  ;;  %v3007_v57 = vpop.f32.mrf.mxu0  ;;  %v9527_v11 = vld [vmem:[#allocation5 + $0x284] ss:$8 sps:$4 sm:$0xff]  }
 0x35c   :  { %v9521_v51 = vpack.c.bf16 %v3080_v6, %v3080_v6  ;;  %v3079_v56 = vsel %vm3063_vm14, %v3055_v34, %v3071_v54  ;;  %4032 = vmatpush2.bf16.msra.mxu1 %v9507_v3  ;;  %v3048_v37 = vpop.f32.mrf.mxu1  ;;  %3992 = vmatprep.subr.bf16.mxu0 %v9511_v45  ;;  %v9533_v57 = vld [vmem:[#allocation5 + $0x384] ss:$8 sps:$4 sm:$0xff]  }
 0x35d   :  { %10824 = vst [vmem:[#allocation112_spill] sm:$0xff] %v9516_v20  ;;  %v3094_v22 = vunpack.c.l.bf16 %v9516_v20  ;;  %v9530_v59 = vpack.c.bf16 %v3079_v56, %v3079_v56  ;;  %v3081_v50 = vsel %vm3065_vm15, %v3057_v62, %v3073_v12  ;;  %4033 = vmatprep.subr.bf16.mxu1 %v9514_v46  ;;  %v9539_v37 = vld [vmem:[#allocation5 + $0x280] ss:$8 sps:$4 sm:$0xff]  }
 0x35e   :  { %10826 = vst [vmem:[#allocation114_spill] sm:$0xff] %v9521_v51  ;;  %v3096_v34 = vunpack.c.l.bf16 %v9521_v51  ;;  %v9536_v54 = vpack.c.bf16 %v3081_v50, %v3081_v50  ;;  %v9544_v62 = vld [vmem:[#allocation5 + $0x380] ss:$8 sps:$4 sm:$0xff]  }
 0x35f   :  { %3993 = vmatpush2.bf16.msra.mxu0 %v9519_v38  ;;  %v3095_v45 = vunpack.c.l.bf16 %v9530_v59  ;;  %v3102_v3 = vsub.f32 %v3078_v19, %v3094_v22 }
 0x360   :  { %4034 = vmatpush2.bf16.msra.mxu1 %v9525_v63  ;;  %3994 = vmatprep.subr.bf16.mxu0 %v9527_v11  ;;  %v3097_v12 = vunpack.c.l.bf16 %v9536_v54  ;;  %v3104_v20 = vsub.f32 %v3080_v6, %v3096_v34  ;;  %v10873_v6 = vld [vmem:[#allocation57_spill] sm:$0xff] }
 0x361   :  { %4035 = vmatprep.subr.bf16.mxu1 %v9533_v57  ;;  %v3103_v51 = vsub.f32 %v3079_v56, %v3095_v45  ;;  %v3110_v29 = vpack.c.bf16 %v3102_v3, %v3102_v3  ;;  %v10865_v3 = vld [vmem:[#allocation49_spill] sm:$0xff]  ;;  %v10867_v45 = vld [vmem:[#allocation51_spill] sm:$0xff] }
 0x362   :  { %v3105_v46 = vsub.f32 %v3081_v50, %v3097_v12  ;;  %v3112_v22 = vpack.c.bf16 %v3104_v20, %v3104_v20  ;;  %v10862_v20 = vld [vmem:[#allocation46_spill] sm:$0xff]  ;;  %v10875_v56 = vld [vmem:[#allocation59_spill] sm:$0xff]  ;;  %v10876_v50 = vld [vmem:[#allocation60_spill] sm:$0xff] }
 0x363   :  { %3995 = vmatpush2.bf16.msra.mxu0 %v9539_v37  ;;  %v3111_v38 = vpack.c.bf16 %v3103_v51, %v3103_v51  ;;  %v10874_v51 = vld [vmem:[#allocation58_spill] sm:$0xff]  ;;  %v10877_v34 = vld [vmem:[#allocation61_spill] sm:$0xff] }
 0x364   :  { %4036 = vmatpush2.bf16.msra.mxu1 %v9544_v62  ;;  %v3113_v19 = vpack.c.bf16 %v3105_v46, %v3105_v46  ;;  %4046 = vmatprep.subr.bf16.mxu0 %v9108_v49  ;;  %v10827_v49 = vld [vmem:[#allocation78_spill] sm:$0xff]  ;;  %v10872_v46 = vld [vmem:[#allocation56_spill] sm:$0xff] }
 0x365   :  { %3996 = vmatprep.mubr.bf16.mxu0 %v3111_v38  ;;  %4087 = vmatprep.subr.bf16.mxu1 %v9110_v2  ;;  %v10828_v2 = vld [vmem:[#allocation12_spill] sm:$0xff]  ;;  %v10863_v38 = vld [vmem:[#allocation47_spill] sm:$0xff]  ;;  %v10878_v12 = vld [vmem:[#allocation62_spill] sm:$0xff] }
 0x366   :  { %4037 = vmatprep.mubr.bf16.mxu1 %v3113_v19  ;;  %3997 = vmatmul.mubr.bf16.vlgmr.msra.gmra.mxu0 %v3110_v29  ;;  %v10861_v29 = vld [vmem:[#allocation45_spill] sm:$0xff]  ;;  %v10879_v19 = vld [vmem:[#allocation63_spill] sm:$0xff] }
 0x367   :  { %4038 = vmatmul.mubr.bf16.vlgmr.msra.gmra.mxu1 %v3112_v22  ;;  %4047 = vmatpush1.bf16.msra.mxu0 %v9112_v26  ;;  %v10829_v26 = vld [vmem:[#allocation14_spill] sm:$0xff]  ;;  %v10880_v22 = vld [vmem:[#allocation64_spill] sm:$0xff] }
 0x368   :  { %4088 = vmatpush1.bf16.msra.mxu1 %v9115_v7  ;;  %4078 = vmatprep.mubr.bf16.mxu0 %v9337_v58  ;;  %v10830_v7 = vld [vmem:[#allocation13_spill] sm:$0xff] }
 0x369   :  { %4119 = vmatprep.mubr.bf16.mxu1 %v9340_v52  ;;  %4048 = vmatprep.subr.bf16.mxu0 %v9117_v4  ;;  %v10831_v4 = vld [vmem:[#allocation15_spill] sm:$0xff] }
 0x36a   :  { %4089 = vmatprep.subr.bf16.mxu1 %v9120_v33  ;;  %v10832_v33 = vld [vmem:[#allocation16_spill] sm:$0xff] }
 0x36b   :  { %4049 = vmatpush1.bf16.msra.mxu0 %v9129_v44  ;;  %v10833_v44 = vld [vmem:[#allocation17_spill] sm:$0xff] }
 0x36c   :  { %4090 = vmatpush1.bf16.msra.mxu1 %v9135_v9  ;;  %4050 = vmatprep.subr.bf16.mxu0 %v9137_v60  ;;  %v10834_v9 = vld [vmem:[#allocation18_spill] sm:$0xff]  ;;  %v10835_v60 = vld [vmem:[#allocation19_spill] sm:$0xff] }
 0x36d   :  { %4091 = vmatprep.subr.bf16.mxu1 %v9142_v39  ;;  %v10836_v39 = vld [vmem:[#allocation20_spill] sm:$0xff] }
 0x36f   :  { %4051 = vmatpush1.bf16.msra.mxu0 %v9145_v43  ;;  %v10837_v43 = vld [vmem:[#allocation21_spill] sm:$0xff] }
 0x370   :  { %4092 = vmatpush1.bf16.msra.mxu1 %v9149_v48  ;;  %4052 = vmatprep.subr.bf16.mxu0 %v9151_v15  ;;  %v10838_v48 = vld [vmem:[#allocation22_spill] sm:$0xff]  ;;  %v10839_v15 = vld [vmem:[#allocation23_spill] sm:$0xff] }
 0x371   :  { %4093 = vmatprep.subr.bf16.mxu1 %v9154_v30  ;;  %v10840_v30 = vld [vmem:[#allocation24_spill] sm:$0xff] }
 0x373   :  { %4053 = vmatpush1.bf16.msra.mxu0 %v9157_v40  ;;  %v10841_v40 = vld [vmem:[#allocation25_spill] sm:$0xff] }
 0x374   :  { %4094 = vmatpush1.bf16.msra.mxu1 %v9161_v24  ;;  %4054 = vmatprep.subr.bf16.mxu0 %v9163_v8  ;;  %v10842_v24 = vld [vmem:[#allocation26_spill] sm:$0xff]  ;;  %v10843_v8 = vld [vmem:[#allocation27_spill] sm:$0xff] }
 0x375   :  { %4095 = vmatprep.subr.bf16.mxu1 %v9166_v21  ;;  %v10844_v21 = vld [vmem:[#allocation28_spill] sm:$0xff] }
 0x377   :  { %4055 = vmatpush1.bf16.msra.mxu0 %v9169_v53  ;;  %v10845_v53 = vld [vmem:[#allocation29_spill] sm:$0xff] }
 0x378   :  { %4096 = vmatpush1.bf16.msra.mxu1 %v9173_v5  ;;  %4056 = vmatprep.subr.bf16.mxu0 %v9175_v16  ;;  %v10846_v5 = vld [vmem:[#allocation30_spill] sm:$0xff]  ;;  %v10847_v16 = vld [vmem:[#allocation31_spill] sm:$0xff] }
 0x379   :  { %4097 = vmatprep.subr.bf16.mxu1 %v9178_v31  ;;  %v10848_v31 = vld [vmem:[#allocation32_spill] sm:$0xff] }
 0x37b   :  { %4057 = vmatpush1.bf16.msra.mxu0 %v9181_v36  ;;  %v10849_v36 = vld [vmem:[#allocation33_spill] sm:$0xff] }
 0x37c   :  { %4098 = vmatpush1.bf16.msra.mxu1 %v9185_v25  ;;  %4058 = vmatprep.subr.bf16.mxu0 %v9187_v10  ;;  %v10850_v25 = vld [vmem:[#allocation34_spill] sm:$0xff]  ;;  %v10851_v10 = vld [vmem:[#allocation35_spill] sm:$0xff] }
 0x37d   :  { %4099 = vmatprep.subr.bf16.mxu1 %v9190_v42  ;;  %v10852_v42 = vld [vmem:[#allocation36_spill] sm:$0xff] }
 0x37f   :  { %4059 = vmatpush1.bf16.msra.mxu0 %v9193_v47  ;;  %v10853_v47 = vld [vmem:[#allocation37_spill] sm:$0xff] }
 0x380   :  { %4100 = vmatpush1.bf16.msra.mxu1 %v9197_v18  ;;  %4060 = vmatprep.subr.bf16.mxu0 %v9199_v14  ;;  %v10854_v18 = vld [vmem:[#allocation38_spill] sm:$0xff]  ;;  %v10855_v14 = vld [vmem:[#allocation39_spill] sm:$0xff] }
 0x381   :  { %4101 = vmatprep.subr.bf16.mxu1 %v9202_v41  ;;  %v10856_v41 = vld [vmem:[#allocation40_spill] sm:$0xff] }
 0x383   :  { %4061 = vmatpush1.bf16.msra.mxu0 %v9205_v0  ;;  %v10857_v0 = vld [vmem:[#allocation41_spill] sm:$0xff] }
 0x384   :  { %4102 = vmatpush1.bf16.msra.mxu1 %v9209_v61  ;;  %4062 = vmatprep.subr.bf16.mxu0 %v9211_v28  ;;  %v10858_v61 = vld [vmem:[#allocation42_spill] sm:$0xff]  ;;  %v10859_v28 = vld [vmem:[#allocation43_spill] sm:$0xff] }
 0x385   :  { %4103 = vmatprep.subr.bf16.mxu1 %v9214_v23  ;;  %v10860_v23 = vld [vmem:[#allocation44_spill] sm:$0xff] }
 0x387   :  { %4063 = vmatpush2.bf16.msra.mxu0 %v10827_v49  ;;  %v10881_v49 = vld [vmem:[#allocation65_spill] sm:$0xff] }
 0x388   :  { %4104 = vmatpush2.bf16.msra.mxu1 %v10828_v2  ;;  %4064 = vmatprep.subr.bf16.mxu0 %v10829_v26  ;;  %v10882_v2 = vld [vmem:[#allocation66_spill] sm:$0xff]  ;;  %v10883_v26 = vld [vmem:[#allocation67_spill] sm:$0xff] }
 0x389   :  { %4105 = vmatprep.subr.bf16.mxu1 %v10830_v7  ;;  %v10884_v7 = vld [vmem:[#allocation68_spill] sm:$0xff] }
 0x38b   :  { %4065 = vmatpush2.bf16.msra.mxu0 %v10831_v4  ;;  %v10885_v4 = vld [vmem:[#allocation69_spill] sm:$0xff] }
 0x38c   :  { %4106 = vmatpush2.bf16.msra.mxu1 %v10832_v33  ;;  %4066 = vmatprep.subr.bf16.mxu0 %v10833_v44  ;;  %v10886_v33 = vld [vmem:[#allocation70_spill] sm:$0xff]  ;;  %v10887_v44 = vld [vmem:[#allocation71_spill] sm:$0xff] }
 0x38d   :  { %4107 = vmatprep.subr.bf16.mxu1 %v10834_v9  ;;  %v10888_v9 = vld [vmem:[#allocation72_spill] sm:$0xff] }
 0x38f   :  { %4067 = vmatpush2.bf16.msra.mxu0 %v10835_v60  ;;  %v10889_v60 = vld [vmem:[#allocation73_spill] sm:$0xff] }
 0x390   :  { %4108 = vmatpush2.bf16.msra.mxu1 %v10836_v39  ;;  %4068 = vmatprep.subr.bf16.mxu0 %v10837_v43  ;;  %v10890_v39 = vld [vmem:[#allocation74_spill] sm:$0xff]  ;;  %v10891_v43 = vld [vmem:[#allocation75_spill] sm:$0xff] }
 0x391   :  { %4109 = vmatprep.subr.bf16.mxu1 %v10838_v48  ;;  %v10892_v48 = vld [vmem:[#allocation76_spill] sm:$0xff] }
 0x393   :  { %4069 = vmatpush2.bf16.msra.mxu0 %v10839_v15  ;;  %v10893_v15 = vld [vmem:[#allocation79_spill] sm:$0xff] }
 0x394   :  { %4110 = vmatpush2.bf16.msra.mxu1 %v10840_v30  ;;  %4070 = vmatprep.subr.bf16.mxu0 %v10841_v40  ;;  %v10894_v30 = vld [vmem:[#allocation82_spill] sm:$0xff]  ;;  %v10895_v40 = vld [vmem:[#allocation85_spill] sm:$0xff] }
 0x395   :  { %4111 = vmatprep.subr.bf16.mxu1 %v10842_v24  ;;  %v10896_v24 = vld [vmem:[#allocation89_spill] sm:$0xff] }
 0x397   :  { %4071 = vmatpush2.bf16.msra.mxu0 %v10843_v8  ;;  %v10897_v8 = vld [vmem:[#allocation86_spill] sm:$0xff] }
 0x398   :  { %4112 = vmatpush2.bf16.msra.mxu1 %v10844_v21  ;;  %4072 = vmatprep.subr.bf16.mxu0 %v10845_v53  ;;  %v10898_v21 = vld [vmem:[#allocation98_spill] sm:$0xff]  ;;  %v10899_v53 = vld [vmem:[#allocation80_spill] sm:$0xff] }
 0x399   :  { %4113 = vmatprep.subr.bf16.mxu1 %v10846_v5  ;;  %v10900_v5 = vld [vmem:[#allocation104_spill] sm:$0xff] }
 0x39b   :  { %4073 = vmatpush2.bf16.msra.mxu0 %v10847_v16  ;;  %v10901_v16 = vld [vmem:[#allocation105_spill] sm:$0xff] }
 0x39c   :  { %4114 = vmatpush2.bf16.msra.mxu1 %v10848_v31  ;;  %4074 = vmatprep.subr.bf16.mxu0 %v10849_v36  ;;  %v10902_v31 = vld [vmem:[#allocation106_spill] sm:$0xff]  ;;  %v10903_v36 = vld [vmem:[#allocation103_spill] sm:$0xff] }
 0x39d   :  { %4115 = vmatprep.subr.bf16.mxu1 %v10850_v25  ;;  %v10904_v25 = vld [vmem:[#allocation77_spill] sm:$0xff] }
 0x39f   :  { %4075 = vmatpush2.bf16.msra.mxu0 %v10851_v10  ;;  %v10905_v10 = vld [vmem:[#allocation107_spill] sm:$0xff] }
 0x3a0   :  { %4116 = vmatpush2.bf16.msra.mxu1 %v10852_v42  ;;  %4076 = vmatprep.subr.bf16.mxu0 %v10853_v47  ;;  %v10906_v42 = vld [vmem:[#allocation108_spill] sm:$0xff]  ;;  %v10907_v47 = vld [vmem:[#allocation109_spill] sm:$0xff] }
 0x3a1   :  { %4117 = vmatprep.subr.bf16.mxu1 %v10854_v18  ;;  %v10908_v18 = vld [vmem:[#allocation110_spill] sm:$0xff] }
 0x3a3   :  { %4077 = vmatpush2.bf16.msra.mxu0 %v10855_v14  ;;  %v10909_v14 = vld [vmem:[#allocation111_spill] sm:$0xff] }
 0x3a4   :  { %4118 = vmatpush2.bf16.msra.mxu1 %v10856_v41  ;;  %4128 = vmatprep.subr.bf16.mxu0 %v10857_v0  ;;  %v10910_v41 = vld [vmem:[#allocation113_spill] sm:$0xff] }
 0x3a5   :  { %4169 = vmatprep.subr.bf16.mxu1 %v10858_v61  ;;  %v6830_v0 = vld [vmem:[#allocation7 + $0x74] ss:$8 sps:$4 sm:$0xff]  }
 0x3a6   :  { %4079 = vmatmul.mubr.bf16.vlgmr.msra.gmra.mxu0 %v10859_v28  ;;  %v6833_v61 = vld [vmem:[#allocation7 + $0x174] ss:$8 sps:$4 sm:$0xff]  }
 0x3a7   :  { %4120 = vmatmul.mubr.bf16.vlgmr.msra.gmra.mxu1 %v10860_v23  ;;  %4129 = vmatpush1.bf16.msra.mxu0 %v9344_v32  ;;  %v10864_v32 = vld [vmem:[#allocation48_spill] sm:$0xff] }
 0x3a8   :  { %4160 = vmatprep.mubr.bf16.mxu0 %v9530_v59  ;;  %4170 = vmatpush1.bf16.msra.mxu1 %v9346_v1  ;;  %v10866_v1 = vld [vmem:[#allocation50_spill] sm:$0xff] }
 0x3a9   :  { %4201 = vmatprep.mubr.bf16.mxu1 %v9536_v54  ;;  %4130 = vmatprep.subr.bf16.mxu0 %v9348_v17  ;;  %v10868_v17 = vld [vmem:[#allocation52_spill] sm:$0xff] }
 0x3aa   :  { %4171 = vmatprep.subr.bf16.mxu1 %v9350_v55  ;;  %v10869_v55 = vld [vmem:[#allocation53_spill] sm:$0xff] }
 0x3ab   :  { %4131 = vmatpush1.bf16.msra.mxu0 %v9353_v27  ;;  %v10870_v27 = vld [vmem:[#allocation54_spill] sm:$0xff] }
 0x3ac   :  { %4172 = vmatpush1.bf16.msra.mxu1 %v9357_v13  ;;  %4132 = vmatprep.subr.bf16.mxu0 %v10861_v29  ;;  %v10871_v13 = vld [vmem:[#allocation55_spill] sm:$0xff]  ;;  %v6831_v29 = vld [vmem:[#allocation7 + $0x170] ss:$8 sps:$4 sm:$0xff]  }
 0x3ad   :  { %4173 = vmatprep.subr.bf16.mxu1 %v10862_v20  ;;  %v6836_v20 = vld [vmem:[#allocation7 + $0x64] ss:$8 sps:$4 sm:$0xff]  }
 0x3af   :  { %4133 = vmatpush1.bf16.msra.mxu0 %v10863_v38  ;;  %v10911_v38 = vld [vmem:[#allocation112_spill] sm:$0xff] }
 0x3b0   :  { %4174 = vmatpush1.bf16.msra.mxu1 %v10864_v32  ;;  %4134 = vmatprep.subr.bf16.mxu0 %v10865_v3  ;;  %v6839_v3 = vld [vmem:[#allocation7 + $0x164] ss:$8 sps:$4 sm:$0xff]  }
 0x3b1   :  { %4175 = vmatprep.subr.bf16.mxu1 %v10866_v1  ;;  %v6834_v1 = vld [vmem:[#allocation7 + $0x60] ss:$8 sps:$4 sm:$0xff]  }
 0x3b3   :  { %4135 = vmatpush1.bf16.msra.mxu0 %v10867_v45  ;;  %v6842_v45 = vld [vmem:[#allocation7 + $0x54] ss:$8 sps:$4 sm:$0xff]  }
 0x3b4   :  { %4176 = vmatpush1.bf16.msra.mxu1 %v10868_v17  ;;  %4136 = vmatprep.subr.bf16.mxu0 %v10869_v55  ;;  %v6845_v55 = vld [vmem:[#allocation7 + $0x154] ss:$8 sps:$4 sm:$0xff]  }
 0x3b5   :  { %4177 = vmatprep.subr.bf16.mxu1 %v10870_v27 }
 0x3b7   :  { %4137 = vmatpush1.bf16.msra.mxu0 %v10871_v13 }
 0x3b8   :  { %4178 = vmatpush1.bf16.msra.mxu1 %v10872_v46  ;;  %4138 = vmatprep.subr.bf16.mxu0 %v10873_v6  ;;  %v6840_v6 = vld [vmem:[#allocation7 + $0x50] ss:$8 sps:$4 sm:$0xff]  }
 0x3b9   :  { %4179 = vmatprep.subr.bf16.mxu1 %v10874_v51 }
 0x3bb   :  { %4139 = vmatpush1.bf16.msra.mxu0 %v10875_v56  ;;  %v6848_v56 = vld [vmem:[#allocation7 + $0x44] ss:$8 sps:$4 sm:$0xff]  }
 0x3bc   :  { %4180 = vmatpush1.bf16.msra.mxu1 %v10876_v50  ;;  %4140 = vmatprep.subr.bf16.mxu0 %v10877_v34  ;;  %v6851_v34 = vld [vmem:[#allocation7 + $0x144] ss:$8 sps:$4 sm:$0xff]  }
 0x3bd   :  { %4181 = vmatprep.subr.bf16.mxu1 %v10878_v12  ;;  %v6849_v12 = vld [vmem:[#allocation7 + $0x140] ss:$8 sps:$4 sm:$0xff]  }
 0x3bf   :  { %4141 = vmatpush1.bf16.msra.mxu0 %v10879_v19  ;;  %v6854_v19 = vld [vmem:[#allocation7 + $0x34] ss:$8 sps:$4 sm:$0xff]  }
 0x3c0   :  { %4182 = vmatpush1.bf16.msra.mxu1 %v10880_v22  ;;  %4142 = vmatprep.subr.bf16.mxu0 %v10881_v49  ;;  %v6857_v22 = vld [vmem:[#allocation7 + $0x134] ss:$8 sps:$4 sm:$0xff]   ;;  %v6852_v49 = vld [vmem:[#allocation7 + $0x30] ss:$8 sps:$4 sm:$0xff]  }
 0x3c1   :  { %4183 = vmatprep.subr.bf16.mxu1 %v10882_v2  ;;  %v6855_v2 = vld [vmem:[#allocation7 + $0x130] ss:$8 sps:$4 sm:$0xff]  }
 0x3c3   :  { %4143 = vmatpush1.bf16.msra.mxu0 %v10883_v26  ;;  %v6860_v26 = vld [vmem:[#allocation7 + $0x24] ss:$8 sps:$4 sm:$0xff]  }
 0x3c4   :  { %4184 = vmatpush1.bf16.msra.mxu1 %v10884_v7  ;;  %4144 = vmatprep.subr.bf16.mxu0 %v10885_v4  ;;  %v6863_v7 = vld [vmem:[#allocation7 + $0x124] ss:$8 sps:$4 sm:$0xff]   ;;  %v6858_v4 = vld [vmem:[#allocation7 + $0x20] ss:$8 sps:$4 sm:$0xff]  }
 0x3c5   :  { %4185 = vmatprep.subr.bf16.mxu1 %v10886_v33  ;;  %v6861_v33 = vld [vmem:[#allocation7 + $0x120] ss:$8 sps:$4 sm:$0xff]  }
 0x3c7   :  { %4145 = vmatpush2.bf16.msra.mxu0 %v10887_v44  ;;  %v6866_v44 = vld [vmem:[#allocation7 + $0x14] ss:$8 sps:$4 sm:$0xff]  }
 0x3c8   :  { %4186 = vmatpush2.bf16.msra.mxu1 %v10888_v9  ;;  %4146 = vmatprep.subr.bf16.mxu0 %v10889_v60  ;;  %v6869_v9 = vld [vmem:[#allocation7 + $0x114] ss:$8 sps:$4 sm:$0xff]   ;;  %v6864_v60 = vld [vmem:[#allocation7 + $0x10] ss:$8 sps:$4 sm:$0xff]  }
 0x3c9   :  { %4187 = vmatprep.subr.bf16.mxu1 %v10890_v39  ;;  %v6867_v39 = vld [vmem:[#allocation7 + $0x110] ss:$8 sps:$4 sm:$0xff]  }
 0x3cb   :  { %4147 = vmatpush2.bf16.msra.mxu0 %v10891_v43  ;;  %v6872_v43 = vld [vmem:[#allocation7 + $0x4] ss:$8 sps:$4 sm:$0xff]  }
 0x3cc   :  { %4188 = vmatpush2.bf16.msra.mxu1 %v10892_v48  ;;  %4148 = vmatprep.subr.bf16.mxu0 %v10893_v15  ;;  %v6875_v48 = vld [vmem:[#allocation7 + $0x104] ss:$8 sps:$4 sm:$0xff]   ;;  %v6870_v15 = vld [vmem:[#allocation7] ss:$8 sps:$4 sm:$0xff]  }
 0x3cd   :  { %4189 = vmatprep.subr.bf16.mxu1 %v10894_v30  ;;  %v6873_v30 = vld [vmem:[#allocation7 + $0x100] ss:$8 sps:$4 sm:$0xff]  }
 0x3cf   :  { %4149 = vmatpush2.bf16.msra.mxu0 %v10895_v40  ;;  %v6878_v40 = vld [vmem:[#allocation7 + $0xf4] ss:$8 sps:$4 sm:$0xff]  }
 0x3d0   :  { %4190 = vmatpush2.bf16.msra.mxu1 %v10896_v24  ;;  %4150 = vmatprep.subr.bf16.mxu0 %v10897_v8  ;;  %v6881_v24 = vld [vmem:[#allocation7 + $0x1f4] ss:$8 sps:$4 sm:$0xff]   ;;  %v6876_v8 = vld [vmem:[#allocation7 + $0xf0] ss:$8 sps:$4 sm:$0xff]  }
 0x3d1   :  { %4191 = vmatprep.subr.bf16.mxu1 %v10898_v21  ;;  %v6879_v21 = vld [vmem:[#allocation7 + $0x1f0] ss:$8 sps:$4 sm:$0xff]  }
 0x3d3   :  { %4151 = vmatpush2.bf16.msra.mxu0 %v10899_v53  ;;  %v6884_v53 = vld [vmem:[#allocation7 + $0xe4] ss:$8 sps:$4 sm:$0xff]  }
 0x3d4   :  { %4192 = vmatpush2.bf16.msra.mxu1 %v10900_v5  ;;  %4152 = vmatprep.subr.bf16.mxu0 %v10901_v16  ;;  %v6887_v5 = vld [vmem:[#allocation7 + $0x1e4] ss:$8 sps:$4 sm:$0xff]   ;;  %v6882_v16 = vld [vmem:[#allocation7 + $0xe0] ss:$8 sps:$4 sm:$0xff]  }
 0x3d5   :  { %4193 = vmatprep.subr.bf16.mxu1 %v10902_v31  ;;  %v6885_v31 = vld [vmem:[#allocation7 + $0x1e0] ss:$8 sps:$4 sm:$0xff]  }
 0x3d7   :  { %4153 = vmatpush2.bf16.msra.mxu0 %v10903_v36  ;;  %v6890_v36 = vld [vmem:[#allocation7 + $0xd4] ss:$8 sps:$4 sm:$0xff]  }
 0x3d8   :  { %4194 = vmatpush2.bf16.msra.mxu1 %v10904_v25  ;;  %4154 = vmatprep.subr.bf16.mxu0 %v10905_v10  ;;  %v6893_v25 = vld [vmem:[#allocation7 + $0x1d4] ss:$8 sps:$4 sm:$0xff]   ;;  %v6888_v10 = vld [vmem:[#allocation7 + $0xd0] ss:$8 sps:$4 sm:$0xff]  }
 0x3d9   :  { %4195 = vmatprep.subr.bf16.mxu1 %v9498_v35  ;;  %v6828_v35 = vld [vmem:[#allocation7 + $0x70] ss:$8 sps:$4 sm:$0xff]  }
 0x3db   :  { %4155 = vmatpush2.bf16.msra.mxu0 %v10906_v42  ;;  %v6891_v42 = vld [vmem:[#allocation7 + $0x1d0] ss:$8 sps:$4 sm:$0xff]  }
 0x3dc   :  { %4196 = vmatpush2.bf16.msra.mxu1 %v10907_v47  ;;  %4156 = vmatprep.subr.bf16.mxu0 %v10908_v18  ;;  %v6896_v47 = vld [vmem:[#allocation7 + $0xc4] ss:$8 sps:$4 sm:$0xff]  }
 0x3dd   :  { %4197 = vmatprep.subr.bf16.mxu1 %v10909_v14  ;;  %v6899_v18 = vld [vmem:[#allocation7 + $0x1c4] ss:$8 sps:$4 sm:$0xff]   ;;  %v6894_v14 = vld [vmem:[#allocation7 + $0xc0] ss:$8 sps:$4 sm:$0xff]  }
 0x3df   :  { %4157 = vmatpush2.bf16.msra.mxu0 %v10910_v41  ;;  %v6897_v41 = vld [vmem:[#allocation7 + $0x1c0] ss:$8 sps:$4 sm:$0xff]  }
 0x3e0   :  { %4198 = vmatpush2.bf16.msra.mxu1 %v9525_v63  ;;  %4158 = vmatprep.subr.bf16.mxu0 %v9527_v11  ;;  %v10912_v63 = vld [vmem:[#allocation114_spill] sm:$0xff] }
 0x3e1   :  { %4199 = vmatprep.subr.bf16.mxu1 %v9533_v57 }
 0x3e3   :  { %4159 = vmatpush2.bf16.msra.mxu0 %v9539_v37 }
 0x3e4   :  { %4200 = vmatpush2.bf16.msra.mxu1 %v9544_v62  ;;  %4978 = vmatprep.subr.bf16.mxu0 %v6830_v0  ;;  %v6837_v62 = vld [vmem:[#allocation7 + $0x160] ss:$8 sps:$4 sm:$0xff]   ;;  %v6902_v0 = vld [vmem:[#allocation7 + $0xb4] ss:$8 sps:$4 sm:$0xff]  }
 0x3e5   :  { %5019 = vmatprep.subr.bf16.mxu1 %v6833_v61  ;;  %v6905_v61 = vld [vmem:[#allocation7 + $0x1b4] ss:$8 sps:$4 sm:$0xff]  }
 0x3e6   :  { %4161 = vmatmul.mubr.bf16.vlgmr.msra.gmra.mxu0 %v10911_v38  ;;  %v3916_v32 = vpop.f32.mrf.mxu0 }
 0x3e7   :  { %4202 = vmatmul.mubr.bf16.vlgmr.msra.gmra.mxu1 %v10912_v63  ;;  %v3957_v11 = vpop.f32.mrf.mxu1  ;;  %4979 = vmatpush1.bf16.msra.mxu0 %v6828_v35  ;;  %v6900_v35 = vld [vmem:[#allocation7 + $0xb0] ss:$8 sps:$4 sm:$0xff]  }
 0x3e8   :  { %v9686_v57 = vadd.f32 %v3957_v11, %v3916_v32  ;;  %5010 = vmatprep.mubr.bf16.mxu0 %v9337_v58  ;;  %5020 = vmatpush1.bf16.msra.mxu1 %v6831_v29  ;;  %v3918_v37 = vpop.f32.mrf.mxu0  ;;  %v6843_v58 = vld [vmem:[#allocation7 + $0x150] ss:$8 sps:$4 sm:$0xff]   ;;  %v6911_v32 = vld [vmem:[#allocation7 + $0x1a4] ss:$8 sps:$4 sm:$0xff]   ;;  %v6909_v11 = vld [vmem:[#allocation7 + $0x1a0] ss:$8 sps:$4 sm:$0xff]  }
 0x3e9   :  { %5051 = vmatprep.mubr.bf16.mxu1 %v9340_v52  ;;  %v3959_v17 = vpop.f32.mrf.mxu1  ;;  %4980 = vmatprep.subr.bf16.mxu0 %v6836_v20  ;;  %v6846_v52 = vld [vmem:[#allocation7 + $0x40] ss:$8 sps:$4 sm:$0xff]   ;;  %v6903_v29 = vld [vmem:[#allocation7 + $0x1b0] ss:$8 sps:$4 sm:$0xff]   ;;  %v6908_v20 = vld [vmem:[#allocation7 + $0xa4] ss:$8 sps:$4 sm:$0xff]  }
 0x3ea   :  { %v9690_v27 = vadd.f32 %v3959_v17, %v3918_v37  ;;  %5021 = vmatprep.subr.bf16.mxu1 %v6839_v3  ;;  %v3920_v13 = vpop.f32.mrf.mxu0  ;;  %v6906_v3 = vld [vmem:[#allocation7 + $0xa0] ss:$8 sps:$4 sm:$0xff]   ;;  %v6917_v37 = vld [vmem:[#allocation7 + $0x194] ss:$8 sps:$4 sm:$0xff]   ;;  %v6920_v17 = vld [vmem:[#allocation7 + $0x84] ss:$8 sps:$4 sm:$0xff]  }
 0x3eb   :  { %v3961_v46 = vpop.f32.mrf.mxu1  ;;  %4981 = vmatpush1.bf16.msra.mxu0 %v6834_v1  ;;  %v6914_v1 = vld [vmem:[#allocation7 + $0x94] ss:$8 sps:$4 sm:$0xff]   ;;  %v6918_v13 = vld [vmem:[#allocation7 + $0x80] ss:$8 sps:$4 sm:$0xff]  }
 0x3ec   :  { %5022 = vmatpush1.bf16.msra.mxu1 %v6837_v62  ;;  %v3921_v51 = vpop.f32.mrf.mxu0  ;;  %4982 = vmatprep.subr.bf16.mxu0 %v6842_v45  ;;  %v6912_v62 = vld [vmem:[#allocation7 + $0x90] ss:$8 sps:$4 sm:$0xff]   ;;  %v6921_v46 = vld [vmem:[#allocation7 + $0x180] ss:$8 sps:$4 sm:$0xff]  }
 0x3ed   :  { %v3962_v50 = vpop.f32.mrf.mxu1  ;;  %5023 = vmatprep.subr.bf16.mxu1 %v6845_v55  ;;  %v6915_v45 = vld [vmem:[#allocation7 + $0x190] ss:$8 sps:$4 sm:$0xff]   ;;  %v6923_v55 = vld [vmem:[#allocation7 + $0x184] ss:$8 sps:$4 sm:$0xff]   ;;  %v6929_v51 = vld [vmem:[#allocation7 + $0x374] ss:$8 sps:$4 sm:$0xff]  }
 0x3ee   :  { %v6932_v50 = vld [vmem:[#allocation7 + $0x264] ss:$8 sps:$4 sm:$0xff]  }
 0x3ef   :  { %4983 = vmatpush1.bf16.msra.mxu0 %v6840_v6  ;;  %v6926_v6 = vld [vmem:[#allocation7 + $0x274] ss:$8 sps:$4 sm:$0xff]  }
 0x3f0   :  { %5024 = vmatpush1.bf16.msra.mxu1 %v6843_v58  ;;  %4984 = vmatprep.subr.bf16.mxu0 %v6848_v56  ;;  %v6924_v58 = vld [vmem:[#allocation7 + $0x270] ss:$8 sps:$4 sm:$0xff]  }
 0x3f1   :  { %5025 = vmatprep.subr.bf16.mxu1 %v6851_v34  ;;  %v6927_v56 = vld [vmem:[#allocation7 + $0x370] ss:$8 sps:$4 sm:$0xff]  }
 0x3f3   :  { %4985 = vmatpush1.bf16.msra.mxu0 %v6846_v52  ;;  %v6935_v52 = vld [vmem:[#allocation7 + $0x364] ss:$8 sps:$4 sm:$0xff]  }
 0x3f4   :  { %5026 = vmatpush1.bf16.msra.mxu1 %v6849_v12  ;;  %4986 = vmatprep.subr.bf16.mxu0 %v6854_v19 }
 0x3f5   :  { %5027 = vmatprep.subr.bf16.mxu1 %v6857_v22  ;;  %v6930_v22 = vld [vmem:[#allocation7 + $0x260] ss:$8 sps:$4 sm:$0xff]  }
 0x3f7   :  { %4987 = vmatpush1.bf16.msra.mxu0 %v6852_v49 }
 0x3f8   :  { %5028 = vmatpush1.bf16.msra.mxu1 %v6855_v2  ;;  %4988 = vmatprep.subr.bf16.mxu0 %v6860_v26  ;;  %v6933_v2 = vld [vmem:[#allocation7 + $0x360] ss:$8 sps:$4 sm:$0xff]   ;;  %v6938_v26 = vld [vmem:[#allocation7 + $0x254] ss:$8 sps:$4 sm:$0xff]  }
 0x3f9   :  { %5029 = vmatprep.subr.bf16.mxu1 %v6863_v7 }
 0x3fb   :  { %4989 = vmatpush1.bf16.msra.mxu0 %v6858_v4 }
 0x3fc   :  { %5030 = vmatpush1.bf16.msra.mxu1 %v6861_v33  ;;  %4990 = vmatprep.subr.bf16.mxu0 %v6866_v44 }
 0x3fd   :  { %5031 = vmatprep.subr.bf16.mxu1 %v6869_v9 }
 0x3ff   :  { %4991 = vmatpush1.bf16.msra.mxu0 %v6864_v60  ;;  %v6939_v60 = vld [vmem:[#allocation7 + $0x350] ss:$8 sps:$4 sm:$0xff]  }
 0x400   :  { %5032 = vmatpush1.bf16.msra.mxu1 %v6867_v39  ;;  %4992 = vmatprep.subr.bf16.mxu0 %v6872_v43  ;;  %v6944_v39 = vld [vmem:[#allocation7 + $0x244] ss:$8 sps:$4 sm:$0xff]  }
 0x401   :  { %5033 = vmatprep.subr.bf16.mxu1 %v6875_v48  ;;  %v6945_v48 = vld [vmem:[#allocation7 + $0x340] ss:$8 sps:$4 sm:$0xff]  }
 0x403   :  { %4993 = vmatpush1.bf16.msra.mxu0 %v6870_v15  ;;  %v6950_v15 = vld [vmem:[#allocation7 + $0x234] ss:$8 sps:$4 sm:$0xff]  }
 0x404   :  { %5034 = vmatpush1.bf16.msra.mxu1 %v6873_v30  ;;  %4994 = vmatprep.subr.bf16.mxu0 %v6878_v40  ;;  %v6953_v30 = vld [vmem:[#allocation7 + $0x334] ss:$8 sps:$4 sm:$0xff]   ;;  %v6948_v40 = vld [vmem:[#allocation7 + $0x230] ss:$8 sps:$4 sm:$0xff]  }
 0x405   :  { %5035 = vmatprep.subr.bf16.mxu1 %v6881_v24  ;;  %v6951_v24 = vld [vmem:[#allocation7 + $0x330] ss:$8 sps:$4 sm:$0xff]  }
 0x407   :  { %4995 = vmatpush2.bf16.msra.mxu0 %v6876_v8  ;;  %v6956_v8 = vld [vmem:[#allocation7 + $0x224] ss:$8 sps:$4 sm:$0xff]  }
 0x408   :  { %5036 = vmatpush2.bf16.msra.mxu1 %v6879_v21  ;;  %4996 = vmatprep.subr.bf16.mxu0 %v6884_v53  ;;  %v6959_v21 = vld [vmem:[#allocation7 + $0x324] ss:$8 sps:$4 sm:$0xff]   ;;  %v6954_v53 = vld [vmem:[#allocation7 + $0x220] ss:$8 sps:$4 sm:$0xff]  }
 0x409   :  { %5037 = vmatprep.subr.bf16.mxu1 %v6887_v5  ;;  %v6957_v5 = vld [vmem:[#allocation7 + $0x320] ss:$8 sps:$4 sm:$0xff]  }
 0x40b   :  { %4997 = vmatpush2.bf16.msra.mxu0 %v6882_v16  ;;  %v6962_v16 = vld [vmem:[#allocation7 + $0x214] ss:$8 sps:$4 sm:$0xff]  }
 0x40c   :  { %5038 = vmatpush2.bf16.msra.mxu1 %v6885_v31  ;;  %4998 = vmatprep.subr.bf16.mxu0 %v6890_v36  ;;  %v6965_v31 = vld [vmem:[#allocation7 + $0x314] ss:$8 sps:$4 sm:$0xff]   ;;  %v6960_v36 = vld [vmem:[#allocation7 + $0x210] ss:$8 sps:$4 sm:$0xff]  }
 0x40d   :  { %5039 = vmatprep.subr.bf16.mxu1 %v6893_v25  ;;  %v6963_v25 = vld [vmem:[#allocation7 + $0x310] ss:$8 sps:$4 sm:$0xff]  }
 0x40f   :  { %4999 = vmatpush2.bf16.msra.mxu0 %v6888_v10  ;;  %v6968_v10 = vld [vmem:[#allocation7 + $0x204] ss:$8 sps:$4 sm:$0xff]  }
 0x410   :  { %5040 = vmatpush2.bf16.msra.mxu1 %v6891_v42  ;;  %5000 = vmatprep.subr.bf16.mxu0 %v6896_v47  ;;  %v6971_v42 = vld [vmem:[#allocation7 + $0x304] ss:$8 sps:$4 sm:$0xff]   ;;  %v6966_v47 = vld [vmem:[#allocation7 + $0x200] ss:$8 sps:$4 sm:$0xff]  }
 0x411   :  { %5041 = vmatprep.subr.bf16.mxu1 %v6899_v18  ;;  %v6969_v18 = vld [vmem:[#allocation7 + $0x300] ss:$8 sps:$4 sm:$0xff]  }
 0x413   :  { %5001 = vmatpush2.bf16.msra.mxu0 %v6894_v14  ;;  %v6974_v14 = vld [vmem:[#allocation7 + $0x2f4] ss:$8 sps:$4 sm:$0xff]  }
 0x414   :  { %5042 = vmatpush2.bf16.msra.mxu1 %v6897_v41  ;;  %5002 = vmatprep.subr.bf16.mxu0 %v6902_v0  ;;  %v6977_v41 = vld [vmem:[#allocation7 + $0x3f4] ss:$8 sps:$4 sm:$0xff]   ;;  %v6972_v0 = vld [vmem:[#allocation7 + $0x2f0] ss:$8 sps:$4 sm:$0xff]  }
 0x415   :  { %5043 = vmatprep.subr.bf16.mxu1 %v6905_v61  ;;  %v6975_v61 = vld [vmem:[#allocation7 + $0x3f0] ss:$8 sps:$4 sm:$0xff]  }
 0x417   :  { %5003 = vmatpush2.bf16.msra.mxu0 %v6900_v35  ;;  %v6980_v35 = vld [vmem:[#allocation7 + $0x2e4] ss:$8 sps:$4 sm:$0xff]  }
 0x418   :  { %5044 = vmatpush2.bf16.msra.mxu1 %v6903_v29  ;;  %5004 = vmatprep.subr.bf16.mxu0 %v6908_v20  ;;  %v6983_v29 = vld [vmem:[#allocation7 + $0x3e4] ss:$8 sps:$4 sm:$0xff]   ;;  %v6978_v20 = vld [vmem:[#allocation7 + $0x2e0] ss:$8 sps:$4 sm:$0xff]  }
 0x419   :  { %5045 = vmatprep.subr.bf16.mxu1 %v6911_v32  ;;  %v6981_v32 = vld [vmem:[#allocation7 + $0x3e0] ss:$8 sps:$4 sm:$0xff]  }
 0x41b   :  { %5005 = vmatpush2.bf16.msra.mxu0 %v6906_v3  ;;  %v6986_v3 = vld [vmem:[#allocation7 + $0x2d4] ss:$8 sps:$4 sm:$0xff]  }
 0x41c   :  { %5046 = vmatpush2.bf16.msra.mxu1 %v6909_v11  ;;  %5006 = vmatprep.subr.bf16.mxu0 %v6914_v1  ;;  %v6989_v11 = vld [vmem:[#allocation7 + $0x3d4] ss:$8 sps:$4 sm:$0xff]   ;;  %v6984_v1 = vld [vmem:[#allocation7 + $0x2d0] ss:$8 sps:$4 sm:$0xff]  }
 0x41d   :  { %5047 = vmatprep.subr.bf16.mxu1 %v6917_v37  ;;  %v6987_v37 = vld [vmem:[#allocation7 + $0x3d0] ss:$8 sps:$4 sm:$0xff]  }
 0x41f   :  { %5007 = vmatpush2.bf16.msra.mxu0 %v6912_v62  ;;  %v6992_v62 = vld [vmem:[#allocation7 + $0x2c4] ss:$8 sps:$4 sm:$0xff]  }
 0x420   :  { %5048 = vmatpush2.bf16.msra.mxu1 %v6915_v45  ;;  %5008 = vmatprep.subr.bf16.mxu0 %v6920_v17  ;;  %v6995_v45 = vld [vmem:[#allocation7 + $0x3c4] ss:$8 sps:$4 sm:$0xff]   ;;  %v6990_v17 = vld [vmem:[#allocation7 + $0x2c0] ss:$8 sps:$4 sm:$0xff]  }
 0x421   :  { %5049 = vmatprep.subr.bf16.mxu1 %v6923_v55  ;;  %v6993_v55 = vld [vmem:[#allocation7 + $0x3c0] ss:$8 sps:$4 sm:$0xff]  }
 0x423   :  { %5009 = vmatpush2.bf16.msra.mxu0 %v6918_v13  ;;  %v6998_v13 = vld [vmem:[#allocation7 + $0x2b4] ss:$8 sps:$4 sm:$0xff]  }
 0x424   :  { %5050 = vmatpush2.bf16.msra.mxu1 %v6921_v46  ;;  %5060 = vmatprep.subr.bf16.mxu0 %v6926_v6  ;;  %v7001_v46 = vld [vmem:[#allocation7 + $0x3b4] ss:$8 sps:$4 sm:$0xff]   ;;  %v6996_v6 = vld [vmem:[#allocation7 + $0x2b0] ss:$8 sps:$4 sm:$0xff]  }
 0x425   :  { %5101 = vmatprep.subr.bf16.mxu1 %v6929_v51  ;;  %v6999_v51 = vld [vmem:[#allocation7 + $0x3b0] ss:$8 sps:$4 sm:$0xff]  }
 0x426   :  { %5011 = vmatmul.mubr.bf16.vlgmr.msra.gmra.mxu0 %v10859_v28  ;;  %v3998_v34 = vpop.f32.mrf.mxu0 }
 0x427   :  { %5052 = vmatmul.mubr.bf16.vlgmr.msra.gmra.mxu1 %v10860_v23  ;;  %v3999_v12 = vadd.f32 %v3998_v34, %v9686_v57  ;;  %v4039_v19 = vpop.f32.mrf.mxu1  ;;  %5061 = vmatpush1.bf16.msra.mxu0 %v6924_v58  ;;  %v6941_v23 = vld [vmem:[#allocation7 + $0x354] ss:$8 sps:$4 sm:$0xff]   ;;  %v7004_v58 = vld [vmem:[#allocation7 + $0x2a4] ss:$8 sps:$4 sm:$0xff]   ;;  %v7005_v34 = vld [vmem:[#allocation7 + $0x3a0] ss:$8 sps:$4 sm:$0xff]  }
 0x428   :  { %5092 = vmatprep.mubr.bf16.mxu0 %v9530_v59  ;;  %5102 = vmatpush1.bf16.msra.mxu1 %v6927_v56  ;;  %v4000_v49 = vpop.f32.mrf.mxu0  ;;  %v6936_v59 = vld [vmem:[#allocation7 + $0x250] ss:$8 sps:$4 sm:$0xff]   ;;  %v7007_v56 = vld [vmem:[#allocation7 + $0x3a4] ss:$8 sps:$4 sm:$0xff]  }
 0x429   :  { %v9696_v7 = vadd.f32 %v4039_v19, %v3999_v12  ;;  %5133 = vmatprep.mubr.bf16.mxu1 %v9536_v54  ;;  %v4001_v28 = vadd.f32 %v4000_v49, %v9690_v27  ;;  %v4041_v4 = vpop.f32.mrf.mxu1  ;;  %5062 = vmatprep.subr.bf16.mxu0 %v6932_v50  ;;  %v6947_v54 = vld [vmem:[#allocation7 + $0x344] ss:$8 sps:$4 sm:$0xff]   ;;  %v6942_v27 = vld [vmem:[#allocation7 + $0x240] ss:$8 sps:$4 sm:$0xff]   ;;  %v7013_v12 = vld [vmem:[#allocation7 + $0x394] ss:$8 sps:$4 sm:$0xff]  }
 0x42a   :  { %5103 = vmatprep.subr.bf16.mxu1 %v6935_v52  ;;  %v4002_v57 = vpop.f32.mrf.mxu0  ;;  %v7002_v50 = vld [vmem:[#allocation7 + $0x2a0] ss:$8 sps:$4 sm:$0xff]   ;;  %v7010_v52 = vld [vmem:[#allocation7 + $0x294] ss:$8 sps:$4 sm:$0xff]   ;;  %v7008_v19 = vld [vmem:[#allocation7 + $0x290] ss:$8 sps:$4 sm:$0xff]  }
 0x42b   :  { %v9700_v33 = vadd.f32 %v4041_v4, %v4001_v28  ;;  %v4043_v44 = vpop.f32.mrf.mxu1  ;;  %5063 = vmatpush1.bf16.msra.mxu0 %v6930_v22  ;;  %v7011_v22 = vld [vmem:[#allocation7 + $0x390] ss:$8 sps:$4 sm:$0xff]   ;;  %v7016_v49 = vld [vmem:[#allocation7 + $0x284] ss:$8 sps:$4 sm:$0xff]   ;;  %v7017_v28 = vld [vmem:[#allocation7 + $0x380] ss:$8 sps:$4 sm:$0xff]  }
 0x42c   :  { %5104 = vmatpush1.bf16.msra.mxu1 %v6933_v2  ;;  %v4003_v9 = vpop.f32.mrf.mxu0  ;;  %5064 = vmatprep.subr.bf16.mxu0 %v6938_v26  ;;  %v7019_v2 = vld [vmem:[#allocation7 + $0x384] ss:$8 sps:$4 sm:$0xff]   ;;  %v7014_v26 = vld [vmem:[#allocation7 + $0x280] ss:$8 sps:$4 sm:$0xff]  }
 0x42d   :  { %v4044_v43 = vpop.f32.mrf.mxu1  ;;  %5105 = vmatprep.subr.bf16.mxu1 %v6941_v23 }
 0x42f   :  { %5065 = vmatpush1.bf16.msra.mxu0 %v6936_v59 }
 0x430   :  { %5106 = vmatpush1.bf16.msra.mxu1 %v6939_v60  ;;  %5066 = vmatprep.subr.bf16.mxu0 %v6944_v39 }
 0x431   :  { %5107 = vmatprep.subr.bf16.mxu1 %v6947_v54 }
 0x433   :  { %5067 = vmatpush1.bf16.msra.mxu0 %v6942_v27 }
 0x434   :  { %5108 = vmatpush1.bf16.msra.mxu1 %v6945_v48  ;;  %5068 = vmatprep.subr.bf16.mxu0 %v6950_v15 }
 0x435   :  { %5109 = vmatprep.subr.bf16.mxu1 %v6953_v30 }
 0x437   :  { %5069 = vmatpush1.bf16.msra.mxu0 %v6948_v40 }
 0x438   :  { %5110 = vmatpush1.bf16.msra.mxu1 %v6951_v24  ;;  %5070 = vmatprep.subr.bf16.mxu0 %v6956_v8 }
 0x439   :  { %5111 = vmatprep.subr.bf16.mxu1 %v6959_v21 }
 0x43b   :  { %5071 = vmatpush1.bf16.msra.mxu0 %v6954_v53 }
 0x43c   :  { %5112 = vmatpush1.bf16.msra.mxu1 %v6957_v5  ;;  %5072 = vmatprep.subr.bf16.mxu0 %v6962_v16 }
 0x43d   :  { %5113 = vmatprep.subr.bf16.mxu1 %v6965_v31 }
 0x43f   :  { %5073 = vmatpush1.bf16.msra.mxu0 %v6960_v36 }
 0x440   :  { %5114 = vmatpush1.bf16.msra.mxu1 %v6963_v25  ;;  %5074 = vmatprep.subr.bf16.mxu0 %v6968_v10 }
 0x441   :  { %5115 = vmatprep.subr.bf16.mxu1 %v6971_v42 }
 0x443   :  { %5075 = vmatpush1.bf16.msra.mxu0 %v6966_v47 }
 0x444   :  { %5116 = vmatpush1.bf16.msra.mxu1 %v6969_v18  ;;  %5076 = vmatprep.subr.bf16.mxu0 %v6974_v14  ;;  %v9706_v18 = vpop.permute.xlu0 %5211 }
 0x445   :  { %5117 = vmatprep.subr.bf16.mxu1 %v6977_v41 }
 0x447   :  { %5077 = vmatpush2.bf16.msra.mxu0 %v6972_v0  ;;  %v9710_v0 = vpop.permute.xlu1 %5220 }
 0x448   :  { %5118 = vmatpush2.bf16.msra.mxu1 %v6975_v61  ;;  %5078 = vmatprep.subr.bf16.mxu0 %v6980_v35  ;;  %v9708_v41 = vpop.permute.xlu0 %5231 }
 0x449   :  { %5119 = vmatprep.subr.bf16.mxu1 %v6983_v29 }
 0x44b   :  { %5079 = vmatpush2.bf16.msra.mxu0 %v6978_v20  ;;  %v9714_v35 = vpop.permute.xlu1 %5242 }
 0x44c   :  { %5120 = vmatpush2.bf16.msra.mxu1 %v6981_v32  ;;  %5080 = vmatprep.subr.bf16.mxu0 %v6986_v3  ;;  %v9712_v61 = vpop.permute.xlu0 %5253 }
 0x44d   :  { %5121 = vmatprep.subr.bf16.mxu1 %v6989_v11 }
 0x44f   :  { %5081 = vmatpush2.bf16.msra.mxu0 %v6984_v1  ;;  %v9718_v20 = vpop.permute.xlu1 %5264 }
 0x450   :  { %5122 = vmatpush2.bf16.msra.mxu1 %v6987_v37  ;;  %5082 = vmatprep.subr.bf16.mxu0 %v6992_v62  ;;  %v9716_v29 = vpop.permute.xlu0 %5275 }
 0x451   :  { %5123 = vmatprep.subr.bf16.mxu1 %v6995_v45 }
 0x453   :  { %5083 = vmatpush2.bf16.msra.mxu0 %v6990_v17  ;;  %v9722_v3 = vpop.permute.xlu1 %5286 }
 0x454   :  { %5124 = vmatpush2.bf16.msra.mxu1 %v6993_v55  ;;  %5084 = vmatprep.subr.bf16.mxu0 %v6998_v13  ;;  %v9720_v32 = vpop.permute.xlu0 %5297  ;;  %10914 = vst [vmem:[#allocation12_spill] sm:$0xff] %v9722_v3 }
 0x455   :  { %5125 = vmatprep.subr.bf16.mxu1 %v7001_v46  ;;  %10913 = vst [vmem:[#allocation78_spill] sm:$0xff] %v9720_v32 }
 0x457   :  { %5085 = vmatpush2.bf16.msra.mxu0 %v6996_v6  ;;  %v9726_v1 = vpop.permute.xlu1 %5308 }
 0x458   :  { %5126 = vmatpush2.bf16.msra.mxu1 %v6999_v51  ;;  %5086 = vmatprep.subr.bf16.mxu0 %v7004_v58  ;;  %v9724_v11 = vpop.permute.xlu0 %5317 }
 0x459   :  { %5127 = vmatprep.subr.bf16.mxu1 %v7007_v56 }
 0x45b   :  { %5087 = vmatpush2.bf16.msra.mxu0 %v7002_v50  ;;  %v9730_v62 = vpop.permute.xlu1 %5328 }
 0x45c   :  { %5128 = vmatpush2.bf16.msra.mxu1 %v7005_v34  ;;  %5088 = vmatprep.subr.bf16.mxu0 %v7010_v52  ;;  %v9728_v37 = vpop.permute.xlu0 %5339 }
 0x45d   :  { %5129 = vmatprep.subr.bf16.mxu1 %v7013_v12 }
 0x45f   :  { %5089 = vmatpush2.bf16.msra.mxu0 %v7008_v19  ;;  %v9734_v17 = vpop.permute.xlu1 %5350 }
 0x460   :  { %5130 = vmatpush2.bf16.msra.mxu1 %v7011_v22  ;;  %5090 = vmatprep.subr.bf16.mxu0 %v7016_v49  ;;  %v9732_v45 = vpop.permute.xlu0 %5361 }
 0x461   :  { %5131 = vmatprep.subr.bf16.mxu1 %v7019_v2 }
 0x463   :  { %5091 = vmatpush2.bf16.msra.mxu0 %v7014_v26  ;;  %v9738_v13 = vpop.permute.xlu1 %5372 }
 0x464   :  { %5132 = vmatpush2.bf16.msra.mxu1 %v7017_v28  ;;  %v9736_v55 = vpop.permute.xlu0 %5383  ;;  %10916 = vst [vmem:[#allocation13_spill] sm:$0xff] %v9738_v13 }
 0x465   :  { %10915 = vst [vmem:[#allocation14_spill] sm:$0xff] %v9736_v55 }
 0x466   :  { %v4080_v4 = vpop.f32.mrf.mxu0  ;;  %5093 = vmatmul.mubr.bf16.vlgmr.msra.gmra.mxu0 %v10911_v38 }
 0x467   :  { %v4081_v23 = vadd.f32 %v4080_v4, %v9696_v7  ;;  %v4121_v57 = vpop.f32.mrf.mxu1  ;;  %5134 = vmatmul.mubr.bf16.vlgmr.msra.gmra.mxu1 %v10912_v63  ;;  %v9742_v6 = vpop.permute.xlu1 %5394 }
 0x468   :  { %v4082_v44 = vpop.f32.mrf.mxu0  ;;  %v9740_v46 = vpop.permute.xlu0 %5415  ;;  %10917 = vst [vmem:[#allocation15_spill] sm:$0xff] %v9742_v6 }
 0x469   :  { %v4122_v59 = vadd.f32 %v4121_v57, %v4081_v23  ;;  %v4083_v9 = vadd.f32 %v4082_v44, %v9700_v33  ;;  %v4123_v60 = vpop.f32.mrf.mxu1 }
 0x46a   :  { %v4084_v39 = vpop.f32.mrf.mxu0 }
 0x46b   :  { %v4124_v43 = vadd.f32 %v4123_v60, %v4083_v9  ;;  %v4125_v54 = vpop.f32.mrf.mxu1  ;;  %v9746_v26 = vpop.permute.xlu1 %5424 }
 0x46c   :  { %v4085_v27 = vpop.f32.mrf.mxu0  ;;  %v9744_v12 = vpop.permute.xlu0 %5435 }
 0x46d   :  { %v4126_v48 = vpop.f32.mrf.mxu1 }
 0x46f   :  { %v9758_v60 = vpop.permute.xlu1 %5446 }
 0x470   :  { %v9754_v9 = vpop.permute.xlu0 %5457 }
 0x474   :  { %v9764_v39 = vpop.permute.xlu0 %5479 }
 0x475   :  { %10918 = vst [vmem:[#allocation16_spill] sm:$0xff] %v9764_v39 }
 0x478   :  { %v9774_v54 = vpop.permute.xlu0 %5501 }
 0x479   :  { %10920 = vst [vmem:[#allocation18_spill] sm:$0xff] %v9774_v54 }
 0x47c   :  { %v9784_v48 = vpop.permute.xlu0 %5531 }
 0x47d   :  { %10922 = vst [vmem:[#allocation20_spill] sm:$0xff] %v9784_v48 }
 0x4a6   :  { %v4162_v15 = vpop.f32.mrf.mxu0 }
 0x4a7   :  { %v4163_v30 = vadd.f32 %v4162_v15, %v4122_v59  ;;  %v4203_v40 = vpop.f32.mrf.mxu1 }
 0x4a8   :  { %v4164_v24 = vpop.f32.mrf.mxu0 }
 0x4a9   :  { %v4204_v38 = vadd.f32 %v4203_v40, %v4163_v30  ;;  %v4165_v8 = vadd.f32 %v4164_v24, %v4124_v43  ;;  %v4205_v7 = vpop.f32.mrf.mxu1  ;;  %v9768_v43 = vpop.permute.xlu1 %5468  ;;  %v6607_v24 = vld [vmem:[%s10306_s4 + $0x118] sm:$0xff] }
 0x4aa   :  { %v4166_v21 = vpop.f32.mrf.mxu0  ;;  %10919 = vst [vmem:[#allocation17_spill] sm:$0xff] %v9768_v43  ;;  %v9794_v30 = vpop.permute.xlu0 %5553 }
 0x4ab   :  { %v4206_v53 = vadd.f32 %v4205_v7, %v4165_v8  ;;  %v4207_v63 = vpop.f32.mrf.mxu1  ;;  %10923 = vst [vmem:[#allocation21_spill] sm:$0xff] %v9794_v30  ;;  %v6616_v7 = vld [vmem:[%s10307_s5 + $0x118] sm:$0xff]  ;;  %v10944_v30 = vld [vmem:[#allocation83_spill] sm:$0xff] }
 0x4ac   :  { %v4167_v5 = vpop.f32.mrf.mxu0 }
 0x4ad   :  { %v4208_v16 = vpop.f32.mrf.mxu1  ;;  %v9778_v27 = vpop.permute.xlu1 %5490  ;;  %v5946_v5 = vld [vmem:[%s10308_s6] sm:$0xff] }
 0x4ae   :  { %10921 = vst [vmem:[#allocation19_spill] sm:$0xff] %v9778_v27  ;;  %v9810_v8 = vpop.permute.xlu0 %5575  ;;  %v10945_v27 = vld [vmem:[#allocation84_spill] sm:$0xff] }
 0x4af   :  { %10925 = vst [vmem:[#allocation23_spill] sm:$0xff] %v9810_v8  ;;  %v10940_v8 = vld [vmem:[#allocation88_spill] sm:$0xff] }
 0x4b1   :  { %v9788_v15 = vpop.permute.xlu1 %5522 }
 0x4b2   :  { %v9820_v63 = vpop.permute.xlu0 %5597 }
 0x4b3   :  { %10926 = vst [vmem:[#allocation24_spill] sm:$0xff] %v9820_v63 }
 0x4b5   :  { %v9798_v40 = vpop.permute.xlu1 %5542 }
 0x4b6   :  { %10924 = vst [vmem:[#allocation22_spill] sm:$0xff] %v9798_v40 }
 0x4b9   :  { %v9815_v21 = vpop.permute.xlu1 %5564 }
 0x4bd   :  { %v9825_v16 = vpop.permute.xlu1 %5586 }
 0x4be   :  { %10927 = vst [vmem:[#allocation25_spill] sm:$0xff] %v9825_v16 }
 0x4e6   :  { %v5012_v31 = vpop.f32.mrf.mxu0 }
 0x4e7   :  { %v5053_v33 = vpop.f32.mrf.mxu1 }
 0x4e8   :  { %v5014_v36 = vpop.f32.mrf.mxu0  ;;  %v5054_v51 = vadd.f32 %v5053_v33, %v5012_v31  ;;  %v9827_v31 = vpop.permute.xlu0 %5629 }
 0x4e9   :  { %v5055_v25 = vpop.f32.mrf.mxu1  ;;  %10928 = vst [vmem:[#allocation26_spill] sm:$0xff] %v9827_v31  ;;  %v9829_v33 = vpop.permute.xlu1 %5608 }
 0x4ea   :  { %v5016_v10 = vpop.f32.mrf.mxu0  ;;  %v5056_v56 = vadd.f32 %v5055_v25, %v5014_v36  ;;  %10929 = vst [vmem:[#allocation27_spill] sm:$0xff] %v9829_v33 }
 0x4eb   :  { %v5057_v42 = vpop.f32.mrf.mxu1 }
 0x4ec   :  { %v5017_v47 = vpop.f32.mrf.mxu0  ;;  %v9831_v36 = vpop.permute.xlu0 %5649 }
 0x4ed   :  { %v5058_v14 = vpop.f32.mrf.mxu1  ;;  %10930 = vst [vmem:[#allocation28_spill] sm:$0xff] %v9831_v36  ;;  %v9833_v25 = vpop.permute.xlu1 %5638 }
 0x4ee   :  { %10931 = vst [vmem:[#allocation29_spill] sm:$0xff] %v9833_v25 }
 0x4f0   :  { %v5672_v10 = vpop.permute.xlu0 %5671 }
 0x4f1   :  { %v9835_v42 = vpop.permute.xlu1 %5660 }
 0x4f2   :  { %10932 = vst [vmem:[#allocation30_spill] sm:$0xff] %v9835_v42 }
 0x4f4   :  { %v5737_v47 = vpop.permute.xlu0 %5736 }
 0x4f5   :  { %v9837_v14 = vpop.permute.xlu1 %5682 }
 0x4f6   :  { %10933 = vst [vmem:[#allocation31_spill] sm:$0xff] %v9837_v14 }
 0x526   :  { %v5094_v58 = vpop.f32.mrf.mxu0 }
 0x527   :  { %v5095_v50 = vadd.f32 %v5094_v58, %v5054_v51  ;;  %v5135_v34 = vpop.f32.mrf.mxu1  ;;  %v9839_v51 = vpop.permute.xlu0 %5756 }
 0x528   :  { %v5096_v52 = vpop.f32.mrf.mxu0  ;;  %v5746_v58 = vpop.permute.xlu1 %5745 }
 0x529   :  { %v5136_v19 = vadd.f32 %v5135_v34, %v5095_v50  ;;  %v5097_v22 = vadd.f32 %v5096_v52, %v5056_v56  ;;  %v5137_v49 = vpop.f32.mrf.mxu1 }
 0x52a   :  { %v5098_v2 = vpop.f32.mrf.mxu0 }
 0x52b   :  { %v9748_v28 = vadd.f32 %v5136_v19, %v4204_v38  ;;  %v5138_v4 = vadd.f32 %v5137_v49, %v5097_v22  ;;  %v5139_v23 = vpop.f32.mrf.mxu1  ;;  %v6614_v38 = vld [vmem:[%s10307_s5 + $0x108] sm:$0xff]  ;;  %v9841_v56 = vpop.permute.xlu0 %5852 }
 0x52c   :  { %v5099_v57 = vpop.f32.mrf.mxu0  ;;  %v9843_v50 = vpop.permute.xlu1 %5843 }
 0x52d   :  { %v9750_v44 = vadd.f32 %v5138_v4, %v4206_v53  ;;  %v5140_v59 = vpop.f32.mrf.mxu1  ;;  %5144 = vrot.lane.b32.xlu0 %v9748_v28, %s7118_s26  ;;  %v6615_v53 = vld [vmem:[%s10307_s5 + $0x110] sm:$0xff]  ;;  %v9881_v25 = vmul.f32 %v9712_v61, %v9748_v28  ;;  %v9899_v54 = vmul.f32 %v9815_v21, %v9748_v28  ;;  %s7126_s5 = smov [#allocation8]  }
 0x52e   :  { %s5964_s6 = sshll.u32 %s7126_s5, 4  ;;  %s5965_s6 = int_to_ptr.vmem [resolvable:$true] %s5964_s6 }
 0x52f   :  { %5146 = vrot.lane.b32.xlu1 %v9750_v44, %s7118_s26  ;;  %v9845_v34 = vpop.permute.xlu0 %5863  ;;  %10943 = vst [vmem:[#allocation38_spill] sm:$0xff] %v9899_v54  ;;  %s7084_s9 = scalar_lea.vmem %s5965_s6, 256  ;;  %p7089_p2 = scmp.lt.s32.totalorder %s5965_s6, %s5965_s6 }
 0x530   :  { %v9847_v52 = vpop.permute.xlu1 %5767  ;;  %p7085_p1 = scmp.ne.s32.totalorder %s5965_s6, %s7084_s9  ;;  %p7090_p3 = scmp.lt.s32.totalorder %s7084_s9, %s7084_s9 }
 0x531   :  { %5152 = vrot.lane.b32.xlu0 %v9748_v28, %s7119_s28 }
 0x532   :  { %p7091_p4 = por %p7090_p3, %p7089_p2 }
 0x533   :  { %5154 = vrot.lane.b32.xlu1 %v9750_v44, %s7119_s28  ;;  %v9849_v19 = vpop.permute.xlu0 %5874 }
 0x534   :  { %v5779_v22 = vpop.permute.xlu1 %5778  ;;  %p7092_p5 = pnand %p7091_p4, %p7085_p1 }
 0x535   :  { %5160 = vrot.lane.b32.xlu0 %v9748_v28, %s7120_s20  ;;  %v9874_v16 = vmul.f32 %v5779_v22, %v9748_v28 }
 0x537   :  { %5162 = vrot.lane.b32.xlu1 %v9750_v44, %s7120_s20  ;;  %v9851_v49 = vpop.permute.xlu0 %5789 }
 0x538   :  { %v9853_v2 = vpop.permute.xlu1 %5693 }
 0x539   :  { %5168 = vrot.lane.b32.xlu0 %v9748_v28, %s7121_s13  ;;  %10934 = vst [vmem:[#allocation32_spill] sm:$0xff] %v9853_v2 }
 0x53b   :  { %5170 = vrot.lane.b32.xlu1 %v9750_v44, %s7121_s13  ;;  %v9855_v4 = vpop.permute.xlu0 %5704 }
 0x53c   :  { %10935 = vst [vmem:[#allocation33_spill] sm:$0xff] %v9855_v4  ;;  %v5886_v23 = vpop.permute.xlu1 %5885 }
 0x53d   :  { %5176 = vrot.lane.b32.xlu0 %v9748_v28, %s7122_s22  ;;  %v9918_v54 = vmul.f32 %v5886_v23, %v9750_v44 }
 0x53f   :  { %5178 = vrot.lane.b32.xlu1 %v9750_v44, %s7122_s22  ;;  %v9857_v57 = vpop.permute.xlu0 %5896 }
 0x540   :  { %v9859_v59 = vpop.permute.xlu1 %5800 }
 0x541   :  { %5184 = vrot.lane.b32.xlu0 %v9748_v28, %s7123_s23 }
 0x543   :  { %5186 = vrot.lane.b32.xlu1 %v9750_v44, %s7123_s23 }
 0x545   :  { %5192 = vrot.lane.b32.xlu0 %v9748_v28, %s7124_s21 }
 0x547   :  { %5194 = vrot.lane.b32.xlu1 %v9750_v44, %s7124_s21 }
 0x549   :  { %5200 = vrot.lane.b32.xlu0 %v9748_v28, %s7125_s29 }
 0x54b   :  { %5202 = vrot.lane.b32.xlu1 %v9750_v44, %s7125_s29 }
 0x54d   :  { %5822 = vperm.xlu0 %6634, %v6607_v24   ;;  %v9861_v24 = vpop.permute.xlu0 %5811 }
 0x54f   :  { %5907 = vperm.xlu1 %6635, %v6614_v38   ;;  %v9863_v38 = vpop.permute.xlu1 %5715 }
 0x550   :  { %10936 = vst [vmem:[#allocation34_spill] sm:$0xff] %v9863_v38  ;;  %v9877_v38 = vmul.f32 %v5886_v23, %v9748_v28  ;;  %v9948_v23 = vmul.f32 %v9815_v21, %v9750_v44 }
 0x551   :  { %5929 = vperm.xlu0 %6634, %v6616_v7  }
 0x552   :  { %10951 = vst [vmem:[#allocation42_spill] sm:$0xff] %v9948_v23 }
 0x553   :  { %5918 = vperm.xlu1 %6635, %v6615_v53  }
 0x557   :  { %5949 = vperm.xlu1 %6635, %v5946_v5  }
 0x59f   :  { %v5145_v7 = vpop.permute.xlu0 %5144 }
 0x5a1   :  { %v5147_v53 = vpop.permute.xlu1 %5146 }
 0x5a2   :  { %v5148_v33 = vsel %vm91_vm1, %v5145_v7, %v5147_v53  ;;  %v5149_v2 = vsel %vm91_vm1, %v5147_v53, %v5145_v7  ;;  %v9885_v7 = vmul.f32 %v9734_v17, %v9748_v28  ;;  %v10938_v53 = vld [vmem:[#allocation87_spill] sm:$0xff] }
 0x5a3   :  { %v5153_v5 = vpop.permute.xlu0 %5152  ;;  %v9888_v31 = vmul.f32 %v5149_v2, %v10938_v53  ;;  %v9908_v2 = vmul.f32 %v5779_v22, %v9750_v44  ;;  %v10949_v22 = vld [vmem:[#allocation91_spill] sm:$0xff] }
 0x5a5   :  { %v5155_v63 = vpop.permute.xlu1 %5154  ;;  %10939 = vst [vmem:[#allocation35_spill] sm:$0xff] %v9888_v31  ;;  %v5846_v55 = vmul.f32 %v9843_v50, %v9888_v31  ;;  %v10001_v13 = vmul.f32 %v9788_v15, %v9888_v31 }
 0x5a6   :  { %v5156_v4 = vsel %vm112_vm0, %v5153_v5, %v5155_v63  ;;  %v5157_v42 = vsel %vm112_vm0, %v5155_v63, %v5153_v5  ;;  %v9891_v63 = vmul.f32 %v5148_v33, %v10940_v8  ;;  %v9895_v5 = vmul.f32 %v9754_v9, %v9748_v28 }
 0x5a7   :  { %v5161_v36 = vpop.permute.xlu0 %5160  ;;  %v9902_v40 = vmul.f32 %v5157_v42, %v10944_v30  ;;  %v9905_v48 = vmul.f32 %v5156_v4, %v10945_v27  ;;  %v9911_v8 = vmul.f32 %v5672_v10, %v9748_v28  ;;  %v9922_v27 = vmul.f32 %v9712_v61, %v9750_v44  ;;  %v10948_v30 = vld [vmem:[#allocation90_spill] sm:$0xff]  ;;  %10955 = vst [vmem:[#allocation44_spill] sm:$0xff] %v10001_v13 }
 0x5a8   :  { %10941 = vst [vmem:[#allocation36_spill] sm:$0xff] %v9891_v63  ;;  %10942 = vst [vmem:[#allocation37_spill] sm:$0xff] %v9895_v5  ;;  %v9944_v61 = vmul.f32 %v9706_v18, %v9891_v63 }
 0x5a9   :  { %10946 = vst [vmem:[#allocation39_spill] sm:$0xff] %v9905_v48  ;;  %v5163_v39 = vpop.permute.xlu1 %5162  ;;  %10947 = vst [vmem:[#allocation40_spill] sm:$0xff] %v9911_v8  ;;  %v9932_v8 = vmul.f32 %v9734_v17, %v9750_v44  ;;  %v9955_v17 = vmul.f32 %v9726_v1, %v9888_v31 }
 0x5aa   :  { %v5164_v33 = vsel %vm134_vm2, %v5161_v36, %v5163_v39  ;;  %v5165_v53 = vsel %vm134_vm2, %v5163_v39, %v5161_v36  ;;  %v9936_v39 = vmul.f32 %v9754_v9, %v9750_v44  ;;  %v9940_v36 = vmul.f32 %v9706_v18, %v9888_v31 }
 0x5ab   :  { %v9925_v42 = vmul.f32 %v5165_v53, %v10948_v30  ;;  %v9928_v4 = vmul.f32 %v5164_v33, %v10949_v22  ;;  %v5169_v28 = vpop.permute.xlu0 %5168  ;;  %v9951_v33 = vmul.f32 %v5672_v10, %v9750_v44  ;;  %v9959_v9 = vmul.f32 %v9726_v1, %v9891_v63  ;;  %v10954_v1 = vld [vmem:[#allocation93_spill] sm:$0xff] }
 0x5ac   :  { %10950 = vst [vmem:[#allocation41_spill] sm:$0xff] %v9936_v39  ;;  %v5748_v30 = vmul.f32 %v5746_v58, %v9902_v40  ;;  %v5749_v18 = vmul.f32 %v5746_v58, %v9905_v48  ;;  %v5739_v10 = vmul.f32 %v5737_v47, %v9888_v31  ;;  %v5740_v22 = vmul.f32 %v5737_v47, %v9891_v63 }
 0x5ad   :  { %10952 = vst [vmem:[#allocation43_spill] sm:$0xff] %v9951_v33  ;;  %v5171_v53 = vpop.permute.xlu1 %5170  ;;  %v10953_v33 = vld [vmem:[#allocation92_spill] sm:$0xff]  ;;  %v5759_v58 = vmul.f32 %v9839_v51, %v9925_v42  ;;  %v5760_v5 = vmul.f32 %v9839_v51, %v9928_v4  ;;  %v9985_v47 = vmul.f32 %v9740_v46, %v9891_v63 }
 0x5ae   :  { %v5172_v21 = vsel %vm156_vm3, %v5169_v28, %v5171_v53  ;;  %v5173_v44 = vsel %vm156_vm3, %v5171_v53, %v5169_v28  ;;  %v9981_v28 = vmul.f32 %v9740_v46, %v9888_v31  ;;  %v5856_v53 = vmul.f32 %v9841_v56, %v9905_v48 }
 0x5af   :  { %v9970_v23 = vmul.f32 %v5173_v44, %v10953_v33  ;;  %v9973_v43 = vmul.f32 %v5172_v21, %v10954_v1  ;;  %v5177_v39 = vpop.permute.xlu0 %5176  ;;  %v5855_v33 = vmul.f32 %v9841_v56, %v9902_v40  ;;  %v5750_v44 = vadd.f32 %v5748_v30, %v5739_v10 }
 0x5b0   :  { %v5751_v1 = vadd.f32 %v5749_v18, %v5740_v22  ;;  %v5847_v46 = vmul.f32 %v9843_v50, %v9891_v63  ;;  %v10005_v56 = vmul.f32 %v9788_v15, %v9891_v63  ;;  %v5223_v22 = vmul.f32 %v9710_v0, %v9902_v40 }
 0x5b1   :  { %v5179_v21 = vpop.permute.xlu1 %5178  ;;  %v5770_v51 = vmul.f32 %v9847_v52, %v9970_v23  ;;  %v5771_v6 = vmul.f32 %v9847_v52, %v9973_v43  ;;  %v5761_v18 = vadd.f32 %v5759_v58, %v5750_v44  ;;  %v5224_v50 = vmul.f32 %v9710_v0, %v9905_v48  ;;  %v10957_v58 = vld [vmem:[#allocation94_spill] sm:$0xff] }
 0x5b2   :  { %10956 = vst [vmem:[#allocation45_spill] sm:$0xff] %v10005_v56  ;;  %v5180_v30 = vsel %vm178_vm4, %v5177_v39, %v5179_v21  ;;  %v5181_v52 = vsel %vm178_vm4, %v5179_v21, %v5177_v39  ;;  %v5762_v10 = vadd.f32 %v5760_v5, %v5751_v1  ;;  %v5866_v31 = vmul.f32 %v9845_v34, %v9925_v42  ;;  %v10958_v21 = vld [vmem:[#allocation95_spill] sm:$0xff] }
 0x5b3   :  { %v5867_v15 = vmul.f32 %v9845_v34, %v9928_v4  ;;  %v5185_v63 = vpop.permute.xlu0 %5184  ;;  %v5772_v13 = vadd.f32 %v5770_v51, %v5761_v18  ;;  %v5857_v3 = vadd.f32 %v5855_v33, %v5846_v55  ;;  %v5858_v39 = vadd.f32 %v5856_v53, %v5847_v46 }
 0x5b4   :  { %v5773_v32 = vadd.f32 %v5771_v6, %v5762_v10  ;;  %v10020_v5 = vmul.f32 %v5180_v30, %v10957_v58  ;;  %v10023_v44 = vmul.f32 %v5181_v52, %v10958_v21  ;;  %v5877_v0 = vmul.f32 %v9849_v19, %v9970_v23 }
 0x5b5   :  { %v5187_v56 = vpop.permute.xlu1 %5186  ;;  %v5878_v1 = vmul.f32 %v9849_v19, %v9973_v43  ;;  %v5320_v34 = vmul.f32 %v9724_v11, %v9902_v40  ;;  %v5321_v6 = vmul.f32 %v9724_v11, %v9905_v48  ;;  %v10035_v55 = vmul.f32 %v9746_v26, %v9902_v40 }
 0x5b6   :  { %v10039_v33 = vmul.f32 %v9746_v26, %v9905_v48  ;;  %v5234_v53 = vmul.f32 %v9708_v41, %v9925_v42  ;;  %v5235_v19 = vmul.f32 %v9708_v41, %v9928_v4  ;;  %v5868_v51 = vadd.f32 %v5866_v31, %v5857_v3 }
 0x5b7   :  { %v5869_v46 = vadd.f32 %v5867_v15, %v5858_v39  ;;  %v5188_v30 = vsel %vm200_vm5, %v5185_v63, %v5187_v56  ;;  %v5189_v11 = vsel %vm200_vm5, %v5187_v56, %v5185_v63  ;;  %v5783_v18 = vadd.f32 %v9874_v16, %v5772_v13  ;;  %v5193_v31 = vpop.permute.xlu0 %5192  ;;  %v10960_v56 = vld [vmem:[#allocation97_spill] sm:$0xff] }
 0x5b8   :  { %v5784_v26 = vadd.f32 %v9908_v2, %v5773_v32  ;;  %v5792_v10 = vmul.f32 %v9851_v49, %v10020_v5  ;;  %v5793_v58 = vmul.f32 %v9851_v49, %v10023_v44  ;;  %v5879_v41 = vadd.f32 %v5877_v0, %v5868_v51  ;;  %v10959_v49 = vld [vmem:[#allocation96_spill] sm:$0xff] }
 0x5b9   :  { %v5195_v52 = vpop.permute.xlu1 %5194  ;;  %v5880_v3 = vadd.f32 %v5878_v1, %v5869_v46  ;;  %v5225_v15 = vadd.f32 %v5223_v22, %v9940_v36  ;;  %v5226_v39 = vadd.f32 %v5224_v50, %v9944_v61  ;;  %v5245_v63 = vmul.f32 %v9714_v35, %v9970_v23 }
 0x5ba   :  { %v5246_v13 = vmul.f32 %v9714_v35, %v9973_v43  ;;  %v5331_v32 = vmul.f32 %v9730_v62, %v9925_v42  ;;  %v5332_v16 = vmul.f32 %v9730_v62, %v9928_v4  ;;  %v10066_v2 = vmul.f32 %v5188_v30, %v10959_v49 }
 0x5bb   :  { %v10069_v21 = vmul.f32 %v5189_v11, %v10960_v56  ;;  %v5196_v36 = vsel %vm222_vm6, %v5193_v31, %v5195_v52  ;;  %v5197_v61 = vsel %vm222_vm6, %v5195_v52, %v5193_v31  ;;  %v5236_v22 = vadd.f32 %v5234_v53, %v5225_v15  ;;  %v10961_v56 = vld [vmem:[#allocation99_spill] sm:$0xff]  ;;  %v10962_v53 = vld [vmem:[#allocation100_spill] sm:$0xff]  ;;  %v5201_v52 = vpop.permute.xlu0 %5200 }
 0x5bc   :  { %v5237_v35 = vadd.f32 %v5235_v19, %v5226_v39  ;;  %v5794_v50 = vadd.f32 %v5792_v10, %v5783_v18  ;;  %v5795_v0 = vadd.f32 %v5793_v58, %v5784_v26  ;;  %v5890_v1 = vadd.f32 %v9877_v38, %v5879_v41 }
 0x5bd   :  { %v5891_v62 = vadd.f32 %v9918_v54, %v5880_v3  ;;  %v5203_v51 = vpop.permute.xlu1 %5202  ;;  %v5899_v46 = vmul.f32 %v9857_v57, %v10020_v5  ;;  %v5900_v30 = vmul.f32 %v9857_v57, %v10023_v44  ;;  %v5247_v11 = vadd.f32 %v5245_v63, %v5236_v22 }
 0x5be   :  { %v5248_v49 = vadd.f32 %v5246_v13, %v5237_v35  ;;  %v10082_v48 = vmul.f32 %v5196_v36, %v10961_v56  ;;  %v10085_v19 = vmul.f32 %v5197_v61, %v10962_v53  ;;  %v5803_v38 = vmul.f32 %v9859_v59, %v10066_v2  ;;  %v10963_v36 = vld [vmem:[#allocation101_spill] sm:$0xff] }
 0x5bf   :  { %v5804_v54 = vmul.f32 %v9859_v59, %v10069_v21  ;;  %v5267_v18 = vmul.f32 %v9718_v20, %v10020_v5  ;;  %v5268_v57 = vmul.f32 %v9718_v20, %v10023_v44  ;;  %v5322_v26 = vadd.f32 %v5320_v34, %v9955_v17 }
 0x5c0   :  { %v5323_v10 = vadd.f32 %v5321_v6, %v9959_v9  ;;  %v5204_v58 = vsel %vm244_vm7, %v5201_v52, %v5203_v51  ;;  %v5205_v41 = vsel %vm244_vm7, %v5203_v51, %v5201_v52  ;;  %v5342_v59 = vmul.f32 %v9728_v37, %v9970_v23 }
 0x5c1   :  { %v5343_v3 = vmul.f32 %v9728_v37, %v9973_v43  ;;  %v5258_v31 = vadd.f32 %v9881_v25, %v5247_v11  ;;  %v5259_v20 = vadd.f32 %v9922_v27, %v5248_v49  ;;  %v5333_v15 = vadd.f32 %v5331_v32, %v5322_v26  ;;  %v10964_v27 = vld [vmem:[#allocation102_spill] sm:$0xff] }
 0x5c2   :  { %v5334_v17 = vadd.f32 %v5332_v16, %v5323_v10  ;;  %v5805_v34 = vadd.f32 %v5803_v38, %v5794_v50  ;;  %v5806_v9 = vadd.f32 %v5804_v54, %v5795_v0  ;;  %v10107_v6 = vadd.f32 %v5899_v46, %v5890_v1  ;;  %v10968_v26 = vld [vmem:[#allocation14_spill] sm:$0xff] }
 0x5c3   :  { %v10109_v39 = vadd.f32 %v5900_v30, %v5891_v62  ;;  %v5814_v14 = vmul.f32 %v9861_v24, %v10082_v48  ;;  %v5815_v63 = vmul.f32 %v9861_v24, %v10085_v19  ;;  %v5344_v13 = vadd.f32 %v5342_v59, %v5333_v15 }
 0x5c4   :  { %v5345_v37 = vadd.f32 %v5343_v3, %v5334_v17  ;;  %v10116_v25 = vmul.f32 %v5204_v58, %v10963_v36  ;;  %v10119_v32 = vmul.f32 %v5205_v41, %v10964_v27  ;;  %v5278_v16 = vmul.f32 %v9716_v29, %v10066_v2 }
 0x5c5   :  { %v5279_v61 = vmul.f32 %v9716_v29, %v10069_v21  ;;  %v5269_v22 = vadd.f32 %v5267_v18, %v5258_v31  ;;  %v5270_v35 = vadd.f32 %v5268_v57, %v5259_v20  ;;  %v5429_v50 = vadd.f32 %v10035_v55, %v9981_v28  ;;  %v10965_v55 = vld [vmem:[#allocation12_spill] sm:$0xff] }
 0x5c6   :  { %v5430_v24 = vadd.f32 %v10039_v33, %v9985_v47  ;;  %v5438_v0 = vmul.f32 %v9744_v12, %v9925_v42  ;;  %v5439_v1 = vmul.f32 %v9744_v12, %v9928_v4  ;;  %v5449_v62 = vmul.f32 %v9758_v60, %v9970_v23 }
 0x5c7   :  { %v5450_v29 = vmul.f32 %v9758_v60, %v9973_v43  ;;  %v5355_v51 = vadd.f32 %v9885_v7, %v5344_v13  ;;  %v5356_v46 = vadd.f32 %v9932_v8, %v5345_v37  ;;  %v5364_v28 = vmul.f32 %v9732_v45, %v10020_v5  ;;  %v10966_v60 = vld [vmem:[#allocation78_spill] sm:$0xff]  ;;  %v10967_v8 = vld [vmem:[#allocation13_spill] sm:$0xff]  ;;  %v10969_v37 = vld [vmem:[#allocation15_spill] sm:$0xff] }
 0x5c8   :  { %v5365_v47 = vmul.f32 %v9732_v45, %v10023_v44  ;;  %v5289_v33 = vmul.f32 %v10965_v55, %v10082_v48  ;;  %v5290_v12 = vmul.f32 %v10965_v55, %v10085_v19  ;;  %v5440_v30 = vadd.f32 %v5438_v0, %v5429_v50  ;;  %v5823_v15 = vpop.permute.xlu0 %5822 }
 0x5c9   :  { %v5441_v11 = vadd.f32 %v5439_v1, %v5430_v24  ;;  %v5300_v49 = vmul.f32 %v10966_v60, %v10116_v25  ;;  %v5301_v7 = vmul.f32 %v10966_v60, %v10119_v32  ;;  %v5375_v56 = vmul.f32 %v10967_v8, %v10066_v2  ;;  %v10974_v60 = vld [vmem:[#allocation20_spill] sm:$0xff] }
 0x5ca   :  { %v5376_v45 = vmul.f32 %v10967_v8, %v10069_v21  ;;  %v5280_v53 = vadd.f32 %v5278_v16, %v5269_v22  ;;  %v5281_v38 = vadd.f32 %v5279_v61, %v5270_v35  ;;  %v5451_v54 = vadd.f32 %v5449_v62, %v5440_v30  ;;  %v5908_v3 = vpop.permute.xlu1 %5907  ;;  %v10970_v16 = vld [vmem:[#allocation37_spill] sm:$0xff] }
 0x5cb   :  { %v5452_v52 = vadd.f32 %v5450_v29, %v5441_v11  ;;  %v5366_v18 = vadd.f32 %v5364_v28, %v5355_v51  ;;  %v5367_v57 = vadd.f32 %v5365_v47, %v5356_v46  ;;  %v5386_v10 = vmul.f32 %v10968_v26, %v10082_v48  ;;  %v10971_v22 = vld [vmem:[#allocation41_spill] sm:$0xff]  ;;  %v10973_v47 = vld [vmem:[#allocation16_spill] sm:$0xff] }
 0x5cc   :  { %v5387_v58 = vmul.f32 %v10968_v26, %v10085_v19  ;;  %v10159_v41 = vadd.f32 %v5814_v14, %v5805_v34  ;;  %v10161_v59 = vadd.f32 %v5815_v63, %v5806_v9  ;;  %v5291_v31 = vadd.f32 %v5289_v33, %v5280_v53  ;;  %v10972_v34 = vld [vmem:[#allocation17_spill] sm:$0xff] }
 0x5cd   :  { %v5292_v20 = vadd.f32 %v5290_v12, %v5281_v38  ;;  %v5377_v17 = vadd.f32 %v5375_v56, %v5366_v18  ;;  %v5378_v13 = vadd.f32 %v5376_v45, %v5367_v57  ;;  %v5397_v36 = vmul.f32 %v10969_v37, %v10116_v25  ;;  %v10976_v56 = vld [vmem:[#allocation19_spill] sm:$0xff]  ;;  %v10977_v38 = vld [vmem:[#allocation22_spill] sm:$0xff]  ;;  %v10978_v18 = vld [vmem:[#allocation44_spill] sm:$0xff] }
 0x5ce   :  { %v5398_v27 = vmul.f32 %v10969_v37, %v10119_v32  ;;  %v5462_v61 = vadd.f32 %v10970_v16, %v5451_v54  ;;  %v5463_v35 = vadd.f32 %v10971_v22, %v5452_v52  ;;  %v5471_v9 = vmul.f32 %v10972_v34, %v10020_v5  ;;  %v5919_v12 = vpop.permute.xlu1 %5918  ;;  %v10979_v26 = vld [vmem:[#allocation45_spill] sm:$0xff] }
 0x5cf   :  { %v5472_v14 = vmul.f32 %v10972_v34, %v10023_v44  ;;  %v10173_v63 = vadd.f32 %v5300_v49, %v5291_v31  ;;  %v10175_v50 = vadd.f32 %v5301_v7, %v5292_v20  ;;  %v5388_v24 = vadd.f32 %v5386_v10, %v5377_v17  ;;  %v10975_v7 = vld [vmem:[#allocation39_spill] sm:$0xff] }
 0x5d0   :  { %v5389_v0 = vadd.f32 %v5387_v58, %v5378_v13  ;;  %v10178_v1 = vmul.f32 %v5823_v15, %v10116_v25  ;;  %v10181_v62 = vmul.f32 %v5823_v15, %v10119_v32  ;;  %v5910_v29 = vmul.f32 %v5908_v3, %v10066_v2  ;;  %v10980_v58 = vld [vmem:[#allocation21_spill] sm:$0xff] }
 0x5d1   :  { %v5911_v51 = vmul.f32 %v5908_v3, %v10069_v21  ;;  %v10185_v46 = vadd.f32 %v5397_v36, %v5388_v24  ;;  %v5482_v55 = vmul.f32 %v10973_v47, %v10066_v2  ;;  %v5483_v33 = vmul.f32 %v10973_v47, %v10069_v21  ;;  %v10983_v47 = vld [vmem:[#allocation35_spill] sm:$0xff] }
 0x5d2   :  { %v10187_v28 = vadd.f32 %v5398_v27, %v5389_v0  ;;  %v5473_v30 = vadd.f32 %v5471_v9, %v5462_v61  ;;  %v5474_v11 = vadd.f32 %v5472_v14, %v5463_v35  ;;  %v5534_v49 = vmul.f32 %v10974_v60, %v9902_v40  ;;  %v10982_v0 = vld [vmem:[#allocation23_spill] sm:$0xff] }
 0x5d3   :  { %v5535_v8 = vmul.f32 %v10974_v60, %v10975_v7  ;;  %v5493_v45 = vmul.f32 %v10976_v56, %v10082_v48  ;;  %v5494_v53 = vmul.f32 %v10976_v56, %v10085_v19  ;;  %v5545_v54 = vmul.f32 %v10977_v38, %v9925_v42 }
 0x5d4   :  { %v5546_v52 = vmul.f32 %v10977_v38, %v9928_v4  ;;  %v5536_v57 = vadd.f32 %v5534_v49, %v10978_v18  ;;  %v5556_v3 = vmul.f32 %v10980_v58, %v9970_v23  ;;  %v5557_v31 = vmul.f32 %v10980_v58, %v9973_v43  ;;  %v10988_v49 = vld [vmem:[#allocation29_spill] sm:$0xff] }
 0x5d5   :  { %v5537_v10 = vadd.f32 %v5535_v8, %v10979_v26  ;;  %v10212_v20 = vadd.f32 %v5910_v29, %v10107_v6  ;;  %v10215_v15 = vadd.f32 %v5911_v51, %v10109_v39  ;;  %v10218_v17 = vmul.f32 %v5919_v12, %v10082_v48  ;;  %v10981_v6 = vld [vmem:[#allocation18_spill] sm:$0xff] }
 0x5d6   :  { %v10221_v13 = vmul.f32 %v5919_v12, %v10085_v19  ;;  %v5484_v37 = vadd.f32 %v5482_v55, %v5473_v30  ;;  %v5485_v36 = vadd.f32 %v5483_v33, %v5474_v11  ;;  %v5547_v27 = vadd.f32 %v5545_v54, %v5536_v57  ;;  %v10986_v12 = vld [vmem:[#allocation38_spill] sm:$0xff]  ;;  %v10990_v54 = vld [vmem:[#allocation28_spill] sm:$0xff] }
 0x5d7   :  { %v5548_v16 = vadd.f32 %v5546_v52, %v5537_v10  ;;  %v5403_v61 = vrot.slane %v10185_v46, 1  ;;  %v5404_v22 = vrot.slane %v10187_v28, 1  ;;  %v5504_v35 = vmul.f32 %v10981_v6, %v10116_v25  ;;  %v10984_v46 = vld [vmem:[#allocation26_spill] sm:$0xff]  ;;  %v10985_v28 = vld [vmem:[#allocation36_spill] sm:$0xff] }
 0x5d8   :  { %v5505_v39 = vmul.f32 %v10981_v6, %v10119_v32  ;;  %v5495_v34 = vadd.f32 %v5493_v45, %v5484_v37  ;;  %v5496_v9 = vadd.f32 %v5494_v53, %v5485_v36  ;;  %v5558_v14 = vadd.f32 %v5556_v3, %v5547_v27  ;;  %v10987_v11 = vld [vmem:[#allocation42_spill] sm:$0xff]  ;;  %v10989_v45 = vld [vmem:[#allocation25_spill] sm:$0xff]  ;;  %v10993_v6 = vld [vmem:[#allocation27_spill] sm:$0xff] }
 0x5d9   :  { %v5559_v24 = vadd.f32 %v5557_v31, %v5548_v16  ;;  %v5578_v29 = vmul.f32 %v10982_v0, %v10020_v5  ;;  %v5579_v51 = vmul.f32 %v10982_v0, %v10023_v44  ;;  %v5632_v55 = vmul.f32 %v10984_v46, %v10983_v47  ;;  %v10991_v10 = vld [vmem:[#allocation30_spill] sm:$0xff]  ;;  %v10992_v31 = vld [vmem:[#allocation24_spill] sm:$0xff] }
 0x5da   :  { %v5633_v33 = vmul.f32 %v10984_v46, %v10985_v28  ;;  %v5569_v30 = vadd.f32 %v10986_v12, %v5558_v14  ;;  %v5641_v8 = vmul.f32 %v10988_v49, %v9902_v40  ;;  %v5642_v56 = vmul.f32 %v10988_v49, %v10975_v7  ;;  %v10995_v47 = vld [vmem:[#allocation32_spill] sm:$0xff]  ;;  %v10998_v49 = vld [vmem:[#allocation33_spill] sm:$0xff] }
 0x5db   :  { %v5570_v60 = vadd.f32 %v10987_v11, %v5559_v24  ;;  %v5589_v53 = vmul.f32 %v10989_v45, %v10066_v2  ;;  %v5590_v38 = vmul.f32 %v10989_v45, %v10069_v21  ;;  %v5652_v52 = vmul.f32 %v10990_v54, %v9925_v42 }
 0x5dc   :  { %v5653_v18 = vmul.f32 %v10990_v54, %v9928_v4  ;;  %v5643_v57 = vadd.f32 %v5641_v8, %v5632_v55  ;;  %v5644_v26 = vadd.f32 %v5642_v56, %v5633_v33  ;;  %v5663_v40 = vmul.f32 %v10991_v10, %v9970_v23 }
 0x5dd   :  { %v5664_v7 = vmul.f32 %v10991_v10, %v9973_v43  ;;  %v5506_v58 = vadd.f32 %v5504_v35, %v5495_v34  ;;  %v5507_v3 = vadd.f32 %v5505_v39, %v5496_v9  ;;  %v5600_v37 = vmul.f32 %v10992_v31, %v10082_v48  ;;  %v10994_v43 = vld [vmem:[#allocation31_spill] sm:$0xff] }
 0x5de   :  { %v5601_v36 = vmul.f32 %v10992_v31, %v10085_v19  ;;  %v5580_v42 = vadd.f32 %v5578_v29, %v5569_v30  ;;  %v5581_v27 = vadd.f32 %v5579_v51, %v5570_v60  ;;  %v5654_v16 = vadd.f32 %v5652_v52, %v5643_v57  ;;  %v10997_v30 = vld [vmem:[#allocation43_spill] sm:$0xff] }
 0x5df   :  { %v5655_v4 = vadd.f32 %v5653_v18, %v5644_v26  ;;  %v5611_v14 = vmul.f32 %v10993_v6, %v10116_v25  ;;  %v5612_v23 = vmul.f32 %v10993_v6, %v10119_v32  ;;  %v5685_v35 = vmul.f32 %v10994_v43, %v10020_v5  ;;  %v10996_v5 = vld [vmem:[#allocation40_spill] sm:$0xff] }
 0x5e0   :  { %v5686_v39 = vmul.f32 %v10994_v43, %v10023_v44  ;;  %v5591_v34 = vadd.f32 %v5589_v53, %v5580_v42  ;;  %v5592_v9 = vadd.f32 %v5590_v38, %v5581_v27  ;;  %v5665_v24 = vadd.f32 %v5663_v40, %v5654_v16 }
 0x5e1   :  { %v5666_v0 = vadd.f32 %v5664_v7, %v5655_v4  ;;  %v5409_v29 = vadd.f32 %v5403_v61, %v10173_v63  ;;  %v5410_v51 = vadd.f32 %v5404_v22, %v10175_v50  ;;  %v5696_v46 = vmul.f32 %v10995_v47, %v10066_v2  ;;  %v5930_v50 = vpop.permute.xlu0 %5929 }
 0x5e2   :  { %v5697_v55 = vmul.f32 %v10995_v47, %v10069_v21  ;;  %v5602_v28 = vadd.f32 %v5600_v37, %v5591_v34  ;;  %v5603_v33 = vadd.f32 %v5601_v36, %v5592_v9  ;;  %v5676_v12 = vadd.f32 %v10996_v5, %v5665_v24  ;;  %v7023_v9 = vld [vmem:[%s10302_s0 + $0x8] sm:$0xff] }
 0x5e3   :  { %v5677_v44 = vadd.f32 %v10997_v30, %v5666_v0  ;;  %v5510_v11 = vrot.slane %v5506_v58, 5  ;;  %v5511_v60 = vrot.slane %v5507_v3, 5  ;;  %v5707_v8 = vmul.f32 %v10998_v49, %v10082_v48  ;;  %v10999_v48 = vld [vmem:[#allocation34_spill] sm:$0xff] }
 0x5e4   :  { %v5708_v63 = vmul.f32 %v10998_v49, %v10085_v19  ;;  %v5613_v61 = vadd.f32 %v5611_v14, %v5602_v28  ;;  %v5614_v2 = vadd.f32 %v5612_v23, %v5603_v33  ;;  %v5687_v22 = vadd.f32 %v5685_v35, %v5676_v12  ;;  %v5950_v23 = vpop.permute.xlu1 %5949 }
 0x5e5   :  { %v5688_v56 = vadd.f32 %v5686_v39, %v5677_v44  ;;  %v5923_v21 = vadd.f32 %v10218_v17, %v10212_v20  ;;  %v5924_v45 = vadd.f32 %v10221_v13, %v10215_v15  ;;  %v5516_v53 = vadd.f32 %v5510_v11, %v5409_v29  ;;  %v7022_v39 = vld [vmem:[%s10302_s0] sm:$0xff] }
 0x5e6   :  { %v5517_v38 = vadd.f32 %v5511_v60, %v5410_v51  ;;  %v5698_v54 = vadd.f32 %v5696_v46, %v5687_v22  ;;  %v5718_v18 = vmul.f32 %v10999_v48, %v10116_v25  ;;  %v5719_v19 = vmul.f32 %v10999_v48, %v10119_v32 }
 0x5e7   :  { %v5699_v52 = vadd.f32 %v5697_v55, %v5688_v56  ;;  %v5827_v57 = vadd.f32 %v10178_v1, %v10159_v41  ;;  %v5828_v26 = vadd.f32 %v10181_v62, %v10161_v59  ;;  %v5932_v20 = vmul.f32 %v5930_v50, %v10116_v25 }
 0x5e8   :  { %v5933_v15 = vmul.f32 %v5930_v50, %v10119_v32  ;;  %v5617_v17 = vrot.slane %v5613_v61, 2  ;;  %v5618_v13 = vrot.slane %v5614_v2, 2  ;;  %v5709_v10 = vadd.f32 %v5707_v8, %v5698_v54 }
 0x5e9   :  { %v5710_v40 = vadd.f32 %v5708_v63, %v5699_v52  ;;  %v5934_v7 = vadd.f32 %v5932_v20, %v5923_v21  ;;  %v5831_v42 = vrot.slane %v5827_v57, 3  ;;  %v5832_v27 = vrot.slane %v5828_v26, 3 }
 0x5ea   :  { %v5935_v58 = vadd.f32 %v5933_v15, %v5924_v45  ;;  %v5623_v3 = vadd.f32 %v5617_v17, %v5516_v53  ;;  %v5624_v31 = vadd.f32 %v5618_v13, %v5517_v38  ;;  %v5720_v37 = vadd.f32 %v5718_v18, %v5709_v10 }
 0x5eb   :  { %v5721_v36 = vadd.f32 %v5719_v19, %v5710_v40  ;;  %v5938_v62 = vrot.slane %v5934_v7, 7 }
 0x5ec   :  { %v5724_v41 = vrot.slane %v5720_v37, 6  ;;  %v5939_v25 = vrot.slane %v5935_v58, 7 }
 0x5ed   :  { %v5725_v1 = vrot.slane %v5721_v36, 6 }
 0x5ee   :  { %v5730_v16 = vadd.f32 %v5724_v41, %v5623_v3 }
 0x5ef   :  { %v5731_v59 = vadd.f32 %v5725_v1, %v5624_v31 }
 0x5f0   :  { %v5837_v4 = vadd.f32 %v5831_v42, %v5730_v16 }
 0x5f1   :  { %v5838_v32 = vadd.f32 %v5832_v27, %v5731_v59 }
 0x5f2   :  { %v5944_v6 = vadd.f32 %v5938_v62, %v5837_v4 }
 0x5f3   :  { %v5945_v14 = vadd.f32 %v5939_v25, %v5838_v32 }
 0x5f4   :  { %v5952_v43 = vadd.f32 %v5950_v23, %v5944_v6 }
 0x5f5   :  { %v5953_v35 = vadd.f32 %v5950_v23, %v5945_v14 }
 0x5f6   :  { %v5954_v34 = vadd.f32 %v7022_v39, %v5952_v43 }
 0x5f7   :  { %v5955_v24 = vadd.f32 %v7023_v9, %v5953_v35 }
 0x5f8   :  { %5956 = vst [vmem:[#allocation8] sm:$0xff] %v5954_v34 }
 0x5f9   :  { %5957 = vst [vmem:[#allocation8 + $0x8] sm:$0xff] %v5955_v24 }
 0x5fa   :  { %7095 = shalt.err (!%p7092_p5)
}
 0x5fb   :  { %5967 = dma.vmem_to_hbm [thread:$0]  %s5965_s6, 256, %s10314_s12, [#allocation4]  }
 0x5fc   :  { %7108 = dma.done.wait [#allocation4], 256  }
 0x5fd   :  { %7109 = vsyncadd [#allocation4], 4294967040 }
 0x5fe   :  { %5971 = vsyncpa [#allocation3], 1 }
 0x5ff   :  { %5972 = vsyncpa [#allocation6], 1 }
 0x600   :  { %5973 = vsyncpa [#allocation4], 1 }

</bundles_post_ra>
